<compile_context>
chip_gen: v7x
topology: tpu7x:2x2x1
jax: 0.10.0
libtpu: 0.0.40
codegen_flags: <defaults>
</compile_context>

<pallas_src>
import jax
import jax.numpy as jnp
import numpy as np
from jax import lax
from jax.experimental import pallas as pl
from jax.experimental.pallas import tpu as pltpu

# fc1 = Linear(32*16*16, 64) implies 32x32 spatial input (pool halves it to 16x16).
H = W = 32
CIN = 3
COUT = 32
KH = KW = 3
PH, PW = H // 2, W // 2              # 16, 16
NPOOL = PH * PW                      # 256
FEAT = COUT * NPOOL                  # 8192
HID = 64

PADW = W + 2                         # padded row width (row stride of the flat padded image)
PADH = H + 3                         # 1 top + 2 bottom zero rows (extra row keeps the last
                                     # shifted im2col slice in-bounds)
PADFLAT = PADH * PADW                # 1190
OUTFLAT = H * PADW                   # 1088: per-channel conv output incl. 2 junk cols per row


# ---------------- Pallas kernels ----------------

def conv_relu_pool_kernel(x_ref, w_ref, b_ref, s_ref, o_ref, col_ref):
    """Fused conv3x3(pad=1) + bias + ReLU + maxpool2x2 for a batch tile, channel-major.

    x_ref:   (TB, CIN, PADFLAT)   flattened zero-padded NCHW input tile
    w_ref:   (COUT, 9*CIN)        conv weight, tap-major / channel-minor, pre-scaled by 1/255
    b_ref:   (COUT, 1)            conv bias
    s_ref:   (OUTFLAT, 4*NPOOL)   constant 0/1 pool-selection matrix (4 phases of the 2x2 window)
    o_ref:   (TB, COUT, NPOOL)    pooled activations, already in NCHW-flatten order
    col_ref: (9*CIN, OUTFLAT)     VMEM scratch holding the im2col matmul operand
    """
    tb = x_ref.shape[0]
    for b in range(tb):
        # im2col: 9 shifted lane-slices of the flat padded image -> one K=27 operand.
        for t in range(KH * KW):
            ky, kx = t // KW, t % KW
            start = ky * PADW + kx
            col_ref[t * CIN:(t + 1) * CIN, :] = x_ref[b, :, start:start + OUTFLAT]
        # Conv as a single (COUT, 27) @ (27, OUTFLAT) matmul -> lane-dense (32, 1088).
        acc = jnp.dot(w_ref[...], col_ref[...], preferred_element_type=jnp.float32)
        # 2x2 max-pool + crop: gather the four window phases with one constant selection
        # matmul, then take the elementwise max of the four 256-wide (128-aligned) slices.
        phases = jnp.dot(acc, s_ref[...], preferred_element_type=jnp.float32)
        pooled = jnp.maximum(
            jnp.maximum(phases[:, 0 * NPOOL:1 * NPOOL], phases[:, 1 * NPOOL:2 * NPOOL]),
            jnp.maximum(phases[:, 2 * NPOOL:3 * NPOOL], phases[:, 3 * NPOOL:4 * NPOOL]))
        # Bias is constant across the 4 phases and ReLU is monotone, so both commute with the
        # pooling max -> apply them once on the pooled (32, 256) tile.
        o_ref[b] = jnp.maximum(pooled + b_ref[...], 0.0)


def mlp_head_kernel(x_ref, w1_ref, b1_ref, w2_ref, b2_ref, o_ref):
    """Fused fc1 + ReLU + fc2 + sigmoid for one batch tile.

    x_ref: (TBM, FEAT), w1_ref: (FEAT, HID), b1_ref: (1, HID),
    w2_ref: (HID, 1), b2_ref: (1, 1), o_ref: (TBM, 1)
    """
    h = jnp.dot(x_ref[...], w1_ref[...], preferred_element_type=jnp.float32)
    h = jnp.maximum(h + b1_ref[...], 0.0)
    y = jnp.dot(h, w2_ref[...], preferred_element_type=jnp.float32) + b2_ref[...]
    o_ref[...] = jax.nn.sigmoid(y)


# ---------------- constants / helpers ----------------

def _pool_selection_matrix():
    """S[f, phase*NPOOL + j] = 1 iff flat conv position f = (2py+dy)*PADW + (2px+dx), j = py*PW+px."""
    s = np.zeros((OUTFLAT, 4 * NPOOL), np.float32)
    py, px = np.meshgrid(np.arange(PH), np.arange(PW), indexing="ij")
    j = (py * PW + px).ravel()
    for phase, (dy, dx) in enumerate(((0, 0), (0, 1), (1, 0), (1, 1))):
        f = ((2 * py + dy) * PADW + (2 * px + dx)).ravel()
        s[f, phase * NPOOL + j] = 1.0
    return jnp.asarray(s)


_POOL_SELECT = _pool_selection_matrix()


def _conv_batch_tile(batch, cap=8):
    """Largest batch tile <= cap that still leaves >= 2 grid steps (keeps both v7x TCs busy)."""
    best = 1
    for t in range(1, min(cap, batch) + 1):
        if batch % t == 0 and batch // t >= 2:
            best = t
    return best


def _mlp_batch_tile(batch, cap=16):
    if batch <= cap:
        return batch
    best = 1
    for t in range(1, cap + 1):
        if batch % t == 0:
            best = t
    return best


# ---------------- wrapper ----------------

def simple_cnn_forward(x_nchw, params):
    """SimpleCNN forward.  x_nchw: (B, 3, 32, 32) pixel-valued; params in PyTorch layouts."""
    B = x_nchw.shape[0]
    assert x_nchw.shape[1:] == (CIN, H, W), x_nchw.shape

    x = x_nchw.astype(jnp.float32)
    # conv padding=1 (plus extra zero rows so every shifted im2col slice stays in-bounds),
    # then flatten the spatial dims: a free row-major reshape.
    xp = jnp.pad(x, ((0, 0), (0, 0), (1, PADH - H - 1), (1, PADW - W - 1)))
    xp = xp.reshape(B, CIN, PADFLAT)

    # Fold x/255 into the conv weight (exact); reorder OIHW -> (COUT, (ky,kx,c)).
    w_conv = (jnp.transpose(params["conv_w"], (0, 2, 3, 1)).reshape(COUT, KH * KW * CIN)
              * (1.0 / 255.0))
    b_conv = params["conv_b"].reshape(COUT, 1)

    tb = _conv_batch_tile(B)
    conv_out = pl.pallas_call(
        conv_relu_pool_kernel,
        out_shape=jax.ShapeDtypeStruct((B, COUT, NPOOL), jnp.float32),
        grid_spec=pltpu.PrefetchScalarGridSpec(
            num_scalar_prefetch=0,
            grid=(B // tb,),
            in_specs=[
                pl.BlockSpec((tb, CIN, PADFLAT), lambda i: (i, 0, 0)),
                pl.BlockSpec((COUT, KH * KW * CIN), lambda i: (0, 0)),
                pl.BlockSpec((COUT, 1), lambda i: (0, 0)),
                pl.BlockSpec((OUTFLAT, 4 * NPOOL), lambda i: (0, 0)),
            ],
            out_specs=pl.BlockSpec((tb, COUT, NPOOL), lambda i: (i, 0, 0)),
            scratch_shapes=[pltpu.VMEM((KH * KW * CIN, OUTFLAT), jnp.float32)],
        ),
        compiler_params=pltpu.CompilerParams(dimension_semantics=("parallel",)),
    )(xp, w_conv, b_conv, _POOL_SELECT)

    # (B, COUT, PH*PW) is already the torch NCHW flatten order -> free reshape, no transpose.
    feat = conv_out.reshape(B, FEAT)

    w1 = params["fc1_w"].T                    # (FEAT, HID)
    b1 = params["fc1_b"].reshape(1, HID)
    w2 = params["fc2_w"].T                    # (HID, 1)
    b2 = params["fc2_b"].reshape(1, 1)
    # TODO(synk): on v6e/v7x, cast w1 (and conv operands) to bfloat16 with f32 accumulation to
    # halve the fc1 HBM traffic; kept f32 here so the 1e-4 self-check stays tight.

    tbm = _mlp_batch_tile(B)
    out = pl.pallas_call(
        mlp_head_kernel,
        out_shape=jax.ShapeDtypeStruct((B, 1), jnp.float32),
        grid_spec=pltpu.PrefetchScalarGridSpec(
            num_scalar_prefetch=0,
            grid=(B // tbm,),
            in_specs=[
                pl.BlockSpec((tbm, FEAT), lambda i: (i, 0)),
                pl.BlockSpec((FEAT, HID), lambda i: (0, 0)),
                pl.BlockSpec((1, HID), lambda i: (0, 0)),
                pl.BlockSpec((HID, 1), lambda i: (0, 0)),
                pl.BlockSpec((1, 1), lambda i: (0, 0)),
            ],
            out_specs=pl.BlockSpec((tbm, 1), lambda i: (i, 0)),
        ),
        compiler_params=pltpu.CompilerParams(dimension_semantics=("parallel",)),
    )(feat, w1, b1, w2, b2)
    return out


# ---------------- pure-JAX reference (self-check) ----------------

def reference_forward(x_nchw, params):
    B = x_nchw.shape[0]
    x = x_nchw.astype(jnp.float32) / 255.0
    y = lax.conv_general_dilated(
        x, params["conv_w"], window_strides=(1, 1), padding="SAME",
        dimension_numbers=("NCHW", "OIHW", "NCHW"))
    y = jax.nn.relu(y + params["conv_b"].reshape(1, COUT, 1, 1))
    y = lax.reduce_window(y, -jnp.inf, lax.max, (1, 1, 2, 2), (1, 1, 2, 2), "VALID")
    feat = y.reshape(B, FEAT)
    h = jax.nn.relu(feat @ params["fc1_w"].T + params["fc1_b"])
    return jax.nn.sigmoid(h @ params["fc2_w"].T + params["fc2_b"])


if __name__ == "__main__":
    key = jax.random.PRNGKey(0)
    k1, k2, k3, kx = jax.random.split(key, 4)
    # Deterministic synthetic parameters, stored in the PyTorch layouts of SimpleCNN.__init__.
    params = {
        "conv_w": jax.random.normal(k1, (COUT, CIN, KH, KW), jnp.float32) * 0.1,   # OIHW
        "conv_b": jnp.linspace(-0.1, 0.1, COUT, dtype=jnp.float32),
        "fc1_w": jax.random.normal(k2, (HID, FEAT), jnp.float32) * 0.02,           # (out, in)
        "fc1_b": jnp.linspace(-0.05, 0.05, HID, dtype=jnp.float32),
        "fc2_w": jax.random.normal(k3, (1, HID), jnp.float32) * 0.1,               # (out, in)
        "fc2_b": jnp.array([0.01], jnp.float32),
    }
    # Input follows the PyTorch NCHW convention, pixel-valued (the model divides by 255).
    x = jax.random.uniform(kx, (2, CIN, H, W), jnp.float32, 0.0, 255.0)

    out = jax.block_until_ready(jax.jit(simple_cnn_forward)(x, params))
    ref = jax.block_until_ready(reference_forward(x, params))

    assert out.shape == (2, 1), out.shape
    assert jnp.allclose(out, ref, rtol=1e-4, atol=1e-4), (out, ref)
    print("KERNEL_OK")
</pallas_src>

<mosaic_0001>
module attributes {stable_mosaic.version = 11 : i64} {
  func.func @conv_relu_pool_kernel(%arg0: i32, %arg1: memref<1x3x1190xf32, #tpu.memory_space<vmem>>, %arg2: memref<32x27xf32, #tpu.memory_space<vmem>>, %arg3: memref<32x1xf32, #tpu.memory_space<vmem>>, %arg4: memref<1088x1024xf32, #tpu.memory_space<vmem>>, %arg5: memref<1x32x256xf32, #tpu.memory_space<vmem>>, %arg6: memref<27x1088xf32, #tpu.memory_space<vmem>>) attributes {dimension_semantics = [#tpu.dimension_semantics<parallel>], iteration_bounds = array<i64: 2>, scalar_prefetch = 0 : i64, scratch_operands = 1 : i64, tpu.core_type = #tpu.core_type<tc>, window_params = [{transform_indices = @transform_0, window_bounds = array<i64: 1, 3, 1190>}, {pipeline_mode = #tpu.pipeline_mode<synchronous>, transform_indices = @transform_1, window_bounds = array<i64: 32, 27>}, {pipeline_mode = #tpu.pipeline_mode<synchronous>, transform_indices = @transform_2, window_bounds = array<i64: 32, 1>}, {pipeline_mode = #tpu.pipeline_mode<synchronous>, transform_indices = @transform_3, window_bounds = array<i64: 1088, 1024>}, {transform_indices = @transform_4, window_bounds = array<i64: 1, 32, 256>}]} {
    %c0 = arith.constant 0 : index
    %c0_0 = arith.constant 0 : index
    %c0_1 = arith.constant 0 : index
    %0 = vector.load %arg1[%c0, %c0_0, %c0_1] : memref<1x3x1190xf32, #tpu.memory_space<vmem>>, vector<1x3x1088xf32>
    %1 = vector.shape_cast %0 : vector<1x3x1088xf32> to vector<3x1088xf32>
    %c0_2 = arith.constant 0 : index
    %c0_3 = arith.constant 0 : index
    %2 = vector.load %arg6[%c0_2, %c0_3] : memref<27x1088xf32, #tpu.memory_space<vmem>>, vector<3x1088xf32>
    tpu.vector_store %arg6[%c0_2, %c0_3], %1 {strides = array<i32>} : memref<27x1088xf32, #tpu.memory_space<vmem>>, vector<3x1088xf32>,
    %c0_4 = arith.constant 0 : index
    %c0_5 = arith.constant 0 : index
    %c1 = arith.constant 1 : index
    %3 = vector.load %arg1[%c0_4, %c0_5, %c1] : memref<1x3x1190xf32, #tpu.memory_space<vmem>>, vector<1x3x1088xf32>
    %4 = vector.shape_cast %3 : vector<1x3x1088xf32> to vector<3x1088xf32>
    %c3 = arith.constant 3 : index
    %c0_6 = arith.constant 0 : index
    %5 = vector.load %arg6[%c3, %c0_6] : memref<27x1088xf32, #tpu.memory_space<vmem>>, vector<3x1088xf32>
    tpu.vector_store %arg6[%c3, %c0_6], %4 {strides = array<i32>} : memref<27x1088xf32, #tpu.memory_space<vmem>>, vector<3x1088xf32>,
    %c0_7 = arith.constant 0 : index
    %c0_8 = arith.constant 0 : index
    %c2 = arith.constant 2 : index
    %6 = vector.load %arg1[%c0_7, %c0_8, %c2] : memref<1x3x1190xf32, #tpu.memory_space<vmem>>, vector<1x3x1088xf32>
    %7 = vector.shape_cast %6 : vector<1x3x1088xf32> to vector<3x1088xf32>
    %c6 = arith.constant 6 : index
    %c0_9 = arith.constant 0 : index
    %8 = vector.load %arg6[%c6, %c0_9] : memref<27x1088xf32, #tpu.memory_space<vmem>>, vector<3x1088xf32>
    tpu.vector_store %arg6[%c6, %c0_9], %7 {strides = array<i32>} : memref<27x1088xf32, #tpu.memory_space<vmem>>, vector<3x1088xf32>,
    %c0_10 = arith.constant 0 : index
    %c0_11 = arith.constant 0 : index
    %c34 = arith.constant 34 : index
    %9 = vector.load %arg1[%c0_10, %c0_11, %c34] : memref<1x3x1190xf32, #tpu.memory_space<vmem>>, vector<1x3x1088xf32>
    %10 = vector.shape_cast %9 : vector<1x3x1088xf32> to vector<3x1088xf32>
    %c9 = arith.constant 9 : index
    %c0_12 = arith.constant 0 : index
    %11 = vector.load %arg6[%c9, %c0_12] : memref<27x1088xf32, #tpu.memory_space<vmem>>, vector<3x1088xf32>
    tpu.vector_store %arg6[%c9, %c0_12], %10 {strides = array<i32>} : memref<27x1088xf32, #tpu.memory_space<vmem>>, vector<3x1088xf32>,
    %c0_13 = arith.constant 0 : index
    %c0_14 = arith.constant 0 : index
    %c35 = arith.constant 35 : index
    %12 = vector.load %arg1[%c0_13, %c0_14, %c35] : memref<1x3x1190xf32, #tpu.memory_space<vmem>>, vector<1x3x1088xf32>
    %13 = vector.shape_cast %12 : vector<1x3x1088xf32> to vector<3x1088xf32>
    %c12 = arith.constant 12 : index
    %c0_15 = arith.constant 0 : index
    %14 = vector.load %arg6[%c12, %c0_15] : memref<27x1088xf32, #tpu.memory_space<vmem>>, vector<3x1088xf32>
    tpu.vector_store %arg6[%c12, %c0_15], %13 {strides = array<i32>} : memref<27x1088xf32, #tpu.memory_space<vmem>>, vector<3x1088xf32>,
    %c0_16 = arith.constant 0 : index
    %c0_17 = arith.constant 0 : index
    %c36 = arith.constant 36 : index
    %15 = vector.load %arg1[%c0_16, %c0_17, %c36] : memref<1x3x1190xf32, #tpu.memory_space<vmem>>, vector<1x3x1088xf32>
    %16 = vector.shape_cast %15 : vector<1x3x1088xf32> to vector<3x1088xf32>
    %c15 = arith.constant 15 : index
    %c0_18 = arith.constant 0 : index
    %17 = vector.load %arg6[%c15, %c0_18] : memref<27x1088xf32, #tpu.memory_space<vmem>>, vector<3x1088xf32>
    tpu.vector_store %arg6[%c15, %c0_18], %16 {strides = array<i32>} : memref<27x1088xf32, #tpu.memory_space<vmem>>, vector<3x1088xf32>,
    %c0_19 = arith.constant 0 : index
    %c0_20 = arith.constant 0 : index
    %c68 = arith.constant 68 : index
    %18 = vector.load %arg1[%c0_19, %c0_20, %c68] : memref<1x3x1190xf32, #tpu.memory_space<vmem>>, vector<1x3x1088xf32>
    %19 = vector.shape_cast %18 : vector<1x3x1088xf32> to vector<3x1088xf32>
    %c18 = arith.constant 18 : index
    %c0_21 = arith.constant 0 : index
    %20 = vector.load %arg6[%c18, %c0_21] : memref<27x1088xf32, #tpu.memory_space<vmem>>, vector<3x1088xf32>
    tpu.vector_store %arg6[%c18, %c0_21], %19 {strides = array<i32>} : memref<27x1088xf32, #tpu.memory_space<vmem>>, vector<3x1088xf32>,
    %c0_22 = arith.constant 0 : index
    %c0_23 = arith.constant 0 : index
    %c69 = arith.constant 69 : index
    %21 = vector.load %arg1[%c0_22, %c0_23, %c69] : memref<1x3x1190xf32, #tpu.memory_space<vmem>>, vector<1x3x1088xf32>
    %22 = vector.shape_cast %21 : vector<1x3x1088xf32> to vector<3x1088xf32>
    %c21 = arith.constant 21 : index
    %c0_24 = arith.constant 0 : index
    %23 = vector.load %arg6[%c21, %c0_24] : memref<27x1088xf32, #tpu.memory_space<vmem>>, vector<3x1088xf32>
    tpu.vector_store %arg6[%c21, %c0_24], %22 {strides = array<i32>} : memref<27x1088xf32, #tpu.memory_space<vmem>>, vector<3x1088xf32>,
    %c0_25 = arith.constant 0 : index
    %c0_26 = arith.constant 0 : index
    %c70 = arith.constant 70 : index
    %24 = vector.load %arg1[%c0_25, %c0_26, %c70] : memref<1x3x1190xf32, #tpu.memory_space<vmem>>, vector<1x3x1088xf32>
    %25 = vector.shape_cast %24 : vector<1x3x1088xf32> to vector<3x1088xf32>
    %c24 = arith.constant 24 : index
    %c0_27 = arith.constant 0 : index
    %26 = vector.load %arg6[%c24, %c0_27] : memref<27x1088xf32, #tpu.memory_space<vmem>>, vector<3x1088xf32>
    tpu.vector_store %arg6[%c24, %c0_27], %25 {strides = array<i32>} : memref<27x1088xf32, #tpu.memory_space<vmem>>, vector<3x1088xf32>,
    %c0_28 = arith.constant 0 : index
    %c0_29 = arith.constant 0 : index
    %27 = vector.load %arg2[%c0_28, %c0_29] : memref<32x27xf32, #tpu.memory_space<vmem>>, vector<32x27xf32>
    %c0_30 = arith.constant 0 : index
    %c0_31 = arith.constant 0 : index
    %28 = vector.load %arg6[%c0_30, %c0_31] : memref<27x1088xf32, #tpu.memory_space<vmem>>, vector<27x1088xf32>
    %cst = arith.constant dense<0.000000e+00> : vector<32x1088xf32>
    %29 = tpu.matmul %27, %28, %cst {dimension_numbers = #tpu.dot_dimension_numbers<[1], [0], [0], [1], [0, 0, 1, 1], [], []>} : vector<32x27xf32>, vector<27x1088xf32>, vector<32x1088xf32> -> vector<32x1088xf32>
    %c0_32 = arith.constant 0 : index
    %c0_33 = arith.constant 0 : index
    %30 = vector.load %arg4[%c0_32, %c0_33] : memref<1088x1024xf32, #tpu.memory_space<vmem>>, vector<1088x1024xf32>
    %cst_34 = arith.constant dense<0.000000e+00> : vector<32x1024xf32>
    %31 = tpu.matmul %29, %30, %cst_34 {dimension_numbers = #tpu.dot_dimension_numbers<[1], [0], [0], [1], [0, 0, 1, 1], [], []>} : vector<32x1088xf32>, vector<1088x1024xf32>, vector<32x1024xf32> -> vector<32x1024xf32>
    %32 = vector.extract_strided_slice %31 {offsets = [0, 0], sizes = [32, 256], strides = [1, 1]} : vector<32x1024xf32> to vector<32x256xf32>
    %33 = vector.extract_strided_slice %31 {offsets = [0, 256], sizes = [32, 256], strides = [1, 1]} : vector<32x1024xf32> to vector<32x256xf32>
    %34 = arith.maximumf %32, %33 : vector<32x256xf32>
    %35 = vector.extract_strided_slice %31 {offsets = [0, 512], sizes = [32, 256], strides = [1, 1]} : vector<32x1024xf32> to vector<32x256xf32>
    %36 = vector.extract_strided_slice %31 {offsets = [0, 768], sizes = [32, 256], strides = [1, 1]} : vector<32x1024xf32> to vector<32x256xf32>
    %37 = arith.maximumf %35, %36 : vector<32x256xf32>
    %38 = arith.maximumf %34, %37 : vector<32x256xf32>
    %c0_35 = arith.constant 0 : index
    %c0_36 = arith.constant 0 : index
    %39 = vector.load %arg3[%c0_35, %c0_36] : memref<32x1xf32, #tpu.memory_space<vmem>>, vector<32x1xf32>
    %40 = vector.broadcast %39 : vector<32x1xf32> to vector<32x256xf32>
    %41 = arith.addf %38, %40 : vector<32x256xf32>
    %cst_37 = arith.constant 0.000000e+00 : f32
    %42 = vector.broadcast %cst_37 : f32 to vector<32x256xf32>
    %43 = arith.maximumf %41, %42 : vector<32x256xf32>
    %c0_38 = arith.constant 0 : index
    %c0_39 = arith.constant 0 : index
    %c0_40 = arith.constant 0 : index
    %44 = vector.load %arg5[%c0_38, %c0_39, %c0_40] : memref<1x32x256xf32, #tpu.memory_space<vmem>>, vector<1x32x256xf32>
    %45 = vector.shape_cast %44 : vector<1x32x256xf32> to vector<32x256xf32>
    %46 = vector.shape_cast %43 : vector<32x256xf32> to vector<1x32x256xf32>
    tpu.vector_store %arg5[%c0_38, %c0_39, %c0_40], %46 {strides = array<i32>} : memref<1x32x256xf32, #tpu.memory_space<vmem>>, vector<1x32x256xf32>,
    return
  }
  func.func @transform_0(%arg0: i32) -> (i32, i32, i32) {
    %c0_i32 = arith.constant 0 : i32
    %c0_i32_0 = arith.constant 0 : i32
    %c0_i32_1 = arith.constant 0 : i32
    return %arg0, %c0_i32, %c0_i32_0 : i32, i32, i32
  }
  func.func @transform_1(%arg0: i32) -> (i32, i32) {
    %c0_i32 = arith.constant 0 : i32
    %c0_i32_0 = arith.constant 0 : i32
    %c0_i32_1 = arith.constant 0 : i32
    return %c0_i32, %c0_i32_0 : i32, i32
  }
  func.func @transform_2(%arg0: i32) -> (i32, i32) {
    %c0_i32 = arith.constant 0 : i32
    %c0_i32_0 = arith.constant 0 : i32
    %c0_i32_1 = arith.constant 0 : i32
    return %c0_i32, %c0_i32_0 : i32, i32
  }
  func.func @transform_3(%arg0: i32) -> (i32, i32) {
    %c0_i32 = arith.constant 0 : i32
    %c0_i32_0 = arith.constant 0 : i32
    %c0_i32_1 = arith.constant 0 : i32
    return %c0_i32, %c0_i32_0 : i32, i32
  }
  func.func @transform_4(%arg0: i32) -> (i32, i32, i32) {
    %c0_i32 = arith.constant 0 : i32
    %c0_i32_0 = arith.constant 0 : i32
    %c0_i32_1 = arith.constant 0 : i32
    return %arg0, %c0_i32, %c0_i32_0 : i32, i32, i32
  }
}

module attributes {stable_mosaic.version = 11 : i64} {
  func.func @mlp_head_kernel(%arg0: i32, %arg1: memref<2x8192xf32, #tpu.memory_space<vmem>>, %arg2: memref<8192x64xf32, #tpu.memory_space<vmem>>, %arg3: memref<1x64xf32, #tpu.memory_space<vmem>>, %arg4: memref<64x1xf32, #tpu.memory_space<vmem>>, %arg5: memref<1x1xf32, #tpu.memory_space<vmem>>, %arg6: memref<2x1xf32, #tpu.memory_space<vmem>>) attributes {dimension_semantics = [#tpu.dimension_semantics<parallel>], iteration_bounds = array<i64: 1>, scalar_prefetch = 0 : i64, scratch_operands = 0 : i64, tpu.core_type = #tpu.core_type<tc>, window_params = [{transform_indices = @transform_0, window_bounds = array<i64: 2, 8192>}, {pipeline_mode = #tpu.pipeline_mode<synchronous>, transform_indices = @transform_1, window_bounds = array<i64: 8192, 64>}, {pipeline_mode = #tpu.pipeline_mode<synchronous>, transform_indices = @transform_2, window_bounds = array<i64: 1, 64>}, {pipeline_mode = #tpu.pipeline_mode<synchronous>, transform_indices = @transform_3, window_bounds = array<i64: 64, 1>}, {pipeline_mode = #tpu.pipeline_mode<synchronous>, transform_indices = @transform_4, window_bounds = array<i64: 1, 1>}, {transform_indices = @transform_5, window_bounds = array<i64: 2, 1>}]} {
    %c0 = arith.constant 0 : index
    %c0_0 = arith.constant 0 : index
    %0 = vector.load %arg1[%c0, %c0_0] : memref<2x8192xf32, #tpu.memory_space<vmem>>, vector<2x8192xf32>
    %c0_1 = arith.constant 0 : index
    %c0_2 = arith.constant 0 : index
    %1 = vector.load %arg2[%c0_1, %c0_2] : memref<8192x64xf32, #tpu.memory_space<vmem>>, vector<8192x64xf32>
    %cst = arith.constant dense<0.000000e+00> : vector<2x64xf32>
    %2 = tpu.matmul %0, %1, %cst {dimension_numbers = #tpu.dot_dimension_numbers<[1], [0], [0], [1], [0, 0, 1, 1], [], []>} : vector<2x8192xf32>, vector<8192x64xf32>, vector<2x64xf32> -> vector<2x64xf32>
    %c0_3 = arith.constant 0 : index
    %c0_4 = arith.constant 0 : index
    %3 = vector.load %arg3[%c0_3, %c0_4] : memref<1x64xf32, #tpu.memory_space<vmem>>, vector<1x64xf32>
    %4 = vector.broadcast %3 : vector<1x64xf32> to vector<2x64xf32>
    %5 = arith.addf %2, %4 : vector<2x64xf32>
    %cst_5 = arith.constant 0.000000e+00 : f32
    %6 = vector.broadcast %cst_5 : f32 to vector<2x64xf32>
    %7 = arith.maximumf %5, %6 : vector<2x64xf32>
    %c0_6 = arith.constant 0 : index
    %c0_7 = arith.constant 0 : index
    %8 = vector.load %arg4[%c0_6, %c0_7] : memref<64x1xf32, #tpu.memory_space<vmem>>, vector<64x1xf32>
    %cst_8 = arith.constant dense<0.000000e+00> : vector<2x1xf32>
    %9 = tpu.matmul %7, %8, %cst_8 {dimension_numbers = #tpu.dot_dimension_numbers<[1], [0], [0], [1], [0, 0, 1, 1], [], []>} : vector<2x64xf32>, vector<64x1xf32>, vector<2x1xf32> -> vector<2x1xf32>
    %c0_9 = arith.constant 0 : index
    %c0_10 = arith.constant 0 : index
    %10 = vector.load %arg5[%c0_9, %c0_10] : memref<1x1xf32, #tpu.memory_space<vmem>>, vector<1x1xf32>
    %11 = vector.broadcast %10 : vector<1x1xf32> to vector<2x1xf32>
    %12 = arith.addf %9, %11 : vector<2x1xf32>
    %13 = arith.negf %12 : vector<2x1xf32>
    %14 = math.exp %13 : vector<2x1xf32>
    %cst_11 = arith.constant 1.000000e+00 : f32
    %15 = vector.broadcast %cst_11 : f32 to vector<2x1xf32>
    %16 = arith.addf %15, %14 : vector<2x1xf32>
    %17 = arith.divf %15, %16 : vector<2x1xf32>
    %c0_12 = arith.constant 0 : index
    %c0_13 = arith.constant 0 : index
    %18 = vector.load %arg6[%c0_12, %c0_13] : memref<2x1xf32, #tpu.memory_space<vmem>>, vector<2x1xf32>
    tpu.vector_store %arg6[%c0_12, %c0_13], %17 {strides = array<i32>} : memref<2x1xf32, #tpu.memory_space<vmem>>, vector<2x1xf32>,
    return
  }
  func.func @transform_0(%arg0: i32) -> (i32, i32) {
    %c0_i32 = arith.constant 0 : i32
    %c0_i32_0 = arith.constant 0 : i32
    return %arg0, %c0_i32 : i32, i32
  }
  func.func @transform_1(%arg0: i32) -> (i32, i32) {
    %c0_i32 = arith.constant 0 : i32
    %c0_i32_0 = arith.constant 0 : i32
    %c0_i32_1 = arith.constant 0 : i32
    return %c0_i32, %c0_i32_0 : i32, i32
  }
  func.func @transform_2(%arg0: i32) -> (i32, i32) {
    %c0_i32 = arith.constant 0 : i32
    %c0_i32_0 = arith.constant 0 : i32
    %c0_i32_1 = arith.constant 0 : i32
    return %c0_i32, %c0_i32_0 : i32, i32
  }
  func.func @transform_3(%arg0: i32) -> (i32, i32) {
    %c0_i32 = arith.constant 0 : i32
    %c0_i32_0 = arith.constant 0 : i32
    %c0_i32_1 = arith.constant 0 : i32
    return %c0_i32, %c0_i32_0 : i32, i32
  }
  func.func @transform_4(%arg0: i32) -> (i32, i32) {
    %c0_i32 = arith.constant 0 : i32
    %c0_i32_0 = arith.constant 0 : i32
    %c0_i32_1 = arith.constant 0 : i32
    return %c0_i32, %c0_i32_0 : i32, i32
  }
  func.func @transform_5(%arg0: i32) -> (i32, i32) {
    %c0_i32 = arith.constant 0 : i32
    %c0_i32_0 = arith.constant 0 : i32
    return %arg0, %c0_i32 : i32, i32
  }
}

</mosaic_0001>

<bundles_post_ra>
// kernel: simple_cnn_forward.3
= control target key start
LH: loop header
LB: loop body
LE: loop exit
PB: predicated region body
PF: predicated region fallthrough
CT: control target
= control target key end

     0   :  { %v5975_v47 = vmov 1983009808   ;;  %v1089_v49 = vlaneseq  ;;  %vm5977_vm0 = vmmov 0   ;;  %vm3677_vm1 = vcmask 523264   ;;  %s9370_s1 = inlined_call_operand.vmem [shape: f32[8192,64], index: 1, kind: input, shape index: {}]   ;;  %s9371_s0 = inlined_call_operand.vmem [shape: f32[2,8192], index: 0, kind: input, shape index: {}]   ;;  %s9372_s2 = inlined_call_operand.vmem [shape: f32[1,64], index: 2, kind: input, shape index: {}]   ;;  %s9373_s3 = inlined_call_operand.vmem [shape: f32[64,1], index: 3, kind: input, shape index: {}]   ;;  %s9374_s4 = inlined_call_operand.<no memory space> [shape: f32[1,1], index: 4, kind: input, shape index: {}]   ;;  %s9375_s5 = inlined_call_operand.vmem [shape: f32[2,1], index: 5, kind: output, shape index: {}]  }
   0x1   :  { %v54_v0 = vld [vmem:[%s9370_s1 + $0x80] sm:$0xff]  ;;  %v55_v1 = vld [vmem:[%s9370_s1 + $0x88] sm:$0xff]  ;;  %v56_v11 = vld [vmem:[%s9370_s1 + $0x90] sm:$0xff]  ;;  %v1087_v48 = vunpack.c.l.s4 %v5975_v47  ;;  %vm3757_vm2 = vcmask 1024  }
   0x2   :  { %v38_v2 = vld [vmem:[%s9370_s1] sm:$0xff]  ;;  %v4915_v3 = vpack.c.bf16 %v55_v1, %v54_v0  ;;  %v39_v4 = vld [vmem:[%s9370_s1 + $0x8] sm:$0xff]  ;;  %v57_v13 = vld [vmem:[%s9370_s1 + $0x98] sm:$0xff]  ;;  %v1090_v0 = vshrl.u32 %v1089_v49, 7 }
   0x3   :  { %v86_v5 = vld [vmem:[%s9370_s1 + $0x180] sm:$0xff]  ;;  %v87_v6 = vld [vmem:[%s9370_s1 + $0x188] sm:$0xff]  ;;  %v4917_v7 = vpack.c.bf16 %v39_v4, %v38_v2  ;;  %v40_v14 = vld [vmem:[%s9370_s1 + $0x10] sm:$0xff]  ;;  %v4919_v16 = vpack.c.bf16 %v57_v13, %v56_v11  ;;  %v1088_v63 = vunpack.c.0.s8 %v1087_v48 }
   0x4   :  { %v4947_v8 = vpack.c.bf16 %v87_v6, %v86_v5  ;;  %v70_v9 = vld [vmem:[%s9370_s1 + $0x100] sm:$0xff]  ;;  %v71_v10 = vld [vmem:[%s9370_s1 + $0x108] sm:$0xff]  ;;  %4916 = vmatprep.subr.bf16.mxu0 %v4915_v3  ;;  %v41_v15 = vld [vmem:[%s9370_s1 + $0x18] sm:$0xff] }
   0x5   :  { %v4949_v12 = vpack.c.bf16 %v71_v10, %v70_v9  ;;  %4918 = vmatpush3.bf16.msra.mxu0 %v4917_v7  ;;  %v4921_v17 = vpack.c.bf16 %v41_v15, %v40_v14  ;;  %v88_v18 = vld [vmem:[%s9370_s1 + $0x190] sm:$0xff]  ;;  %v89_v19 = vld [vmem:[%s9370_s1 + $0x198] sm:$0xff]  ;;  %v58_v23 = vld [vmem:[%s9370_s1 + $0xa0] sm:$0xff]  ;;  %v6159_v13 = vsub.s32 %v1088_v63, %v1090_v0 }
   0x6   :  { %4948 = vmatprep.subr.bf16.mxu1 %v4947_v8  ;;  %v72_v20 = vld [vmem:[%s9370_s1 + $0x110] sm:$0xff]  ;;  %v4951_v21 = vpack.c.bf16 %v89_v19, %v88_v18  ;;  %v73_v22 = vld [vmem:[%s9370_s1 + $0x118] sm:$0xff]  ;;  %v59_v24 = vld [vmem:[%s9370_s1 + $0xa8] sm:$0xff]  ;;  %4920 = vmatprep.subr.bf16.mxu0 %v4919_v16 }
   0x7   :  { %4950 = vmatpush3.bf16.msra.mxu1 %v4949_v12  ;;  %v4953_v25 = vpack.c.bf16 %v73_v22, %v72_v20  ;;  %v4923_v26 = vpack.c.bf16 %v59_v24, %v58_v23  ;;  %v42_v27 = vld [vmem:[%s9370_s1 + $0x20] sm:$0xff]  ;;  %v43_v28 = vld [vmem:[%s9370_s1 + $0x28] sm:$0xff]  ;;  %v60_v35 = vld [vmem:[%s9370_s1 + $0xb0] sm:$0xff] }
   0x8   :  { %v90_v29 = vld [vmem:[%s9370_s1 + $0x1a0] sm:$0xff]  ;;  %4952 = vmatprep.subr.bf16.mxu1 %v4951_v21  ;;  %v91_v30 = vld [vmem:[%s9370_s1 + $0x1a8] sm:$0xff]  ;;  %v4925_v33 = vpack.c.bf16 %v43_v28, %v42_v27  ;;  %v61_v36 = vld [vmem:[%s9370_s1 + $0xb8] sm:$0xff] }
   0x9   :  { %v74_v31 = vld [vmem:[%s9370_s1 + $0x120] sm:$0xff]  ;;  %v75_v32 = vld [vmem:[%s9370_s1 + $0x128] sm:$0xff]  ;;  %4922 = vmatpush3.bf16.msra.mxu0 %v4921_v17  ;;  %v4955_v34 = vpack.c.bf16 %v91_v30, %v90_v29  ;;  %v44_v37 = vld [vmem:[%s9370_s1 + $0x30] sm:$0xff]  ;;  %v4927_v39 = vpack.c.bf16 %v61_v36, %v60_v35 }
   0xa   :  { %4924 = vmatprep.subr.bf16.mxu0 %v4923_v26  ;;  %v4957_v38 = vpack.c.bf16 %v75_v32, %v74_v31  ;;  %v45_v40 = vld [vmem:[%s9370_s1 + $0x38] sm:$0xff]  ;;  %v92_v41 = vld [vmem:[%s9370_s1 + $0x1b0] sm:$0xff]  ;;  %v62_v46 = vld [vmem:[%s9370_s1 + $0xc0] sm:$0xff] }
   0xb   :  { %4954 = vmatpush3.bf16.msra.mxu1 %v4953_v25  ;;  %v93_v42 = vld [vmem:[%s9370_s1 + $0x1b8] sm:$0xff]  ;;  %v76_v44 = vld [vmem:[%s9370_s1 + $0x130] sm:$0xff]  ;;  %v63_v50 = vld [vmem:[%s9370_s1 + $0xc8] sm:$0xff]  ;;  %v4929_v51 = vpack.c.bf16 %v45_v40, %v44_v37 }
   0xc   :  { %4956 = vmatprep.subr.bf16.mxu1 %v4955_v34  ;;  %v4959_v43 = vpack.c.bf16 %v93_v42, %v92_v41  ;;  %v77_v45 = vld [vmem:[%s9370_s1 + $0x138] sm:$0xff]  ;;  %v94_v52 = vld [vmem:[%s9370_s1 + $0x1c0] sm:$0xff]  ;;  %v95_v53 = vld [vmem:[%s9370_s1 + $0x1c8] sm:$0xff]  ;;  %v4931_v55 = vpack.c.bf16 %v63_v50, %v62_v46 }
   0xd   :  { %4926 = vmatpush3.bf16.msra.mxu0 %v4925_v33  ;;  %v4961_v54 = vpack.c.bf16 %v77_v45, %v76_v44  ;;  %v46_v56 = vld [vmem:[%s9370_s1 + $0x40] sm:$0xff]  ;;  %v47_v57 = vld [vmem:[%s9370_s1 + $0x48] sm:$0xff]  ;;  %v4963_v59 = vpack.c.bf16 %v95_v53, %v94_v52  ;;  %v64_v61 = vld [vmem:[%s9370_s1 + $0xd0] sm:$0xff] }
   0xe   :  { %4928 = vmatprep.subr.bf16.mxu0 %v4927_v39  ;;  %v78_v58 = vld [vmem:[%s9370_s1 + $0x140] sm:$0xff]  ;;  %v79_v60 = vld [vmem:[%s9370_s1 + $0x148] sm:$0xff]  ;;  %v65_v62 = vld [vmem:[%s9370_s1 + $0xd8] sm:$0xff]  ;;  %v4933_v3 = vpack.c.bf16 %v47_v57, %v46_v56 }
   0xf   :  { %4958 = vmatpush3.bf16.msra.mxu1 %v4957_v38  ;;  %v96_v1 = vld [vmem:[%s9370_s1 + $0x1d0] sm:$0xff]  ;;  %v97_v2 = vld [vmem:[%s9370_s1 + $0x1d8] sm:$0xff]  ;;  %v4965_v4 = vpack.c.bf16 %v79_v60, %v78_v58  ;;  %v4935_v5 = vpack.c.bf16 %v65_v62, %v64_v61  ;;  %v66_v11 = vld [vmem:[%s9370_s1 + $0xe0] sm:$0xff] }
  0x10   :  { %4960 = vmatprep.subr.bf16.mxu1 %v4959_v43  ;;  %v48_v6 = vld [vmem:[%s9370_s1 + $0x50] sm:$0xff]  ;;  %v49_v7 = vld [vmem:[%s9370_s1 + $0x58] sm:$0xff]  ;;  %v4967_v9 = vpack.c.bf16 %v97_v2, %v96_v1  ;;  %v67_v12 = vld [vmem:[%s9370_s1 + $0xe8] sm:$0xff] }
  0x11   :  { %4930 = vmatpush3.bf16.msra.mxu0 %v4929_v51  ;;  %v80_v8 = vld [vmem:[%s9370_s1 + $0x150] sm:$0xff]  ;;  %v81_v10 = vld [vmem:[%s9370_s1 + $0x158] sm:$0xff]  ;;  %v98_v14 = vld [vmem:[%s9370_s1 + $0x1e0] sm:$0xff]  ;;  %v4937_v16 = vpack.c.bf16 %v49_v7, %v48_v6  ;;  %v4939_v19 = vpack.c.bf16 %v67_v12, %v66_v11 }
  0x12   :  { %4932 = vmatprep.subr.bf16.mxu0 %v4931_v55  ;;  %v99_v15 = vld [vmem:[%s9370_s1 + $0x1e8] sm:$0xff]  ;;  %v50_v17 = vld [vmem:[%s9370_s1 + $0x60] sm:$0xff]  ;;  %v4969_v18 = vpack.c.bf16 %v81_v10, %v80_v8  ;;  %v68_v25 = vld [vmem:[%s9370_s1 + $0xf0] sm:$0xff] }
  0x13   :  { %4962 = vmatpush3.bf16.msra.mxu1 %v4961_v54  ;;  %v51_v20 = vld [vmem:[%s9370_s1 + $0x68] sm:$0xff]  ;;  %v82_v21 = vld [vmem:[%s9370_s1 + $0x160] sm:$0xff]  ;;  %v4971_v23 = vpack.c.bf16 %v99_v15, %v98_v14  ;;  %v69_v26 = vld [vmem:[%s9370_s1 + $0xf8] sm:$0xff] }
  0x14   :  { %4964 = vmatprep.subr.bf16.mxu1 %v4963_v59  ;;  %v22_v22 = vld [vmem:[%s9371_s0] sm:$0xff]  ;;  %v83_v24 = vld [vmem:[%s9370_s1 + $0x168] sm:$0xff]  ;;  %v100_v29 = vld [vmem:[%s9370_s1 + $0x1f0] sm:$0xff]  ;;  %v4941_v31 = vpack.c.bf16 %v51_v20, %v50_v17  ;;  %v4943_v35 = vpack.c.bf16 %v69_v26, %v68_v25 }
  0x15   :  { %4934 = vmatpush3.bf16.msra.mxu0 %v4933_v3  ;;  %v1092_v27 = vrot.slane %v22_v22, %v6159_v13  ;;  %v1085_v28 = vcombine.high %v22_v22, %v22_v22  ;;  %v101_v30 = vld [vmem:[%s9370_s1 + $0x1f8] sm:$0xff]  ;;  %v4973_v34 = vpack.c.bf16 %v83_v24, %v82_v21  ;;  %v52_v36 = vld [vmem:[%s9370_s1 + $0x70] sm:$0xff]  ;;  %v118_v41 = vld [vmem:[%s9370_s1 + $0x280] sm:$0xff] }
  0x16   :  { %4936 = vmatprep.subr.bf16.mxu0 %v4935_v5  ;;  %v53_v37 = vld [vmem:[%s9370_s1 + $0x78] sm:$0xff]  ;;  %v84_v38 = vld [vmem:[%s9370_s1 + $0x170] sm:$0xff]  ;;  %v4975_v39 = vpack.c.bf16 %v101_v30, %v100_v29  ;;  %v119_v42 = vld [vmem:[%s9370_s1 + $0x288] sm:$0xff] }
  0x17   :  { %4966 = vmatpush3.bf16.msra.mxu1 %v4965_v4  ;;  %v1100_v32 = vcombine.high %v1092_v27, %v1092_v27  ;;  %v1099_v33 = vrot.slane %v1085_v28, %v6159_v13  ;;  %v85_v40 = vld [vmem:[%s9370_s1 + $0x178] sm:$0xff]  ;;  %v150_v44 = vld [vmem:[%s9370_s1 + $0x380] sm:$0xff]  ;;  %v151_v45 = vld [vmem:[%s9370_s1 + $0x388] sm:$0xff]  ;;  %v4945_v46 = vpack.c.bf16 %v53_v37, %v52_v36  ;;  %v4979_v48 = vpack.c.bf16 %v119_v42, %v118_v41 }
  0x18   :  { %4968 = vmatprep.subr.bf16.mxu1 %v4967_v9  ;;  %v4977_v47 = vpack.c.bf16 %v85_v40, %v84_v38  ;;  %v102_v49 = vld [vmem:[%s9370_s1 + $0x200] sm:$0xff]  ;;  %v103_v50 = vld [vmem:[%s9370_s1 + $0x208] sm:$0xff]  ;;  %v5011_v52 = vpack.c.bf16 %v151_v45, %v150_v44  ;;  %v120_v54 = vld [vmem:[%s9370_s1 + $0x290] sm:$0xff] }
  0x19   :  { %4938 = vmatpush3.bf16.msra.mxu0 %v4937_v16  ;;  %1485 = vmatprep.mubr.f32.mxu0 %v1100_v32  ;;  %v1101_v43 = vcombine.high %v1099_v33, %v1099_v33  ;;  %v134_v51 = vld [vmem:[%s9370_s1 + $0x300] sm:$0xff]  ;;  %v135_v53 = vld [vmem:[%s9370_s1 + $0x308] sm:$0xff]  ;;  %v121_v55 = vld [vmem:[%s9370_s1 + $0x298] sm:$0xff]  ;;  %v4981_v58 = vpack.c.bf16 %v103_v50, %v102_v49 }
  0x1a   :  { %4940 = vmatprep.subr.bf16.mxu0 %v4939_v19  ;;  %v152_v56 = vld [vmem:[%s9370_s1 + $0x390] sm:$0xff]  ;;  %v153_v57 = vld [vmem:[%s9370_s1 + $0x398] sm:$0xff]  ;;  %v5013_v59 = vpack.c.bf16 %v135_v53, %v134_v51  ;;  %v4983_v60 = vpack.c.bf16 %v121_v55, %v120_v54  ;;  %v122_v2 = vld [vmem:[%s9370_s1 + $0x2a0] sm:$0xff] }
  0x1b   :  { %4970 = vmatpush3.bf16.msra.mxu1 %v4969_v18  ;;  %1555 = vmatprep.mubr.f32.mxu1 %v1101_v43  ;;  %v104_v61 = vld [vmem:[%s9370_s1 + $0x210] sm:$0xff]  ;;  %v105_v62 = vld [vmem:[%s9370_s1 + $0x218] sm:$0xff]  ;;  %v5015_v0 = vpack.c.bf16 %v153_v57, %v152_v56  ;;  %v123_v3 = vld [vmem:[%s9370_s1 + $0x2a8] sm:$0xff] }
  0x1c   :  { %4972 = vmatprep.subr.bf16.mxu1 %v4971_v23  ;;  %v136_v63 = vld [vmem:[%s9370_s1 + $0x310] sm:$0xff]  ;;  %v137_v1 = vld [vmem:[%s9370_s1 + $0x318] sm:$0xff]  ;;  %v154_v4 = vld [vmem:[%s9370_s1 + $0x3a0] sm:$0xff]  ;;  %v4985_v6 = vpack.c.bf16 %v105_v62, %v104_v61  ;;  %v4987_v8 = vpack.c.bf16 %v123_v3, %v122_v2 }
  0x1d   :  { %4942 = vmatpush3.bf16.msra.mxu0 %v4941_v31  ;;  %v155_v5 = vld [vmem:[%s9370_s1 + $0x3a8] sm:$0xff]  ;;  %v5017_v7 = vpack.c.bf16 %v137_v1, %v136_v63  ;;  %v106_v9 = vld [vmem:[%s9370_s1 + $0x220] sm:$0xff]  ;;  %v124_v15 = vld [vmem:[%s9370_s1 + $0x2b0] sm:$0xff] }
  0x1e   :  { %4944 = vmatprep.subr.bf16.mxu0 %v4943_v35  ;;  %v107_v10 = vld [vmem:[%s9370_s1 + $0x228] sm:$0xff]  ;;  %v138_v11 = vld [vmem:[%s9370_s1 + $0x320] sm:$0xff]  ;;  %v5019_v12 = vpack.c.bf16 %v155_v5, %v154_v4  ;;  %v125_v16 = vld [vmem:[%s9370_s1 + $0x2b8] sm:$0xff] }
  0x1f   :  { %4974 = vmatpush3.bf16.msra.mxu1 %v4973_v34  ;;  %v139_v14 = vld [vmem:[%s9370_s1 + $0x328] sm:$0xff]  ;;  %v156_v17 = vld [vmem:[%s9370_s1 + $0x3b0] sm:$0xff]  ;;  %v157_v18 = vld [vmem:[%s9370_s1 + $0x3b8] sm:$0xff]  ;;  %v4989_v19 = vpack.c.bf16 %v107_v10, %v106_v9  ;;  %v4991_v21 = vpack.c.bf16 %v125_v16, %v124_v15 }
  0x20   :  { %4976 = vmatprep.subr.bf16.mxu1 %v4975_v39  ;;  %v5021_v20 = vpack.c.bf16 %v139_v14, %v138_v11  ;;  %v108_v22 = vld [vmem:[%s9370_s1 + $0x230] sm:$0xff]  ;;  %v109_v23 = vld [vmem:[%s9370_s1 + $0x238] sm:$0xff]  ;;  %v5023_v25 = vpack.c.bf16 %v157_v18, %v156_v17  ;;  %v127_v28 = vld [vmem:[%s9370_s1 + $0x2c8] sm:$0xff] }
  0x21   :  { %4946 = vmatpush3.bf16.msra.mxu0 %v4945_v46  ;;  %v140_v24 = vld [vmem:[%s9370_s1 + $0x330] sm:$0xff]  ;;  %v141_v26 = vld [vmem:[%s9370_s1 + $0x338] sm:$0xff]  ;;  %v158_v29 = vld [vmem:[%s9370_s1 + $0x3c0] sm:$0xff]  ;;  %v4993_v32 = vpack.c.bf16 %v109_v23, %v108_v22 }
  0x22   :  { %4980 = vmatprep.subr.bf16.mxu0 %v4979_v48  ;;  %v159_v30 = vld [vmem:[%s9370_s1 + $0x3c8] sm:$0xff]  ;;  %v5025_v35 = vpack.c.bf16 %v141_v26, %v140_v24  ;;  %v110_v37 = vld [vmem:[%s9370_s1 + $0x240] sm:$0xff]  ;;  %v128_v42 = vld [vmem:[%s9370_s1 + $0x2d0] sm:$0xff] }
  0x23   :  { %4978 = vmatpush3.bf16.msra.mxu1 %v4977_v47  ;;  %v23_v31 = vld [vmem:[%s9371_s0 + $0x8] sm:$0xff]  ;;  %v142_v39 = vld [vmem:[%s9370_s1 + $0x340] sm:$0xff]  ;;  %v5027_v40 = vpack.c.bf16 %v159_v30, %v158_v29  ;;  %v129_v43 = vld [vmem:[%s9370_s1 + $0x2d8] sm:$0xff] }
  0x24   :  { %5012 = vmatprep.subr.bf16.mxu1 %v5011_v52  ;;  %1486 = vmatmul.mubr.f32.vlgmr.msra.gmra.mrb[0].mxu0 %v1092_v27  ;;  %v126_v27 = vld [vmem:[%s9370_s1 + $0x2c0] sm:$0xff]  ;;  %v1102_v34 = vcombine.high %v23_v31, %v23_v31  ;;  %v111_v38 = vld [vmem:[%s9370_s1 + $0x248] sm:$0xff]  ;;  %v160_v46 = vld [vmem:[%s9370_s1 + $0x3d0] sm:$0xff]  ;;  %v4999_v51 = vpack.c.bf16 %v129_v43, %v128_v42 }
  0x25   :  { %4982 = vmatpush3.bf16.msra.mxu0 %v4981_v58  ;;  %v4995_v36 = vpack.c.bf16 %v127_v28, %v126_v27  ;;  %v143_v41 = vld [vmem:[%s9370_s1 + $0x348] sm:$0xff]  ;;  %v161_v47 = vld [vmem:[%s9370_s1 + $0x3d8] sm:$0xff]  ;;  %v4997_v48 = vpack.c.bf16 %v111_v38, %v110_v37  ;;  %v112_v52 = vld [vmem:[%s9370_s1 + $0x250] sm:$0xff] }
  0x26   :  { %1556 = vmatmul.mubr.f32.vlgmr.msra.gmra.mrb[0].mxu1 %v1099_v33  ;;  %4984 = vmatprep.subr.bf16.mxu0 %v4983_v60  ;;  %v6320_v33 = vrot.slane %v23_v31, %v6159_v13  ;;  %v6343_v45 = vrot.slane %v1102_v34, %v6159_v13  ;;  %v5029_v50 = vpack.c.bf16 %v143_v41, %v142_v39  ;;  %v113_v53 = vld [vmem:[%s9370_s1 + $0x258] sm:$0xff]  ;;  %v144_v54 = vld [vmem:[%s9370_s1 + $0x350] sm:$0xff]  ;;  %v130_v57 = vld [vmem:[%s9370_s1 + $0x2e0] sm:$0xff] }
  0x27   :  { %5014 = vmatpush3.bf16.msra.mxu1 %v5013_v59  ;;  %v5031_v55 = vpack.c.bf16 %v161_v47, %v160_v46  ;;  %v145_v56 = vld [vmem:[%s9370_s1 + $0x358] sm:$0xff]  ;;  %v131_v58 = vld [vmem:[%s9370_s1 + $0x2e8] sm:$0xff]  ;;  %v162_v59 = vld [vmem:[%s9370_s1 + $0x3e0] sm:$0xff]  ;;  %v5001_v61 = vpack.c.bf16 %v113_v53, %v112_v52 }
  0x28   :  { %5016 = vmatprep.subr.bf16.mxu1 %v5015_v0  ;;  %v1117_v44 = vcombine.high %v6320_v33, %v6320_v33  ;;  %v1118_v49 = vcombine.high %v6343_v45, %v6343_v45  ;;  %v163_v60 = vld [vmem:[%s9370_s1 + $0x3e8] sm:$0xff]  ;;  %v5033_v62 = vpack.c.bf16 %v145_v56, %v144_v54  ;;  %v5003_v63 = vpack.c.bf16 %v131_v58, %v130_v57  ;;  %v114_v0 = vld [vmem:[%s9370_s1 + $0x260] sm:$0xff]  ;;  %v132_v5 = vld [vmem:[%s9370_s1 + $0x2f0] sm:$0xff] }
  0x29   :  { %4986 = vmatpush3.bf16.msra.mxu0 %v4985_v6  ;;  %v115_v1 = vld [vmem:[%s9370_s1 + $0x268] sm:$0xff]  ;;  %v146_v2 = vld [vmem:[%s9370_s1 + $0x360] sm:$0xff]  ;;  %v5035_v3 = vpack.c.bf16 %v163_v60, %v162_v59  ;;  %v133_v6 = vld [vmem:[%s9370_s1 + $0x2f8] sm:$0xff] }
  0x2a   :  { %4988 = vmatprep.subr.bf16.mxu0 %v4987_v8  ;;  %1625 = vmatprep.mubr.f32.mxu0 %v1117_v44  ;;  %v147_v4 = vld [vmem:[%s9370_s1 + $0x368] sm:$0xff]  ;;  %v165_v8 = vld [vmem:[%s9370_s1 + $0x3f8] sm:$0xff]  ;;  %v5005_v9 = vpack.c.bf16 %v115_v1, %v114_v0  ;;  %v5007_v11 = vpack.c.bf16 %v133_v6, %v132_v5  ;;  %v148_v15 = vld [vmem:[%s9370_s1 + $0x370] sm:$0xff] }
  0x2b   :  { %5018 = vmatpush3.bf16.msra.mxu1 %v5017_v7  ;;  %1695 = vmatprep.mubr.f32.mxu1 %v1118_v49  ;;  %v164_v7 = vld [vmem:[%s9370_s1 + $0x3f0] sm:$0xff]  ;;  %v5037_v10 = vpack.c.bf16 %v147_v4, %v146_v2  ;;  %v117_v14 = vld [vmem:[%s9370_s1 + $0x278] sm:$0xff]  ;;  %v182_v18 = vld [vmem:[%s9370_s1 + $0x480] sm:$0xff] }
  0x2c   :  { %5020 = vmatprep.subr.bf16.mxu1 %v5019_v12  ;;  %v116_v12 = vld [vmem:[%s9370_s1 + $0x270] sm:$0xff]  ;;  %v5039_v16 = vpack.c.bf16 %v165_v8, %v164_v7  ;;  %v149_v17 = vld [vmem:[%s9370_s1 + $0x378] sm:$0xff]  ;;  %v166_v23 = vld [vmem:[%s9370_s1 + $0x400] sm:$0xff] }
  0x2d   :  { %4990 = vmatpush3.bf16.msra.mxu0 %v4989_v19  ;;  %v183_v19 = vld [vmem:[%s9370_s1 + $0x488] sm:$0xff]  ;;  %v5009_v22 = vpack.c.bf16 %v117_v14, %v116_v12  ;;  %v5041_v24 = vpack.c.bf16 %v149_v17, %v148_v15  ;;  %v198_v27 = vld [vmem:[%s9370_s1 + $0x500] sm:$0xff]  ;;  %v184_v30 = vld [vmem:[%s9370_s1 + $0x490] sm:$0xff] }
  0x2e   :  { %4992 = vmatprep.subr.bf16.mxu0 %v4991_v21  ;;  %v215_v21 = vld [vmem:[%s9370_s1 + $0x588] sm:$0xff]  ;;  %v185_v31 = vld [vmem:[%s9370_s1 + $0x498] sm:$0xff]  ;;  %v24_v37 = vld [vmem:[%s9371_s0 + $0x10] sm:$0xff] }
  0x2f   :  { %5022 = vmatpush3.bf16.msra.mxu1 %v5021_v20  ;;  %v214_v20 = vld [vmem:[%s9370_s1 + $0x580] sm:$0xff]  ;;  %v167_v26 = vld [vmem:[%s9370_s1 + $0x408] sm:$0xff]  ;;  %v217_v34 = vld [vmem:[%s9370_s1 + $0x598] sm:$0xff]  ;;  %v5047_v38 = vpack.c.bf16 %v185_v31, %v184_v30  ;;  %v6462_v42 = vrot.slane %v24_v37, %v6159_v13  ;;  %v1119_v43 = vcombine.high %v24_v37, %v24_v37 }
  0x30   :  { %5024 = vmatprep.subr.bf16.mxu1 %v5023_v25  ;;  %v5043_v25 = vpack.c.bf16 %v183_v19, %v182_v18  ;;  %v199_v28 = vld [vmem:[%s9370_s1 + $0x508] sm:$0xff]  ;;  %v5075_v29 = vpack.c.bf16 %v215_v21, %v214_v20  ;;  %v168_v39 = vld [vmem:[%s9370_s1 + $0x410] sm:$0xff]  ;;  %v201_v46 = vld [vmem:[%s9370_s1 + $0x518] sm:$0xff] }
  0x31   :  { %4994 = vmatpush3.bf16.msra.mxu0 %v4993_v32  ;;  %v216_v32 = vld [vmem:[%s9370_s1 + $0x590] sm:$0xff]  ;;  %v186_v47 = vld [vmem:[%s9370_s1 + $0x4a0] sm:$0xff]  ;;  %v6483_v52 = vrot.slane %v1119_v43, %v6159_v13  ;;  %v171_v56 = vld [vmem:[%s9370_s1 + $0x428] sm:$0xff] }
  0x32   :  { %4996 = vmatprep.subr.bf16.mxu0 %v4995_v36  ;;  %v5077_v36 = vpack.c.bf16 %v199_v28, %v198_v27  ;;  %v200_v41 = vld [vmem:[%s9370_s1 + $0x510] sm:$0xff]  ;;  %v5079_v44 = vpack.c.bf16 %v217_v34, %v216_v32  ;;  %v218_v49 = vld [vmem:[%s9370_s1 + $0x5a0] sm:$0xff]  ;;  %v203_v59 = vld [vmem:[%s9370_s1 + $0x528] sm:$0xff] }
  0x33   :  { %5026 = vmatpush3.bf16.msra.mxu1 %v5025_v35  ;;  %v5045_v35 = vpack.c.bf16 %v167_v26, %v166_v23  ;;  %v202_v57 = vld [vmem:[%s9370_s1 + $0x520] sm:$0xff]  ;;  %v188_v60 = vld [vmem:[%s9370_s1 + $0x4b0] sm:$0xff]  ;;  %v173_v4 = vld [vmem:[%s9370_s1 + $0x438] sm:$0xff] }
  0x34   :  { %5028 = vmatprep.subr.bf16.mxu1 %v5027_v40  ;;  %v169_v40 = vld [vmem:[%s9370_s1 + $0x418] sm:$0xff]  ;;  %v5085_v1 = vpack.c.bf16 %v203_v59, %v202_v57  ;;  %v204_v5 = vld [vmem:[%s9370_s1 + $0x530] sm:$0xff]  ;;  %v190_v8 = vld [vmem:[%s9370_s1 + $0x4c0] sm:$0xff] }
  0x35   :  { %4998 = vmatpush3.bf16.msra.mxu0 %v4997_v48  ;;  %v187_v48 = vld [vmem:[%s9370_s1 + $0x4a8] sm:$0xff]  ;;  %v5049_v53 = vpack.c.bf16 %v169_v40, %v168_v39  ;;  %v205_v7 = vld [vmem:[%s9370_s1 + $0x538] sm:$0xff]  ;;  %v206_v18 = vld [vmem:[%s9370_s1 + $0x540] sm:$0xff] }
  0x36   :  { %5000 = vmatprep.subr.bf16.mxu0 %v4999_v51  ;;  %v1134_v51 = vcombine.high %v6462_v42, %v6462_v42  ;;  %v5051_v54 = vpack.c.bf16 %v187_v48, %v186_v47  ;;  %v5089_v14 = vpack.c.bf16 %v205_v7, %v204_v5  ;;  %v175_v17 = vld [vmem:[%s9370_s1 + $0x448] sm:$0xff]  ;;  %v192_v21 = vld [vmem:[%s9370_s1 + $0x4d0] sm:$0xff]  ;;  %v209_v32 = vld [vmem:[%s9370_s1 + $0x558] sm:$0xff] }
  0x37   :  { %5030 = vmatpush3.bf16.msra.mxu1 %v5029_v50  ;;  %v219_v50 = vld [vmem:[%s9370_s1 + $0x5a8] sm:$0xff]  ;;  %v224_v23 = vld [vmem:[%s9370_s1 + $0x5d0] sm:$0xff]  ;;  %v194_v34 = vld [vmem:[%s9370_s1 + $0x4e0] sm:$0xff] }
  0x38   :  { %5032 = vmatprep.subr.bf16.mxu1 %v5031_v55  ;;  %v170_v55 = vld [vmem:[%s9370_s1 + $0x420] sm:$0xff]  ;;  %v5083_v58 = vpack.c.bf16 %v219_v50, %v218_v49  ;;  %v207_v20 = vld [vmem:[%s9370_s1 + $0x548] sm:$0xff]  ;;  %v176_v28 = vld [vmem:[%s9370_s1 + $0x450] sm:$0xff] }
  0x39   :  { %5002 = vmatpush3.bf16.msra.mxu0 %v5001_v61  ;;  %v189_v61 = vld [vmem:[%s9370_s1 + $0x4b8] sm:$0xff]  ;;  %v5053_v0 = vpack.c.bf16 %v171_v56, %v170_v55  ;;  %v5093_v26 = vpack.c.bf16 %v207_v20, %v206_v18  ;;  %v208_v30 = vld [vmem:[%s9370_s1 + $0x550] sm:$0xff]  ;;  %v227_v37 = vld [vmem:[%s9370_s1 + $0x5e8] sm:$0xff] }
  0x3a   :  { %5004 = vmatprep.subr.bf16.mxu0 %v5003_v63  ;;  %v221_v63 = vld [vmem:[%s9370_s1 + $0x5b8] sm:$0xff]  ;;  %v5055_v2 = vpack.c.bf16 %v189_v61, %v188_v60  ;;  %v5097_v39 = vpack.c.bf16 %v209_v32, %v208_v30  ;;  %v179_v43 = vld [vmem:[%s9370_s1 + $0x468] sm:$0xff]  ;;  %v196_v48 = vld [vmem:[%s9370_s1 + $0x4f0] sm:$0xff] }
  0x3b   :  { %5034 = vmatpush3.bf16.msra.mxu1 %v5033_v62  ;;  %v220_v62 = vld [vmem:[%s9370_s1 + $0x5b0] sm:$0xff]  ;;  %v211_v47 = vld [vmem:[%s9370_s1 + $0x568] sm:$0xff]  ;;  %v197_v49 = vld [vmem:[%s9370_s1 + $0x4f8] sm:$0xff] }
  0x3c   :  { %5036 = vmatprep.subr.bf16.mxu1 %v5035_v3  ;;  %v172_v3 = vld [vmem:[%s9370_s1 + $0x430] sm:$0xff]  ;;  %v5087_v6 = vpack.c.bf16 %v221_v63, %v220_v62  ;;  %v5071_v55 = vpack.c.bf16 %v197_v49, %v196_v48  ;;  %v181_v57 = vld [vmem:[%s9370_s1 + $0x478] sm:$0xff]  ;;  %v246_v60 = vld [vmem:[%s9370_s1 + $0x680] sm:$0xff] }
  0x3d   :  { %5006 = vmatpush3.bf16.msra.mxu0 %v5005_v9  ;;  %v191_v9 = vld [vmem:[%s9370_s1 + $0x4c8] sm:$0xff]  ;;  %v5057_v12 = vpack.c.bf16 %v173_v4, %v172_v3  ;;  %v228_v50 = vld [vmem:[%s9370_s1 + $0x5f0] sm:$0xff]  ;;  %v213_v59 = vld [vmem:[%s9370_s1 + $0x578] sm:$0xff] }
  0x3e   :  { %5008 = vmatprep.subr.bf16.mxu0 %v5007_v11  ;;  %v223_v11 = vld [vmem:[%s9370_s1 + $0x5c8] sm:$0xff]  ;;  %v5059_v15 = vpack.c.bf16 %v191_v9, %v190_v8  ;;  %v180_v56 = vld [vmem:[%s9370_s1 + $0x470] sm:$0xff]  ;;  %v278_v62 = vld [vmem:[%s9370_s1 + $0x780] sm:$0xff] }
  0x3f   :  { %5038 = vmatpush3.bf16.msra.mxu1 %v5037_v10  ;;  %v222_v10 = vld [vmem:[%s9370_s1 + $0x5c0] sm:$0xff]  ;;  %v247_v61 = vld [vmem:[%s9370_s1 + $0x688] sm:$0xff]  ;;  %v248_v9 = vld [vmem:[%s9370_s1 + $0x690] sm:$0xff] }
  0x40   :  { %5040 = vmatprep.subr.bf16.mxu1 %v5039_v16  ;;  %v174_v16 = vld [vmem:[%s9370_s1 + $0x440] sm:$0xff]  ;;  %v5091_v19 = vpack.c.bf16 %v223_v11, %v222_v10  ;;  %v279_v63 = vld [vmem:[%s9370_s1 + $0x788] sm:$0xff]  ;;  %v5107_v3 = vpack.c.bf16 %v247_v61, %v246_v60  ;;  %v249_v10 = vld [vmem:[%s9370_s1 + $0x698] sm:$0xff] }
  0x41   :  { %5010 = vmatpush3.bf16.msra.mxu0 %v5009_v22  ;;  %v193_v22 = vld [vmem:[%s9370_s1 + $0x4d8] sm:$0xff]  ;;  %v230_v4 = vld [vmem:[%s9370_s1 + $0x600] sm:$0xff]  ;;  %v231_v5 = vld [vmem:[%s9370_s1 + $0x608] sm:$0xff]  ;;  %v5139_v7 = vpack.c.bf16 %v279_v63, %v278_v62  ;;  %v5111_v18 = vpack.c.bf16 %v249_v10, %v248_v9 }
  0x42   :  { %5044 = vmatprep.subr.bf16.mxu0 %v5043_v25  ;;  %v5061_v25 = vpack.c.bf16 %v175_v17, %v174_v16  ;;  %v5063_v27 = vpack.c.bf16 %v193_v22, %v192_v21  ;;  %v263_v8 = vld [vmem:[%s9370_s1 + $0x708] sm:$0xff]  ;;  %v5109_v16 = vpack.c.bf16 %v231_v5, %v230_v4  ;;  %v233_v20 = vld [vmem:[%s9370_s1 + $0x618] sm:$0xff]  ;;  %v264_v21 = vld [vmem:[%s9370_s1 + $0x710] sm:$0xff] }
  0x43   :  { %5042 = vmatpush3.bf16.msra.mxu1 %v5041_v24  ;;  %v225_v24 = vld [vmem:[%s9370_s1 + $0x5d8] sm:$0xff]  ;;  %v268_v48 = vld [vmem:[%s9370_s1 + $0x730] sm:$0xff]  ;;  %v271_v61 = vld [vmem:[%s9370_s1 + $0x748] sm:$0xff] }
  0x44   :  { %5076 = vmatprep.subr.bf16.mxu1 %v5075_v29  ;;  %1626 = vmatmul.mubr.f32.vlgmr.msra.gmra.mrb[2].mxu0 %v6320_v33  ;;  %v5081_v33 = vpack.c.bf16 %v201_v46, %v200_v41  ;;  %v177_v29 = vld [vmem:[%s9370_s1 + $0x458] sm:$0xff]  ;;  %v5095_v31 = vpack.c.bf16 %v225_v24, %v224_v23  ;;  %v178_v41 = vld [vmem:[%s9370_s1 + $0x460] sm:$0xff]  ;;  %v256_v62 = vld [vmem:[%s9370_s1 + $0x6d0] sm:$0xff] }
  0x45   :  { %5046 = vmatpush3.bf16.msra.mxu0 %v5045_v35  ;;  %1765 = vmatprep.mubr.f32.mxu0 %v1134_v51  ;;  %v195_v35 = vld [vmem:[%s9370_s1 + $0x4e8] sm:$0xff]  ;;  %v229_v51 = vld [vmem:[%s9370_s1 + $0x5f8] sm:$0xff]  ;;  %v250_v24 = vld [vmem:[%s9370_s1 + $0x6a0] sm:$0xff] }
  0x46   :  { %1696 = vmatmul.mubr.f32.vlgmr.msra.gmra.mrb[2].mxu1 %v6343_v45  ;;  %5048 = vmatprep.subr.bf16.mxu0 %v5047_v38  ;;  %v1135_v45 = vcombine.high %v6483_v52, %v6483_v52  ;;  %v5065_v38 = vpack.c.bf16 %v177_v29, %v176_v28  ;;  %v5067_v40 = vpack.c.bf16 %v195_v35, %v194_v34  ;;  %v265_v23 = vld [vmem:[%s9370_s1 + $0x718] sm:$0xff]  ;;  %v283_v28 = vld [vmem:[%s9370_s1 + $0x7a8] sm:$0xff]  ;;  %v266_v35 = vld [vmem:[%s9370_s1 + $0x720] sm:$0xff] }
  0x47   :  { %5078 = vmatpush3.bf16.msra.mxu1 %v5077_v36  ;;  %v226_v36 = vld [vmem:[%s9370_s1 + $0x5e0] sm:$0xff]  ;;  %v235_v34 = vld [vmem:[%s9370_s1 + $0x628] sm:$0xff]  ;;  %v257_v63 = vld [vmem:[%s9370_s1 + $0x6d8] sm:$0xff] }
  0x48   :  { %5080 = vmatprep.subr.bf16.mxu1 %v5079_v44  ;;  %1835 = vmatprep.mubr.f32.mxu1 %v1135_v45  ;;  %v210_v44 = vld [vmem:[%s9370_s1 + $0x560] sm:$0xff]  ;;  %v5099_v46 = vpack.c.bf16 %v227_v37, %v226_v36  ;;  %v212_v45 = vld [vmem:[%s9370_s1 + $0x570] sm:$0xff]  ;;  %v5127_v4 = vpack.c.bf16 %v257_v63, %v256_v62  ;;  %v273_v9 = vld [vmem:[%s9370_s1 + $0x758] sm:$0xff] }
  0x49   :  { %5050 = vmatpush3.bf16.msra.mxu0 %v5049_v53  ;;  %v5069_v53 = vpack.c.bf16 %v179_v43, %v178_v41  ;;  %v252_v37 = vld [vmem:[%s9370_s1 + $0x6b0] sm:$0xff]  ;;  %v258_v10 = vld [vmem:[%s9370_s1 + $0x6e0] sm:$0xff] }
  0x4a   :  { %5052 = vmatprep.subr.bf16.mxu0 %v5051_v54  ;;  %v5101_v54 = vpack.c.bf16 %v211_v47, %v210_v44  ;;  %v237_v47 = vld [vmem:[%s9370_s1 + $0x638] sm:$0xff]  ;;  %v240_v5 = vld [vmem:[%s9370_s1 + $0x650] sm:$0xff] }
  0x4b   :  { %5082 = vmatpush3.bf16.msra.mxu1 %v5081_v33  ;;  %v25_v33 = vld [vmem:[%s9371_s0 + $0x18] sm:$0xff]  ;;  %v328_v62 = vld [vmem:[%s9370_s1 + $0x910] sm:$0xff] }
  0x4c   :  { %5084 = vmatprep.subr.bf16.mxu1 %v5083_v58  ;;  %v5103_v58 = vpack.c.bf16 %v229_v51, %v228_v50  ;;  %v6654_v11 = vrot.slane %v25_v33, %v6159_v13  ;;  %v269_v50 = vld [vmem:[%s9370_s1 + $0x738] sm:$0xff]  ;;  %v254_v51 = vld [vmem:[%s9370_s1 + $0x6c0] sm:$0xff] }
  0x4d   :  { %5054 = vmatpush3.bf16.msra.mxu0 %v5053_v0  ;;  %v1136_v0 = vcombine.high %v25_v33, %v25_v33  ;;  %v286_v33 = vld [vmem:[%s9370_s1 + $0x7c0] sm:$0xff] }
  0x4e   :  { %5056 = vmatprep.subr.bf16.mxu0 %v5055_v2  ;;  %v5105_v2 = vpack.c.bf16 %v213_v59, %v212_v45  ;;  %v238_v45 = vld [vmem:[%s9370_s1 + $0x640] sm:$0xff] }
  0x4f   :  { %5086 = vmatpush3.bf16.msra.mxu1 %v5085_v1  ;;  %v5073_v1 = vpack.c.bf16 %v181_v57, %v180_v56  ;;  %v5153_v56 = vpack.c.bf16 %v269_v50, %v268_v48  ;;  %v270_v59 = vld [vmem:[%s9370_s1 + $0x740] sm:$0xff]  ;;  %v295_v48 = vld [vmem:[%s9370_s1 + $0x808] sm:$0xff] }
  0x50   :  { %5088 = vmatprep.subr.bf16.mxu1 %v5087_v6  ;;  %v262_v6 = vld [vmem:[%s9370_s1 + $0x700] sm:$0xff] }
  0x51   :  { %5058 = vmatpush3.bf16.msra.mxu0 %v5057_v12  ;;  %v280_v12 = vld [vmem:[%s9370_s1 + $0x790] sm:$0xff]  ;;  %v5141_v17 = vpack.c.bf16 %v263_v8, %v262_v6  ;;  %v241_v6 = vld [vmem:[%s9370_s1 + $0x658] sm:$0xff] }
  0x52   :  { %5060 = vmatprep.subr.bf16.mxu0 %v5059_v15  ;;  %v6663_v15 = vrot.slane %v1136_v0, %v6159_v13  ;;  %v288_v0 = vld [vmem:[%s9370_s1 + $0x7d0] sm:$0xff] }
  0x53   :  { %5090 = vmatpush3.bf16.msra.mxu1 %v5089_v14  ;;  %v281_v14 = vld [vmem:[%s9370_s1 + $0x798] sm:$0xff] }
  0x54   :  { %5092 = vmatprep.subr.bf16.mxu1 %v5091_v19  ;;  %v232_v19 = vld [vmem:[%s9370_s1 + $0x610] sm:$0xff]  ;;  %v5143_v22 = vpack.c.bf16 %v281_v14, %v280_v12  ;;  %v1152_v29 = vcombine.high %v6663_v15, %v6663_v15  ;;  %v259_v12 = vld [vmem:[%s9370_s1 + $0x6e8] sm:$0xff]  ;;  %v290_v14 = vld [vmem:[%s9370_s1 + $0x7e0] sm:$0xff] }
  0x55   :  { %5062 = vmatpush3.bf16.msra.mxu0 %v5061_v25  ;;  %v251_v25 = vld [vmem:[%s9370_s1 + $0x6a8] sm:$0xff]  ;;  %v5113_v30 = vpack.c.bf16 %v233_v20, %v232_v19  ;;  %v5131_v19 = vpack.c.bf16 %v259_v12, %v258_v10  ;;  %v242_v20 = vld [vmem:[%s9370_s1 + $0x660] sm:$0xff] }
  0x56   :  { %5064 = vmatprep.subr.bf16.mxu0 %v5063_v27  ;;  %v282_v27 = vld [vmem:[%s9370_s1 + $0x7a0] sm:$0xff]  ;;  %v5115_v32 = vpack.c.bf16 %v251_v25, %v250_v24  ;;  %v275_v24 = vld [vmem:[%s9370_s1 + $0x768] sm:$0xff]  ;;  %v260_v25 = vld [vmem:[%s9370_s1 + $0x6f0] sm:$0xff] }
  0x57   :  { %5094 = vmatpush3.bf16.msra.mxu1 %v5093_v26  ;;  %v1151_v26 = vcombine.high %v6654_v11, %v6654_v11  ;;  %v5147_v36 = vpack.c.bf16 %v283_v28, %v282_v27  ;;  %v292_v27 = vld [vmem:[%s9370_s1 + $0x7f0] sm:$0xff]  ;;  %v293_v28 = vld [vmem:[%s9370_s1 + $0x7f8] sm:$0xff]  ;;  %v299_v10 = vld [vmem:[%s9370_s1 + $0x828] sm:$0xff] }
  0x58   :  { %5096 = vmatprep.subr.bf16.mxu1 %v5095_v31  ;;  %v5145_v31 = vpack.c.bf16 %v265_v23, %v264_v21  ;;  %v243_v21 = vld [vmem:[%s9370_s1 + $0x668] sm:$0xff]  ;;  %v330_v12 = vld [vmem:[%s9370_s1 + $0x920] sm:$0xff] }
  0x59   :  { %5066 = vmatpush3.bf16.msra.mxu0 %v5065_v38  ;;  %v253_v38 = vld [vmem:[%s9370_s1 + $0x6b8] sm:$0xff] }
  0x5a   :  { %5068 = vmatprep.subr.bf16.mxu0 %v5067_v40  ;;  %v285_v40 = vld [vmem:[%s9370_s1 + $0x7b8] sm:$0xff]  ;;  %v5119_v44 = vpack.c.bf16 %v253_v38, %v252_v37  ;;  %v310_v37 = vld [vmem:[%s9370_s1 + $0x880] sm:$0xff]  ;;  %v311_v38 = vld [vmem:[%s9370_s1 + $0x888] sm:$0xff] }
  0x5b   :  { %5098 = vmatpush3.bf16.msra.mxu1 %v5097_v39  ;;  %v284_v39 = vld [vmem:[%s9370_s1 + $0x7b0] sm:$0xff] }
  0x5c   :  { %5100 = vmatprep.subr.bf16.mxu1 %v5099_v46  ;;  %v236_v46 = vld [vmem:[%s9370_s1 + $0x630] sm:$0xff]  ;;  %v5151_v49 = vpack.c.bf16 %v285_v40, %v284_v39  ;;  %v342_v39 = vld [vmem:[%s9370_s1 + $0x980] sm:$0xff]  ;;  %v343_v40 = vld [vmem:[%s9370_s1 + $0x988] sm:$0xff] }
  0x5d   :  { %5070 = vmatpush3.bf16.msra.mxu0 %v5069_v53  ;;  %v255_v53 = vld [vmem:[%s9370_s1 + $0x6c8] sm:$0xff]  ;;  %v5203_v50 = vpack.c.bf16 %v343_v40, %v342_v39  ;;  %v320_v39 = vld [vmem:[%s9370_s1 + $0x8d0] sm:$0xff]  ;;  %v321_v40 = vld [vmem:[%s9370_s1 + $0x8d8] sm:$0xff] }
  0x5e   :  { %5072 = vmatprep.subr.bf16.mxu0 %v5071_v55  ;;  %v5121_v55 = vpack.c.bf16 %v237_v47, %v236_v46  ;;  %v5123_v57 = vpack.c.bf16 %v255_v53, %v254_v51  ;;  %v5171_v46 = vpack.c.bf16 %v311_v38, %v310_v37  ;;  %v294_v47 = vld [vmem:[%s9370_s1 + $0x800] sm:$0xff]  ;;  %v327_v51 = vld [vmem:[%s9370_s1 + $0x908] sm:$0xff]  ;;  %v312_v53 = vld [vmem:[%s9370_s1 + $0x890] sm:$0xff] }
  0x5f   :  { %5102 = vmatpush3.bf16.msra.mxu1 %v5101_v54  ;;  %v287_v54 = vld [vmem:[%s9370_s1 + $0x7c8] sm:$0xff] }
  0x60   :  { %5104 = vmatprep.subr.bf16.mxu1 %v5103_v58  ;;  %v239_v58 = vld [vmem:[%s9370_s1 + $0x648] sm:$0xff]  ;;  %v5155_v60 = vpack.c.bf16 %v287_v54, %v286_v33  ;;  %v313_v33 = vld [vmem:[%s9370_s1 + $0x898] sm:$0xff] }
  0x61   :  { %5074 = vmatpush3.bf16.msra.mxu0 %v5073_v1  ;;  %v289_v1 = vld [vmem:[%s9370_s1 + $0x7d8] sm:$0xff]  ;;  %v335_v38 = vld [vmem:[%s9370_s1 + $0x948] sm:$0xff] }
  0x62   :  { %5108 = vmatprep.subr.bf16.mxu0 %v5107_v3  ;;  %v5157_v3 = vpack.c.bf16 %v271_v61, %v270_v59  ;;  %v5159_v8 = vpack.c.bf16 %v289_v1, %v288_v0  ;;  %v5175_v59 = vpack.c.bf16 %v313_v33, %v312_v53  ;;  %v297_v61 = vld [vmem:[%s9370_s1 + $0x818] sm:$0xff]  ;;  %v314_v1 = vld [vmem:[%s9370_s1 + $0x8a0] sm:$0xff] }
  0x63   :  { %5106 = vmatpush3.bf16.msra.mxu1 %v5105_v2  ;;  %v5125_v2 = vpack.c.bf16 %v239_v58, %v238_v45  ;;  %v5173_v45 = vpack.c.bf16 %v295_v48, %v294_v47  ;;  %v329_v0 = vld [vmem:[%s9370_s1 + $0x918] sm:$0xff]  ;;  %v5191_v47 = vpack.c.bf16 %v321_v40, %v320_v39  ;;  %v304_v48 = vld [vmem:[%s9370_s1 + $0x850] sm:$0xff]  ;;  %v322_v33 = vld [vmem:[%s9370_s1 + $0x8e0] sm:$0xff] }
  0x64   :  { %5140 = vmatprep.subr.bf16.mxu1 %v5139_v7  ;;  %1766 = vmatmul.mubr.f32.vlgmr.msra.gmra.mrb[4].mxu0 %v6462_v42  ;;  %v234_v42 = vld [vmem:[%s9370_s1 + $0x620] sm:$0xff]  ;;  %v272_v7 = vld [vmem:[%s9370_s1 + $0x750] sm:$0xff]  ;;  %v337_v53 = vld [vmem:[%s9370_s1 + $0x958] sm:$0xff] }
  0x65   :  { %5110 = vmatpush3.bf16.msra.mxu0 %v5109_v16  ;;  %1905 = vmatprep.mubr.f32.mxu0 %v1151_v26  ;;  %v5117_v41 = vpack.c.bf16 %v235_v34, %v234_v42  ;;  %v291_v16 = vld [vmem:[%s9370_s1 + $0x7e8] sm:$0xff]  ;;  %v261_v26 = vld [vmem:[%s9370_s1 + $0x6f8] sm:$0xff]  ;;  %v244_v42 = vld [vmem:[%s9370_s1 + $0x670] sm:$0xff] }
  0x66   :  { %1836 = vmatmul.mubr.f32.vlgmr.msra.gmra.mrb[4].mxu1 %v6483_v52  ;;  %5112 = vmatprep.subr.bf16.mxu0 %v5111_v18  ;;  %v267_v52 = vld [vmem:[%s9370_s1 + $0x728] sm:$0xff]  ;;  %v5161_v18 = vpack.c.bf16 %v273_v9, %v272_v7  ;;  %v5163_v23 = vpack.c.bf16 %v291_v16, %v290_v14  ;;  %v245_v34 = vld [vmem:[%s9370_s1 + $0x678] sm:$0xff]  ;;  %v316_v16 = vld [vmem:[%s9370_s1 + $0x8b0] sm:$0xff] }
  0x67   :  { %5142 = vmatpush3.bf16.msra.mxu1 %v5141_v17  ;;  %1975 = vmatprep.mubr.f32.mxu1 %v1152_v29  ;;  %v5149_v43 = vpack.c.bf16 %v267_v52, %v266_v35  ;;  %v5129_v17 = vpack.c.bf16 %v241_v6, %v240_v5  ;;  %v5133_v29 = vpack.c.bf16 %v243_v21, %v242_v20  ;;  %v276_v35 = vld [vmem:[%s9370_s1 + $0x770] sm:$0xff]  ;;  %v277_v52 = vld [vmem:[%s9370_s1 + $0x778] sm:$0xff]  ;;  %v347_v5 = vld [vmem:[%s9370_s1 + $0x9a8] sm:$0xff] }
  0x68   :  { %5144 = vmatprep.subr.bf16.mxu1 %v5143_v22  ;;  %v274_v22 = vld [vmem:[%s9370_s1 + $0x760] sm:$0xff]  ;;  %v392_v39 = vld [vmem:[%s9370_s1 + $0xb10] sm:$0xff] }
  0x69   :  { %5114 = vmatpush3.bf16.msra.mxu0 %v5113_v30  ;;  %v26_v30 = vld [vmem:[%s9371_s0 + $0x20] sm:$0xff] }
  0x6a   :  { %5116 = vmatprep.subr.bf16.mxu0 %v5115_v32  ;;  %v5135_v32 = vpack.c.bf16 %v261_v26, %v260_v25  ;;  %v6861_v54 = vrot.slane %v26_v30, %v6159_v13  ;;  %v332_v25 = vld [vmem:[%s9370_s1 + $0x930] sm:$0xff] }
  0x6b   :  { %5146 = vmatpush3.bf16.msra.mxu1 %v5145_v31  ;;  %v5165_v31 = vpack.c.bf16 %v275_v24, %v274_v22  ;;  %v301_v24 = vld [vmem:[%s9370_s1 + $0x838] sm:$0xff] }
  0x6c   :  { %5148 = vmatprep.subr.bf16.mxu1 %v5147_v36  ;;  %v5167_v36 = vpack.c.bf16 %v293_v28, %v292_v27  ;;  %v333_v27 = vld [vmem:[%s9370_s1 + $0x938] sm:$0xff]  ;;  %v318_v28 = vld [vmem:[%s9370_s1 + $0x8c0] sm:$0xff] }
  0x6d   :  { %5118 = vmatpush3.bf16.msra.mxu0 %v5117_v41  ;;  %v1153_v41 = vcombine.high %v26_v30, %v26_v30  ;;  %v350_v30 = vld [vmem:[%s9370_s1 + $0x9c0] sm:$0xff] }
  0x6e   :  { %5120 = vmatprep.subr.bf16.mxu0 %v5119_v44  ;;  %v5169_v44 = vpack.c.bf16 %v277_v52, %v276_v35  ;;  %v302_v35 = vld [vmem:[%s9370_s1 + $0x840] sm:$0xff] }
  0x6f   :  { %5150 = vmatpush3.bf16.msra.mxu1 %v5149_v43  ;;  %v5137_v43 = vpack.c.bf16 %v245_v34, %v244_v42  ;;  %v5217_v42 = vpack.c.bf16 %v333_v27, %v332_v25  ;;  %v334_v52 = vld [vmem:[%s9370_s1 + $0x940] sm:$0xff]  ;;  %v359_v25 = vld [vmem:[%s9370_s1 + $0xa08] sm:$0xff] }
  0x70   :  { %5152 = vmatprep.subr.bf16.mxu1 %v5151_v49  ;;  %v326_v49 = vld [vmem:[%s9370_s1 + $0x900] sm:$0xff] }
  0x71   :  { %5122 = vmatpush3.bf16.msra.mxu0 %v5121_v55  ;;  %v344_v55 = vld [vmem:[%s9370_s1 + $0x990] sm:$0xff]  ;;  %v5205_v58 = vpack.c.bf16 %v327_v51, %v326_v49  ;;  %v305_v49 = vld [vmem:[%s9370_s1 + $0x858] sm:$0xff] }
  0x72   :  { %5124 = vmatprep.subr.bf16.mxu0 %v5123_v57  ;;  %v6870_v57 = vrot.slane %v1153_v41, %v6159_v13  ;;  %v352_v41 = vld [vmem:[%s9370_s1 + $0x9d0] sm:$0xff] }
  0x73   :  { %5154 = vmatpush3.bf16.msra.mxu1 %v5153_v56  ;;  %v345_v56 = vld [vmem:[%s9370_s1 + $0x998] sm:$0xff] }
  0x74   :  { %5156 = vmatprep.subr.bf16.mxu1 %v5155_v60  ;;  %v296_v60 = vld [vmem:[%s9370_s1 + $0x810] sm:$0xff]  ;;  %v5207_v63 = vpack.c.bf16 %v345_v56, %v344_v55  ;;  %v1169_v6 = vcombine.high %v6870_v57, %v6870_v57  ;;  %v323_v55 = vld [vmem:[%s9370_s1 + $0x8e8] sm:$0xff]  ;;  %v354_v56 = vld [vmem:[%s9370_s1 + $0x9e0] sm:$0xff] }
  0x75   :  { %5126 = vmatpush3.bf16.msra.mxu0 %v5125_v2  ;;  %v315_v2 = vld [vmem:[%s9370_s1 + $0x8a8] sm:$0xff]  ;;  %v5177_v7 = vpack.c.bf16 %v297_v61, %v296_v60  ;;  %v5195_v60 = vpack.c.bf16 %v323_v55, %v322_v33  ;;  %v306_v61 = vld [vmem:[%s9370_s1 + $0x860] sm:$0xff] }
  0x76   :  { %5128 = vmatprep.subr.bf16.mxu0 %v5127_v4  ;;  %v346_v4 = vld [vmem:[%s9370_s1 + $0x9a0] sm:$0xff]  ;;  %v5179_v9 = vpack.c.bf16 %v315_v2, %v314_v1  ;;  %v339_v1 = vld [vmem:[%s9370_s1 + $0x968] sm:$0xff]  ;;  %v324_v2 = vld [vmem:[%s9370_s1 + $0x8f0] sm:$0xff] }
  0x77   :  { %5158 = vmatpush3.bf16.msra.mxu1 %v5157_v3  ;;  %v1168_v3 = vcombine.high %v6861_v54, %v6861_v54  ;;  %v5211_v14 = vpack.c.bf16 %v347_v5, %v346_v4  ;;  %v356_v4 = vld [vmem:[%s9370_s1 + $0x9f0] sm:$0xff]  ;;  %v357_v5 = vld [vmem:[%s9370_s1 + $0x9f8] sm:$0xff]  ;;  %v363_v33 = vld [vmem:[%s9370_s1 + $0xa28] sm:$0xff] }
  0x78   :  { %5160 = vmatprep.subr.bf16.mxu1 %v5159_v8  ;;  %v5209_v8 = vpack.c.bf16 %v329_v0, %v328_v62  ;;  %v307_v62 = vld [vmem:[%s9370_s1 + $0x868] sm:$0xff]  ;;  %v394_v55 = vld [vmem:[%s9370_s1 + $0xb20] sm:$0xff] }
  0x79   :  { %5130 = vmatpush3.bf16.msra.mxu0 %v5129_v17  ;;  %v317_v17 = vld [vmem:[%s9370_s1 + $0x8b8] sm:$0xff] }
  0x7a   :  { %5132 = vmatprep.subr.bf16.mxu0 %v5131_v19  ;;  %v349_v19 = vld [vmem:[%s9370_s1 + $0x9b8] sm:$0xff]  ;;  %v5183_v22 = vpack.c.bf16 %v317_v17, %v316_v16  ;;  %v374_v16 = vld [vmem:[%s9370_s1 + $0xa80] sm:$0xff]  ;;  %v375_v17 = vld [vmem:[%s9370_s1 + $0xa88] sm:$0xff] }
  0x7b   :  { %5162 = vmatpush3.bf16.msra.mxu1 %v5161_v18  ;;  %v348_v18 = vld [vmem:[%s9370_s1 + $0x9b0] sm:$0xff] }
  0x7c   :  { %5164 = vmatprep.subr.bf16.mxu1 %v5163_v23  ;;  %v300_v23 = vld [vmem:[%s9370_s1 + $0x830] sm:$0xff]  ;;  %v5215_v26 = vpack.c.bf16 %v349_v19, %v348_v18  ;;  %v406_v18 = vld [vmem:[%s9370_s1 + $0xb80] sm:$0xff]  ;;  %v407_v19 = vld [vmem:[%s9370_s1 + $0xb88] sm:$0xff] }
  0x7d   :  { %5134 = vmatpush3.bf16.msra.mxu0 %v5133_v29  ;;  %v319_v29 = vld [vmem:[%s9370_s1 + $0x8c8] sm:$0xff]  ;;  %v5267_v27 = vpack.c.bf16 %v407_v19, %v406_v18  ;;  %v384_v18 = vld [vmem:[%s9370_s1 + $0xad0] sm:$0xff]  ;;  %v385_v19 = vld [vmem:[%s9370_s1 + $0xad8] sm:$0xff] }
  0x7e   :  { %5136 = vmatprep.subr.bf16.mxu0 %v5135_v32  ;;  %v5185_v32 = vpack.c.bf16 %v301_v24, %v300_v23  ;;  %v5187_v34 = vpack.c.bf16 %v319_v29, %v318_v28  ;;  %v5235_v23 = vpack.c.bf16 %v375_v17, %v374_v16  ;;  %v358_v24 = vld [vmem:[%s9370_s1 + $0xa00] sm:$0xff]  ;;  %v391_v28 = vld [vmem:[%s9370_s1 + $0xb08] sm:$0xff]  ;;  %v376_v29 = vld [vmem:[%s9370_s1 + $0xa90] sm:$0xff] }
  0x7f   :  { %5166 = vmatpush3.bf16.msra.mxu1 %v5165_v31  ;;  %v351_v31 = vld [vmem:[%s9370_s1 + $0x9c8] sm:$0xff] }
  0x80   :  { %5168 = vmatprep.subr.bf16.mxu1 %v5167_v36  ;;  %v303_v36 = vld [vmem:[%s9370_s1 + $0x848] sm:$0xff]  ;;  %v5219_v37 = vpack.c.bf16 %v351_v31, %v350_v30  ;;  %v377_v30 = vld [vmem:[%s9370_s1 + $0xa98] sm:$0xff] }
  0x81   :  { %5138 = vmatpush3.bf16.msra.mxu0 %v5137_v43  ;;  %v353_v43 = vld [vmem:[%s9370_s1 + $0x9d8] sm:$0xff]  ;;  %v399_v17 = vld [vmem:[%s9370_s1 + $0xb48] sm:$0xff] }
  0x82   :  { %5172 = vmatprep.subr.bf16.mxu0 %v5171_v46  ;;  %v5221_v46 = vpack.c.bf16 %v335_v38, %v334_v52  ;;  %v5223_v51 = vpack.c.bf16 %v353_v43, %v352_v41  ;;  %v5239_v52 = vpack.c.bf16 %v377_v30, %v376_v29  ;;  %v361_v38 = vld [vmem:[%s9370_s1 + $0xa18] sm:$0xff]  ;;  %v378_v43 = vld [vmem:[%s9370_s1 + $0xaa0] sm:$0xff] }
  0x83   :  { %5170 = vmatpush3.bf16.msra.mxu1 %v5169_v44  ;;  %v5189_v44 = vpack.c.bf16 %v303_v36, %v302_v35  ;;  %v5237_v35 = vpack.c.bf16 %v359_v25, %v358_v24  ;;  %v393_v41 = vld [vmem:[%s9370_s1 + $0xb18] sm:$0xff]  ;;  %v5255_v24 = vpack.c.bf16 %v385_v19, %v384_v18  ;;  %v368_v25 = vld [vmem:[%s9370_s1 + $0xa50] sm:$0xff]  ;;  %v386_v30 = vld [vmem:[%s9370_s1 + $0xae0] sm:$0xff] }
  0x84   :  { %5204 = vmatprep.subr.bf16.mxu1 %v5203_v50  ;;  %1906 = vmatmul.mubr.f32.vlgmr.msra.gmra.mrb[6].mxu0 %v6654_v11  ;;  %v298_v11 = vld [vmem:[%s9370_s1 + $0x820] sm:$0xff]  ;;  %v336_v50 = vld [vmem:[%s9370_s1 + $0x950] sm:$0xff]  ;;  %v401_v29 = vld [vmem:[%s9370_s1 + $0xb58] sm:$0xff] }
  0x85   :  { %5174 = vmatpush3.bf16.msra.mxu0 %v5173_v45  ;;  %2045 = vmatprep.mubr.f32.mxu0 %v1168_v3  ;;  %v5181_v20 = vpack.c.bf16 %v299_v10, %v298_v11  ;;  %v355_v45 = vld [vmem:[%s9370_s1 + $0x9e8] sm:$0xff]  ;;  %v325_v3 = vld [vmem:[%s9370_s1 + $0x8f8] sm:$0xff]  ;;  %v308_v11 = vld [vmem:[%s9370_s1 + $0x870] sm:$0xff] }
  0x86   :  { %1976 = vmatmul.mubr.f32.vlgmr.msra.gmra.mrb[6].mxu1 %v6663_v15  ;;  %5176 = vmatprep.subr.bf16.mxu0 %v5175_v59  ;;  %v331_v15 = vld [vmem:[%s9370_s1 + $0x928] sm:$0xff]  ;;  %v5225_v59 = vpack.c.bf16 %v337_v53, %v336_v50  ;;  %v5227_v0 = vpack.c.bf16 %v355_v45, %v354_v56  ;;  %v309_v10 = vld [vmem:[%s9370_s1 + $0x878] sm:$0xff]  ;;  %v380_v45 = vld [vmem:[%s9370_s1 + $0xab0] sm:$0xff] }
  0x87   :  { %5206 = vmatpush3.bf16.msra.mxu1 %v5205_v58  ;;  %2115 = vmatprep.mubr.f32.mxu1 %v1169_v6  ;;  %v5213_v21 = vpack.c.bf16 %v331_v15, %v330_v12  ;;  %v5193_v58 = vpack.c.bf16 %v305_v49, %v304_v48  ;;  %v5197_v6 = vpack.c.bf16 %v307_v62, %v306_v61  ;;  %v340_v12 = vld [vmem:[%s9370_s1 + $0x970] sm:$0xff]  ;;  %v341_v15 = vld [vmem:[%s9370_s1 + $0x978] sm:$0xff]  ;;  %v411_v48 = vld [vmem:[%s9370_s1 + $0xba8] sm:$0xff] }
  0x88   :  { %5208 = vmatprep.subr.bf16.mxu1 %v5207_v63  ;;  %v338_v63 = vld [vmem:[%s9370_s1 + $0x960] sm:$0xff]  ;;  %v456_v18 = vld [vmem:[%s9370_s1 + $0xd10] sm:$0xff] }
  0x89   :  { %5178 = vmatpush3.bf16.msra.mxu0 %v5177_v7  ;;  %v27_v7 = vld [vmem:[%s9371_s0 + $0x28] sm:$0xff] }
  0x8a   :  { %5180 = vmatprep.subr.bf16.mxu0 %v5179_v9  ;;  %v5199_v9 = vpack.c.bf16 %v325_v3, %v324_v2  ;;  %v7068_v31 = vrot.slane %v27_v7, %v6159_v13  ;;  %v396_v2 = vld [vmem:[%s9370_s1 + $0xb30] sm:$0xff] }
  0x8b   :  { %5210 = vmatpush3.bf16.msra.mxu1 %v5209_v8  ;;  %v5229_v8 = vpack.c.bf16 %v339_v1, %v338_v63  ;;  %v365_v1 = vld [vmem:[%s9370_s1 + $0xa38] sm:$0xff] }
  0x8c   :  { %5212 = vmatprep.subr.bf16.mxu1 %v5211_v14  ;;  %v5231_v14 = vpack.c.bf16 %v357_v5, %v356_v4  ;;  %v397_v4 = vld [vmem:[%s9370_s1 + $0xb38] sm:$0xff]  ;;  %v382_v5 = vld [vmem:[%s9370_s1 + $0xac0] sm:$0xff] }
  0x8d   :  { %5182 = vmatpush3.bf16.msra.mxu0 %v5181_v20  ;;  %v1170_v20 = vcombine.high %v27_v7, %v27_v7  ;;  %v414_v7 = vld [vmem:[%s9370_s1 + $0xbc0] sm:$0xff] }
  0x8e   :  { %5184 = vmatprep.subr.bf16.mxu0 %v5183_v22  ;;  %v5233_v22 = vpack.c.bf16 %v341_v15, %v340_v12  ;;  %v366_v12 = vld [vmem:[%s9370_s1 + $0xa40] sm:$0xff] }
  0x8f   :  { %5214 = vmatpush3.bf16.msra.mxu1 %v5213_v21  ;;  %v5201_v21 = vpack.c.bf16 %v309_v10, %v308_v11  ;;  %v5281_v11 = vpack.c.bf16 %v397_v4, %v396_v2  ;;  %v398_v15 = vld [vmem:[%s9370_s1 + $0xb40] sm:$0xff]  ;;  %v423_v2 = vld [vmem:[%s9370_s1 + $0xc08] sm:$0xff] }
  0x90   :  { %5216 = vmatprep.subr.bf16.mxu1 %v5215_v26  ;;  %v390_v26 = vld [vmem:[%s9370_s1 + $0xb00] sm:$0xff] }
  0x91   :  { %5186 = vmatpush3.bf16.msra.mxu0 %v5185_v32  ;;  %v408_v32 = vld [vmem:[%s9370_s1 + $0xb90] sm:$0xff]  ;;  %v5269_v36 = vpack.c.bf16 %v391_v28, %v390_v26  ;;  %v369_v26 = vld [vmem:[%s9370_s1 + $0xa58] sm:$0xff] }
  0x92   :  { %5188 = vmatprep.subr.bf16.mxu0 %v5187_v34  ;;  %v7077_v34 = vrot.slane %v1170_v20, %v6159_v13  ;;  %v416_v20 = vld [vmem:[%s9370_s1 + $0xbd0] sm:$0xff] }
  0x93   :  { %5218 = vmatpush3.bf16.msra.mxu1 %v5217_v42  ;;  %v409_v42 = vld [vmem:[%s9370_s1 + $0xb98] sm:$0xff] }
  0x94   :  { %5220 = vmatprep.subr.bf16.mxu1 %v5219_v37  ;;  %v360_v37 = vld [vmem:[%s9370_s1 + $0xa10] sm:$0xff]  ;;  %v5271_v40 = vpack.c.bf16 %v409_v42, %v408_v32  ;;  %v1186_v49 = vcombine.high %v7077_v34, %v7077_v34  ;;  %v387_v32 = vld [vmem:[%s9370_s1 + $0xae8] sm:$0xff]  ;;  %v418_v42 = vld [vmem:[%s9370_s1 + $0xbe0] sm:$0xff] }
  0x95   :  { %5190 = vmatpush3.bf16.msra.mxu0 %v5189_v44  ;;  %v379_v44 = vld [vmem:[%s9370_s1 + $0xaa8] sm:$0xff]  ;;  %v5241_v50 = vpack.c.bf16 %v361_v38, %v360_v37  ;;  %v5259_v37 = vpack.c.bf16 %v387_v32, %v386_v30  ;;  %v370_v38 = vld [vmem:[%s9370_s1 + $0xa60] sm:$0xff] }
  0x96   :  { %5192 = vmatprep.subr.bf16.mxu0 %v5191_v47  ;;  %v410_v47 = vld [vmem:[%s9370_s1 + $0xba0] sm:$0xff]  ;;  %v5243_v53 = vpack.c.bf16 %v379_v44, %v378_v43  ;;  %v403_v43 = vld [vmem:[%s9370_s1 + $0xb68] sm:$0xff]  ;;  %v388_v44 = vld [vmem:[%s9370_s1 + $0xaf0] sm:$0xff] }
  0x97   :  { %5222 = vmatpush3.bf16.msra.mxu1 %v5221_v46  ;;  %v1185_v46 = vcombine.high %v7068_v31, %v7068_v31  ;;  %v5275_v56 = vpack.c.bf16 %v411_v48, %v410_v47  ;;  %v420_v47 = vld [vmem:[%s9370_s1 + $0xbf0] sm:$0xff]  ;;  %v421_v48 = vld [vmem:[%s9370_s1 + $0xbf8] sm:$0xff]  ;;  %v427_v30 = vld [vmem:[%s9370_s1 + $0xc28] sm:$0xff] }
  0x98   :  { %5224 = vmatprep.subr.bf16.mxu1 %v5223_v51  ;;  %v5273_v51 = vpack.c.bf16 %v393_v41, %v392_v39  ;;  %v371_v39 = vld [vmem:[%s9370_s1 + $0xa68] sm:$0xff]  ;;  %v458_v32 = vld [vmem:[%s9370_s1 + $0xd20] sm:$0xff] }
  0x99   :  { %5194 = vmatpush3.bf16.msra.mxu0 %v5193_v58  ;;  %v381_v58 = vld [vmem:[%s9370_s1 + $0xab8] sm:$0xff] }
  0x9a   :  { %5196 = vmatprep.subr.bf16.mxu0 %v5195_v60  ;;  %v413_v60 = vld [vmem:[%s9370_s1 + $0xbb8] sm:$0xff]  ;;  %v5247_v63 = vpack.c.bf16 %v381_v58, %v380_v45  ;;  %v438_v45 = vld [vmem:[%s9370_s1 + $0xc80] sm:$0xff]  ;;  %v439_v58 = vld [vmem:[%s9370_s1 + $0xc88] sm:$0xff] }
  0x9b   :  { %5226 = vmatpush3.bf16.msra.mxu1 %v5225_v59  ;;  %v412_v59 = vld [vmem:[%s9370_s1 + $0xbb0] sm:$0xff] }
  0x9c   :  { %5228 = vmatprep.subr.bf16.mxu1 %v5227_v0  ;;  %v364_v0 = vld [vmem:[%s9370_s1 + $0xa30] sm:$0xff]  ;;  %v5279_v3 = vpack.c.bf16 %v413_v60, %v412_v59  ;;  %v470_v59 = vld [vmem:[%s9370_s1 + $0xd80] sm:$0xff]  ;;  %v471_v60 = vld [vmem:[%s9370_s1 + $0xd88] sm:$0xff] }
  0x9d   :  { %5198 = vmatpush3.bf16.msra.mxu0 %v5197_v6  ;;  %v383_v6 = vld [vmem:[%s9370_s1 + $0xac8] sm:$0xff]  ;;  %v5331_v4 = vpack.c.bf16 %v471_v60, %v470_v59  ;;  %v448_v59 = vld [vmem:[%s9370_s1 + $0xcd0] sm:$0xff]  ;;  %v449_v60 = vld [vmem:[%s9370_s1 + $0xcd8] sm:$0xff] }
  0x9e   :  { %5200 = vmatprep.subr.bf16.mxu0 %v5199_v9  ;;  %v5249_v9 = vpack.c.bf16 %v365_v1, %v364_v0  ;;  %v5251_v10 = vpack.c.bf16 %v383_v6, %v382_v5  ;;  %v5299_v0 = vpack.c.bf16 %v439_v58, %v438_v45  ;;  %v422_v1 = vld [vmem:[%s9370_s1 + $0xc00] sm:$0xff]  ;;  %v455_v5 = vld [vmem:[%s9370_s1 + $0xd08] sm:$0xff]  ;;  %v440_v6 = vld [vmem:[%s9370_s1 + $0xc90] sm:$0xff] }
  0x9f   :  { %5230 = vmatpush3.bf16.msra.mxu1 %v5229_v8  ;;  %v415_v8 = vld [vmem:[%s9370_s1 + $0xbc8] sm:$0xff] }
  0xa0   :  { %5232 = vmatprep.subr.bf16.mxu1 %v5231_v14  ;;  %v367_v14 = vld [vmem:[%s9370_s1 + $0xa48] sm:$0xff]  ;;  %v5283_v16 = vpack.c.bf16 %v415_v8, %v414_v7  ;;  %v441_v7 = vld [vmem:[%s9370_s1 + $0xc98] sm:$0xff] }
  0xa1   :  { %5202 = vmatpush3.bf16.msra.mxu0 %v5201_v21  ;;  %v417_v21 = vld [vmem:[%s9370_s1 + $0xbd8] sm:$0xff]  ;;  %v463_v58 = vld [vmem:[%s9370_s1 + $0xd48] sm:$0xff] }
  0xa2   :  { %5236 = vmatprep.subr.bf16.mxu0 %v5235_v23  ;;  %v5285_v23 = vpack.c.bf16 %v399_v17, %v398_v15  ;;  %v5287_v28 = vpack.c.bf16 %v417_v21, %v416_v20  ;;  %v5303_v15 = vpack.c.bf16 %v441_v7, %v440_v6  ;;  %v425_v17 = vld [vmem:[%s9370_s1 + $0xc18] sm:$0xff]  ;;  %v442_v21 = vld [vmem:[%s9370_s1 + $0xca0] sm:$0xff] }
  0xa3   :  { %5234 = vmatpush3.bf16.msra.mxu1 %v5233_v22  ;;  %v5253_v22 = vpack.c.bf16 %v367_v14, %v366_v12  ;;  %v5301_v12 = vpack.c.bf16 %v423_v2, %v422_v1  ;;  %v457_v20 = vld [vmem:[%s9370_s1 + $0xd18] sm:$0xff]  ;;  %v5319_v1 = vpack.c.bf16 %v449_v60, %v448_v59  ;;  %v432_v2 = vld [vmem:[%s9370_s1 + $0xc50] sm:$0xff]  ;;  %v450_v7 = vld [vmem:[%s9370_s1 + $0xce0] sm:$0xff] }
  0xa4   :  { %5268 = vmatprep.subr.bf16.mxu1 %v5267_v27  ;;  %2046 = vmatmul.mubr.f32.vlgmr.msra.gmra.mrb[8].mxu0 %v6861_v54  ;;  %v362_v54 = vld [vmem:[%s9370_s1 + $0xa20] sm:$0xff]  ;;  %v400_v27 = vld [vmem:[%s9370_s1 + $0xb50] sm:$0xff]  ;;  %v465_v6 = vld [vmem:[%s9370_s1 + $0xd58] sm:$0xff] }
  0xa5   :  { %5238 = vmatpush3.bf16.msra.mxu0 %v5237_v35  ;;  %2185 = vmatprep.mubr.f32.mxu0 %v1185_v46  ;;  %v5245_v61 = vpack.c.bf16 %v363_v33, %v362_v54  ;;  %v419_v35 = vld [vmem:[%s9370_s1 + $0xbe8] sm:$0xff]  ;;  %v389_v46 = vld [vmem:[%s9370_s1 + $0xaf8] sm:$0xff]  ;;  %v372_v54 = vld [vmem:[%s9370_s1 + $0xa70] sm:$0xff] }
  0xa6   :  { %2116 = vmatmul.mubr.f32.vlgmr.msra.gmra.mrb[8].mxu1 %v6870_v57  ;;  %5240 = vmatprep.subr.bf16.mxu0 %v5239_v52  ;;  %v395_v57 = vld [vmem:[%s9370_s1 + $0xb28] sm:$0xff]  ;;  %v5289_v52 = vpack.c.bf16 %v401_v29, %v400_v27  ;;  %v5291_v41 = vpack.c.bf16 %v419_v35, %v418_v42  ;;  %v373_v33 = vld [vmem:[%s9370_s1 + $0xa78] sm:$0xff]  ;;  %v444_v35 = vld [vmem:[%s9370_s1 + $0xcb0] sm:$0xff] }
  0xa7   :  { %5270 = vmatpush3.bf16.msra.mxu1 %v5269_v36  ;;  %2255 = vmatprep.mubr.f32.mxu1 %v1186_v49  ;;  %v5277_v62 = vpack.c.bf16 %v395_v57, %v394_v55  ;;  %v5257_v36 = vpack.c.bf16 %v369_v26, %v368_v25  ;;  %v5261_v49 = vpack.c.bf16 %v371_v39, %v370_v38  ;;  %v404_v55 = vld [vmem:[%s9370_s1 + $0xb70] sm:$0xff]  ;;  %v405_v57 = vld [vmem:[%s9370_s1 + $0xb78] sm:$0xff]  ;;  %v475_v25 = vld [vmem:[%s9370_s1 + $0xda8] sm:$0xff] }
  0xa8   :  { %5272 = vmatprep.subr.bf16.mxu1 %v5271_v40  ;;  %v402_v40 = vld [vmem:[%s9370_s1 + $0xb60] sm:$0xff]  ;;  %v520_v59 = vld [vmem:[%s9370_s1 + $0xf10] sm:$0xff] }
  0xa9   :  { %5242 = vmatpush3.bf16.msra.mxu0 %v5241_v50  ;;  %v28_v50 = vld [vmem:[%s9371_s0 + $0x30] sm:$0xff] }
  0xaa   :  { %5244 = vmatprep.subr.bf16.mxu0 %v5243_v53  ;;  %v5263_v53 = vpack.c.bf16 %v389_v46, %v388_v44  ;;  %v7275_v8 = vrot.slane %v28_v50, %v6159_v13  ;;  %v460_v44 = vld [vmem:[%s9370_s1 + $0xd30] sm:$0xff] }
  0xab   :  { %5274 = vmatpush3.bf16.msra.mxu1 %v5273_v51  ;;  %v5293_v51 = vpack.c.bf16 %v403_v43, %v402_v40  ;;  %v429_v43 = vld [vmem:[%s9370_s1 + $0xc38] sm:$0xff] }
  0xac   :  { %5276 = vmatprep.subr.bf16.mxu1 %v5275_v56  ;;  %v5295_v56 = vpack.c.bf16 %v421_v48, %v420_v47  ;;  %v461_v47 = vld [vmem:[%s9370_s1 + $0xd38] sm:$0xff]  ;;  %v446_v48 = vld [vmem:[%s9370_s1 + $0xcc0] sm:$0xff] }
  0xad   :  { %5246 = vmatpush3.bf16.msra.mxu0 %v5245_v61  ;;  %v1187_v61 = vcombine.high %v28_v50, %v28_v50  ;;  %v478_v50 = vld [vmem:[%s9370_s1 + $0xdc0] sm:$0xff] }
  0xae   :  { %5248 = vmatprep.subr.bf16.mxu0 %v5247_v63  ;;  %v5297_v63 = vpack.c.bf16 %v405_v57, %v404_v55  ;;  %v430_v55 = vld [vmem:[%s9370_s1 + $0xc40] sm:$0xff] }
  0xaf   :  { %5278 = vmatpush3.bf16.msra.mxu1 %v5277_v62  ;;  %v5265_v62 = vpack.c.bf16 %v373_v33, %v372_v54  ;;  %v5345_v54 = vpack.c.bf16 %v461_v47, %v460_v44  ;;  %v462_v57 = vld [vmem:[%s9370_s1 + $0xd40] sm:$0xff]  ;;  %v487_v44 = vld [vmem:[%s9370_s1 + $0xe08] sm:$0xff] }
  0xb0   :  { %5280 = vmatprep.subr.bf16.mxu1 %v5279_v3  ;;  %v454_v3 = vld [vmem:[%s9370_s1 + $0xd00] sm:$0xff] }
  0xb1   :  { %5250 = vmatpush3.bf16.msra.mxu0 %v5249_v9  ;;  %v472_v9 = vld [vmem:[%s9370_s1 + $0xd90] sm:$0xff]  ;;  %v5333_v14 = vpack.c.bf16 %v455_v5, %v454_v3  ;;  %v433_v3 = vld [vmem:[%s9370_s1 + $0xc58] sm:$0xff] }
  0xb2   :  { %5252 = vmatprep.subr.bf16.mxu0 %v5251_v10  ;;  %v7284_v10 = vrot.slane %v1187_v61, %v6159_v13  ;;  %v480_v61 = vld [vmem:[%s9370_s1 + $0xdd0] sm:$0xff] }
  0xb3   :  { %5282 = vmatpush3.bf16.msra.mxu1 %v5281_v11  ;;  %v473_v11 = vld [vmem:[%s9370_s1 + $0xd98] sm:$0xff] }
  0xb4   :  { %5284 = vmatprep.subr.bf16.mxu1 %v5283_v16  ;;  %v424_v16 = vld [vmem:[%s9370_s1 + $0xc10] sm:$0xff]  ;;  %v5335_v19 = vpack.c.bf16 %v473_v11, %v472_v9  ;;  %v1203_v26 = vcombine.high %v7284_v10, %v7284_v10  ;;  %v451_v9 = vld [vmem:[%s9370_s1 + $0xce8] sm:$0xff]  ;;  %v482_v11 = vld [vmem:[%s9370_s1 + $0xde0] sm:$0xff] }
  0xb5   :  { %5254 = vmatpush3.bf16.msra.mxu0 %v5253_v22  ;;  %v443_v22 = vld [vmem:[%s9370_s1 + $0xca8] sm:$0xff]  ;;  %v5305_v27 = vpack.c.bf16 %v425_v17, %v424_v16  ;;  %v5323_v16 = vpack.c.bf16 %v451_v9, %v450_v7  ;;  %v434_v17 = vld [vmem:[%s9370_s1 + $0xc60] sm:$0xff] }
  0xb6   :  { %5256 = vmatprep.subr.bf16.mxu0 %v5255_v24  ;;  %v474_v24 = vld [vmem:[%s9370_s1 + $0xda0] sm:$0xff]  ;;  %v5307_v29 = vpack.c.bf16 %v443_v22, %v442_v21  ;;  %v467_v21 = vld [vmem:[%s9370_s1 + $0xd68] sm:$0xff]  ;;  %v452_v22 = vld [vmem:[%s9370_s1 + $0xcf0] sm:$0xff] }
  0xb7   :  { %5286 = vmatpush3.bf16.msra.mxu1 %v5285_v23  ;;  %v1202_v23 = vcombine.high %v7275_v8, %v7275_v8  ;;  %v5339_v42 = vpack.c.bf16 %v475_v25, %v474_v24  ;;  %v484_v24 = vld [vmem:[%s9370_s1 + $0xdf0] sm:$0xff]  ;;  %v485_v25 = vld [vmem:[%s9370_s1 + $0xdf8] sm:$0xff]  ;;  %v491_v7 = vld [vmem:[%s9370_s1 + $0xe28] sm:$0xff] }
  0xb8   :  { %5288 = vmatprep.subr.bf16.mxu1 %v5287_v28  ;;  %v5337_v28 = vpack.c.bf16 %v457_v20, %v456_v18  ;;  %v435_v18 = vld [vmem:[%s9370_s1 + $0xc68] sm:$0xff]  ;;  %v522_v9 = vld [vmem:[%s9370_s1 + $0xf20] sm:$0xff] }
  0xb9   :  { %5258 = vmatpush3.bf16.msra.mxu0 %v5257_v36  ;;  %v445_v36 = vld [vmem:[%s9370_s1 + $0xcb8] sm:$0xff] }
  0xba   :  { %5260 = vmatprep.subr.bf16.mxu0 %v5259_v37  ;;  %v477_v37 = vld [vmem:[%s9370_s1 + $0xdb8] sm:$0xff]  ;;  %v5311_v40 = vpack.c.bf16 %v445_v36, %v444_v35  ;;  %v502_v35 = vld [vmem:[%s9370_s1 + $0xe80] sm:$0xff]  ;;  %v503_v36 = vld [vmem:[%s9370_s1 + $0xe88] sm:$0xff] }
  0xbb   :  { %5290 = vmatpush3.bf16.msra.mxu1 %v5289_v52  ;;  %v476_v52 = vld [vmem:[%s9370_s1 + $0xdb0] sm:$0xff] }
  0xbc   :  { %5292 = vmatprep.subr.bf16.mxu1 %v5291_v41  ;;  %v428_v41 = vld [vmem:[%s9370_s1 + $0xc30] sm:$0xff]  ;;  %v5343_v46 = vpack.c.bf16 %v477_v37, %v476_v52  ;;  %v534_v52 = vld [vmem:[%s9370_s1 + $0xf80] sm:$0xff]  ;;  %v535_v37 = vld [vmem:[%s9370_s1 + $0xf88] sm:$0xff] }
  0xbd   :  { %5262 = vmatpush3.bf16.msra.mxu0 %v5261_v49  ;;  %v447_v49 = vld [vmem:[%s9370_s1 + $0xcc8] sm:$0xff]  ;;  %v5395_v47 = vpack.c.bf16 %v535_v37, %v534_v52  ;;  %v512_v52 = vld [vmem:[%s9370_s1 + $0xed0] sm:$0xff]  ;;  %v513_v37 = vld [vmem:[%s9370_s1 + $0xed8] sm:$0xff] }
  0xbe   :  { %5264 = vmatprep.subr.bf16.mxu0 %v5263_v53  ;;  %v5313_v53 = vpack.c.bf16 %v429_v43, %v428_v41  ;;  %v5315_v33 = vpack.c.bf16 %v447_v49, %v446_v48  ;;  %v5363_v41 = vpack.c.bf16 %v503_v36, %v502_v35  ;;  %v486_v43 = vld [vmem:[%s9370_s1 + $0xe00] sm:$0xff]  ;;  %v519_v48 = vld [vmem:[%s9370_s1 + $0xf08] sm:$0xff]  ;;  %v504_v49 = vld [vmem:[%s9370_s1 + $0xe90] sm:$0xff] }
  0xbf   :  { %5294 = vmatpush3.bf16.msra.mxu1 %v5293_v51  ;;  %v479_v51 = vld [vmem:[%s9370_s1 + $0xdc8] sm:$0xff] }
  0xc0   :  { %5296 = vmatprep.subr.bf16.mxu1 %v5295_v56  ;;  %v431_v56 = vld [vmem:[%s9370_s1 + $0xc48] sm:$0xff]  ;;  %v5347_v45 = vpack.c.bf16 %v479_v51, %v478_v50  ;;  %v505_v50 = vld [vmem:[%s9370_s1 + $0xe98] sm:$0xff] }
  0xc1   :  { %5266 = vmatpush3.bf16.msra.mxu0 %v5265_v62  ;;  %v481_v62 = vld [vmem:[%s9370_s1 + $0xdd8] sm:$0xff]  ;;  %v527_v36 = vld [vmem:[%s9370_s1 + $0xf48] sm:$0xff] }
  0xc2   :  { %5300 = vmatprep.subr.bf16.mxu0 %v5299_v0  ;;  %v5349_v0 = vpack.c.bf16 %v463_v58, %v462_v57  ;;  %v5351_v5 = vpack.c.bf16 %v481_v62, %v480_v61  ;;  %v5367_v57 = vpack.c.bf16 %v505_v50, %v504_v49  ;;  %v489_v58 = vld [vmem:[%s9370_s1 + $0xe18] sm:$0xff]  ;;  %v506_v62 = vld [vmem:[%s9370_s1 + $0xea0] sm:$0xff] }
  0xc3   :  { %5298 = vmatpush3.bf16.msra.mxu1 %v5297_v63  ;;  %v5317_v63 = vpack.c.bf16 %v431_v56, %v430_v55  ;;  %v5365_v55 = vpack.c.bf16 %v487_v44, %v486_v43  ;;  %v521_v61 = vld [vmem:[%s9370_s1 + $0xf18] sm:$0xff]  ;;  %v5383_v43 = vpack.c.bf16 %v513_v37, %v512_v52  ;;  %v496_v44 = vld [vmem:[%s9370_s1 + $0xe50] sm:$0xff]  ;;  %v514_v50 = vld [vmem:[%s9370_s1 + $0xee0] sm:$0xff] }
  0xc4   :  { %5332 = vmatprep.subr.bf16.mxu1 %v5331_v4  ;;  %2186 = vmatmul.mubr.f32.vlgmr.msra.gmra.mrb[10].mxu0 %v7068_v31  ;;  %v426_v31 = vld [vmem:[%s9370_s1 + $0xc20] sm:$0xff]  ;;  %v464_v4 = vld [vmem:[%s9370_s1 + $0xd50] sm:$0xff]  ;;  %v529_v49 = vld [vmem:[%s9370_s1 + $0xf58] sm:$0xff] }
  0xc5   :  { %5302 = vmatpush3.bf16.msra.mxu0 %v5301_v12  ;;  %2325 = vmatprep.mubr.f32.mxu0 %v1202_v23  ;;  %v5309_v38 = vpack.c.bf16 %v427_v30, %v426_v31  ;;  %v483_v12 = vld [vmem:[%s9370_s1 + $0xde8] sm:$0xff]  ;;  %v453_v23 = vld [vmem:[%s9370_s1 + $0xcf8] sm:$0xff]  ;;  %v436_v31 = vld [vmem:[%s9370_s1 + $0xc70] sm:$0xff] }
  0xc6   :  { %2256 = vmatmul.mubr.f32.vlgmr.msra.gmra.mrb[10].mxu1 %v7077_v34  ;;  %5304 = vmatprep.subr.bf16.mxu0 %v5303_v15  ;;  %v459_v34 = vld [vmem:[%s9370_s1 + $0xd28] sm:$0xff]  ;;  %v5353_v15 = vpack.c.bf16 %v465_v6, %v464_v4  ;;  %v5355_v20 = vpack.c.bf16 %v483_v12, %v482_v11  ;;  %v437_v30 = vld [vmem:[%s9370_s1 + $0xc78] sm:$0xff]  ;;  %v508_v12 = vld [vmem:[%s9370_s1 + $0xeb0] sm:$0xff] }
  0xc7   :  { %5334 = vmatpush3.bf16.msra.mxu1 %v5333_v14  ;;  %2395 = vmatprep.mubr.f32.mxu1 %v1203_v26  ;;  %v5341_v39 = vpack.c.bf16 %v459_v34, %v458_v32  ;;  %v5321_v14 = vpack.c.bf16 %v433_v3, %v432_v2  ;;  %v5325_v26 = vpack.c.bf16 %v435_v18, %v434_v17  ;;  %v468_v32 = vld [vmem:[%s9370_s1 + $0xd70] sm:$0xff]  ;;  %v469_v34 = vld [vmem:[%s9370_s1 + $0xd78] sm:$0xff]  ;;  %v539_v2 = vld [vmem:[%s9370_s1 + $0xfa8] sm:$0xff] }
  0xc8   :  { %5336 = vmatprep.subr.bf16.mxu1 %v5335_v19  ;;  %v466_v19 = vld [vmem:[%s9370_s1 + $0xd60] sm:$0xff]  ;;  %v600_v37 = vld [vmem:[%s9370_s1 + $0x1190] sm:$0xff] }
  0xc9   :  { %5306 = vmatpush3.bf16.msra.mxu0 %v5305_v27  ;;  %v29_v27 = vld [vmem:[%s9371_s0 + $0x38] sm:$0xff] }
  0xca   :  { %5308 = vmatprep.subr.bf16.mxu0 %v5307_v29  ;;  %v5327_v29 = vpack.c.bf16 %v453_v23, %v452_v22  ;;  %v7482_v51 = vrot.slane %v29_v27, %v6159_v13  ;;  %v524_v22 = vld [vmem:[%s9370_s1 + $0xf30] sm:$0xff] }
  0xcb   :  { %5338 = vmatpush3.bf16.msra.mxu1 %v5337_v28  ;;  %v5357_v28 = vpack.c.bf16 %v467_v21, %v466_v19  ;;  %v493_v21 = vld [vmem:[%s9370_s1 + $0xe38] sm:$0xff] }
  0xcc   :  { %5340 = vmatprep.subr.bf16.mxu1 %v5339_v42  ;;  %v5359_v42 = vpack.c.bf16 %v485_v25, %v484_v24  ;;  %v525_v24 = vld [vmem:[%s9370_s1 + $0xf38] sm:$0xff]  ;;  %v510_v25 = vld [vmem:[%s9370_s1 + $0xec0] sm:$0xff] }
  0xcd   :  { %5310 = vmatpush3.bf16.msra.mxu0 %v5309_v38  ;;  %v1204_v38 = vcombine.high %v29_v27, %v29_v27  ;;  %v542_v27 = vld [vmem:[%s9370_s1 + $0xfc0] sm:$0xff] }
  0xce   :  { %5312 = vmatprep.subr.bf16.mxu0 %v5311_v40  ;;  %v5361_v40 = vpack.c.bf16 %v469_v34, %v468_v32  ;;  %v494_v32 = vld [vmem:[%s9370_s1 + $0xe40] sm:$0xff] }
  0xcf   :  { %5342 = vmatpush3.bf16.msra.mxu1 %v5341_v39  ;;  %v5329_v39 = vpack.c.bf16 %v437_v30, %v436_v31  ;;  %v5409_v31 = vpack.c.bf16 %v525_v24, %v524_v22  ;;  %v526_v34 = vld [vmem:[%s9370_s1 + $0xf40] sm:$0xff]  ;;  %v567_v22 = vld [vmem:[%s9370_s1 + $0x1088] sm:$0xff] }
  0xd0   :  { %5344 = vmatprep.subr.bf16.mxu1 %v5343_v46  ;;  %v518_v46 = vld [vmem:[%s9370_s1 + $0xf00] sm:$0xff]  ;;  %v599_v24 = vld [vmem:[%s9370_s1 + $0x1188] sm:$0xff] }
  0xd1   :  { %5314 = vmatpush3.bf16.msra.mxu0 %v5313_v53  ;;  %v536_v53 = vld [vmem:[%s9370_s1 + $0xf90] sm:$0xff]  ;;  %v5397_v56 = vpack.c.bf16 %v519_v48, %v518_v46  ;;  %v497_v46 = vld [vmem:[%s9370_s1 + $0xe58] sm:$0xff] }
  0xd2   :  { %5316 = vmatprep.subr.bf16.mxu0 %v5315_v33  ;;  %v7491_v33 = vrot.slane %v1204_v38, %v6159_v13  ;;  %v544_v38 = vld [vmem:[%s9370_s1 + $0xfd0] sm:$0xff] }
  0xd3   :  { %5346 = vmatpush3.bf16.msra.mxu1 %v5345_v54  ;;  %v537_v54 = vld [vmem:[%s9370_s1 + $0xf98] sm:$0xff] }
  0xd4   :  { %5348 = vmatprep.subr.bf16.mxu1 %v5347_v45  ;;  %v488_v45 = vld [vmem:[%s9370_s1 + $0xe10] sm:$0xff]  ;;  %v5399_v60 = vpack.c.bf16 %v537_v54, %v536_v53  ;;  %v1220_v3 = vcombine.high %v7491_v33, %v7491_v33  ;;  %v515_v53 = vld [vmem:[%s9370_s1 + $0xee8] sm:$0xff]  ;;  %v546_v54 = vld [vmem:[%s9370_s1 + $0xfe0] sm:$0xff] }
  0xd5   :  { %5318 = vmatpush3.bf16.msra.mxu0 %v5317_v63  ;;  %v507_v63 = vld [vmem:[%s9370_s1 + $0xea8] sm:$0xff]  ;;  %v5369_v4 = vpack.c.bf16 %v489_v58, %v488_v45  ;;  %v5387_v45 = vpack.c.bf16 %v515_v53, %v514_v50  ;;  %v498_v58 = vld [vmem:[%s9370_s1 + $0xe60] sm:$0xff] }
  0xd6   :  { %5320 = vmatprep.subr.bf16.mxu0 %v5319_v1  ;;  %v538_v1 = vld [vmem:[%s9370_s1 + $0xfa0] sm:$0xff]  ;;  %v5371_v6 = vpack.c.bf16 %v507_v63, %v506_v62  ;;  %v531_v63 = vld [vmem:[%s9370_s1 + $0xf68] sm:$0xff] }
  0xd7   :  { %5350 = vmatpush3.bf16.msra.mxu1 %v5349_v0  ;;  %v1219_v0 = vcombine.high %v7482_v51, %v7482_v51  ;;  %v5403_v11 = vpack.c.bf16 %v539_v2, %v538_v1  ;;  %v517_v1 = vld [vmem:[%s9370_s1 + $0xef8] sm:$0xff]  ;;  %v3763_v2 = vld [vmem:[%s9372_s2] ss:$0 sm:$0xff]  ;;  %v571_v53 = vld [vmem:[%s9370_s1 + $0x10a8] sm:$0xff] }
  0xd8   :  { %5352 = vmatprep.subr.bf16.mxu1 %v5351_v5  ;;  %v5401_v5 = vpack.c.bf16 %v521_v61, %v520_v59  ;;  %v499_v59 = vld [vmem:[%s9370_s1 + $0xe68] sm:$0xff]  ;;  %v570_v50 = vld [vmem:[%s9370_s1 + $0x10a0] sm:$0xff] }
  0xd9   :  { %5322 = vmatpush3.bf16.msra.mxu0 %v5321_v14  ;;  %v509_v14 = vld [vmem:[%s9370_s1 + $0xeb8] sm:$0xff] }
  0xda   :  { %5324 = vmatprep.subr.bf16.mxu0 %v5323_v16  ;;  %v541_v16 = vld [vmem:[%s9370_s1 + $0xfb8] sm:$0xff]  ;;  %v5375_v19 = vpack.c.bf16 %v509_v14, %v508_v12 }
  0xdb   :  { %5354 = vmatpush3.bf16.msra.mxu1 %v5353_v15  ;;  %v540_v15 = vld [vmem:[%s9370_s1 + $0xfb0] sm:$0xff] }
  0xdc   :  { %5356 = vmatprep.subr.bf16.mxu1 %v5355_v20  ;;  %v492_v20 = vld [vmem:[%s9370_s1 + $0xe30] sm:$0xff]  ;;  %v5407_v23 = vpack.c.bf16 %v541_v16, %v540_v15  ;;  %v501_v16 = vld [vmem:[%s9370_s1 + $0xe78] sm:$0xff] }
  0xdd   :  { %5326 = vmatpush3.bf16.msra.mxu0 %v5325_v26  ;;  %v511_v26 = vld [vmem:[%s9370_s1 + $0xec8] sm:$0xff]  ;;  %v500_v15 = vld [vmem:[%s9370_s1 + $0xe70] sm:$0xff] }
  0xde   :  { %5328 = vmatprep.subr.bf16.mxu0 %v5327_v29  ;;  %v5377_v29 = vpack.c.bf16 %v493_v21, %v492_v20  ;;  %v5379_v30 = vpack.c.bf16 %v511_v26, %v510_v25  ;;  %v533_v20 = vld [vmem:[%s9370_s1 + $0xf78] sm:$0xff]  ;;  %v566_v21 = vld [vmem:[%s9370_s1 + $0x1080] sm:$0xff] }
  0xdf   :  { %5358 = vmatpush3.bf16.msra.mxu1 %v5357_v28  ;;  %v543_v28 = vld [vmem:[%s9370_s1 + $0xfc8] sm:$0xff] }
  0xe0   :  { %5360 = vmatprep.subr.bf16.mxu1 %v5359_v42  ;;  %v495_v42 = vld [vmem:[%s9370_s1 + $0xe48] sm:$0xff]  ;;  %v5411_v35 = vpack.c.bf16 %v543_v28, %v542_v27  ;;  %v5393_v27 = vpack.c.bf16 %v501_v16, %v500_v15 }
  0xe1   :  { %5330 = vmatpush3.bf16.msra.mxu0 %v5329_v39  ;;  %v545_v39 = vld [vmem:[%s9370_s1 + $0xfd8] sm:$0xff]  ;;  %v607_v15 = vld [vmem:[%s9370_s1 + $0x11c8] sm:$0xff] }
  0xe2   :  { %5364 = vmatprep.subr.bf16.mxu0 %v5363_v41  ;;  %v5413_v41 = vpack.c.bf16 %v527_v36, %v526_v34  ;;  %v5415_v48 = vpack.c.bf16 %v545_v39, %v544_v38  ;;  %v583_v34 = vld [vmem:[%s9370_s1 + $0x1108] sm:$0xff]  ;;  %v569_v36 = vld [vmem:[%s9370_s1 + $0x1098] sm:$0xff] }
  0xe3   :  { %5362 = vmatpush3.bf16.msra.mxu1 %v5361_v40  ;;  %v5381_v40 = vpack.c.bf16 %v495_v42, %v494_v32  ;;  %v582_v32 = vld [vmem:[%s9370_s1 + $0x1100] sm:$0xff]  ;;  %v601_v38 = vld [vmem:[%s9370_s1 + $0x1198] sm:$0xff] }
  0xe4   :  { %5396 = vmatprep.subr.bf16.mxu1 %v5395_v47  ;;  %2326 = vmatmul.mubr.f32.vlgmr.msra.gmra.mrb[12].mxu0 %v7275_v8  ;;  %v490_v8 = vld [vmem:[%s9370_s1 + $0xe20] sm:$0xff]  ;;  %v528_v47 = vld [vmem:[%s9370_s1 + $0xf50] sm:$0xff] }
  0xe5   :  { %5366 = vmatpush3.bf16.msra.mxu0 %v5365_v55  ;;  %2465 = vmatprep.mubr.f32.mxu0 %v1219_v0  ;;  %v5373_v17 = vpack.c.bf16 %v491_v7, %v490_v8  ;;  %v547_v55 = vld [vmem:[%s9370_s1 + $0xfe8] sm:$0xff]  ;;  %v516_v0 = vld [vmem:[%s9370_s1 + $0xef0] sm:$0xff] }
  0xe6   :  { %2396 = vmatmul.mubr.f32.vlgmr.msra.gmra.mrb[12].mxu1 %v7284_v10  ;;  %5368 = vmatprep.subr.bf16.mxu0 %v5367_v57  ;;  %v523_v10 = vld [vmem:[%s9370_s1 + $0xf28] sm:$0xff]  ;;  %v5417_v57 = vpack.c.bf16 %v529_v49, %v528_v47  ;;  %v5419_v62 = vpack.c.bf16 %v547_v55, %v546_v54  ;;  %v5391_v14 = vpack.c.bf16 %v517_v1, %v516_v0  ;;  %v584_v47 = vld [vmem:[%s9370_s1 + $0x1110] sm:$0xff]  ;;  %v585_v49 = vld [vmem:[%s9370_s1 + $0x1118] sm:$0xff] }
  0xe7   :  { %5398 = vmatpush3.bf16.msra.mxu1 %v5397_v56  ;;  %2535 = vmatprep.mubr.f32.mxu1 %v1220_v3  ;;  %v5405_v18 = vpack.c.bf16 %v523_v10, %v522_v9  ;;  %v5385_v56 = vpack.c.bf16 %v497_v46, %v496_v44  ;;  %v5389_v9 = vpack.c.bf16 %v499_v59, %v498_v58  ;;  %v552_v44 = vld [vmem:[%s9370_s1 + $0x1010] sm:$0xff]  ;;  %v553_v46 = vld [vmem:[%s9370_s1 + $0x1018] sm:$0xff]  ;;  %v602_v55 = vld [vmem:[%s9370_s1 + $0x11a0] sm:$0xff] }
  0xe8   :  { %5400 = vmatprep.subr.bf16.mxu1 %v5399_v60  ;;  %v530_v60 = vld [vmem:[%s9370_s1 + $0xf60] sm:$0xff]  ;;  %v5465_v58 = vpack.c.bf16 %v585_v49, %v584_v47  ;;  %v5435_v59 = vpack.c.bf16 %v571_v53, %v570_v50  ;;  %v573_v0 = vld [vmem:[%s9370_s1 + $0x10b8] sm:$0xff]  ;;  %v604_v1 = vld [vmem:[%s9370_s1 + $0x11b0] sm:$0xff] }
  0xe9   :  { %5370 = vmatpush3.bf16.msra.mxu0 %v5369_v4  ;;  %v5421_v12 = vpack.c.bf16 %v531_v63, %v530_v60  ;;  %v555_v60 = vld [vmem:[%s9370_s1 + $0x1028] sm:$0xff]  ;;  %v572_v63 = vld [vmem:[%s9370_s1 + $0x10b0] sm:$0xff]  ;;  %v562_v47 = vld [vmem:[%s9370_s1 + $0x1060] sm:$0xff] }
  0xea   :  { %5372 = vmatprep.subr.bf16.mxu0 %v5371_v6  ;;  %v549_v6 = vld [vmem:[%s9370_s1 + $0xff8] sm:$0xff]  ;;  %v594_v49 = vld [vmem:[%s9370_s1 + $0x1160] sm:$0xff] }
  0xeb   :  { %5402 = vmatpush3.bf16.msra.mxu1 %v5401_v5  ;;  %v548_v5 = vld [vmem:[%s9370_s1 + $0xff0] sm:$0xff] }
  0xec   :  { %5404 = vmatprep.subr.bf16.mxu1 %v5403_v11  ;;  %v30_v11 = vld [vmem:[%s9371_s0 + $0x40] sm:$0xff] }
  0xed   :  { %5374 = vmatpush3.bf16.msra.mxu0 %v5373_v17  ;;  %v532_v17 = vld [vmem:[%s9370_s1 + $0xf70] sm:$0xff]  ;;  %v1221_v25 = vcombine.high %v30_v11, %v30_v11  ;;  %v7694_v52 = vrot.slane %v30_v11, %v6159_v13  ;;  %v589_v11 = vld [vmem:[%s9370_s1 + $0x1138] sm:$0xff] }
  0xee   :  { %5376 = vmatprep.subr.bf16.mxu0 %v5375_v19  ;;  %v5423_v19 = vpack.c.bf16 %v549_v6, %v548_v5  ;;  %v5425_v28 = vpack.c.bf16 %v533_v20, %v532_v17  ;;  %v5439_v5 = vpack.c.bf16 %v573_v0, %v572_v63  ;;  %v556_v6 = vld [vmem:[%s9370_s1 + $0x1030] sm:$0xff]  ;;  %v559_v20 = vld [vmem:[%s9370_s1 + $0x1048] sm:$0xff] }
  0xef   :  { %5406 = vmatpush3.bf16.msra.mxu1 %v5405_v18  ;;  %v7703_v39 = vrot.slane %v1221_v25, %v6159_v13  ;;  %v1236_v54 = vcombine.high %v7694_v52, %v7694_v52  ;;  %v577_v25 = vld [vmem:[%s9370_s1 + $0x10d8] sm:$0xff] }
  0xf0   :  { %5408 = vmatprep.subr.bf16.mxu1 %v5407_v23  ;;  %v598_v23 = vld [vmem:[%s9370_s1 + $0x1180] sm:$0xff] }
  0xf1   :  { %5378 = vmatpush3.bf16.msra.mxu0 %v5377_v29  ;;  %v5427_v29 = vpack.c.bf16 %v567_v22, %v566_v21  ;;  %v5459_v42 = vpack.c.bf16 %v599_v24, %v598_v23  ;;  %v590_v21 = vld [vmem:[%s9370_s1 + $0x1140] sm:$0xff]  ;;  %v591_v23 = vld [vmem:[%s9370_s1 + $0x1148] sm:$0xff]  ;;  %v576_v24 = vld [vmem:[%s9370_s1 + $0x10d0] sm:$0xff] }
  0xf2   :  { %5380 = vmatprep.subr.bf16.mxu0 %v5379_v30  ;;  %v551_v30 = vld [vmem:[%s9370_s1 + $0x1008] sm:$0xff] }
  0xf3   :  { %5410 = vmatpush3.bf16.msra.mxu1 %v5409_v31  ;;  %v550_v31 = vld [vmem:[%s9370_s1 + $0x1000] sm:$0xff] }
  0xf4   :  { %5412 = vmatprep.subr.bf16.mxu1 %v5411_v35  ;;  %v568_v35 = vld [vmem:[%s9370_s1 + $0x1090] sm:$0xff] }
  0xf5   :  { %5382 = vmatpush3.bf16.msra.mxu0 %v5381_v40  ;;  %v5429_v40 = vpack.c.bf16 %v551_v30, %v550_v31  ;;  %v5477_v31 = vpack.c.bf16 %v591_v23, %v590_v21  ;;  %v5447_v30 = vpack.c.bf16 %v577_v25, %v576_v24  ;;  %v632_v21 = vld [vmem:[%s9370_s1 + $0x1290] sm:$0xff]  ;;  %v665_v25 = vld [vmem:[%s9370_s1 + $0x1398] sm:$0xff] }
  0xf6   :  { %5384 = vmatprep.subr.bf16.mxu0 %v5383_v43  ;;  %v5431_v43 = vpack.c.bf16 %v569_v36, %v568_v35  ;;  %v593_v36 = vld [vmem:[%s9370_s1 + $0x1158] sm:$0xff]  ;;  %v664_v24 = vld [vmem:[%s9370_s1 + $0x1390] sm:$0xff] }
  0xf7   :  { %5414 = vmatpush3.bf16.msra.mxu1 %v5413_v41  ;;  %v3799_v61 = vpop.f32.mrb[0].mxu0  ;;  %v5461_v41 = vpack.c.bf16 %v583_v34, %v582_v32  ;;  %v560_v32 = vld [vmem:[%s9370_s1 + $0x1050] sm:$0xff] }
  0xf8   :  { %5416 = vmatprep.subr.bf16.mxu1 %v5415_v48  ;;  %v3800_v3 = vpop.f32.mrb[1].mxu0  ;;  %v5463_v48 = vpack.c.bf16 %v601_v38, %v600_v37  ;;  %v592_v34 = vld [vmem:[%s9370_s1 + $0x1150] sm:$0xff]  ;;  %v578_v37 = vld [vmem:[%s9370_s1 + $0x10e0] sm:$0xff]  ;;  %v579_v38 = vld [vmem:[%s9370_s1 + $0x10e8] sm:$0xff] }
  0xf9   :  { %v3834_v4 = vpop.f32.mrb[0].mxu1  ;;  %v3801_v8 = vadd.f32 %v3800_v3, %v3799_v61  ;;  %5386 = vmatpush3.bf16.msra.mxu0 %v5385_v56  ;;  %v603_v56 = vld [vmem:[%s9370_s1 + $0x11a8] sm:$0xff]  ;;  %v586_v61 = vld [vmem:[%s9370_s1 + $0x1120] sm:$0xff] }
  0xfa   :  { %v3835_v7 = vpop.f32.mrb[1].mxu1  ;;  %5388 = vmatprep.subr.bf16.mxu0 %v5387_v45  ;;  %v5433_v45 = vpack.c.bf16 %v553_v46, %v552_v44  ;;  %v5481_v44 = vpack.c.bf16 %v593_v36, %v592_v34  ;;  %v5451_v46 = vpack.c.bf16 %v579_v38, %v578_v37  ;;  %v5527_v34 = vpack.c.bf16 %v665_v25, %v664_v24  ;;  %v634_v36 = vld [vmem:[%s9370_s1 + $0x12a0] sm:$0xff]  ;;  %v635_v37 = vld [vmem:[%s9370_s1 + $0x12a8] sm:$0xff] }
  0xfb   :  { %v3836_v10 = vadd.f32 %v3835_v7, %v3834_v4  ;;  %5418 = vmatpush3.bf16.msra.mxu1 %v5417_v57  ;;  %v1488_v18 = vadd.f32 %v3801_v8, %v3763_v2  ;;  %v1237_v57 = vcombine.high %v7703_v39, %v7703_v39  ;;  %v605_v2 = vld [vmem:[%s9370_s1 + $0x11b8] sm:$0xff]  ;;  %v588_v7 = vld [vmem:[%s9370_s1 + $0x1130] sm:$0xff]  ;;  %v642_v24 = vld [vmem:[%s9370_s1 + $0x12e0] sm:$0xff] }
  0xfc   :  { %5420 = vmatprep.subr.bf16.mxu1 %v5419_v62  ;;  %v5467_v62 = vpack.c.bf16 %v603_v56, %v602_v55  ;;  %v557_v8 = vld [vmem:[%s9370_s1 + $0x1038] sm:$0xff]  ;;  %v5473_v17 = vpack.c.bf16 %v589_v11, %v588_v7  ;;  %v580_v55 = vld [vmem:[%s9370_s1 + $0x10f0] sm:$0xff]  ;;  %v631_v7 = vld [vmem:[%s9370_s1 + $0x1288] sm:$0xff] }
  0xfd   :  { %v7673_v26 = vadd.f32 %v3836_v10, %v1488_v18  ;;  %5390 = vmatpush3.bf16.msra.mxu0 %v5389_v9  ;;  %v5471_v9 = vpack.c.bf16 %v605_v2, %v604_v1  ;;  %v574_v10 = vld [vmem:[%s9370_s1 + $0x10c0] sm:$0xff]  ;;  %v5441_v16 = vpack.c.bf16 %v557_v8, %v556_v6  ;;  %v581_v56 = vld [vmem:[%s9370_s1 + $0x10f8] sm:$0xff]  ;;  %v564_v1 = vld [vmem:[%s9370_s1 + $0x1070] sm:$0xff] }
  0xfe   :  { %5392 = vmatprep.subr.bf16.mxu0 %v5391_v14  ;;  %v606_v14 = vld [vmem:[%s9370_s1 + $0x11c0] sm:$0xff]  ;;  %v5455_v0 = vpack.c.bf16 %v581_v56, %v580_v55  ;;  %v565_v2 = vld [vmem:[%s9370_s1 + $0x1078] sm:$0xff]  ;;  %v668_v55 = vld [vmem:[%s9370_s1 + $0x13b0] sm:$0xff] }
  0xff   :  { %5422 = vmatpush3.bf16.msra.mxu1 %v5421_v12  ;;  %v575_v12 = vld [vmem:[%s9370_s1 + $0x10c8] sm:$0xff]  ;;  %v5475_v22 = vpack.c.bf16 %v607_v15, %v606_v14  ;;  %v597_v6 = vld [vmem:[%s9370_s1 + $0x1178] sm:$0xff]  ;;  %v630_v8 = vld [vmem:[%s9370_s1 + $0x1280] sm:$0xff] }
 0x100   :  { %5424 = vmatprep.subr.bf16.mxu1 %v5423_v19  ;;  %v5443_v18 = vpack.c.bf16 %v575_v12, %v574_v10  ;;  %v558_v19 = vld [vmem:[%s9370_s1 + $0x1040] sm:$0xff]  ;;  %v5457_v12 = vpack.c.bf16 %v565_v2, %v564_v1  ;;  %v5491_v15 = vpack.c.bf16 %v631_v7, %v630_v8  ;;  %v669_v56 = vld [vmem:[%s9370_s1 + $0x13b8] sm:$0xff]  ;;  %v671_v1 = vld [vmem:[%s9370_s1 + $0x13c8] sm:$0xff] }
 0x101   :  { %5394 = vmatpush3.bf16.msra.mxu0 %v5393_v27  ;;  %v608_v27 = vld [vmem:[%s9370_s1 + $0x11d0] sm:$0xff]  ;;  %v654_v8 = vld [vmem:[%s9370_s1 + $0x1340] sm:$0xff]  ;;  %v643_v25 = vld [vmem:[%s9370_s1 + $0x12e8] sm:$0xff] }
 0x102   :  { %5428 = vmatprep.subr.bf16.mxu0 %v5427_v29  ;;  %v5445_v29 = vpack.c.bf16 %v559_v20, %v558_v19  ;;  %v647_v20 = vld [vmem:[%s9370_s1 + $0x1308] sm:$0xff] }
 0x103   :  { %5426 = vmatpush3.bf16.msra.mxu1 %v5425_v28  ;;  %v609_v28 = vld [vmem:[%s9370_s1 + $0x11d8] sm:$0xff] }
 0x104   :  { %5460 = vmatprep.subr.bf16.mxu1 %v5459_v42  ;;  %2466 = vmatmul.mubr.f32.vlgmr.msra.gmra.mrb[14].mxu0 %v7482_v51  ;;  %v554_v51 = vld [vmem:[%s9370_s1 + $0x1020] sm:$0xff]  ;;  %v561_v42 = vld [vmem:[%s9370_s1 + $0x1058] sm:$0xff]  ;;  %v5479_v35 = vpack.c.bf16 %v609_v28, %v608_v27 }
 0x105   :  { %5430 = vmatpush3.bf16.msra.mxu0 %v5429_v40  ;;  %2605 = vmatprep.mubr.f32.mxu0 %v1236_v54  ;;  %v5437_v3 = vpack.c.bf16 %v555_v60, %v554_v51  ;;  %v610_v40 = vld [vmem:[%s9370_s1 + $0x11e0] sm:$0xff]  ;;  %v595_v54 = vld [vmem:[%s9370_s1 + $0x1168] sm:$0xff] }
 0x106   :  { %2536 = vmatmul.mubr.f32.vlgmr.msra.gmra.mrb[14].mxu1 %v7491_v33  ;;  %5432 = vmatprep.subr.bf16.mxu0 %v5431_v43  ;;  %v587_v33 = vld [vmem:[%s9370_s1 + $0x1128] sm:$0xff]  ;;  %v5449_v43 = vpack.c.bf16 %v561_v42, %v560_v32  ;;  %v5485_v63 = vpack.c.bf16 %v595_v54, %v594_v49  ;;  %v617_v32 = vld [vmem:[%s9370_s1 + $0x1218] sm:$0xff]  ;;  %v648_v42 = vld [vmem:[%s9370_s1 + $0x1310] sm:$0xff] }
 0x107   :  { %5462 = vmatpush3.bf16.msra.mxu1 %v5461_v41  ;;  %2675 = vmatprep.mubr.f32.mxu1 %v1237_v57  ;;  %v5469_v4 = vpack.c.bf16 %v587_v33, %v586_v61  ;;  %v611_v41 = vld [vmem:[%s9370_s1 + $0x11e8] sm:$0xff]  ;;  %v650_v49 = vld [vmem:[%s9370_s1 + $0x1320] sm:$0xff]  ;;  %v637_v54 = vld [vmem:[%s9370_s1 + $0x12b8] sm:$0xff] }
 0x108   :  { %5464 = vmatprep.subr.bf16.mxu1 %v5463_v48  ;;  %v563_v48 = vld [vmem:[%s9370_s1 + $0x1068] sm:$0xff]  ;;  %v5483_v53 = vpack.c.bf16 %v611_v41, %v610_v40  ;;  %v666_v40 = vld [vmem:[%s9370_s1 + $0x13a0] sm:$0xff] }
 0x109   :  { %5434 = vmatpush3.bf16.msra.mxu0 %v5433_v45  ;;  %v5453_v61 = vpack.c.bf16 %v563_v48, %v562_v47  ;;  %v667_v41 = vld [vmem:[%s9370_s1 + $0x13a8] sm:$0xff]  ;;  %v5499_v47 = vpack.c.bf16 %v635_v37, %v634_v36 }
 0x10a   :  { %5436 = vmatprep.subr.bf16.mxu0 %v5435_v59  ;;  %v613_v59 = vld [vmem:[%s9370_s1 + $0x11f8] sm:$0xff]  ;;  %v619_v48 = vld [vmem:[%s9370_s1 + $0x1228] sm:$0xff] }
 0x10b   :  { %5466 = vmatpush3.bf16.msra.mxu1 %v5465_v58  ;;  %v612_v58 = vld [vmem:[%s9370_s1 + $0x11f0] sm:$0xff] }
 0x10c   :  { %5468 = vmatprep.subr.bf16.mxu1 %v5467_v62  ;;  %v31_v62 = vld [vmem:[%s9371_s0 + $0x48] sm:$0xff] }
 0x10d   :  { %5438 = vmatpush3.bf16.msra.mxu0 %v5437_v3  ;;  %v596_v3 = vld [vmem:[%s9370_s1 + $0x1170] sm:$0xff]  ;;  %v1238_v11 = vcombine.high %v31_v62, %v31_v62  ;;  %v7904_v23 = vrot.slane %v31_v62, %v6159_v13  ;;  %v653_v62 = vld [vmem:[%s9370_s1 + $0x1338] sm:$0xff] }
 0x10e   :  { %5440 = vmatprep.subr.bf16.mxu0 %v5439_v5  ;;  %v5487_v5 = vpack.c.bf16 %v613_v59, %v612_v58  ;;  %v5489_v14 = vpack.c.bf16 %v597_v6, %v596_v3  ;;  %v620_v59 = vld [vmem:[%s9370_s1 + $0x1230] sm:$0xff]  ;;  %v623_v6 = vld [vmem:[%s9370_s1 + $0x1248] sm:$0xff] }
 0x10f   :  { %5470 = vmatpush3.bf16.msra.mxu1 %v5469_v4  ;;  %v7913_v27 = vrot.slane %v1238_v11, %v6159_v13  ;;  %v1253_v38 = vcombine.high %v7904_v23, %v7904_v23  ;;  %v641_v11 = vld [vmem:[%s9370_s1 + $0x12d8] sm:$0xff] }
 0x110   :  { %5472 = vmatprep.subr.bf16.mxu1 %v5471_v9  ;;  %v662_v9 = vld [vmem:[%s9370_s1 + $0x1380] sm:$0xff] }
 0x111   :  { %5442 = vmatpush3.bf16.msra.mxu0 %v5441_v16  ;;  %v614_v16 = vld [vmem:[%s9370_s1 + $0x1200] sm:$0xff] }
 0x112   :  { %5444 = vmatprep.subr.bf16.mxu0 %v5443_v18  ;;  %v646_v18 = vld [vmem:[%s9370_s1 + $0x1300] sm:$0xff] }
 0x113   :  { %5474 = vmatpush3.bf16.msra.mxu1 %v5473_v17  ;;  %v615_v17 = vld [vmem:[%s9370_s1 + $0x1208] sm:$0xff] }
 0x114   :  { %5476 = vmatprep.subr.bf16.mxu1 %v5475_v22  ;;  %v633_v22 = vld [vmem:[%s9370_s1 + $0x1298] sm:$0xff]  ;;  %v5493_v28 = vpack.c.bf16 %v615_v17, %v614_v16 }
 0x115   :  { %5446 = vmatpush3.bf16.msra.mxu0 %v5445_v29  ;;  %v5525_v29 = vpack.c.bf16 %v647_v20, %v646_v18  ;;  %v624_v18 = vld [vmem:[%s9370_s1 + $0x1250] sm:$0xff] }
 0x116   :  { %5448 = vmatprep.subr.bf16.mxu0 %v5447_v30  ;;  %v616_v30 = vld [vmem:[%s9370_s1 + $0x1210] sm:$0xff] }
 0x117   :  { %5478 = vmatpush3.bf16.msra.mxu1 %v5477_v31  ;;  %v3869_v50 = vpop.f32.mrb[2].mxu0  ;;  %v5495_v31 = vpack.c.bf16 %v633_v22, %v632_v21  ;;  %v656_v20 = vld [vmem:[%s9370_s1 + $0x1350] sm:$0xff]  ;;  %v657_v22 = vld [vmem:[%s9370_s1 + $0x1358] sm:$0xff] }
 0x118   :  { %5480 = vmatprep.subr.bf16.mxu1 %v5479_v35  ;;  %v3870_v57 = vpop.f32.mrb[3].mxu0  ;;  %v649_v35 = vld [vmem:[%s9370_s1 + $0x1318] sm:$0xff] }
 0x119   :  { %v3904_v45 = vpop.f32.mrb[2].mxu1  ;;  %v3871_v51 = vadd.f32 %v3870_v57, %v3869_v50  ;;  %5450 = vmatpush3.bf16.msra.mxu0 %v5449_v43  ;;  %v1254_v43 = vcombine.high %v7913_v27, %v7913_v27  ;;  %v5531_v50 = vpack.c.bf16 %v667_v41, %v666_v40  ;;  %v644_v40 = vld [vmem:[%s9370_s1 + $0x12f0] sm:$0xff]  ;;  %v645_v41 = vld [vmem:[%s9370_s1 + $0x12f8] sm:$0xff] }
 0x11a   :  { %v3905_v60 = vpop.f32.mrb[3].mxu1  ;;  %5452 = vmatprep.subr.bf16.mxu0 %v5451_v46  ;;  %v5529_v46 = vpack.c.bf16 %v649_v35, %v648_v42  ;;  %v626_v42 = vld [vmem:[%s9370_s1 + $0x1260] sm:$0xff] }
 0x11b   :  { %v3906_v33 = vadd.f32 %v3905_v60, %v3904_v45  ;;  %5482 = vmatpush3.bf16.msra.mxu1 %v5481_v44  ;;  %v1628_v4 = vadd.f32 %v3871_v51, %v7673_v26  ;;  %v663_v26 = vld [vmem:[%s9370_s1 + $0x1388] sm:$0xff]  ;;  %v5497_v44 = vpack.c.bf16 %v617_v32, %v616_v30  ;;  %v621_v51 = vld [vmem:[%s9370_s1 + $0x1238] sm:$0xff]  ;;  %v652_v60 = vld [vmem:[%s9370_s1 + $0x1330] sm:$0xff]  ;;  %v5545_v30 = vpack.c.bf16 %v657_v22, %v656_v20 }
 0x11c   :  { %5484 = vmatprep.subr.bf16.mxu1 %v5483_v53  ;;  %v5523_v19 = vpack.c.bf16 %v663_v26, %v662_v9  ;;  %v636_v53 = vld [vmem:[%s9370_s1 + $0x12b0] sm:$0xff]  ;;  %v5505_v2 = vpack.c.bf16 %v621_v51, %v620_v59  ;;  %v5537_v3 = vpack.c.bf16 %v653_v62, %v652_v60  ;;  %v655_v9 = vld [vmem:[%s9370_s1 + $0x1348] sm:$0xff]  ;;  %v5515_v32 = vpack.c.bf16 %v643_v25, %v642_v24  ;;  %v658_v35 = vld [vmem:[%s9370_s1 + $0x1360] sm:$0xff] }
 0x11d   :  { %v7883_v10 = vadd.f32 %v3906_v33, %v1628_v4  ;;  %5454 = vmatpush3.bf16.msra.mxu0 %v5453_v61  ;;  %v5503_v58 = vpack.c.bf16 %v637_v54, %v636_v53  ;;  %v5535_v61 = vpack.c.bf16 %v669_v56, %v668_v55  ;;  %v638_v33 = vld [vmem:[%s9370_s1 + $0x12c0] sm:$0xff]  ;;  %v640_v26 = vld [vmem:[%s9370_s1 + $0x12d0] sm:$0xff]  ;;  %v5541_v16 = vpack.c.bf16 %v655_v9, %v654_v8  ;;  %v629_v56 = vld [vmem:[%s9370_s1 + $0x1278] sm:$0xff] }
 0x11e   :  { %5456 = vmatprep.subr.bf16.mxu0 %v5455_v0  ;;  %v670_v0 = vld [vmem:[%s9370_s1 + $0x13c0] sm:$0xff]  ;;  %v5511_v17 = vpack.c.bf16 %v641_v11, %v640_v26  ;;  %v5519_v54 = vpack.c.bf16 %v645_v41, %v644_v40  ;;  %v628_v55 = vld [vmem:[%s9370_s1 + $0x1270] sm:$0xff]  ;;  %v661_v59 = vld [vmem:[%s9370_s1 + $0x1378] sm:$0xff] }
 0x11f   :  { %5486 = vmatpush3.bf16.msra.mxu1 %v5485_v63  ;;  %v639_v63 = vld [vmem:[%s9370_s1 + $0x12c8] sm:$0xff]  ;;  %v5539_v7 = vpack.c.bf16 %v671_v1, %v670_v0  ;;  %v694_v51 = vld [vmem:[%s9370_s1 + $0x1480] sm:$0xff]  ;;  %v696_v8 = vld [vmem:[%s9370_s1 + $0x1490] sm:$0xff] }
 0x120   :  { %5488 = vmatprep.subr.bf16.mxu1 %v5487_v5  ;;  %v5507_v4 = vpack.c.bf16 %v639_v63, %v638_v33  ;;  %v622_v5 = vld [vmem:[%s9370_s1 + $0x1240] sm:$0xff]  ;;  %v695_v60 = vld [vmem:[%s9370_s1 + $0x1488] sm:$0xff]  ;;  %v5521_v63 = vpack.c.bf16 %v629_v56, %v628_v55  ;;  %v728_v26 = vld [vmem:[%s9370_s1 + $0x1590] sm:$0xff] }
 0x121   :  { %5458 = vmatpush3.bf16.msra.mxu0 %v5457_v12  ;;  %v672_v12 = vld [vmem:[%s9370_s1 + $0x13d0] sm:$0xff]  ;;  %v5555_v1 = vpack.c.bf16 %v695_v60, %v694_v51  ;;  %v729_v11 = vld [vmem:[%s9370_s1 + $0x1598] sm:$0xff]  ;;  %v698_v22 = vld [vmem:[%s9370_s1 + $0x14a0] sm:$0xff] }
 0x122   :  { %5492 = vmatprep.subr.bf16.mxu0 %v5491_v15  ;;  %v5509_v15 = vpack.c.bf16 %v623_v6, %v622_v5  ;;  %v711_v6 = vld [vmem:[%s9370_s1 + $0x1508] sm:$0xff]  ;;  %v5591_v20 = vpack.c.bf16 %v729_v11, %v728_v26  ;;  %v732_v40 = vld [vmem:[%s9370_s1 + $0x15b0] sm:$0xff]  ;;  %v733_v41 = vld [vmem:[%s9370_s1 + $0x15b8] sm:$0xff] }
 0x123   :  { %5490 = vmatpush3.bf16.msra.mxu1 %v5489_v14  ;;  %v673_v14 = vld [vmem:[%s9370_s1 + $0x13d8] sm:$0xff]  ;;  %v699_v24 = vld [vmem:[%s9370_s1 + $0x14a8] sm:$0xff]  ;;  %v718_v51 = vld [vmem:[%s9370_s1 + $0x1540] sm:$0xff] }
 0x124   :  { %5524 = vmatprep.subr.bf16.mxu1 %v5523_v19  ;;  %2606 = vmatmul.mubr.f32.vlgmr.msra.gmra.mrb[16].mxu0 %v7694_v52  ;;  %v618_v52 = vld [vmem:[%s9370_s1 + $0x1220] sm:$0xff]  ;;  %v625_v19 = vld [vmem:[%s9370_s1 + $0x1258] sm:$0xff]  ;;  %v5543_v21 = vpack.c.bf16 %v673_v14, %v672_v12  ;;  %v735_v55 = vld [vmem:[%s9370_s1 + $0x15c8] sm:$0xff] }
 0x125   :  { %5494 = vmatpush3.bf16.msra.mxu0 %v5493_v28  ;;  %2745 = vmatprep.mubr.f32.mxu0 %v1253_v38  ;;  %v5501_v57 = vpack.c.bf16 %v619_v48, %v618_v52  ;;  %v674_v28 = vld [vmem:[%s9370_s1 + $0x13e0] sm:$0xff]  ;;  %v659_v38 = vld [vmem:[%s9370_s1 + $0x1368] sm:$0xff] }
 0x126   :  { %2676 = vmatmul.mubr.f32.vlgmr.msra.gmra.mrb[16].mxu1 %v7703_v39  ;;  %5496 = vmatprep.subr.bf16.mxu0 %v5495_v31  ;;  %v651_v39 = vld [vmem:[%s9370_s1 + $0x1328] sm:$0xff]  ;;  %v5513_v31 = vpack.c.bf16 %v625_v19, %v624_v18  ;;  %v5549_v53 = vpack.c.bf16 %v659_v38, %v658_v35  ;;  %v681_v18 = vld [vmem:[%s9370_s1 + $0x1418] sm:$0xff]  ;;  %v712_v19 = vld [vmem:[%s9370_s1 + $0x1510] sm:$0xff] }
 0x127   :  { %5526 = vmatpush3.bf16.msra.mxu1 %v5525_v29  ;;  %2815 = vmatprep.mubr.f32.mxu1 %v1254_v43  ;;  %v5533_v45 = vpack.c.bf16 %v651_v39, %v650_v49  ;;  %v675_v29 = vld [vmem:[%s9370_s1 + $0x13e8] sm:$0xff]  ;;  %v714_v35 = vld [vmem:[%s9370_s1 + $0x1520] sm:$0xff]  ;;  %v701_v38 = vld [vmem:[%s9370_s1 + $0x14b8] sm:$0xff] }
 0x128   :  { %5528 = vmatprep.subr.bf16.mxu1 %v5527_v34  ;;  %v627_v34 = vld [vmem:[%s9370_s1 + $0x1268] sm:$0xff]  ;;  %v5547_v37 = vpack.c.bf16 %v675_v29, %v674_v28  ;;  %v730_v28 = vld [vmem:[%s9370_s1 + $0x15a0] sm:$0xff] }
 0x129   :  { %5498 = vmatpush3.bf16.msra.mxu0 %v5497_v44  ;;  %v5517_v49 = vpack.c.bf16 %v627_v34, %v626_v42  ;;  %v731_v29 = vld [vmem:[%s9370_s1 + $0x15a8] sm:$0xff]  ;;  %v5563_v42 = vpack.c.bf16 %v699_v24, %v698_v22  ;;  %v706_v26 = vld [vmem:[%s9370_s1 + $0x14e0] sm:$0xff] }
 0x12a   :  { %5500 = vmatprep.subr.bf16.mxu0 %v5499_v47  ;;  %v677_v47 = vld [vmem:[%s9370_s1 + $0x13f8] sm:$0xff]  ;;  %v683_v34 = vld [vmem:[%s9370_s1 + $0x1428] sm:$0xff] }
 0x12b   :  { %5530 = vmatpush3.bf16.msra.mxu1 %v5529_v46  ;;  %v676_v46 = vld [vmem:[%s9370_s1 + $0x13f0] sm:$0xff]  ;;  %v707_v11 = vld [vmem:[%s9370_s1 + $0x14e8] sm:$0xff] }
 0x12c   :  { %5532 = vmatprep.subr.bf16.mxu1 %v5531_v50  ;;  %v32_v50 = vld [vmem:[%s9371_s0 + $0x50] sm:$0xff] }
 0x12d   :  { %5502 = vmatpush3.bf16.msra.mxu0 %v5501_v57  ;;  %v660_v57 = vld [vmem:[%s9370_s1 + $0x1370] sm:$0xff]  ;;  %v1255_v62 = vcombine.high %v32_v50, %v32_v50  ;;  %v8114_v9 = vrot.slane %v32_v50, %v6159_v13  ;;  %v717_v50 = vld [vmem:[%s9370_s1 + $0x1538] sm:$0xff] }
 0x12e   :  { %5504 = vmatprep.subr.bf16.mxu0 %v5503_v58  ;;  %v5551_v58 = vpack.c.bf16 %v677_v47, %v676_v46  ;;  %v5553_v0 = vpack.c.bf16 %v661_v59, %v660_v57  ;;  %v684_v47 = vld [vmem:[%s9370_s1 + $0x1430] sm:$0xff]  ;;  %v687_v59 = vld [vmem:[%s9370_s1 + $0x1448] sm:$0xff] }
 0x12f   :  { %5534 = vmatpush3.bf16.msra.mxu1 %v5533_v45  ;;  %v8123_v12 = vrot.slane %v1255_v62, %v6159_v13  ;;  %v1270_v25 = vcombine.high %v8114_v9, %v8114_v9  ;;  %v705_v62 = vld [vmem:[%s9370_s1 + $0x14d8] sm:$0xff] }
 0x130   :  { %5536 = vmatprep.subr.bf16.mxu1 %v5535_v61  ;;  %v726_v61 = vld [vmem:[%s9370_s1 + $0x1580] sm:$0xff] }
 0x131   :  { %5506 = vmatpush3.bf16.msra.mxu0 %v5505_v2  ;;  %v678_v2 = vld [vmem:[%s9370_s1 + $0x1400] sm:$0xff] }
 0x132   :  { %5508 = vmatprep.subr.bf16.mxu0 %v5507_v4  ;;  %v710_v4 = vld [vmem:[%s9370_s1 + $0x1500] sm:$0xff] }
 0x133   :  { %5538 = vmatpush3.bf16.msra.mxu1 %v5537_v3  ;;  %v679_v3 = vld [vmem:[%s9370_s1 + $0x1408] sm:$0xff] }
 0x134   :  { %5540 = vmatprep.subr.bf16.mxu1 %v5539_v7  ;;  %v697_v7 = vld [vmem:[%s9370_s1 + $0x1498] sm:$0xff]  ;;  %v5557_v14 = vpack.c.bf16 %v679_v3, %v678_v2 }
 0x135   :  { %5510 = vmatpush3.bf16.msra.mxu0 %v5509_v15  ;;  %v5589_v15 = vpack.c.bf16 %v711_v6, %v710_v4  ;;  %v688_v4 = vld [vmem:[%s9370_s1 + $0x1450] sm:$0xff] }
 0x136   :  { %5512 = vmatprep.subr.bf16.mxu0 %v5511_v17  ;;  %v680_v17 = vld [vmem:[%s9370_s1 + $0x1410] sm:$0xff] }
 0x137   :  { %5542 = vmatpush3.bf16.msra.mxu1 %v5541_v16  ;;  %v3939_v36 = vpop.f32.mrb[4].mxu0  ;;  %v5559_v16 = vpack.c.bf16 %v697_v7, %v696_v8  ;;  %v720_v6 = vld [vmem:[%s9370_s1 + $0x1550] sm:$0xff]  ;;  %v721_v7 = vld [vmem:[%s9370_s1 + $0x1558] sm:$0xff] }
 0x138   :  { %5544 = vmatprep.subr.bf16.mxu1 %v5543_v21  ;;  %v3940_v43 = vpop.f32.mrb[5].mxu0  ;;  %v713_v21 = vld [vmem:[%s9370_s1 + $0x1518] sm:$0xff] }
 0x139   :  { %v3974_v44 = vpop.f32.mrb[4].mxu1  ;;  %v3941_v52 = vadd.f32 %v3940_v43, %v3939_v36  ;;  %5514 = vmatpush3.bf16.msra.mxu0 %v5513_v31  ;;  %v1271_v31 = vcombine.high %v8123_v12, %v8123_v12  ;;  %v5595_v36 = vpack.c.bf16 %v731_v29, %v730_v28  ;;  %v708_v28 = vld [vmem:[%s9370_s1 + $0x14f0] sm:$0xff]  ;;  %v709_v29 = vld [vmem:[%s9370_s1 + $0x14f8] sm:$0xff] }
 0x13a   :  { %v3975_v48 = vpop.f32.mrb[5].mxu1  ;;  %5516 = vmatprep.subr.bf16.mxu0 %v5515_v32  ;;  %v5593_v32 = vpack.c.bf16 %v713_v21, %v712_v19  ;;  %v690_v19 = vld [vmem:[%s9370_s1 + $0x1460] sm:$0xff] }
 0x13b   :  { %v3976_v39 = vadd.f32 %v3975_v48, %v3974_v44  ;;  %5546 = vmatpush3.bf16.msra.mxu1 %v5545_v30  ;;  %v1768_v45 = vadd.f32 %v3941_v52, %v7883_v10  ;;  %v727_v10 = vld [vmem:[%s9370_s1 + $0x1588] sm:$0xff]  ;;  %v5561_v30 = vpack.c.bf16 %v681_v18, %v680_v17  ;;  %v685_v52 = vld [vmem:[%s9370_s1 + $0x1438] sm:$0xff]  ;;  %v716_v48 = vld [vmem:[%s9370_s1 + $0x1530] sm:$0xff]  ;;  %v5609_v17 = vpack.c.bf16 %v721_v7, %v720_v6 }
 0x13c   :  { %5548 = vmatprep.subr.bf16.mxu1 %v5547_v37  ;;  %v5587_v5 = vpack.c.bf16 %v727_v10, %v726_v61  ;;  %v700_v37 = vld [vmem:[%s9370_s1 + $0x14b0] sm:$0xff]  ;;  %v5569_v56 = vpack.c.bf16 %v685_v52, %v684_v47  ;;  %v5601_v57 = vpack.c.bf16 %v717_v50, %v716_v48  ;;  %v719_v61 = vld [vmem:[%s9370_s1 + $0x1548] sm:$0xff]  ;;  %v5579_v18 = vpack.c.bf16 %v707_v11, %v706_v26  ;;  %v722_v21 = vld [vmem:[%s9370_s1 + $0x1560] sm:$0xff] }
 0x13d   :  { %v8093_v33 = vadd.f32 %v3976_v39, %v1768_v45  ;;  %5518 = vmatpush3.bf16.msra.mxu0 %v5517_v49  ;;  %v5567_v46 = vpack.c.bf16 %v701_v38, %v700_v37  ;;  %v5599_v49 = vpack.c.bf16 %v733_v41, %v732_v40  ;;  %v702_v39 = vld [vmem:[%s9370_s1 + $0x14c0] sm:$0xff]  ;;  %v704_v10 = vld [vmem:[%s9370_s1 + $0x14d0] sm:$0xff]  ;;  %v5605_v2 = vpack.c.bf16 %v719_v61, %v718_v51  ;;  %v693_v41 = vld [vmem:[%s9370_s1 + $0x1478] sm:$0xff] }
 0x13e   :  { %5520 = vmatprep.subr.bf16.mxu0 %v5519_v54  ;;  %v734_v54 = vld [vmem:[%s9370_s1 + $0x15c0] sm:$0xff]  ;;  %v5575_v3 = vpack.c.bf16 %v705_v62, %v704_v10  ;;  %v5583_v38 = vpack.c.bf16 %v709_v29, %v708_v28  ;;  %v692_v40 = vld [vmem:[%s9370_s1 + $0x1470] sm:$0xff]  ;;  %v725_v47 = vld [vmem:[%s9370_s1 + $0x1578] sm:$0xff] }
 0x13f   :  { %5550 = vmatpush3.bf16.msra.mxu1 %v5549_v53  ;;  %v703_v53 = vld [vmem:[%s9370_s1 + $0x14c8] sm:$0xff]  ;;  %v5603_v60 = vpack.c.bf16 %v735_v55, %v734_v54  ;;  %v758_v52 = vld [vmem:[%s9370_s1 + $0x1680] sm:$0xff]  ;;  %v760_v51 = vld [vmem:[%s9370_s1 + $0x1690] sm:$0xff] }
 0x140   :  { %5552 = vmatprep.subr.bf16.mxu1 %v5551_v58  ;;  %v5571_v45 = vpack.c.bf16 %v703_v53, %v702_v39  ;;  %v686_v58 = vld [vmem:[%s9370_s1 + $0x1440] sm:$0xff]  ;;  %v759_v48 = vld [vmem:[%s9370_s1 + $0x1688] sm:$0xff]  ;;  %v5585_v53 = vpack.c.bf16 %v693_v41, %v692_v40  ;;  %v792_v10 = vld [vmem:[%s9370_s1 + $0x1790] sm:$0xff] }
 0x141   :  { %5522 = vmatpush3.bf16.msra.mxu0 %v5521_v63  ;;  %v736_v63 = vld [vmem:[%s9370_s1 + $0x15d0] sm:$0xff]  ;;  %v5619_v55 = vpack.c.bf16 %v759_v48, %v758_v52  ;;  %v793_v62 = vld [vmem:[%s9370_s1 + $0x1798] sm:$0xff]  ;;  %v762_v7 = vld [vmem:[%s9370_s1 + $0x16a0] sm:$0xff] }
 0x142   :  { %5556 = vmatprep.subr.bf16.mxu0 %v5555_v1  ;;  %v5573_v1 = vpack.c.bf16 %v687_v59, %v686_v58  ;;  %v775_v59 = vld [vmem:[%s9370_s1 + $0x1708] sm:$0xff]  ;;  %v5655_v6 = vpack.c.bf16 %v793_v62, %v792_v10  ;;  %v796_v28 = vld [vmem:[%s9370_s1 + $0x17b0] sm:$0xff]  ;;  %v797_v29 = vld [vmem:[%s9370_s1 + $0x17b8] sm:$0xff] }
 0x143   :  { %5554 = vmatpush3.bf16.msra.mxu1 %v5553_v0  ;;  %v737_v0 = vld [vmem:[%s9370_s1 + $0x15d8] sm:$0xff]  ;;  %v763_v26 = vld [vmem:[%s9370_s1 + $0x16a8] sm:$0xff]  ;;  %v782_v52 = vld [vmem:[%s9370_s1 + $0x1740] sm:$0xff] }
 0x144   :  { %5588 = vmatprep.subr.bf16.mxu1 %v5587_v5  ;;  %2746 = vmatmul.mubr.f32.vlgmr.msra.gmra.mrb[18].mxu0 %v7904_v23  ;;  %v682_v23 = vld [vmem:[%s9370_s1 + $0x1420] sm:$0xff]  ;;  %v689_v5 = vld [vmem:[%s9370_s1 + $0x1458] sm:$0xff]  ;;  %v5607_v8 = vpack.c.bf16 %v737_v0, %v736_v63  ;;  %v799_v40 = vld [vmem:[%s9370_s1 + $0x17c8] sm:$0xff] }
 0x145   :  { %5558 = vmatpush3.bf16.msra.mxu0 %v5557_v14  ;;  %2885 = vmatprep.mubr.f32.mxu0 %v1270_v25  ;;  %v5565_v43 = vpack.c.bf16 %v683_v34, %v682_v23  ;;  %v738_v14 = vld [vmem:[%s9370_s1 + $0x15e0] sm:$0xff]  ;;  %v723_v25 = vld [vmem:[%s9370_s1 + $0x1568] sm:$0xff] }
 0x146   :  { %2816 = vmatmul.mubr.f32.vlgmr.msra.gmra.mrb[18].mxu1 %v7913_v27  ;;  %5560 = vmatprep.subr.bf16.mxu0 %v5559_v16  ;;  %v715_v27 = vld [vmem:[%s9370_s1 + $0x1528] sm:$0xff]  ;;  %v5577_v16 = vpack.c.bf16 %v689_v5, %v688_v4  ;;  %v5613_v37 = vpack.c.bf16 %v723_v25, %v722_v21  ;;  %v745_v4 = vld [vmem:[%s9370_s1 + $0x1618] sm:$0xff]  ;;  %v776_v5 = vld [vmem:[%s9370_s1 + $0x1710] sm:$0xff] }
 0x147   :  { %5590 = vmatpush3.bf16.msra.mxu1 %v5589_v15  ;;  %2955 = vmatprep.mubr.f32.mxu1 %v1271_v31  ;;  %v5597_v44 = vpack.c.bf16 %v715_v27, %v714_v35  ;;  %v739_v15 = vld [vmem:[%s9370_s1 + $0x15e8] sm:$0xff]  ;;  %v778_v21 = vld [vmem:[%s9370_s1 + $0x1720] sm:$0xff]  ;;  %v765_v25 = vld [vmem:[%s9370_s1 + $0x16b8] sm:$0xff] }
 0x148   :  { %5592 = vmatprep.subr.bf16.mxu1 %v5591_v20  ;;  %v691_v20 = vld [vmem:[%s9370_s1 + $0x1468] sm:$0xff]  ;;  %v5611_v24 = vpack.c.bf16 %v739_v15, %v738_v14  ;;  %v794_v14 = vld [vmem:[%s9370_s1 + $0x17a0] sm:$0xff] }
 0x149   :  { %5562 = vmatpush3.bf16.msra.mxu0 %v5561_v30  ;;  %v5581_v35 = vpack.c.bf16 %v691_v20, %v690_v19  ;;  %v795_v15 = vld [vmem:[%s9370_s1 + $0x17a8] sm:$0xff]  ;;  %v5627_v19 = vpack.c.bf16 %v763_v26, %v762_v7  ;;  %v770_v10 = vld [vmem:[%s9370_s1 + $0x16e0] sm:$0xff] }
 0x14a   :  { %5564 = vmatprep.subr.bf16.mxu0 %v5563_v42  ;;  %v741_v42 = vld [vmem:[%s9370_s1 + $0x15f8] sm:$0xff]  ;;  %v747_v20 = vld [vmem:[%s9370_s1 + $0x1628] sm:$0xff] }
 0x14b   :  { %5594 = vmatpush3.bf16.msra.mxu1 %v5593_v32  ;;  %v740_v32 = vld [vmem:[%s9370_s1 + $0x15f0] sm:$0xff]  ;;  %v771_v62 = vld [vmem:[%s9370_s1 + $0x16e8] sm:$0xff] }
 0x14c   :  { %5596 = vmatprep.subr.bf16.mxu1 %v5595_v36  ;;  %v33_v36 = vld [vmem:[%s9371_s0 + $0x58] sm:$0xff] }
 0x14d   :  { %5566 = vmatpush3.bf16.msra.mxu0 %v5565_v43  ;;  %v724_v43 = vld [vmem:[%s9370_s1 + $0x1570] sm:$0xff]  ;;  %v1272_v50 = vcombine.high %v33_v36, %v33_v36  ;;  %v8324_v61 = vrot.slane %v33_v36, %v6159_v13  ;;  %v781_v36 = vld [vmem:[%s9370_s1 + $0x1738] sm:$0xff] }
 0x14e   :  { %5568 = vmatprep.subr.bf16.mxu0 %v5567_v46  ;;  %v5615_v46 = vpack.c.bf16 %v741_v42, %v740_v32  ;;  %v5617_v54 = vpack.c.bf16 %v725_v47, %v724_v43  ;;  %v748_v42 = vld [vmem:[%s9370_s1 + $0x1630] sm:$0xff]  ;;  %v751_v47 = vld [vmem:[%s9370_s1 + $0x1648] sm:$0xff] }
 0x14f   :  { %5598 = vmatpush3.bf16.msra.mxu1 %v5597_v44  ;;  %v8333_v63 = vrot.slane %v1272_v50, %v6159_v13  ;;  %v1287_v11 = vcombine.high %v8324_v61, %v8324_v61  ;;  %v769_v50 = vld [vmem:[%s9370_s1 + $0x16d8] sm:$0xff] }
 0x150   :  { %5600 = vmatprep.subr.bf16.mxu1 %v5599_v49  ;;  %v790_v49 = vld [vmem:[%s9370_s1 + $0x1780] sm:$0xff] }
 0x151   :  { %5570 = vmatpush3.bf16.msra.mxu0 %v5569_v56  ;;  %v742_v56 = vld [vmem:[%s9370_s1 + $0x1600] sm:$0xff] }
 0x152   :  { %5572 = vmatprep.subr.bf16.mxu0 %v5571_v45  ;;  %v774_v45 = vld [vmem:[%s9370_s1 + $0x1700] sm:$0xff] }
 0x153   :  { %5602 = vmatpush3.bf16.msra.mxu1 %v5601_v57  ;;  %v743_v57 = vld [vmem:[%s9370_s1 + $0x1608] sm:$0xff] }
 0x154   :  { %5604 = vmatprep.subr.bf16.mxu1 %v5603_v60  ;;  %v761_v60 = vld [vmem:[%s9370_s1 + $0x1698] sm:$0xff]  ;;  %v5621_v0 = vpack.c.bf16 %v743_v57, %v742_v56 }
 0x155   :  { %5574 = vmatpush3.bf16.msra.mxu0 %v5573_v1  ;;  %v5653_v1 = vpack.c.bf16 %v775_v59, %v774_v45  ;;  %v752_v45 = vld [vmem:[%s9370_s1 + $0x1650] sm:$0xff] }
 0x156   :  { %5576 = vmatprep.subr.bf16.mxu0 %v5575_v3  ;;  %v744_v3 = vld [vmem:[%s9370_s1 + $0x1610] sm:$0xff] }
 0x157   :  { %5606 = vmatpush3.bf16.msra.mxu1 %v5605_v2  ;;  %v4009_v22 = vpop.f32.mrb[6].mxu0  ;;  %v5623_v2 = vpack.c.bf16 %v761_v60, %v760_v51  ;;  %v784_v59 = vld [vmem:[%s9370_s1 + $0x1750] sm:$0xff]  ;;  %v785_v60 = vld [vmem:[%s9370_s1 + $0x1758] sm:$0xff] }
 0x158   :  { %5608 = vmatprep.subr.bf16.mxu1 %v5607_v8  ;;  %v4010_v31 = vpop.f32.mrb[7].mxu0  ;;  %v777_v8 = vld [vmem:[%s9370_s1 + $0x1718] sm:$0xff] }
 0x159   :  { %v4044_v30 = vpop.f32.mrb[6].mxu1  ;;  %v4011_v23 = vadd.f32 %v4010_v31, %v4009_v22  ;;  %5578 = vmatpush3.bf16.msra.mxu0 %v5577_v16  ;;  %v1288_v16 = vcombine.high %v8333_v63, %v8333_v63  ;;  %v5659_v22 = vpack.c.bf16 %v795_v15, %v794_v14  ;;  %v772_v14 = vld [vmem:[%s9370_s1 + $0x16f0] sm:$0xff]  ;;  %v773_v15 = vld [vmem:[%s9370_s1 + $0x16f8] sm:$0xff] }
 0x15a   :  { %v4045_v34 = vpop.f32.mrb[7].mxu1  ;;  %5580 = vmatprep.subr.bf16.mxu0 %v5579_v18  ;;  %v5657_v18 = vpack.c.bf16 %v777_v8, %v776_v5  ;;  %v754_v5 = vld [vmem:[%s9370_s1 + $0x1660] sm:$0xff] }
 0x15b   :  { %v4046_v27 = vadd.f32 %v4045_v34, %v4044_v30  ;;  %5610 = vmatpush3.bf16.msra.mxu1 %v5609_v17  ;;  %v1908_v44 = vadd.f32 %v4011_v23, %v8093_v33  ;;  %v791_v33 = vld [vmem:[%s9370_s1 + $0x1788] sm:$0xff]  ;;  %v5625_v17 = vpack.c.bf16 %v745_v4, %v744_v3  ;;  %v749_v23 = vld [vmem:[%s9370_s1 + $0x1638] sm:$0xff]  ;;  %v780_v34 = vld [vmem:[%s9370_s1 + $0x1730] sm:$0xff]  ;;  %v5673_v3 = vpack.c.bf16 %v785_v60, %v784_v59 }
 0x15c   :  { %5612 = vmatprep.subr.bf16.mxu1 %v5611_v24  ;;  %v5651_v58 = vpack.c.bf16 %v791_v33, %v790_v49  ;;  %v764_v24 = vld [vmem:[%s9370_s1 + $0x16b0] sm:$0xff]  ;;  %v5633_v41 = vpack.c.bf16 %v749_v23, %v748_v42  ;;  %v5665_v43 = vpack.c.bf16 %v781_v36, %v780_v34  ;;  %v783_v49 = vld [vmem:[%s9370_s1 + $0x1748] sm:$0xff]  ;;  %v5643_v4 = vpack.c.bf16 %v771_v62, %v770_v10  ;;  %v786_v8 = vld [vmem:[%s9370_s1 + $0x1760] sm:$0xff] }
 0x15d   :  { %v8303_v39 = vadd.f32 %v4046_v27, %v1908_v44  ;;  %5582 = vmatpush3.bf16.msra.mxu0 %v5581_v35  ;;  %v5631_v32 = vpack.c.bf16 %v765_v25, %v764_v24  ;;  %v5663_v35 = vpack.c.bf16 %v797_v29, %v796_v28  ;;  %v766_v27 = vld [vmem:[%s9370_s1 + $0x16c0] sm:$0xff]  ;;  %v768_v33 = vld [vmem:[%s9370_s1 + $0x16d0] sm:$0xff]  ;;  %v5669_v56 = vpack.c.bf16 %v783_v49, %v782_v52  ;;  %v757_v29 = vld [vmem:[%s9370_s1 + $0x1678] sm:$0xff] }
 0x15e   :  { %5584 = vmatprep.subr.bf16.mxu0 %v5583_v38  ;;  %v798_v38 = vld [vmem:[%s9370_s1 + $0x17c0] sm:$0xff]  ;;  %v5639_v57 = vpack.c.bf16 %v769_v50, %v768_v33  ;;  %v5647_v25 = vpack.c.bf16 %v773_v15, %v772_v14  ;;  %v756_v28 = vld [vmem:[%s9370_s1 + $0x1670] sm:$0xff]  ;;  %v789_v42 = vld [vmem:[%s9370_s1 + $0x1778] sm:$0xff] }
 0x15f   :  { %5614 = vmatpush3.bf16.msra.mxu1 %v5613_v37  ;;  %v767_v37 = vld [vmem:[%s9370_s1 + $0x16c8] sm:$0xff]  ;;  %v5667_v48 = vpack.c.bf16 %v799_v40, %v798_v38  ;;  %v822_v23 = vld [vmem:[%s9370_s1 + $0x1880] sm:$0xff]  ;;  %v824_v52 = vld [vmem:[%s9370_s1 + $0x1890] sm:$0xff] }
 0x160   :  { %5616 = vmatprep.subr.bf16.mxu1 %v5615_v46  ;;  %v5635_v44 = vpack.c.bf16 %v767_v37, %v766_v27  ;;  %v750_v46 = vld [vmem:[%s9370_s1 + $0x1640] sm:$0xff]  ;;  %v823_v34 = vld [vmem:[%s9370_s1 + $0x1888] sm:$0xff]  ;;  %v5649_v37 = vpack.c.bf16 %v757_v29, %v756_v28  ;;  %v856_v33 = vld [vmem:[%s9370_s1 + $0x1990] sm:$0xff] }
 0x161   :  { %5586 = vmatpush3.bf16.msra.mxu0 %v5585_v53  ;;  %v800_v53 = vld [vmem:[%s9370_s1 + $0x17d0] sm:$0xff]  ;;  %v5683_v40 = vpack.c.bf16 %v823_v34, %v822_v23  ;;  %v857_v50 = vld [vmem:[%s9370_s1 + $0x1998] sm:$0xff]  ;;  %v826_v60 = vld [vmem:[%s9370_s1 + $0x18a0] sm:$0xff] }
 0x162   :  { %5620 = vmatprep.subr.bf16.mxu0 %v5619_v55  ;;  %v5637_v55 = vpack.c.bf16 %v751_v47, %v750_v46  ;;  %v839_v47 = vld [vmem:[%s9370_s1 + $0x1908] sm:$0xff]  ;;  %v5719_v59 = vpack.c.bf16 %v857_v50, %v856_v33  ;;  %v860_v14 = vld [vmem:[%s9370_s1 + $0x19b0] sm:$0xff]  ;;  %v861_v15 = vld [vmem:[%s9370_s1 + $0x19b8] sm:$0xff] }
 0x163   :  { %5618 = vmatpush3.bf16.msra.mxu1 %v5617_v54  ;;  %v801_v54 = vld [vmem:[%s9370_s1 + $0x17d8] sm:$0xff]  ;;  %v827_v10 = vld [vmem:[%s9370_s1 + $0x18a8] sm:$0xff]  ;;  %v846_v23 = vld [vmem:[%s9370_s1 + $0x1940] sm:$0xff] }
 0x164   :  { %5652 = vmatprep.subr.bf16.mxu1 %v5651_v58  ;;  %2886 = vmatmul.mubr.f32.vlgmr.msra.gmra.mrb[20].mxu0 %v8114_v9  ;;  %v746_v9 = vld [vmem:[%s9370_s1 + $0x1620] sm:$0xff]  ;;  %v753_v58 = vld [vmem:[%s9370_s1 + $0x1658] sm:$0xff]  ;;  %v5671_v51 = vpack.c.bf16 %v801_v54, %v800_v53  ;;  %v863_v28 = vld [vmem:[%s9370_s1 + $0x19c8] sm:$0xff] }
 0x165   :  { %5622 = vmatpush3.bf16.msra.mxu0 %v5621_v0  ;;  %3025 = vmatprep.mubr.f32.mxu0 %v1287_v11  ;;  %v5629_v31 = vpack.c.bf16 %v747_v20, %v746_v9  ;;  %v802_v0 = vld [vmem:[%s9370_s1 + $0x17e0] sm:$0xff]  ;;  %v787_v11 = vld [vmem:[%s9370_s1 + $0x1768] sm:$0xff] }
 0x166   :  { %2956 = vmatmul.mubr.f32.vlgmr.msra.gmra.mrb[20].mxu1 %v8123_v12  ;;  %5624 = vmatprep.subr.bf16.mxu0 %v5623_v2  ;;  %v779_v12 = vld [vmem:[%s9370_s1 + $0x1728] sm:$0xff]  ;;  %v5641_v2 = vpack.c.bf16 %v753_v58, %v752_v45  ;;  %v5677_v24 = vpack.c.bf16 %v787_v11, %v786_v8  ;;  %v809_v45 = vld [vmem:[%s9370_s1 + $0x1818] sm:$0xff]  ;;  %v840_v58 = vld [vmem:[%s9370_s1 + $0x1910] sm:$0xff] }
 0x167   :  { %5654 = vmatpush3.bf16.msra.mxu1 %v5653_v1  ;;  %3095 = vmatprep.mubr.f32.mxu1 %v1288_v16  ;;  %v5661_v30 = vpack.c.bf16 %v779_v12, %v778_v21  ;;  %v803_v1 = vld [vmem:[%s9370_s1 + $0x17e8] sm:$0xff]  ;;  %v842_v8 = vld [vmem:[%s9370_s1 + $0x1920] sm:$0xff]  ;;  %v829_v11 = vld [vmem:[%s9370_s1 + $0x18b8] sm:$0xff] }
 0x168   :  { %5656 = vmatprep.subr.bf16.mxu1 %v5655_v6  ;;  %v755_v6 = vld [vmem:[%s9370_s1 + $0x1668] sm:$0xff]  ;;  %v5675_v26 = vpack.c.bf16 %v803_v1, %v802_v0  ;;  %v858_v0 = vld [vmem:[%s9370_s1 + $0x19a0] sm:$0xff] }
 0x169   :  { %5626 = vmatpush3.bf16.msra.mxu0 %v5625_v17  ;;  %v5645_v21 = vpack.c.bf16 %v755_v6, %v754_v5  ;;  %v859_v1 = vld [vmem:[%s9370_s1 + $0x19a8] sm:$0xff]  ;;  %v5691_v5 = vpack.c.bf16 %v827_v10, %v826_v60  ;;  %v834_v33 = vld [vmem:[%s9370_s1 + $0x18e0] sm:$0xff] }
 0x16a   :  { %5628 = vmatprep.subr.bf16.mxu0 %v5627_v19  ;;  %v805_v19 = vld [vmem:[%s9370_s1 + $0x17f8] sm:$0xff]  ;;  %v811_v6 = vld [vmem:[%s9370_s1 + $0x1828] sm:$0xff] }
 0x16b   :  { %5658 = vmatpush3.bf16.msra.mxu1 %v5657_v18  ;;  %v804_v18 = vld [vmem:[%s9370_s1 + $0x17f0] sm:$0xff]  ;;  %v835_v50 = vld [vmem:[%s9370_s1 + $0x18e8] sm:$0xff] }
 0x16c   :  { %5660 = vmatprep.subr.bf16.mxu1 %v5659_v22  ;;  %v34_v22 = vld [vmem:[%s9371_s0 + $0x60] sm:$0xff] }
 0x16d   :  { %5630 = vmatpush3.bf16.msra.mxu0 %v5629_v31  ;;  %v788_v31 = vld [vmem:[%s9370_s1 + $0x1770] sm:$0xff]  ;;  %v1289_v36 = vcombine.high %v34_v22, %v34_v22  ;;  %v8534_v49 = vrot.slane %v34_v22, %v6159_v13  ;;  %v845_v22 = vld [vmem:[%s9370_s1 + $0x1938] sm:$0xff] }
 0x16e   :  { %5632 = vmatprep.subr.bf16.mxu0 %v5631_v32  ;;  %v5679_v32 = vpack.c.bf16 %v805_v19, %v804_v18  ;;  %v5681_v38 = vpack.c.bf16 %v789_v42, %v788_v31  ;;  %v812_v19 = vld [vmem:[%s9370_s1 + $0x1830] sm:$0xff]  ;;  %v815_v42 = vld [vmem:[%s9370_s1 + $0x1848] sm:$0xff] }
 0x16f   :  { %5662 = vmatpush3.bf16.msra.mxu1 %v5661_v30  ;;  %v8543_v53 = vrot.slane %v1289_v36, %v6159_v13  ;;  %v1304_v62 = vcombine.high %v8534_v49, %v8534_v49  ;;  %v833_v36 = vld [vmem:[%s9370_s1 + $0x18d8] sm:$0xff] }
 0x170   :  { %5664 = vmatprep.subr.bf16.mxu1 %v5663_v35  ;;  %v854_v35 = vld [vmem:[%s9370_s1 + $0x1980] sm:$0xff] }
 0x171   :  { %5634 = vmatpush3.bf16.msra.mxu0 %v5633_v41  ;;  %v806_v41 = vld [vmem:[%s9370_s1 + $0x1800] sm:$0xff] }
 0x172   :  { %5636 = vmatprep.subr.bf16.mxu0 %v5635_v44  ;;  %v838_v44 = vld [vmem:[%s9370_s1 + $0x1900] sm:$0xff] }
 0x173   :  { %5666 = vmatpush3.bf16.msra.mxu1 %v5665_v43  ;;  %v807_v43 = vld [vmem:[%s9370_s1 + $0x1808] sm:$0xff] }
 0x174   :  { %5668 = vmatprep.subr.bf16.mxu1 %v5667_v48  ;;  %v825_v48 = vld [vmem:[%s9370_s1 + $0x1898] sm:$0xff]  ;;  %v5685_v54 = vpack.c.bf16 %v807_v43, %v806_v41 }
 0x175   :  { %5638 = vmatpush3.bf16.msra.mxu0 %v5637_v55  ;;  %v5717_v55 = vpack.c.bf16 %v839_v47, %v838_v44  ;;  %v816_v44 = vld [vmem:[%s9370_s1 + $0x1850] sm:$0xff] }
 0x176   :  { %5640 = vmatprep.subr.bf16.mxu0 %v5639_v57  ;;  %v808_v57 = vld [vmem:[%s9370_s1 + $0x1810] sm:$0xff] }
 0x177   :  { %5670 = vmatpush3.bf16.msra.mxu1 %v5669_v56  ;;  %v4079_v7 = vpop.f32.mrb[8].mxu0  ;;  %v5687_v56 = vpack.c.bf16 %v825_v48, %v824_v52  ;;  %v848_v47 = vld [vmem:[%s9370_s1 + $0x1950] sm:$0xff]  ;;  %v849_v48 = vld [vmem:[%s9370_s1 + $0x1958] sm:$0xff] }
 0x178   :  { %5672 = vmatprep.subr.bf16.mxu1 %v5671_v51  ;;  %v4080_v16 = vpop.f32.mrb[9].mxu0  ;;  %v841_v51 = vld [vmem:[%s9370_s1 + $0x1918] sm:$0xff] }
 0x179   :  { %v4114_v17 = vpop.f32.mrb[8].mxu1  ;;  %v4081_v9 = vadd.f32 %v4080_v16, %v4079_v7  ;;  %5642 = vmatpush3.bf16.msra.mxu0 %v5641_v2  ;;  %v1305_v2 = vcombine.high %v8543_v53, %v8543_v53  ;;  %v5723_v7 = vpack.c.bf16 %v859_v1, %v858_v0  ;;  %v836_v0 = vld [vmem:[%s9370_s1 + $0x18f0] sm:$0xff]  ;;  %v837_v1 = vld [vmem:[%s9370_s1 + $0x18f8] sm:$0xff] }
 0x17a   :  { %v4115_v20 = vpop.f32.mrb[9].mxu1  ;;  %5644 = vmatprep.subr.bf16.mxu0 %v5643_v4  ;;  %v5721_v4 = vpack.c.bf16 %v841_v51, %v840_v58  ;;  %v818_v58 = vld [vmem:[%s9370_s1 + $0x1860] sm:$0xff] }
 0x17b   :  { %v4116_v12 = vadd.f32 %v4115_v20, %v4114_v17  ;;  %5674 = vmatpush3.bf16.msra.mxu1 %v5673_v3  ;;  %v2048_v30 = vadd.f32 %v4081_v9, %v8303_v39  ;;  %v855_v39 = vld [vmem:[%s9370_s1 + $0x1988] sm:$0xff]  ;;  %v5689_v3 = vpack.c.bf16 %v809_v45, %v808_v57  ;;  %v813_v9 = vld [vmem:[%s9370_s1 + $0x1838] sm:$0xff]  ;;  %v844_v20 = vld [vmem:[%s9370_s1 + $0x1930] sm:$0xff]  ;;  %v5737_v57 = vpack.c.bf16 %v849_v48, %v848_v47 }
 0x17c   :  { %5676 = vmatprep.subr.bf16.mxu1 %v5675_v26  ;;  %v5715_v46 = vpack.c.bf16 %v855_v39, %v854_v35  ;;  %v828_v26 = vld [vmem:[%s9370_s1 + $0x18b0] sm:$0xff]  ;;  %v5697_v29 = vpack.c.bf16 %v813_v9, %v812_v19  ;;  %v5729_v31 = vpack.c.bf16 %v845_v22, %v844_v20  ;;  %v847_v35 = vld [vmem:[%s9370_s1 + $0x1948] sm:$0xff]  ;;  %v5707_v45 = vpack.c.bf16 %v835_v50, %v834_v33  ;;  %v850_v51 = vld [vmem:[%s9370_s1 + $0x1960] sm:$0xff] }
 0x17d   :  { %v8513_v27 = vadd.f32 %v4116_v12, %v2048_v30  ;;  %5646 = vmatpush3.bf16.msra.mxu0 %v5645_v21  ;;  %v5695_v18 = vpack.c.bf16 %v829_v11, %v828_v26  ;;  %v5727_v21 = vpack.c.bf16 %v861_v15, %v860_v14  ;;  %v830_v12 = vld [vmem:[%s9370_s1 + $0x18c0] sm:$0xff]  ;;  %v832_v39 = vld [vmem:[%s9370_s1 + $0x18d0] sm:$0xff]  ;;  %v5733_v41 = vpack.c.bf16 %v847_v35, %v846_v23  ;;  %v821_v15 = vld [vmem:[%s9370_s1 + $0x1878] sm:$0xff] }
 0x17e   :  { %5648 = vmatprep.subr.bf16.mxu0 %v5647_v25  ;;  %v862_v25 = vld [vmem:[%s9370_s1 + $0x19c0] sm:$0xff]  ;;  %v5703_v43 = vpack.c.bf16 %v833_v36, %v832_v39  ;;  %v5711_v11 = vpack.c.bf16 %v837_v1, %v836_v0  ;;  %v820_v14 = vld [vmem:[%s9370_s1 + $0x1870] sm:$0xff]  ;;  %v853_v19 = vld [vmem:[%s9370_s1 + $0x1978] sm:$0xff] }
 0x17f   :  { %5678 = vmatpush3.bf16.msra.mxu1 %v5677_v24  ;;  %v831_v24 = vld [vmem:[%s9370_s1 + $0x18c8] sm:$0xff]  ;;  %v5731_v34 = vpack.c.bf16 %v863_v28, %v862_v25  ;;  %v886_v9 = vld [vmem:[%s9370_s1 + $0x1a80] sm:$0xff]  ;;  %v888_v23 = vld [vmem:[%s9370_s1 + $0x1a90] sm:$0xff] }
 0x180   :  { %5680 = vmatprep.subr.bf16.mxu1 %v5679_v32  ;;  %v5699_v30 = vpack.c.bf16 %v831_v24, %v830_v12  ;;  %v814_v32 = vld [vmem:[%s9370_s1 + $0x1840] sm:$0xff]  ;;  %v887_v20 = vld [vmem:[%s9370_s1 + $0x1a88] sm:$0xff]  ;;  %v5713_v24 = vpack.c.bf16 %v821_v15, %v820_v14  ;;  %v920_v39 = vld [vmem:[%s9370_s1 + $0x1b90] sm:$0xff] }
 0x181   :  { %5650 = vmatpush3.bf16.msra.mxu0 %v5649_v37  ;;  %v864_v37 = vld [vmem:[%s9370_s1 + $0x19d0] sm:$0xff]  ;;  %v5747_v28 = vpack.c.bf16 %v887_v20, %v886_v9  ;;  %v921_v36 = vld [vmem:[%s9370_s1 + $0x1b98] sm:$0xff]  ;;  %v890_v48 = vld [vmem:[%s9370_s1 + $0x1aa0] sm:$0xff] }
 0x182   :  { %5684 = vmatprep.subr.bf16.mxu0 %v5683_v40  ;;  %v5701_v40 = vpack.c.bf16 %v815_v42, %v814_v32  ;;  %v903_v42 = vld [vmem:[%s9370_s1 + $0x1b08] sm:$0xff]  ;;  %v5783_v47 = vpack.c.bf16 %v921_v36, %v920_v39  ;;  %v924_v0 = vld [vmem:[%s9370_s1 + $0x1bb0] sm:$0xff]  ;;  %v925_v1 = vld [vmem:[%s9370_s1 + $0x1bb8] sm:$0xff] }
 0x183   :  { %5682 = vmatpush3.bf16.msra.mxu1 %v5681_v38  ;;  %v865_v38 = vld [vmem:[%s9370_s1 + $0x19d8] sm:$0xff]  ;;  %v891_v33 = vld [vmem:[%s9370_s1 + $0x1aa8] sm:$0xff]  ;;  %v910_v9 = vld [vmem:[%s9370_s1 + $0x1b40] sm:$0xff] }
 0x184   :  { %5716 = vmatprep.subr.bf16.mxu1 %v5715_v46  ;;  %3026 = vmatmul.mubr.f32.vlgmr.msra.gmra.mrb[22].mxu0 %v8324_v61  ;;  %v810_v61 = vld [vmem:[%s9370_s1 + $0x1820] sm:$0xff]  ;;  %v817_v46 = vld [vmem:[%s9370_s1 + $0x1858] sm:$0xff]  ;;  %v5735_v52 = vpack.c.bf16 %v865_v38, %v864_v37  ;;  %v927_v14 = vld [vmem:[%s9370_s1 + $0x1bc8] sm:$0xff] }
 0x185   :  { %5686 = vmatpush3.bf16.msra.mxu0 %v5685_v54  ;;  %3165 = vmatprep.mubr.f32.mxu0 %v1304_v62  ;;  %v5693_v16 = vpack.c.bf16 %v811_v6, %v810_v61  ;;  %v866_v54 = vld [vmem:[%s9370_s1 + $0x19e0] sm:$0xff]  ;;  %v851_v62 = vld [vmem:[%s9370_s1 + $0x1968] sm:$0xff] }
 0x186   :  { %3096 = vmatmul.mubr.f32.vlgmr.msra.gmra.mrb[22].mxu1 %v8333_v63  ;;  %5688 = vmatprep.subr.bf16.mxu0 %v5687_v56  ;;  %v843_v63 = vld [vmem:[%s9370_s1 + $0x1928] sm:$0xff]  ;;  %v5705_v56 = vpack.c.bf16 %v817_v46, %v816_v44  ;;  %v5741_v26 = vpack.c.bf16 %v851_v62, %v850_v51  ;;  %v873_v44 = vld [vmem:[%s9370_s1 + $0x1a18] sm:$0xff]  ;;  %v904_v46 = vld [vmem:[%s9370_s1 + $0x1b10] sm:$0xff] }
 0x187   :  { %5718 = vmatpush3.bf16.msra.mxu1 %v5717_v55  ;;  %3235 = vmatprep.mubr.f32.mxu1 %v1305_v2  ;;  %v5725_v17 = vpack.c.bf16 %v843_v63, %v842_v8  ;;  %v867_v55 = vld [vmem:[%s9370_s1 + $0x19e8] sm:$0xff]  ;;  %v906_v51 = vld [vmem:[%s9370_s1 + $0x1b20] sm:$0xff]  ;;  %v893_v62 = vld [vmem:[%s9370_s1 + $0x1ab8] sm:$0xff] }
 0x188   :  { %5720 = vmatprep.subr.bf16.mxu1 %v5719_v59  ;;  %v819_v59 = vld [vmem:[%s9370_s1 + $0x1868] sm:$0xff]  ;;  %v5739_v10 = vpack.c.bf16 %v867_v55, %v866_v54  ;;  %v922_v54 = vld [vmem:[%s9370_s1 + $0x1ba0] sm:$0xff] }
 0x189   :  { %5690 = vmatpush3.bf16.msra.mxu0 %v5689_v3  ;;  %v5709_v8 = vpack.c.bf16 %v819_v59, %v818_v58  ;;  %v923_v55 = vld [vmem:[%s9370_s1 + $0x1ba8] sm:$0xff]  ;;  %v5755_v58 = vpack.c.bf16 %v891_v33, %v890_v48  ;;  %v898_v39 = vld [vmem:[%s9370_s1 + $0x1ae0] sm:$0xff] }
 0x18a   :  { %5692 = vmatprep.subr.bf16.mxu0 %v5691_v5  ;;  %v869_v5 = vld [vmem:[%s9370_s1 + $0x19f8] sm:$0xff]  ;;  %v875_v59 = vld [vmem:[%s9370_s1 + $0x1a28] sm:$0xff] }
 0x18b   :  { %5722 = vmatpush3.bf16.msra.mxu1 %v5721_v4  ;;  %v868_v4 = vld [vmem:[%s9370_s1 + $0x19f0] sm:$0xff]  ;;  %v899_v36 = vld [vmem:[%s9370_s1 + $0x1ae8] sm:$0xff] }
 0x18c   :  { %5724 = vmatprep.subr.bf16.mxu1 %v5723_v7  ;;  %v35_v7 = vld [vmem:[%s9371_s0 + $0x68] sm:$0xff] }
 0x18d   :  { %5694 = vmatpush3.bf16.msra.mxu0 %v5693_v16  ;;  %v852_v16 = vld [vmem:[%s9370_s1 + $0x1970] sm:$0xff]  ;;  %v1306_v22 = vcombine.high %v35_v7, %v35_v7  ;;  %v8744_v35 = vrot.slane %v35_v7, %v6159_v13  ;;  %v909_v7 = vld [vmem:[%s9370_s1 + $0x1b38] sm:$0xff] }
 0x18e   :  { %5696 = vmatprep.subr.bf16.mxu0 %v5695_v18  ;;  %v5743_v18 = vpack.c.bf16 %v869_v5, %v868_v4  ;;  %v5745_v25 = vpack.c.bf16 %v853_v19, %v852_v16  ;;  %v876_v5 = vld [vmem:[%s9370_s1 + $0x1a30] sm:$0xff]  ;;  %v879_v19 = vld [vmem:[%s9370_s1 + $0x1a48] sm:$0xff] }
 0x18f   :  { %5726 = vmatpush3.bf16.msra.mxu1 %v5725_v17  ;;  %v8753_v37 = vrot.slane %v1306_v22, %v6159_v13  ;;  %v1321_v50 = vcombine.high %v8744_v35, %v8744_v35  ;;  %v897_v22 = vld [vmem:[%s9370_s1 + $0x1ad8] sm:$0xff] }
 0x190   :  { %5728 = vmatprep.subr.bf16.mxu1 %v5727_v21  ;;  %v918_v21 = vld [vmem:[%s9370_s1 + $0x1b80] sm:$0xff] }
 0x191   :  { %5698 = vmatpush3.bf16.msra.mxu0 %v5697_v29  ;;  %v870_v29 = vld [vmem:[%s9370_s1 + $0x1a00] sm:$0xff] }
 0x192   :  { %5700 = vmatprep.subr.bf16.mxu0 %v5699_v30  ;;  %v902_v30 = vld [vmem:[%s9370_s1 + $0x1b00] sm:$0xff] }
 0x193   :  { %5730 = vmatpush3.bf16.msra.mxu1 %v5729_v31  ;;  %v871_v31 = vld [vmem:[%s9370_s1 + $0x1a08] sm:$0xff] }
 0x194   :  { %5732 = vmatprep.subr.bf16.mxu1 %v5731_v34  ;;  %v889_v34 = vld [vmem:[%s9370_s1 + $0x1a98] sm:$0xff]  ;;  %v5749_v38 = vpack.c.bf16 %v871_v31, %v870_v29 }
 0x195   :  { %5702 = vmatpush3.bf16.msra.mxu0 %v5701_v40  ;;  %v5781_v40 = vpack.c.bf16 %v903_v42, %v902_v30  ;;  %v880_v30 = vld [vmem:[%s9370_s1 + $0x1a50] sm:$0xff] }
 0x196   :  { %5704 = vmatprep.subr.bf16.mxu0 %v5703_v43  ;;  %v872_v43 = vld [vmem:[%s9370_s1 + $0x1a10] sm:$0xff] }
 0x197   :  { %5734 = vmatpush3.bf16.msra.mxu1 %v5733_v41  ;;  %v4149_v60 = vpop.f32.mrb[10].mxu0  ;;  %v5751_v41 = vpack.c.bf16 %v889_v34, %v888_v23  ;;  %v912_v42 = vld [vmem:[%s9370_s1 + $0x1b50] sm:$0xff]  ;;  %v913_v34 = vld [vmem:[%s9370_s1 + $0x1b58] sm:$0xff] }
 0x198   :  { %5736 = vmatprep.subr.bf16.mxu1 %v5735_v52  ;;  %v4150_v2 = vpop.f32.mrb[11].mxu0  ;;  %v905_v52 = vld [vmem:[%s9370_s1 + $0x1b18] sm:$0xff] }
 0x199   :  { %v4184_v3 = vpop.f32.mrb[10].mxu1  ;;  %v4151_v61 = vadd.f32 %v4150_v2, %v4149_v60  ;;  %5706 = vmatpush3.bf16.msra.mxu0 %v5705_v56  ;;  %v1322_v56 = vcombine.high %v8753_v37, %v8753_v37  ;;  %v5787_v60 = vpack.c.bf16 %v923_v55, %v922_v54  ;;  %v900_v54 = vld [vmem:[%s9370_s1 + $0x1af0] sm:$0xff]  ;;  %v901_v55 = vld [vmem:[%s9370_s1 + $0x1af8] sm:$0xff] }
 0x19a   :  { %v4185_v6 = vpop.f32.mrb[11].mxu1  ;;  %5708 = vmatprep.subr.bf16.mxu0 %v5707_v45  ;;  %v5785_v45 = vpack.c.bf16 %v905_v52, %v904_v46  ;;  %v882_v46 = vld [vmem:[%s9370_s1 + $0x1a60] sm:$0xff] }
 0x19b   :  { %v4186_v63 = vadd.f32 %v4185_v6, %v4184_v3  ;;  %5738 = vmatpush3.bf16.msra.mxu1 %v5737_v57  ;;  %v2188_v17 = vadd.f32 %v4151_v61, %v8513_v27  ;;  %v919_v27 = vld [vmem:[%s9370_s1 + $0x1b88] sm:$0xff]  ;;  %v5753_v57 = vpack.c.bf16 %v873_v44, %v872_v43  ;;  %v877_v61 = vld [vmem:[%s9370_s1 + $0x1a38] sm:$0xff]  ;;  %v908_v6 = vld [vmem:[%s9370_s1 + $0x1b30] sm:$0xff]  ;;  %v5801_v43 = vpack.c.bf16 %v913_v34, %v912_v42 }
 0x19c   :  { %5740 = vmatprep.subr.bf16.mxu1 %v5739_v10  ;;  %v5779_v32 = vpack.c.bf16 %v919_v27, %v918_v21  ;;  %v892_v10 = vld [vmem:[%s9370_s1 + $0x1ab0] sm:$0xff]  ;;  %v5761_v15 = vpack.c.bf16 %v877_v61, %v876_v5  ;;  %v5793_v16 = vpack.c.bf16 %v909_v7, %v908_v6  ;;  %v911_v21 = vld [vmem:[%s9370_s1 + $0x1b48] sm:$0xff]  ;;  %v5771_v44 = vpack.c.bf16 %v899_v36, %v898_v39  ;;  %v914_v52 = vld [vmem:[%s9370_s1 + $0x1b60] sm:$0xff] }
 0x19d   :  { %v8723_v12 = vadd.f32 %v4186_v63, %v2188_v17  ;;  %5710 = vmatpush3.bf16.msra.mxu0 %v5709_v8  ;;  %v5759_v4 = vpack.c.bf16 %v893_v62, %v892_v10  ;;  %v5791_v8 = vpack.c.bf16 %v925_v1, %v924_v0  ;;  %v894_v63 = vld [vmem:[%s9370_s1 + $0x1ac0] sm:$0xff]  ;;  %v896_v27 = vld [vmem:[%s9370_s1 + $0x1ad0] sm:$0xff]  ;;  %v5797_v29 = vpack.c.bf16 %v911_v21, %v910_v9  ;;  %v885_v1 = vld [vmem:[%s9370_s1 + $0x1a78] sm:$0xff] }
 0x19e   :  { %5712 = vmatprep.subr.bf16.mxu0 %v5711_v11  ;;  %v926_v11 = vld [vmem:[%s9370_s1 + $0x1bc0] sm:$0xff]  ;;  %v5767_v31 = vpack.c.bf16 %v897_v22, %v896_v27  ;;  %v5775_v62 = vpack.c.bf16 %v901_v55, %v900_v54  ;;  %v884_v0 = vld [vmem:[%s9370_s1 + $0x1a70] sm:$0xff]  ;;  %v917_v5 = vld [vmem:[%s9370_s1 + $0x1b78] sm:$0xff] }
 0x19f   :  { %5742 = vmatpush3.bf16.msra.mxu1 %v5741_v26  ;;  %v895_v26 = vld [vmem:[%s9370_s1 + $0x1ac8] sm:$0xff]  ;;  %v5795_v20 = vpack.c.bf16 %v927_v14, %v926_v11  ;;  %v950_v61 = vld [vmem:[%s9370_s1 + $0x1c80] sm:$0xff]  ;;  %v952_v9 = vld [vmem:[%s9370_s1 + $0x1c90] sm:$0xff] }
 0x1a0   :  { %5744 = vmatprep.subr.bf16.mxu1 %v5743_v18  ;;  %v5763_v17 = vpack.c.bf16 %v895_v26, %v894_v63  ;;  %v878_v18 = vld [vmem:[%s9370_s1 + $0x1a40] sm:$0xff]  ;;  %v951_v6 = vld [vmem:[%s9370_s1 + $0x1c88] sm:$0xff]  ;;  %v5777_v26 = vpack.c.bf16 %v885_v1, %v884_v0  ;;  %v984_v27 = vld [vmem:[%s9370_s1 + $0x1d90] sm:$0xff] }
 0x1a1   :  { %5714 = vmatpush3.bf16.msra.mxu0 %v5713_v24  ;;  %v928_v24 = vld [vmem:[%s9370_s1 + $0x1bd0] sm:$0xff]  ;;  %v5811_v14 = vpack.c.bf16 %v951_v6, %v950_v61  ;;  %v985_v22 = vld [vmem:[%s9370_s1 + $0x1d98] sm:$0xff]  ;;  %v954_v34 = vld [vmem:[%s9370_s1 + $0x1ca0] sm:$0xff] }
 0x1a2   :  { %5748 = vmatprep.subr.bf16.mxu0 %v5747_v28  ;;  %v5765_v28 = vpack.c.bf16 %v879_v19, %v878_v18  ;;  %v967_v19 = vld [vmem:[%s9370_s1 + $0x1d08] sm:$0xff]  ;;  %v5847_v42 = vpack.c.bf16 %v985_v22, %v984_v27  ;;  %v988_v54 = vld [vmem:[%s9370_s1 + $0x1db0] sm:$0xff]  ;;  %v989_v55 = vld [vmem:[%s9370_s1 + $0x1db8] sm:$0xff] }
 0x1a3   :  { %5746 = vmatpush3.bf16.msra.mxu1 %v5745_v25  ;;  %v929_v25 = vld [vmem:[%s9370_s1 + $0x1bd8] sm:$0xff]  ;;  %v955_v39 = vld [vmem:[%s9370_s1 + $0x1ca8] sm:$0xff]  ;;  %v974_v61 = vld [vmem:[%s9370_s1 + $0x1d40] sm:$0xff] }
 0x1a4   :  { %5780 = vmatprep.subr.bf16.mxu1 %v5779_v32  ;;  %3166 = vmatmul.mubr.f32.vlgmr.msra.gmra.mrb[24].mxu0 %v8534_v49  ;;  %v874_v49 = vld [vmem:[%s9370_s1 + $0x1a20] sm:$0xff]  ;;  %v881_v32 = vld [vmem:[%s9370_s1 + $0x1a58] sm:$0xff]  ;;  %v5799_v23 = vpack.c.bf16 %v929_v25, %v928_v24  ;;  %v991_v0 = vld [vmem:[%s9370_s1 + $0x1dc8] sm:$0xff] }
 0x1a5   :  { %5750 = vmatpush3.bf16.msra.mxu0 %v5749_v38  ;;  %3305 = vmatprep.mubr.f32.mxu0 %v1321_v50  ;;  %v5757_v2 = vpack.c.bf16 %v875_v59, %v874_v49  ;;  %v930_v38 = vld [vmem:[%s9370_s1 + $0x1be0] sm:$0xff]  ;;  %v915_v50 = vld [vmem:[%s9370_s1 + $0x1b68] sm:$0xff] }
 0x1a6   :  { %3236 = vmatmul.mubr.f32.vlgmr.msra.gmra.mrb[24].mxu1 %v8543_v53  ;;  %5752 = vmatprep.subr.bf16.mxu0 %v5751_v41  ;;  %v907_v53 = vld [vmem:[%s9370_s1 + $0x1b28] sm:$0xff]  ;;  %v5769_v41 = vpack.c.bf16 %v881_v32, %v880_v30  ;;  %v5805_v10 = vpack.c.bf16 %v915_v50, %v914_v52  ;;  %v937_v30 = vld [vmem:[%s9370_s1 + $0x1c18] sm:$0xff]  ;;  %v968_v32 = vld [vmem:[%s9370_s1 + $0x1d10] sm:$0xff] }
 0x1a7   :  { %5782 = vmatpush3.bf16.msra.mxu1 %v5781_v40  ;;  %3375 = vmatprep.mubr.f32.mxu1 %v1322_v56  ;;  %v5789_v3 = vpack.c.bf16 %v907_v53, %v906_v51  ;;  %v931_v40 = vld [vmem:[%s9370_s1 + $0x1be8] sm:$0xff]  ;;  %v970_v52 = vld [vmem:[%s9370_s1 + $0x1d20] sm:$0xff]  ;;  %v957_v50 = vld [vmem:[%s9370_s1 + $0x1cb8] sm:$0xff] }
 0x1a8   :  { %5784 = vmatprep.subr.bf16.mxu1 %v5783_v47  ;;  %v883_v47 = vld [vmem:[%s9370_s1 + $0x1a68] sm:$0xff]  ;;  %v5803_v33 = vpack.c.bf16 %v931_v40, %v930_v38  ;;  %v986_v38 = vld [vmem:[%s9370_s1 + $0x1da0] sm:$0xff] }
 0x1a9   :  { %5754 = vmatpush3.bf16.msra.mxu0 %v5753_v57  ;;  %v5773_v51 = vpack.c.bf16 %v883_v47, %v882_v46  ;;  %v987_v40 = vld [vmem:[%s9370_s1 + $0x1da8] sm:$0xff]  ;;  %v5819_v46 = vpack.c.bf16 %v955_v39, %v954_v34  ;;  %v962_v27 = vld [vmem:[%s9370_s1 + $0x1ce0] sm:$0xff] }
 0x1aa   :  { %5756 = vmatprep.subr.bf16.mxu0 %v5755_v58  ;;  %v933_v58 = vld [vmem:[%s9370_s1 + $0x1bf8] sm:$0xff]  ;;  %v939_v47 = vld [vmem:[%s9370_s1 + $0x1c28] sm:$0xff] }
 0x1ab   :  { %5786 = vmatpush3.bf16.msra.mxu1 %v5785_v45  ;;  %v932_v45 = vld [vmem:[%s9370_s1 + $0x1bf0] sm:$0xff]  ;;  %v963_v22 = vld [vmem:[%s9370_s1 + $0x1ce8] sm:$0xff] }
 0x1ac   :  { %5788 = vmatprep.subr.bf16.mxu1 %v5787_v60  ;;  %v36_v60 = vld [vmem:[%s9371_s0 + $0x70] sm:$0xff] }
 0x1ad   :  { %5758 = vmatpush3.bf16.msra.mxu0 %v5757_v2  ;;  %v916_v2 = vld [vmem:[%s9370_s1 + $0x1b70] sm:$0xff]  ;;  %v1323_v7 = vcombine.high %v36_v60, %v36_v60  ;;  %v8954_v21 = vrot.slane %v36_v60, %v6159_v13  ;;  %v973_v60 = vld [vmem:[%s9370_s1 + $0x1d38] sm:$0xff] }
 0x1ae   :  { %5760 = vmatprep.subr.bf16.mxu0 %v5759_v4  ;;  %v5807_v4 = vpack.c.bf16 %v933_v58, %v932_v45  ;;  %v5809_v11 = vpack.c.bf16 %v917_v5, %v916_v2  ;;  %v940_v58 = vld [vmem:[%s9370_s1 + $0x1c30] sm:$0xff]  ;;  %v943_v5 = vld [vmem:[%s9370_s1 + $0x1c48] sm:$0xff] }
 0x1af   :  { %5790 = vmatpush3.bf16.msra.mxu1 %v5789_v3  ;;  %v8963_v24 = vrot.slane %v1323_v7, %v6159_v13  ;;  %v1338_v36 = vcombine.high %v8954_v21, %v8954_v21  ;;  %v961_v7 = vld [vmem:[%s9370_s1 + $0x1cd8] sm:$0xff] }
 0x1b0   :  { %5792 = vmatprep.subr.bf16.mxu1 %v5791_v8  ;;  %v982_v8 = vld [vmem:[%s9370_s1 + $0x1d80] sm:$0xff] }
 0x1b1   :  { %5762 = vmatpush3.bf16.msra.mxu0 %v5761_v15  ;;  %v934_v15 = vld [vmem:[%s9370_s1 + $0x1c00] sm:$0xff] }
 0x1b2   :  { %5764 = vmatprep.subr.bf16.mxu0 %v5763_v17  ;;  %v966_v17 = vld [vmem:[%s9370_s1 + $0x1d00] sm:$0xff] }
 0x1b3   :  { %5794 = vmatpush3.bf16.msra.mxu1 %v5793_v16  ;;  %v935_v16 = vld [vmem:[%s9370_s1 + $0x1c08] sm:$0xff] }
 0x1b4   :  { %5796 = vmatprep.subr.bf16.mxu1 %v5795_v20  ;;  %v953_v20 = vld [vmem:[%s9370_s1 + $0x1c98] sm:$0xff]  ;;  %v5813_v25 = vpack.c.bf16 %v935_v16, %v934_v15 }
 0x1b5   :  { %5766 = vmatpush3.bf16.msra.mxu0 %v5765_v28  ;;  %v5845_v28 = vpack.c.bf16 %v967_v19, %v966_v17  ;;  %v944_v17 = vld [vmem:[%s9370_s1 + $0x1c50] sm:$0xff] }
 0x1b6   :  { %5768 = vmatprep.subr.bf16.mxu0 %v5767_v31  ;;  %v936_v31 = vld [vmem:[%s9370_s1 + $0x1c10] sm:$0xff] }
 0x1b7   :  { %5798 = vmatpush3.bf16.msra.mxu1 %v5797_v29  ;;  %v4219_v48 = vpop.f32.mrb[12].mxu0  ;;  %v5815_v29 = vpack.c.bf16 %v953_v20, %v952_v9  ;;  %v976_v19 = vld [vmem:[%s9370_s1 + $0x1d50] sm:$0xff]  ;;  %v977_v20 = vld [vmem:[%s9370_s1 + $0x1d58] sm:$0xff] }
 0x1b8   :  { %5800 = vmatprep.subr.bf16.mxu1 %v5799_v23  ;;  %v4220_v56 = vpop.f32.mrb[13].mxu0  ;;  %v969_v23 = vld [vmem:[%s9370_s1 + $0x1d18] sm:$0xff] }
 0x1b9   :  { %v4254_v57 = vpop.f32.mrb[12].mxu1  ;;  %v4221_v49 = vadd.f32 %v4220_v56, %v4219_v48  ;;  %5770 = vmatpush3.bf16.msra.mxu0 %v5769_v41  ;;  %v1339_v41 = vcombine.high %v8963_v24, %v8963_v24  ;;  %v5851_v48 = vpack.c.bf16 %v987_v40, %v986_v38  ;;  %v964_v38 = vld [vmem:[%s9370_s1 + $0x1cf0] sm:$0xff]  ;;  %v965_v40 = vld [vmem:[%s9370_s1 + $0x1cf8] sm:$0xff] }
 0x1ba   :  { %v4255_v59 = vpop.f32.mrb[13].mxu1  ;;  %5772 = vmatprep.subr.bf16.mxu0 %v5771_v44  ;;  %v5849_v44 = vpack.c.bf16 %v969_v23, %v968_v32  ;;  %v946_v32 = vld [vmem:[%s9370_s1 + $0x1c60] sm:$0xff] }
 0x1bb   :  { %v4256_v53 = vadd.f32 %v4255_v59, %v4254_v57  ;;  %5802 = vmatpush3.bf16.msra.mxu1 %v5801_v43  ;;  %v2328_v3 = vadd.f32 %v4221_v49, %v8723_v12  ;;  %v983_v12 = vld [vmem:[%s9370_s1 + $0x1d88] sm:$0xff]  ;;  %v5817_v43 = vpack.c.bf16 %v937_v30, %v936_v31  ;;  %v941_v49 = vld [vmem:[%s9370_s1 + $0x1c38] sm:$0xff]  ;;  %v972_v59 = vld [vmem:[%s9370_s1 + $0x1d30] sm:$0xff]  ;;  %v5865_v31 = vpack.c.bf16 %v977_v20, %v976_v19 }
 0x1bc   :  { %5804 = vmatprep.subr.bf16.mxu1 %v5803_v33  ;;  %v5843_v18 = vpack.c.bf16 %v983_v12, %v982_v8  ;;  %v956_v33 = vld [vmem:[%s9370_s1 + $0x1cb0] sm:$0xff]  ;;  %v5825_v1 = vpack.c.bf16 %v941_v49, %v940_v58  ;;  %v5857_v2 = vpack.c.bf16 %v973_v60, %v972_v59  ;;  %v975_v8 = vld [vmem:[%s9370_s1 + $0x1d48] sm:$0xff]  ;;  %v5835_v30 = vpack.c.bf16 %v963_v22, %v962_v27  ;;  %v978_v23 = vld [vmem:[%s9370_s1 + $0x1d60] sm:$0xff] }
 0x1bd   :  { %v8933_v63 = vadd.f32 %v4256_v53, %v2328_v3  ;;  %5774 = vmatpush3.bf16.msra.mxu0 %v5773_v51  ;;  %v5823_v45 = vpack.c.bf16 %v957_v50, %v956_v33  ;;  %v5855_v51 = vpack.c.bf16 %v989_v55, %v988_v54  ;;  %v958_v53 = vld [vmem:[%s9370_s1 + $0x1cc0] sm:$0xff]  ;;  %v960_v12 = vld [vmem:[%s9370_s1 + $0x1cd0] sm:$0xff]  ;;  %v5861_v15 = vpack.c.bf16 %v975_v8, %v974_v61  ;;  %v949_v55 = vld [vmem:[%s9370_s1 + $0x1c78] sm:$0xff] }
 0x1be   :  { %5776 = vmatprep.subr.bf16.mxu0 %v5775_v62  ;;  %v990_v62 = vld [vmem:[%s9370_s1 + $0x1dc0] sm:$0xff]  ;;  %v5831_v16 = vpack.c.bf16 %v961_v7, %v960_v12  ;;  %v5839_v50 = vpack.c.bf16 %v965_v40, %v964_v38  ;;  %v948_v54 = vld [vmem:[%s9370_s1 + $0x1c70] sm:$0xff]  ;;  %v981_v58 = vld [vmem:[%s9370_s1 + $0x1d78] sm:$0xff] }
 0x1bf   :  { %5806 = vmatpush3.bf16.msra.mxu1 %v5805_v10  ;;  %v959_v10 = vld [vmem:[%s9370_s1 + $0x1cc8] sm:$0xff]  ;;  %v5859_v6 = vpack.c.bf16 %v991_v0, %v990_v62  ;;  %v1014_v49 = vld [vmem:[%s9370_s1 + $0x1e80] sm:$0xff]  ;;  %v1016_v61 = vld [vmem:[%s9370_s1 + $0x1e90] sm:$0xff] }
 0x1c0   :  { %5808 = vmatprep.subr.bf16.mxu1 %v5807_v4  ;;  %v5827_v3 = vpack.c.bf16 %v959_v10, %v958_v53  ;;  %v942_v4 = vld [vmem:[%s9370_s1 + $0x1c40] sm:$0xff]  ;;  %v1015_v59 = vld [vmem:[%s9370_s1 + $0x1e88] sm:$0xff]  ;;  %v5841_v10 = vpack.c.bf16 %v949_v55, %v948_v54  ;;  %v1048_v12 = vld [vmem:[%s9370_s1 + $0x1f90] sm:$0xff] }
 0x1c1   :  { %5778 = vmatpush3.bf16.msra.mxu0 %v5777_v26  ;;  %v992_v26 = vld [vmem:[%s9370_s1 + $0x1dd0] sm:$0xff]  ;;  %v5875_v0 = vpack.c.bf16 %v1015_v59, %v1014_v49  ;;  %v1049_v7 = vld [vmem:[%s9370_s1 + $0x1f98] sm:$0xff]  ;;  %v1019_v20 = vld [vmem:[%s9370_s1 + $0x1ea8] sm:$0xff] }
 0x1c2   :  { %5812 = vmatprep.subr.bf16.mxu0 %v5811_v14  ;;  %v5829_v14 = vpack.c.bf16 %v943_v5, %v942_v4  ;;  %v1031_v5 = vld [vmem:[%s9370_s1 + $0x1f08] sm:$0xff]  ;;  %v1033_v19 = vld [vmem:[%s9370_s1 + $0x1f18] sm:$0xff]  ;;  %v1050_v22 = vld [vmem:[%s9370_s1 + $0x1fa0] sm:$0xff] }
 0x1c3   :  { %5810 = vmatpush3.bf16.msra.mxu1 %v5809_v11  ;;  %v993_v11 = vld [vmem:[%s9370_s1 + $0x1dd8] sm:$0xff]  ;;  %v1039_v59 = vld [vmem:[%s9370_s1 + $0x1f48] sm:$0xff] }
 0x1c4   :  { %5844 = vmatprep.subr.bf16.mxu1 %v5843_v18  ;;  %3306 = vmatmul.mubr.f32.vlgmr.msra.gmra.mrb[26].mxu0 %v8744_v35  ;;  %v938_v35 = vld [vmem:[%s9370_s1 + $0x1c20] sm:$0xff]  ;;  %v945_v18 = vld [vmem:[%s9370_s1 + $0x1c58] sm:$0xff]  ;;  %v5863_v9 = vpack.c.bf16 %v993_v11, %v992_v26 }
 0x1c5   :  { %5814 = vmatpush3.bf16.msra.mxu0 %v5813_v25  ;;  %3445 = vmatprep.mubr.f32.mxu0 %v1338_v36  ;;  %v5821_v56 = vpack.c.bf16 %v939_v47, %v938_v35  ;;  %v994_v25 = vld [vmem:[%s9370_s1 + $0x1de0] sm:$0xff]  ;;  %v979_v36 = vld [vmem:[%s9370_s1 + $0x1d68] sm:$0xff]  ;;  %v1053_v38 = vld [vmem:[%s9370_s1 + $0x1fb8] sm:$0xff] }
 0x1c6   :  { %3376 = vmatmul.mubr.f32.vlgmr.msra.gmra.mrb[26].mxu1 %v8753_v37  ;;  %5816 = vmatprep.subr.bf16.mxu0 %v5815_v29  ;;  %v971_v37 = vld [vmem:[%s9370_s1 + $0x1d28] sm:$0xff]  ;;  %v5833_v29 = vpack.c.bf16 %v945_v18, %v944_v17  ;;  %v5869_v33 = vpack.c.bf16 %v979_v36, %v978_v23  ;;  %v1001_v17 = vld [vmem:[%s9370_s1 + $0x1e18] sm:$0xff]  ;;  %v1032_v18 = vld [vmem:[%s9370_s1 + $0x1f10] sm:$0xff] }
 0x1c7   :  { %5846 = vmatpush3.bf16.msra.mxu1 %v5845_v28  ;;  %3515 = vmatprep.mubr.f32.mxu1 %v1339_v41  ;;  %v5853_v57 = vpack.c.bf16 %v971_v37, %v970_v52  ;;  %v995_v28 = vld [vmem:[%s9370_s1 + $0x1de8] sm:$0xff]  ;;  %v1052_v36 = vld [vmem:[%s9370_s1 + $0x1fb0] sm:$0xff] }
 0x1c8   :  { %5848 = vmatprep.subr.bf16.mxu1 %v5847_v42  ;;  %v947_v42 = vld [vmem:[%s9370_s1 + $0x1c68] sm:$0xff]  ;;  %v5867_v39 = vpack.c.bf16 %v995_v28, %v994_v25 }
 0x1c9   :  { %5818 = vmatpush3.bf16.msra.mxu0 %v5817_v43  ;;  %v5837_v52 = vpack.c.bf16 %v947_v42, %v946_v32  ;;  %v1051_v25 = vld [vmem:[%s9370_s1 + $0x1fa8] sm:$0xff]  ;;  %v1034_v42 = vld [vmem:[%s9370_s1 + $0x1f20] sm:$0xff] }
 0x1ca   :  { %5820 = vmatprep.subr.bf16.mxu0 %v5819_v46  ;;  %v997_v46 = vld [vmem:[%s9370_s1 + $0x1df8] sm:$0xff]  ;;  %v1003_v32 = vld [vmem:[%s9370_s1 + $0x1e28] sm:$0xff]  ;;  %v5915_v23 = vpack.c.bf16 %v1051_v25, %v1050_v22 }
 0x1cb   :  { %5850 = vmatpush3.bf16.msra.mxu1 %v5849_v44  ;;  %v996_v44 = vld [vmem:[%s9370_s1 + $0x1df0] sm:$0xff]  ;;  %v1029_v22 = vld [vmem:[%s9370_s1 + $0x1ef8] sm:$0xff] }
 0x1cc   :  { %5852 = vmatprep.subr.bf16.mxu1 %v5851_v48  ;;  %v37_v48 = vld [vmem:[%s9371_s0 + $0x78] sm:$0xff] }
 0x1cd   :  { %5822 = vmatpush3.bf16.msra.mxu0 %v5821_v56  ;;  %v980_v56 = vld [vmem:[%s9370_s1 + $0x1d70] sm:$0xff]  ;;  %v1340_v60 = vcombine.high %v37_v48, %v37_v48  ;;  %v9164_v8 = vrot.slane %v37_v48, %v6159_v13  ;;  %v1022_v48 = vld [vmem:[%s9370_s1 + $0x1ec0] sm:$0xff] }
 0x1ce   :  { %5824 = vmatprep.subr.bf16.mxu0 %v5823_v45  ;;  %v5871_v45 = vpack.c.bf16 %v997_v46, %v996_v44  ;;  %v5873_v62 = vpack.c.bf16 %v981_v58, %v980_v56  ;;  %v1004_v44 = vld [vmem:[%s9370_s1 + $0x1e30] sm:$0xff]  ;;  %v1005_v46 = vld [vmem:[%s9370_s1 + $0x1e38] sm:$0xff]  ;;  %v1038_v58 = vld [vmem:[%s9370_s1 + $0x1f40] sm:$0xff] }
 0x1cf   :  { %5854 = vmatpush3.bf16.msra.mxu1 %v5853_v57  ;;  %v9173_v26 = vrot.slane %v1340_v60, %v6159_v13  ;;  %v5911_v13 = vpack.c.bf16 %v1049_v7, %v1048_v12  ;;  %v1355_v27 = vcombine.high %v9164_v8, %v9164_v8  ;;  %v5889_v54 = vpack.c.bf16 %v1005_v46, %v1004_v44  ;;  %v1056_v60 = vld [vmem:[%s9370_s1 + $0x1fd0] sm:$0xff]  ;;  %v1027_v12 = vld [vmem:[%s9370_s1 + $0x1ee8] sm:$0xff]  ;;  %v1058_v7 = vld [vmem:[%s9370_s1 + $0x1fe0] sm:$0xff] }
 0x1d0   :  { %5856 = vmatprep.subr.bf16.mxu1 %v5855_v51  ;;  %v1046_v51 = vld [vmem:[%s9370_s1 + $0x1f80] sm:$0xff] }
 0x1d1   :  { %5826 = vmatpush3.bf16.msra.mxu0 %v5825_v1  ;;  %v998_v1 = vld [vmem:[%s9370_s1 + $0x1e00] sm:$0xff]  ;;  %v1356_v28 = vcombine.high %v9173_v26, %v9173_v26 }
 0x1d2   :  { %5828 = vmatprep.subr.bf16.mxu0 %v5827_v3  ;;  %v1030_v3 = vld [vmem:[%s9370_s1 + $0x1f00] sm:$0xff] }
 0x1d3   :  { %5858 = vmatpush3.bf16.msra.mxu1 %v5857_v2  ;;  %v999_v2 = vld [vmem:[%s9370_s1 + $0x1e08] sm:$0xff] }
 0x1d4   :  { %5860 = vmatprep.subr.bf16.mxu1 %v5859_v6  ;;  %v1017_v6 = vld [vmem:[%s9370_s1 + $0x1e98] sm:$0xff]  ;;  %v5877_v11 = vpack.c.bf16 %v999_v2, %v998_v1  ;;  %v1008_v2 = vld [vmem:[%s9370_s1 + $0x1e50] sm:$0xff] }
 0x1d5   :  { %5830 = vmatpush3.bf16.msra.mxu0 %v5829_v14  ;;  %v5909_v14 = vpack.c.bf16 %v1031_v5, %v1030_v3  ;;  %v1009_v3 = vld [vmem:[%s9370_s1 + $0x1e58] sm:$0xff] }
 0x1d6   :  { %5832 = vmatprep.subr.bf16.mxu0 %v5831_v16  ;;  %v1000_v16 = vld [vmem:[%s9370_s1 + $0x1e10] sm:$0xff] }
 0x1d7   :  { %5862 = vmatpush3.bf16.msra.mxu1 %v5861_v15  ;;  %v4289_v34 = vpop.f32.mrb[14].mxu0  ;;  %v5879_v15 = vpack.c.bf16 %v1017_v6, %v1016_v61  ;;  %v1041_v61 = vld [vmem:[%s9370_s1 + $0x1f58] sm:$0xff]  ;;  %v1026_v6 = vld [vmem:[%s9370_s1 + $0x1ee0] sm:$0xff] }
 0x1d8   :  { %5864 = vmatprep.subr.bf16.mxu1 %v5863_v9  ;;  %v4290_v41 = vpop.f32.mrb[15].mxu0  ;;  %v1018_v9 = vld [vmem:[%s9370_s1 + $0x1ea0] sm:$0xff] }
 0x1d9   :  { %v4324_v43 = vpop.f32.mrb[14].mxu1  ;;  %v4291_v35 = vadd.f32 %v4290_v41, %v4289_v34  ;;  %5834 = vmatpush3.bf16.msra.mxu0 %v5833_v29  ;;  %v5881_v29 = vpack.c.bf16 %v1001_v17, %v1000_v16  ;;  %v1020_v34 = vld [vmem:[%s9370_s1 + $0x1eb0] sm:$0xff]  ;;  %v5899_v16 = vpack.c.bf16 %v1027_v12, %v1026_v6  ;;  %v1010_v17 = vld [vmem:[%s9370_s1 + $0x1e60] sm:$0xff] }
 0x1da   :  { %v4325_v47 = vpop.f32.mrb[15].mxu1  ;;  %5836 = vmatprep.subr.bf16.mxu0 %v5835_v30  ;;  %v5883_v30 = vpack.c.bf16 %v1019_v20, %v1018_v9  ;;  %v1043_v20 = vld [vmem:[%s9370_s1 + $0x1f68] sm:$0xff] }
 0x1db   :  { %v4326_v37 = vadd.f32 %v4325_v47, %v4324_v43  ;;  %5866 = vmatpush3.bf16.msra.mxu1 %v5865_v31  ;;  %v2468_v57 = vadd.f32 %v4291_v35, %v8933_v63  ;;  %v1047_v63 = vld [vmem:[%s9370_s1 + $0x1f88] sm:$0xff]  ;;  %v5913_v31 = vpack.c.bf16 %v1033_v19, %v1032_v18  ;;  %v1036_v35 = vld [vmem:[%s9370_s1 + $0x1f30] sm:$0xff]  ;;  %v5919_v47 = vpack.c.bf16 %v1053_v38, %v1052_v36 }
 0x1dc   :  { %5868 = vmatprep.subr.bf16.mxu1 %v5867_v39  ;;  %v5907_v4 = vpack.c.bf16 %v1047_v63, %v1046_v51  ;;  %v1021_v39 = vld [vmem:[%s9370_s1 + $0x1eb8] sm:$0xff]  ;;  %v1024_v51 = vld [vmem:[%s9370_s1 + $0x1ed0] sm:$0xff]  ;;  %v1011_v18 = vld [vmem:[%s9370_s1 + $0x1e68] sm:$0xff] }
 0x1dd   :  { %v9143_v53 = vadd.f32 %v4326_v37, %v2468_v57  ;;  %5838 = vmatpush3.bf16.msra.mxu0 %v5837_v52  ;;  %v5887_v43 = vpack.c.bf16 %v1021_v39, %v1020_v34  ;;  %v1037_v52 = vld [vmem:[%s9370_s1 + $0x1f38] sm:$0xff]  ;;  %v1023_v37 = vld [vmem:[%s9370_s1 + $0x1ec8] sm:$0xff]  ;;  %v1006_v57 = vld [vmem:[%s9370_s1 + $0x1e40] sm:$0xff] }
 0x1de   :  { %5840 = vmatprep.subr.bf16.mxu0 %v5839_v50  ;;  %v1055_v50 = vld [vmem:[%s9370_s1 + $0x1fc8] sm:$0xff]  ;;  %v5921_v55 = vpack.c.bf16 %v1037_v52, %v1036_v35  ;;  %v5891_v56 = vpack.c.bf16 %v1023_v37, %v1022_v48  ;;  %v1025_v63 = vld [vmem:[%s9370_s1 + $0x1ed8] sm:$0xff]  ;;  %v1012_v34 = vld [vmem:[%s9370_s1 + $0x1e70] sm:$0xff] }
 0x1df   :  { %5870 = vmatpush3.bf16.msra.mxu1 %v5869_v33  ;;  %v1054_v33 = vld [vmem:[%s9370_s1 + $0x1fc0] sm:$0xff]  ;;  %v5895_v1 = vpack.c.bf16 %v1025_v63, %v1024_v51  ;;  %v1013_v39 = vld [vmem:[%s9370_s1 + $0x1e78] sm:$0xff]  ;;  %v5976_v51 = vmov 0.0|0.0   ;;  %v3664_v63 = vld [vmem:[%s9373_s3 + $0x10] sm:$0xff] }
 0x1e0   :  { %5872 = vmatprep.subr.bf16.mxu1 %v5871_v45  ;;  %v1007_v45 = vld [vmem:[%s9370_s1 + $0x1e48] sm:$0xff]  ;;  %v5923_v49 = vpack.c.bf16 %v1055_v50, %v1054_v33  ;;  %v5905_v44 = vpack.c.bf16 %v1013_v39, %v1012_v34 }
 0x1e1   :  { %5842 = vmatpush3.bf16.msra.mxu0 %v5841_v10  ;;  %v1057_v10 = vld [vmem:[%s9370_s1 + $0x1fd8] sm:$0xff] }
 0x1e2   :  { %5876 = vmatprep.subr.bf16.mxu0 %v5875_v0  ;;  %v5925_v0 = vpack.c.bf16 %v1039_v59, %v1038_v58  ;;  %v5927_v5 = vpack.c.bf16 %v1057_v10, %v1056_v60  ;;  %v3665_v10 = vld [vmem:[%s9373_s3 + $0x18] sm:$0xff] }
 0x1e3   :  { %5874 = vmatpush3.bf16.msra.mxu1 %v5873_v62  ;;  %v5893_v62 = vpack.c.bf16 %v1007_v45, %v1006_v57 }
 0x1e4   :  { %5908 = vmatprep.subr.bf16.mxu1 %v5907_v4  ;;  %3446 = vmatmul.mubr.f32.vlgmr.msra.gmra.mrb[28].mxu0 %v8954_v21  ;;  %v1002_v21 = vld [vmem:[%s9370_s1 + $0x1e20] sm:$0xff]  ;;  %v1040_v4 = vld [vmem:[%s9370_s1 + $0x1f50] sm:$0xff] }
 0x1e5   :  { %5878 = vmatpush3.bf16.msra.mxu0 %v5877_v11  ;;  %3585 = vmatprep.mubr.f32.mxu0 %v1355_v27  ;;  %v5885_v40 = vpack.c.bf16 %v1003_v32, %v1002_v21  ;;  %v1059_v11 = vld [vmem:[%s9370_s1 + $0x1fe8] sm:$0xff]  ;;  %v1028_v27 = vld [vmem:[%s9370_s1 + $0x1ef0] sm:$0xff]  ;;  %v5901_v32 = vpack.c.bf16 %v1011_v18, %v1010_v17  ;;  %v5978_v17 = vmov 0.0   ;;  %v10_v18 = vstv %s9374_s4 }
 0x1e6   :  { %3516 = vmatmul.mubr.f32.vlgmr.msra.gmra.mrb[28].mxu1 %v8963_v24  ;;  %5880 = vmatprep.subr.bf16.mxu0 %v5879_v15  ;;  %v1035_v24 = vld [vmem:[%s9370_s1 + $0x1f28] sm:$0xff]  ;;  %v5929_v15 = vpack.c.bf16 %v1041_v61, %v1040_v4  ;;  %v5931_v9 = vpack.c.bf16 %v1059_v11, %v1058_v7  ;;  %v3668_v11 = vld [vmem:[%s9373_s3 + $0x30] sm:$0xff]  ;;  %11 = vst [vmem:[#allocation2] sm:$0x1] %v10_v18 }
 0x1e7   :  { %5910 = vmatpush3.bf16.msra.mxu1 %v5909_v14  ;;  %3655 = vmatprep.mubr.f32.mxu1 %v1356_v28  ;;  %v5917_v41 = vpack.c.bf16 %v1035_v24, %v1034_v42  ;;  %v5897_v14 = vpack.c.bf16 %v1009_v3, %v1008_v2  ;;  %v5903_v24 = vpack.c.bf16 %v1029_v22, %v1028_v27  ;;  %v3667_v2 = vld [vmem:[%s9373_s3 + $0x28] sm:$0xff] }
 0x1e8   :  { %5912 = vmatprep.subr.bf16.mxu1 %v5911_v13  ;;  %v1042_v13 = vld [vmem:[%s9370_s1 + $0x1f60] sm:$0xff] }
 0x1e9   :  { %5882 = vmatpush3.bf16.msra.mxu0 %v5881_v29  ;;  %v1060_v29 = vld [vmem:[%s9370_s1 + $0x1ff0] sm:$0xff] }
 0x1ea   :  { %5884 = vmatprep.subr.bf16.mxu0 %v5883_v30 }
 0x1eb   :  { %5914 = vmatpush3.bf16.msra.mxu1 %v5913_v31  ;;  %v1061_v31 = vld [vmem:[%s9370_s1 + $0x1ff8] sm:$0xff] }
 0x1ec   :  { %5916 = vmatprep.subr.bf16.mxu1 %v5915_v23  ;;  %v5933_v23 = vpack.c.bf16 %v1043_v20, %v1042_v13  ;;  %v5935_v38 = vpack.c.bf16 %v1061_v31, %v1060_v29 }
 0x1ed   :  { %5886 = vmatpush3.bf16.msra.mxu0 %v5885_v40  ;;  %v1044_v40 = vld [vmem:[%s9370_s1 + $0x1f70] sm:$0xff] }
 0x1ee   :  { %5888 = vmatprep.subr.bf16.mxu0 %v5887_v43 }
 0x1ef   :  { %5918 = vmatpush3.bf16.msra.mxu1 %v5917_v41  ;;  %v1045_v41 = vld [vmem:[%s9370_s1 + $0x1f78] sm:$0xff] }
 0x1f0   :  { %5920 = vmatprep.subr.bf16.mxu1 %v5919_v47  ;;  %v5937_v46 = vpack.c.bf16 %v1045_v41, %v1044_v40 }
 0x1f1   :  { %5890 = vmatpush3.bf16.msra.mxu0 %v5889_v54 }
 0x1f2   :  { %5892 = vmatprep.subr.bf16.mxu0 %v5891_v56 }
 0x1f3   :  { %5922 = vmatpush3.bf16.msra.mxu1 %v5921_v55 }
 0x1f4   :  { %5924 = vmatprep.subr.bf16.mxu1 %v5923_v49 }
 0x1f5   :  { %5894 = vmatpush3.bf16.msra.mxu0 %v5893_v62  ;;  %v5943_v62 = vpack.c.bf16 %v3665_v10, %v3664_v63 }
 0x1f6   :  { %5896 = vmatprep.subr.bf16.mxu0 %v5895_v1  ;;  %v3666_v1 = vld [vmem:[%s9373_s3 + $0x20] sm:$0xff] }
 0x1f7   :  { %5926 = vmatpush3.bf16.msra.mxu1 %v5925_v0  ;;  %v4359_v19 = vpop.f32.mrb[16].mxu0 }
 0x1f8   :  { %5928 = vmatprep.subr.bf16.mxu1 %v5927_v5  ;;  %v4360_v25 = vpop.f32.mrb[17].mxu0  ;;  %v5946_v5 = vpack.c.bf16 %v3667_v2, %v3666_v1 }
 0x1f9   :  { %v4394_v28 = vpop.f32.mrb[16].mxu1  ;;  %v4361_v30 = vadd.f32 %v4360_v25, %v4359_v19  ;;  %5898 = vmatpush3.bf16.msra.mxu0 %v5897_v14  ;;  %v3669_v14 = vld [vmem:[%s9373_s3 + $0x38] sm:$0xff] }
 0x1fa   :  { %v4395_v21 = vpop.f32.mrb[17].mxu1  ;;  %5900 = vmatprep.subr.bf16.mxu0 %v5899_v16 }
 0x1fb   :  { %v4396_v42 = vadd.f32 %v4395_v21, %v4394_v28  ;;  %5930 = vmatpush3.bf16.msra.mxu1 %v5929_v15  ;;  %v2608_v36 = vadd.f32 %v4361_v30, %v9143_v53  ;;  %v5949_v15 = vpack.c.bf16 %v3669_v14, %v3668_v11 }
 0x1fc   :  { %5932 = vmatprep.subr.bf16.mxu1 %v5931_v9 }
 0x1fd   :  { %v2678_v43 = vadd.f32 %v4396_v42, %v2608_v36  ;;  %5902 = vmatpush3.bf16.msra.mxu0 %v5901_v32 }
 0x1fe   :  { %5904 = vmatprep.subr.bf16.mxu0 %v5903_v24 }
 0x1ff   :  { %5934 = vmatpush3.bf16.msra.mxu1 %v5933_v23 }
 0x200   :  { %5936 = vmatprep.subr.bf16.mxu1 %v5935_v38 }
 0x201   :  { %5906 = vmatpush3.bf16.msra.mxu0 %v5905_v44 }
 0x202   :  { %5939 = vmatprep.subr.bf16.mxu0 %v5976_v51 }
 0x203   :  { %5938 = vmatpush3.bf16.msra.mxu1 %v5937_v46 }
 0x204   :  { %3586 = vmatmul.mubr.f32.vlgmr.msra.gmra.mrb[30].mxu0 %v9164_v8  ;;  %v3662_v8 = vld [vmem:[%s9373_s3] sm:$0xff] }
 0x205   :  { %4912 = vmatprep.mubr.msk.f32.mxu0 %vm5977_vm0, %v5978_v17 }
 0x206   :  { %3656 = vmatmul.mubr.f32.vlgmr.msra.gmra.mrb[30].mxu1 %v9173_v26  ;;  %v3663_v26 = vld [vmem:[%s9373_s3 + $0x8] sm:$0xff] }
 0x207   :  { %v5940_v60 = vpack.c.bf16 %v3663_v26, %v3662_v8 }
 0x209   :  { %5941 = vmatpush3.bf16.msra.mxu0 %v5940_v60 }
 0x20a   :  { %5942 = vmatprep.subr.bf16.mxu0 %v5976_v51 }
 0x20d   :  { %5944 = vmatpush3.bf16.msra.mxu0 %v5943_v62 }
 0x20e   :  { %5945 = vmatprep.subr.bf16.mxu0 %v5976_v51 }
 0x211   :  { %5947 = vmatpush3.bf16.msra.mxu0 %v5946_v5 }
 0x212   :  { %5948 = vmatprep.subr.bf16.mxu0 %v5976_v51 }
 0x215   :  { %5950 = vmatpush3.bf16.msra.mxu0 %v5949_v15 }
 0x217   :  { %v4429_v53 = vpop.f32.mrb[18].mxu0 }
 0x218   :  { %v4430_v35 = vpop.f32.mrb[19].mxu0 }
 0x219   :  { %v4464_v47 = vpop.f32.mrb[18].mxu1  ;;  %v4431_v52 = vadd.f32 %v4430_v35, %v4429_v53 }
 0x21a   :  { %v4465_v48 = vpop.f32.mrb[19].mxu1 }
 0x21b   :  { %v4466_v37 = vadd.f32 %v4465_v48, %v4464_v47  ;;  %v2748_v33 = vadd.f32 %v4431_v52, %v2678_v43 }
 0x21d   :  { %v2818_v50 = vadd.f32 %v4466_v37, %v2748_v33 }
 0x237   :  { %v4499_v54 = vpop.f32.mrb[20].mxu0 }
 0x238   :  { %v4500_v55 = vpop.f32.mrb[21].mxu0 }
 0x239   :  { %v4534_v56 = vpop.f32.mrb[20].mxu1  ;;  %v4501_v57 = vadd.f32 %v4500_v55, %v4499_v54  ;;  %v3764_v54 = vld [vmem:[#allocation2] ss:$0 sm:$0xff] }
 0x23a   :  { %v4535_v45 = vpop.f32.mrb[21].mxu1 }
 0x23b   :  { %v4536_v58 = vadd.f32 %v4535_v45, %v4534_v56  ;;  %v2888_v49 = vadd.f32 %v4501_v57, %v2818_v50 }
 0x23d   :  { %v2958_v59 = vadd.f32 %v4536_v58, %v2888_v49 }
 0x257   :  { %v4569_v0 = vpop.f32.mrb[22].mxu0 }
 0x258   :  { %v4570_v3 = vpop.f32.mrb[23].mxu0 }
 0x259   :  { %v4604_v4 = vpop.f32.mrb[22].mxu1  ;;  %v4571_v61 = vadd.f32 %v4570_v3, %v4569_v0 }
 0x25a   :  { %v4605_v6 = vpop.f32.mrb[23].mxu1 }
 0x25b   :  { %v4606_v12 = vadd.f32 %v4605_v6, %v4604_v4  ;;  %v3028_v7 = vadd.f32 %v4571_v61, %v2958_v59 }
 0x25d   :  { %v3098_v16 = vadd.f32 %v4606_v12, %v3028_v7 }
 0x277   :  { %v4639_v13 = vpop.f32.mrb[24].mxu0 }
 0x278   :  { %v4640_v19 = vpop.f32.mrb[25].mxu0 }
 0x279   :  { %v4674_v9 = vpop.f32.mrb[24].mxu1  ;;  %v4641_v20 = vadd.f32 %v4640_v19, %v4639_v13 }
 0x27a   :  { %v4675_v27 = vpop.f32.mrb[25].mxu1 }
 0x27b   :  { %v4676_v22 = vadd.f32 %v4675_v27, %v4674_v9  ;;  %v3168_v25 = vadd.f32 %v4641_v20, %v3098_v16 }
 0x27d   :  { %v3238_v28 = vadd.f32 %v4676_v22, %v3168_v25 }
 0x297   :  { %v4709_v29 = vpop.f32.mrb[26].mxu0 }
 0x298   :  { %v4710_v31 = vpop.f32.mrb[27].mxu0 }
 0x299   :  { %v4744_v30 = vpop.f32.mrb[26].mxu1  ;;  %v4711_v21 = vadd.f32 %v4710_v31, %v4709_v29 }
 0x29a   :  { %v4745_v32 = vpop.f32.mrb[27].mxu1 }
 0x29b   :  { %v4746_v42 = vadd.f32 %v4745_v32, %v4744_v30  ;;  %v3308_v23 = vadd.f32 %v4711_v21, %v3238_v28 }
 0x29d   :  { %v3378_v24 = vadd.f32 %v4746_v42, %v3308_v23 }
 0x2b7   :  { %v4779_v34 = vpop.f32.mrb[28].mxu0 }
 0x2b8   :  { %v4780_v39 = vpop.f32.mrb[29].mxu0 }
 0x2b9   :  { %v4814_v36 = vpop.f32.mrb[28].mxu1  ;;  %v4781_v38 = vadd.f32 %v4780_v39, %v4779_v34 }
 0x2ba   :  { %v4815_v40 = vpop.f32.mrb[29].mxu1 }
 0x2bb   :  { %v4816_v41 = vadd.f32 %v4815_v40, %v4814_v36  ;;  %v3448_v43 = vadd.f32 %v4781_v38, %v3378_v24 }
 0x2bd   :  { %v3518_v44 = vadd.f32 %v4816_v41, %v3448_v43 }
 0x2d7   :  { %v4849_v46 = vpop.f32.mrb[30].mxu0 }
 0x2d8   :  { %v4850_v53 = vpop.f32.mrb[31].mxu0 }
 0x2d9   :  { %v4884_v35 = vpop.f32.mrb[30].mxu1  ;;  %v4851_v47 = vadd.f32 %v4850_v53, %v4849_v46 }
 0x2da   :  { %v4885_v52 = vpop.f32.mrb[31].mxu1 }
 0x2db   :  { %v4886_v48 = vadd.f32 %v4885_v52, %v4884_v35  ;;  %v3588_v37 = vadd.f32 %v4851_v47, %v3518_v44 }
 0x2dd   :  { %v3658_v33 = vadd.f32 %v4886_v48, %v3588_v37 }
 0x2df   :  { %v3661_v50 = vmax.f32 %v3658_v33, 0.0 }
 0x2e1   :  { %4913 = vmatmul.mubr.msk.f32.vlgmr.msra.gmra.mrb[32].mxu0 %vm3677_vm1, %v3661_v50 }
 0x3b4   :  { %v3747_v55 = vpop.f32.mrb[32].mxu0 }
 0x3b5   :  { %v3748_v56 = vadd.f32 %v3764_v54, %v3747_v55  ;;  %v4914_v57 = vpop.f32.mrb[33].mxu0 }
 0x3b7   :  { %v3766_v45 = vmul.f32 -1.442695, %v3748_v56 }
 0x3b9   :  { %5971 = vpow2.f32 %v3766_v45 }
 0x3c3   :  { %v5972_v58 = vpop.eup %5971 }
 0x3c4   :  { %v3754_v49 = vadd.f32 1.0, %v5972_v58 }
 0x3c6   :  { %5973 = vrcp.f32 %v3754_v49 }
 0x3d0   :  { %v5974_v59 = vpop.eup %5973 }
 0x3d1   :  { %3758 = vst.msk [vmem:[%s9375_s5] sm:$0x3] %vm3757_vm2, %v5974_v59 }

// kernel: simple_cnn_forward.2
= control target key start
LH: loop header
LB: loop body
LE: loop exit
PB: predicated region body
PF: predicated region fallthrough
CT: control target
= control target key end

     0   :  { %9 = vsyncpa [#allocation4], 0  ;;  %s5854_s15 = smov 0   ;;  %s6701_s0 = inlined_call_operand.vmem [shape: f32[2,3,1190], index: 0, kind: input, shape index: {}]   ;;  %s6702_s1 = inlined_call_operand.vmem [shape: f32[32,27], index: 1, kind: input, shape index: {}]   ;;  %s6703_s2 = inlined_call_operand.vmem [shape: f32[32,1], index: 2, kind: input, shape index: {}]   ;;  %s6704_s3 = inlined_call_operand.hbm [shape: f32[1088,1024], index: 3, kind: input, shape index: {}]   ;;  %s6705_s4 = inlined_call_operand.vmem [shape: f32[2,32,256], index: 4, kind: output, shape index: {}]  }
   0x1 LB: > { %s5860_s16 = sadd.s32 4294967295, %s5813_s15   ;;  %p4352_p0 = scmp.ge.s32.totalorder %s5813_s15, 1  ;;  %s5813_s15 = sphi %s5854_s15, %s15_s15  }
   0x2   : > { %p135_p1 = scmp.lt.s32.totalorder %s5813_s15, 3  ;;  %s5815_s17 = smov [#allocation3]  }
   0x3   : > { %s153_s18 = sshll.u32 %s5815_s17, 4  ;;  %p6706_p3 = scmp.eq.s32.totalorder %s5860_s16, 0  ;;  %s154_s18 = int_to_ptr.vmem [resolvable:$true] %s153_s18 }
   0x4   : > { %p5864_p2 = pnand %p4352_p0, %p135_p1  ;;  %s5775_s23 = scalar_lea.hbm %s6704_s3, 139264 }
   0x5   : > { %p5776_p6 = scmp.ne.s32.totalorder %s6704_s3, %s5775_s23  ;;  %p5782_p10 = scmp.lt.u32.totalorder %s5775_s23, %s6704_s3 }
   0x6   : > { %s6708_s19 = scalar_select %p5864_p2, 1, 0 }
   0x7   : > { %p5705_p4 = pneg %p5864_p2 }
   0x9   : > { %p5873_p5 = pnand %p6706_p3, %p5705_p4 }
   0xb   : > { %p5777_p7 = pneg %p5873_p5 }
   0xd   : > { %p5778_p8 = pnand %p5777_p7, %p5776_p6 }
   0xf   : > { %p5779_p9 = pneg %p5778_p8 }
  0x11   : > { %p5784_p11 = pnand %p5782_p10, %p5779_p9 }
  0x13   : > { %5787 = shalt.err (!%p5784_p11)
}
  0x14   : > { %s5788_s28 = scalar_lea.vmem %s154_s18, 139264  ;;  %p5796_p1 = scmp.lt.s32.totalorder %s154_s18, %s154_s18 }
  0x15   : > { %p5789_p12 = scmp.ne.s32.totalorder %s154_s18, %s5788_s28  ;;  %p5797_p4 = scmp.lt.s32.totalorder %s5788_s28, %s5788_s28 }
  0x17   : > { %p5791_p13 = pnand %p5789_p12, %p5777_p7  ;;  %p5798_p3 = por %p5797_p4, %p5796_p1 }
  0x19   : > { %p5792_p0 = pneg %p5791_p13 }
  0x1b   : > { %p5799_p2 = pnand %p5798_p3, %p5792_p0 }
  0x1d   : > { %5802 = shalt.err (!%p5799_p2)
}
  0x1e   : > { %s5816_s29 = smov 1024   ;;  %s5817_s30 = smov 64  }
  0x1f   : > { %5708 = dma.hbm_to_vmem [thread:$0]  (!%p5873_p5), %s6704_s3, 139264, %s154_s18, [#allocation4], %s5816_s29, %s5816_s29, %s5817_s30  }
  0x20   : > { %p6710_p6 = scmp.ne.s32.totalorder %s6708_s19, 0 }
  0x21   : > { %p6711_p8 = scmp.eq.s32.totalorder (!%p6710_p6), %s5860_s16, 0 }
  0x22   : > { %177 = sbr.rel (%p6710_p6) target bundleno = 1157 (0x485), region = 36 }
  0x29   : > { %5808 = dma.done.wait (%p6711_p8), [#allocation4], 139264   ;;  %p6712_p7 = pmov %p6711_p8 }
  0x2a   : > { %p203_p2 = scmp.lt.s32.totalorder %s5860_s16, 1  ;;  %s5818_s11 = smov 93   ;;  %v5826_v52 = vmov 0.0   ;;  %vm281_vm0 = vcmask 1039360   ;;  %vm490_vm1 = vcmask 760832   ;;  %vm429_vm2 = vcmask 769024  }
  0x2b   : > { %5810 = vsyncadd (%p6712_p7), [#allocation4], 4294828032  ;;  %s5819_s12 = smov 126   ;;  %s5820_s13 = smov 127   ;;  %953 = vmatprep.mubr.f32.mxu0 %v5826_v52  ;;  %965 = vmatprep.mubr.f32.mxu1 %v5826_v52  ;;  %vm350_vm3 = vcmask 1031168   ;;  %vm559_vm4 = vcmask 752640  }
  0x2c   : > { %s6716_s16 = smov (!%p203_p2, %s5860_s16), 1  ;;  %s5821_s14 = smov 94   ;;  %vm642_vm5 = vcmask 490496   ;;  %vm238_vm6 = vcmask 518144   ;;  %vm716_vm7 = vcmask 482304   ;;  %vm780_vm8 = vcmask 474112  }
  0x2d   : > { %s5700_s7 = smul.u32 40, %s6716_s16  ;;  %s5822_s17 = smov 92   ;;  %vm861_vm9 = vcmask 1042432   ;;  %vm5827_vm10 = vmmov 1   ;;  %vm848_vm12 = vcmask 220160   ;;  %vm307_vm13 = vcmask 521219  }
  0x2e   : > { %s5823_s18 = smov 60   ;;  %s5824_s19 = smov 59   ;;  %vm6128_vm11 = vmpackc.low %vm861_vm9, %vm5827_vm10  ;;  %vm376_vm14 = vcmask 523270   ;;  %vm386_vm15 = vcmask 516096   ;;  %vm595_vm9 = vcmask 517120  }
  0x2f   : > { %s5907_s10 = scalar_lea.vmem %s6701_s0, %s5700_s7  ;;  %s5825_s20 = smov 58  }
  0x30   : > { %v457_v0 = vld [vmem:[%s5907_s10] sm:$0x77]  ;;  %v5911_v1 = vld [vmem:[%s5907_s10 + $0x8] sm:$0x77]  ;;  %v242_v47 = vld [vmem:[%s5907_s10 + $0x10] sm:$0x77] }
  0x31   : > { %v5914_v2 = vld [vmem:[%s5907_s10 + $0x8] sm:$0x77]  ;;  %474 = vrot.lane.b32.xlu0 %v457_v0, %s5818_s11  ;;  %v325_v3 = vrot.slane %v5911_v1, 2  ;;  %v240_v6 = vld [vmem:[%s5907_s10] sm:$0x77]  ;;  %v467_v27 = vcombine.low %v457_v0, %v457_v0  ;;  %v320_v48 = vcombine.high %v5911_v1, %v5911_v1  ;;  %v258_v50 = vrot.slane %v242_v47, 5 }
  0x32   : > { %v256_v4 = vrot.slane %v5914_v2, 5  ;;  %v5920_v5 = vld [vmem:[%s5907_s10 + $0x8] sm:$0x77]  ;;  %v250_v7 = vcombine.high %v240_v6, %v240_v6  ;;  %v388_v8 = vld [vmem:[%s5907_s10] sm:$0x77]  ;;  %v254_v23 = vrot.slane %v240_v6, 5  ;;  %v251_v45 = vcombine.high %v5914_v2, %v5914_v2 }
  0x33   : > { %336 = vrot.lane.b32.xlu1 %v325_v3, %s5819_s12  ;;  %v404_v9 = vrot.slane %v5920_v5, 7  ;;  %v5927_v10 = vld [vmem:[%s5907_s10 + $0x8] sm:$0x77]  ;;  %v309_v11 = vld [vmem:[%s5907_s10] sm:$0x77]  ;;  %v398_v13 = vcombine.high %v388_v8, %v388_v8  ;;  %v402_v26 = vrot.slane %v388_v8, 7  ;;  %v399_v54 = vcombine.high %v5920_v5, %v5920_v5 }
  0x34   : > { %v255_v12 = vrot.slane %v250_v7, 5  ;;  %v518_v14 = vld [vmem:[%s5907_s10] sm:$0x77]  ;;  %v468_v15 = vcombine.low %v5927_v10, %v5927_v10  ;;  %v319_v16 = vcombine.high %v309_v11, %v309_v11  ;;  %v5938_v20 = vld [vmem:[%s5907_s10 + $0x8] sm:$0x77]  ;;  %v323_v24 = vrot.slane %v309_v11, 2 }
  0x35   : > { %267 = vrot.lane.b32.xlu0 %v256_v4, %s5820_s13  ;;  %v403_v17 = vrot.slane %v398_v13, 7  ;;  %v528_v18 = vcombine.high %v518_v14, %v518_v14  ;;  %v534_v22 = vrot.slane %v5938_v20, 1  ;;  %v597_v25 = vld [vmem:[%s5907_s10] sm:$0x77]  ;;  %v532_v32 = vrot.slane %v518_v14, 1 }
  0x36   : > { %v324_v19 = vrot.slane %v319_v16, 2  ;;  %v607_v28 = vcombine.high %v597_v25, %v597_v25  ;;  %v213_v29 = vld [vmem:[%s5907_s10] sm:$0x77]  ;;  %v5952_v33 = vld [vmem:[%s5907_s10 + $0x8] sm:$0x77]  ;;  %v612_v43 = vrot.slane %v597_v25, 6  ;;  %v529_v61 = vcombine.high %v5938_v20, %v5938_v20 }
  0x37   : > { %415 = vrot.lane.b32.xlu1 %v404_v9, %s5821_s14  ;;  %v533_v21 = vrot.slane %v528_v18, 1  ;;  %v671_v30 = vld [vmem:[%s5907_s10] sm:$0x77]  ;;  %v222_v31 = vcombine.high %v213_v29, %v213_v29  ;;  %230 = vst [vmem:[#allocation2] sm:$0x7] %v213_v29  ;;  %v614_v36 = vrot.slane %v5952_v33, 6  ;;  %v608_v1 = vcombine.high %v5952_v33, %v5952_v33 }
  0x38   : > { %v613_v34 = vrot.slane %v607_v28, 6  ;;  %v681_v35 = vcombine.high %v671_v30, %v671_v30  ;;  %v672_v37 = vld [vmem:[%s5907_s10 + $0x8] sm:$0x77]  ;;  %v745_v39 = vld [vmem:[%s5907_s10] sm:$0x77]  ;;  %v686_v44 = vrot.slane %v671_v30, 3  ;;  %v252_v11 = vcombine.high %v242_v47, %v242_v47 }
  0x39   : > { %265 = vrot.lane.b32.xlu0 %v255_v12, %s5820_s13  ;;  %231 = vst [vmem:[#allocation2 + $0x8] sm:$0x7] %v222_v31  ;;  %v688_v40 = vrot.slane %v672_v37, 3  ;;  %v755_v41 = vcombine.high %v745_v39, %v745_v39  ;;  %v746_v42 = vld [vmem:[%s5907_s10 + $0x8] sm:$0x77]  ;;  %v257_v49 = vrot.slane %v251_v45, 5  ;;  %v682_v5 = vcombine.high %v672_v37, %v672_v37 }
  0x3a   : > { %v687_v38 = vrot.slane %v681_v35, 3  ;;  %v214_v46 = vld [vmem:[%s5907_s10 + $0x8] sm:$0x77]  ;;  %v311_v51 = vld [vmem:[%s5907_s10 + $0x10] sm:$0x77]  ;;  %v326_v53 = vrot.slane %v320_v48, 2 }
  0x3b   : > { %476 = vrot.lane.b32.xlu1 %v468_v15, %s5818_s11  ;;  %232 = vst [vmem:[#allocation2 + $0x10] sm:$0x7] %v214_v46  ;;  %v327_v55 = vrot.slane %v311_v51, 2  ;;  %v390_v56 = vld [vmem:[%s5907_s10 + $0x10] sm:$0x77]  ;;  %v405_v57 = vrot.slane %v399_v54, 7  ;;  %v223_v58 = vcombine.high %v214_v46, %v214_v46  ;;  %v321_v16 = vcombine.high %v311_v51, %v311_v51 }
  0x3c   : > { %v406_v59 = vrot.slane %v390_v56, 7  ;;  %v459_v60 = vld [vmem:[%s5907_s10 + $0x10] sm:$0x77]  ;;  %v535_v0 = vrot.slane %v529_v61, 1  ;;  %v615_v4 = vrot.slane %v608_v1, 6  ;;  %v689_v8 = vrot.slane %v682_v5, 3 }
  0x3d   : > { %413 = vrot.lane.b32.xlu0 %v403_v17, %s5821_s14  ;;  %233 = vst [vmem:[#allocation2 + $0x18] sm:$0x7] %v223_v58  ;;  %v469_v62 = vcombine.low %v459_v60, %v459_v60  ;;  %v520_v63 = vld [vmem:[%s5907_s10 + $0x10] sm:$0x77]  ;;  %v243_v14 = vld [vmem:[%s5907_s10 + $0x18] sm:$0x77]  ;;  %v400_v20 = vcombine.high %v390_v56, %v390_v56 }
  0x3e   : > { %v536_v2 = vrot.slane %v520_v63, 1  ;;  %v599_v3 = vld [vmem:[%s5907_s10 + $0x10] sm:$0x77]  ;;  %v259_v15 = vrot.slane %v252_v11, 5  ;;  %v260_v17 = vrot.slane %v243_v14, 5 }
  0x3f   : > { %334 = vrot.lane.b32.xlu1 %v324_v19, %s5819_s12  ;;  %v616_v6 = vrot.slane %v599_v3, 6  ;;  %v673_v7 = vld [vmem:[%s5907_s10 + $0x10] sm:$0x77]  ;;  %v312_v18 = vld [vmem:[%s5907_s10 + $0x18] sm:$0x77]  ;;  %v328_v19 = vrot.slane %v321_v16, 2  ;;  %v609_v31 = vcombine.high %v599_v3, %v599_v3 }
  0x40   : > { %v690_v9 = vrot.slane %v673_v7, 3  ;;  %v215_v12 = vld [vmem:[%s5907_s10 + $0x10] sm:$0x77]  ;;  %v521_v29 = vld [vmem:[%s5907_s10 + $0x18] sm:$0x77]  ;;  %v683_v35 = vcombine.high %v673_v7, %v673_v7  ;;  %v322_v45 = vcombine.high %v312_v18, %v312_v18 }
  0x41   : > { %543 = vrot.lane.b32.xlu0 %v533_v21, %s5822_s17  ;;  %234 = vst [vmem:[#allocation2 + $0x20] sm:$0x7] %v215_v12  ;;  %v747_v13 = vld [vmem:[%s5907_s10 + $0x10] sm:$0x77]  ;;  %v329_v21 = vrot.slane %v312_v18, 2  ;;  %v531_v61 = vcombine.high %v521_v29, %v521_v29 }
  0x42   : > { %v6026_v33 = vld [vmem:[%s5907_s10 + $0x18] sm:$0x77]  ;;  %v313_v47 = vld [vmem:[%s5907_s10 + $0x20] sm:$0x7]  ;;  %v330_v48 = vrot.slane %v322_v45, 2 }
  0x43   : > { %545 = vrot.lane.b32.xlu1 %v534_v22, %s5822_s17  ;;  %v391_v22 = vld [vmem:[%s5907_s10 + $0x18] sm:$0x77]  ;;  %v331_v51 = vrot.slane %v313_v47, 2  ;;  %v522_v1 = vld [vmem:[%s5907_s10 + $0x20] sm:$0x7]  ;;  %v539_v3 = vrot.slane %v531_v61, 1 }
  0x44   : > { %v408_v25 = vrot.slane %v391_v22, 7  ;;  %v6032_v37 = vld [vmem:[%s5907_s10 + $0x18] sm:$0x77]  ;;  %v540_v7 = vrot.slane %v522_v1, 1 }
  0x45   : > { %263 = vrot.lane.b32.xlu0 %v254_v23, %s5820_s13  ;;  %v407_v23 = vrot.slane %v400_v20, 7  ;;  %v216_v56 = vld [vmem:[%s5907_s10 + $0x18] sm:$0x77]  ;;  %v684_v16 = vcombine.high %v6032_v37, %v6032_v37 }
  0x46   : > { %236 = vst [vmem:[#allocation2 + $0x30] sm:$0x7] %v216_v56 }
  0x47   : > { %332 = vrot.lane.b32.xlu1 %v323_v24, %s5819_s12  ;;  %v224_v24 = vcombine.high %v215_v12, %v215_v12 }
  0x49   : > { %411 = vrot.lane.b32.xlu0 %v402_v26, %s5821_s14  ;;  %v6016_v26 = vld [vmem:[%s5907_s10 + $0x18] sm:$0x77]  ;;  %235 = vst [vmem:[#allocation2 + $0x28] sm:$0x7] %v224_v24 }
  0x4a   : > { %v470_v28 = vcombine.low %v6016_v26, %v6016_v26 }
  0x4b   : > { %472 = vrot.lane.b32.xlu1 %v467_v27, %s5818_s11  ;;  %v530_v27 = vcombine.high %v520_v63, %v520_v63  ;;  %v5764_v63 = vld [vmem:[%s5907_s10 + $0x20] ss:$0 sps:$4 sm:$0x77]  }
  0x4d   : > { %541 = vrot.lane.b32.xlu0 %v532_v32, %s5822_s17  ;;  %v537_v30 = vrot.slane %v530_v27, 1  ;;  %v538_v32 = vrot.slane %v521_v29, 1 }
  0x4f   : > { %624 = vrot.lane.b32.xlu1 %v613_v34, %s5823_s18  ;;  %v617_v34 = vrot.slane %v609_v31, 6 }
  0x51   : > { %626 = vrot.lane.b32.xlu0 %v614_v36, %s5823_s18  ;;  %v618_v36 = vrot.slane %v6026_v33, 6 }
  0x53   : > { %698 = vrot.lane.b32.xlu1 %v687_v38, %s5824_s19  ;;  %v691_v38 = vrot.slane %v683_v35, 3 }
  0x55   : > { %700 = vrot.lane.b32.xlu0 %v688_v40, %s5824_s19  ;;  %v757_v40 = vcombine.high %v747_v13, %v747_v13 }
  0x57   : > { %762 = vrot.lane.b32.xlu1 %v755_v41, %s5825_s20  ;;  %v253_v41 = vcombine.high %v243_v14, %v243_v14 }
  0x59   : > { %764 = vrot.lane.b32.xlu0 %v746_v42, %s5825_s20 }
  0x5b   : > { %622 = vrot.lane.b32.xlu1 %v612_v43, %s5823_s18  ;;  %v244_v43 = vld [vmem:[%s5907_s10 + $0x20] sm:$0x7] }
  0x5c   : > { %v262_v46 = vrot.slane %v244_v43, 5 }
  0x5d   : > { %696 = vrot.lane.b32.xlu0 %v686_v44, %s5824_s19  ;;  %v261_v44 = vrot.slane %v253_v41, 5 }
  0x5f   : > { %760 = vrot.lane.b32.xlu1 %v745_v39, %s5825_s20  ;;  %v692_v39 = vrot.slane %v6032_v37, 3 }
  0x61   : > { %269 = vrot.lane.b32.xlu0 %v257_v49, %s5820_s13  ;;  %v401_v49 = vcombine.high %v391_v22, %v391_v22  ;;  %v693_v22 = vrot.slane %v684_v16, 3 }
  0x63   : > { %271 = vrot.lane.b32.xlu1 %v258_v50, %s5820_s13 }
  0x65   : > { %338 = vrot.lane.b32.xlu0 %v326_v53, %s5819_s12  ;;  %v392_v53 = vld [vmem:[%s5907_s10 + $0x20] sm:$0x7] }
  0x67   : > { %340 = vrot.lane.b32.xlu1 %v327_v55, %s5819_s12  ;;  %v409_v55 = vrot.slane %v401_v49, 7 }
  0x69   : > { %417 = vrot.lane.b32.xlu0 %v405_v57, %s5821_s14  ;;  %v225_v57 = vcombine.high %v216_v56, %v216_v56 }
  0x6b   : > { %419 = vrot.lane.b32.xlu1 %v406_v59, %s5821_s14  ;;  %v410_v59 = vrot.slane %v392_v53, 7  ;;  %237 = vst [vmem:[#allocation2 + $0x38] sm:$0x7] %v225_v57 }
  0x6d   : > { %478 = vrot.lane.b32.xlu0 %v5927_v10, %s5818_s11  ;;  %v756_v10 = vcombine.high %v746_v42, %v746_v42  ;;  %v6040_v42 = vld [vmem:[%s5907_s10 + $0x18] sm:$0x77] }
  0x6e   : > { %v758_v31 = vcombine.high %v6040_v42, %v6040_v42 }
  0x6f   : > { %480 = vrot.lane.b32.xlu1 %v469_v62, %s5818_s11 }
  0x71   : > { %547 = vrot.lane.b32.xlu0 %v535_v0, %s5822_s17 }
  0x73   : > { %549 = vrot.lane.b32.xlu1 %v536_v2, %s5822_s17 }
  0x75   : > { %628 = vrot.lane.b32.xlu0 %v615_v4, %s5823_s18  ;;  %v610_v4 = vcombine.high %v6026_v33, %v6026_v33 }
  0x77   : > { %630 = vrot.lane.b32.xlu1 %v616_v6, %s5823_s18  ;;  %v619_v11 = vrot.slane %v610_v4, 6 }
  0x79   : > { %702 = vrot.lane.b32.xlu0 %v689_v8, %s5824_s19 }
  0x7b   : > { %704 = vrot.lane.b32.xlu1 %v690_v9, %s5824_s19  ;;  %v601_v9 = vld [vmem:[%s5907_s10 + $0x20] sm:$0x77] }
  0x7c   : > { %v611_v12 = vcombine.high %v601_v9, %v601_v9 }
  0x7d   : > { %766 = vrot.lane.b32.xlu0 %v756_v10, %s5825_s20 }
  0x7f   : > { %768 = vrot.lane.b32.xlu1 %v747_v13, %s5825_s20 }
  0x81   : > { %273 = vrot.lane.b32.xlu0 %v259_v15, %s5820_s13  ;;  %v620_v15 = vrot.slane %v601_v9, 6 }
  0x83   : > { %275 = vrot.lane.b32.xlu1 %v260_v17, %s5820_s13  ;;  %v675_v17 = vld [vmem:[%s5907_s10 + $0x20] sm:$0x77] }
  0x85   : > { %342 = vrot.lane.b32.xlu0 %v328_v19, %s5819_s12  ;;  %v621_v19 = vrot.slane %v611_v12, 6 }
  0x87   : > { %344 = vrot.lane.b32.xlu1 %v329_v21, %s5819_s12 }
  0x89   : > { %421 = vrot.lane.b32.xlu0 %v407_v23, %s5821_s14  ;;  %v685_v23 = vcombine.high %v675_v17, %v675_v17 }
  0x8b   : > { %423 = vrot.lane.b32.xlu1 %v408_v25, %s5821_s14  ;;  %v695_v29 = vrot.slane %v685_v23, 3  ;;  %v6178_v23 = vld [vmem:[%s6702_s1 + $0x8] sm:$0xff] }
  0x8d   : > { %482 = vrot.lane.b32.xlu0 %v459_v60, %s5818_s11 }
  0x8f   : > { %484 = vrot.lane.b32.xlu1 %v470_v28, %s5818_s11 }
  0x91   : > { %551 = vrot.lane.b32.xlu0 %v537_v30, %s5822_s17 }
  0x93   : > { %553 = vrot.lane.b32.xlu1 %v538_v32, %s5822_s17 }
  0x95   : > { %632 = vrot.lane.b32.xlu0 %v617_v34, %s5823_s18 }
  0x97   : > { %634 = vrot.lane.b32.xlu1 %v618_v36, %s5823_s18 }
  0x99   : > { %706 = vrot.lane.b32.xlu0 %v691_v38, %s5824_s19 }
  0x9b   : > { %708 = vrot.lane.b32.xlu1 %v692_v39, %s5824_s19  ;;  %v749_v39 = vld [vmem:[%s5907_s10 + $0x20] sm:$0x77] }
  0x9c   : > { %v759_v41 = vcombine.high %v749_v39, %v749_v39 }
  0x9d   : > { %770 = vrot.lane.b32.xlu0 %v757_v40, %s5825_s20 }
  0x9f   : > { %772 = vrot.lane.b32.xlu1 %v6040_v42, %s5825_s20  ;;  %v217_v42 = vld [vmem:[%s5907_s10 + $0x20] sm:$0x7] }
  0xa0   : > { %239 = vst.msk [vmem:[#allocation2 + $0x40] sm:$0x7] %vm238_vm6, %v217_v42 }
  0xa1   : > { %277 = vrot.lane.b32.xlu0 %v261_v44, %s5820_s13 }
  0xa3   : > { %v6048_v50 = vpop.permute.xlu0 %474  ;;  %279 = vrot.lane.b32.xlu1 %v262_v46, %s5820_s13 }
  0xa5   : > { %v6052_v54 = vpop.permute.xlu1 %336  ;;  %346 = vrot.lane.b32.xlu0 %v330_v48, %s5819_s12 }
  0xa7   : > { %348 = vrot.lane.b32.xlu1 %v331_v51, %s5819_s12  ;;  %v6057_v58 = vpop.permute.xlu0 %267 }
  0xa9   : > { %v6059_v60 = vpop.permute.xlu1 %415  ;;  %425 = vrot.lane.b32.xlu0 %v409_v55, %s5821_s14 }
  0xab   : > { %427 = vrot.lane.b32.xlu1 %v410_v59, %s5821_s14  ;;  %v266_v62 = vpop.permute.xlu0 %265 }
  0xac   : > { %v283_v0 = vsel %vm281_vm0, %v266_v62, %v6057_v58 }
  0xad   : > { %300 = vst [vmem:[#allocation2 + $0x8] sm:$0x38] %v283_v0  ;;  %v6067_v2 = vpop.permute.xlu1 %476  ;;  %486 = vrot.lane.b32.xlu0 %v6016_v26, %s5818_s11  ;;  %v694_v26 = vrot.slane %v675_v17, 3 }
  0xae   : > { %v492_v5 = vsel %vm490_vm1, %v6048_v50, %v6067_v2 }
  0xaf   : > { %509 = vst [vmem:[#allocation2 + $0x50] sm:$0x70] %v492_v5  ;;  %488 = vrot.lane.b32.xlu1 %v5764_v63, %s5818_s11  ;;  %v414_v6 = vpop.permute.xlu0 %413  ;;  %s4407_s11 = sshll.u32 %s6716_s16, 6 }
  0xb0   : > { %v431_v8 = vsel %vm429_vm2, %v414_v6, %v6059_v60  ;;  %s6670_s14 = scalar_lea.vmem %s6705_s4, %s4407_s11 }
  0xb1   : > { %448 = vst [vmem:[#allocation2 + $0x50] sm:$0xe] %v431_v8  ;;  %v335_v10 = vpop.permute.xlu1 %334  ;;  %555 = vrot.lane.b32.xlu0 %v539_v3, %s5822_s17 }
  0xb2   : > { %v352_v13 = vsel %vm350_vm3, %v335_v10, %v6052_v54 }
  0xb3   : > { %369 = vst [vmem:[#allocation2 + $0x50] ss:$-68 sps:$4 sm:$0xc1] %v352_v13   ;;  %557 = vrot.lane.b32.xlu1 %v540_v7, %s5822_s17  ;;  %v544_v14 = vpop.permute.xlu0 %543 }
  0xb5   : > { %v6087_v18 = vpop.permute.xlu1 %545  ;;  %636 = vrot.lane.b32.xlu0 %v619_v11, %s5823_s18 }
  0xb6   : > { %v561_v20 = vsel %vm559_vm4, %v544_v14, %v6087_v18 }
  0xb7   : > { %578 = vst [vmem:[#allocation2 + $0x98] ss:$-68 sps:$4 sm:$0x83] %v561_v20   ;;  %638 = vrot.lane.b32.xlu1 %v620_v15, %s5823_s18  ;;  %v264_v21 = vpop.permute.xlu0 %263 }
  0xb8   : > { %v282_v24 = vsel %vm281_vm0, %v264_v21, %v266_v62 }
  0xb9   : > { %299 = vst [vmem:[#allocation2] sm:$0x38] %v282_v24  ;;  %v333_v25 = vpop.permute.xlu1 %332  ;;  %640 = vrot.lane.b32.xlu0 %v621_v19, %s5823_s18  ;;  %v6162_v19 = vld [vmem:[%s6702_s1 + $0x10] sm:$0xff] }
  0xba   : > { %v351_v27 = vsel %vm350_vm3, %v333_v25, %v335_v10  ;;  %v813_v34 = vld [vmem:[#allocation2 + $0x8] sm:$0xff] }
  0xbb   : > { %368 = vst [vmem:[#allocation2 + $0x48] ss:$-68 sps:$4 sm:$0xc1] %v351_v27   ;;  %710 = vrot.lane.b32.xlu1 %v693_v22, %s5824_s19  ;;  %v412_v28 = vpop.permute.xlu0 %411 }
  0xbc   : > { %v430_v30 = vsel %vm429_vm2, %v412_v28, %v414_v6 }
  0xbd   : > { %447 = vst [vmem:[#allocation2 + $0x48] sm:$0xe] %v430_v30  ;;  %v473_v32 = vpop.permute.xlu1 %472  ;;  %712 = vrot.lane.b32.xlu0 %v694_v26, %s5824_s19 }
  0xbe   : > { %v491_v33 = vsel %vm490_vm1, %v473_v32, %v6048_v50  ;;  %v822_v35 = vld [vmem:[#allocation2 + $0x50] sm:$0xff] }
  0xbf   : > { %508 = vst [vmem:[#allocation2 + $0x48] sm:$0x70] %v491_v33  ;;  %714 = vrot.lane.b32.xlu1 %v695_v29, %s5824_s19  ;;  %v542_v36 = vpop.permute.xlu0 %541  ;;  %v4430_v37 = vpack.c.bf16 %v822_v35, %v813_v34 }
  0xc0   : > { %v560_v38 = vsel %vm559_vm4, %v542_v36, %v544_v14 }
  0xc1   : > { %577 = vst [vmem:[#allocation2 + $0x90] ss:$-68 sps:$4 sm:$0x83] %v560_v38   ;;  %v625_v40 = vpop.permute.xlu1 %624  ;;  %774 = vrot.lane.b32.xlu0 %v758_v31, %s5825_s20  ;;  %4431 = vmatprep.subr.bf16.mxu0 %v4430_v37 }
  0xc2   : > { %5568 = vmatprep.subr.bf16.mxu1 %v4430_v37  ;;  %v812_v48 = vld [vmem:[#allocation2] sm:$0xff] }
  0xc3   : > { %776 = vrot.lane.b32.xlu1 %v749_v39, %s5825_s20  ;;  %v6109_v43 = vpop.permute.xlu0 %626 }
  0xc4   : > { %v644_v44 = vsel %vm642_vm5, %v625_v40, %v6109_v43 }
  0xc5   : > { %662 = vst [vmem:[#allocation2 + $0x98] sm:$0x1c] %v644_v44  ;;  %v699_v45 = vpop.permute.xlu1 %698  ;;  %778 = vrot.lane.b32.xlu0 %v759_v41, %s5825_s20 }
  0xc7   : > { %v6115_v46 = vpop.permute.xlu0 %700 }
  0xc8   : > { %v718_v47 = vsel %vm716_vm7, %v699_v45, %v6115_v46  ;;  %v821_v49 = vld [vmem:[#allocation2 + $0x48] sm:$0xff] }
  0xc9   : > { %736 = vst [vmem:[#allocation2 + $0x98] sm:$0xe0] %v718_v47  ;;  %v763_v50 = vpop.permute.xlu1 %762  ;;  %v4432_v51 = vpack.c.bf16 %v821_v49, %v812_v48 }
  0xcb   : > { %v6119_v53 = vpop.permute.xlu0 %764  ;;  %4433 = vmatpush1.bf16.msra.mxu0 %v4432_v51  ;;  %5570 = vmatpush1.bf16.msra.mxu1 %v4432_v51 }
  0xcc   : > { %v782_v55 = vsel %vm780_vm8, %v763_v50, %v6119_v53 }
  0xcd   : > { %800 = vst [vmem:[#allocation2 + $0xe0] sm:$0x7] %v782_v55  ;;  %v623_v56 = vpop.permute.xlu1 %622 }
  0xce   : > { %v643_v57 = vsel %vm642_vm5, %v623_v56, %v625_v40 }
  0xcf   : > { %661 = vst [vmem:[#allocation2 + $0x90] sm:$0x1c] %v643_v57  ;;  %v697_v59 = vpop.permute.xlu0 %696 }
  0xd0   : > { %v717_v61 = vsel %vm716_vm7, %v697_v59, %v699_v45  ;;  %v831_v3 = vld [vmem:[#allocation2 + $0x98] sm:$0xff] }
  0xd1   : > { %735 = vst [vmem:[#allocation2 + $0x90] sm:$0xe0] %v717_v61  ;;  %v761_v62 = vpop.permute.xlu1 %760 }
  0xd2   : > { %v781_v63 = vsel %vm780_vm8, %v761_v62, %v763_v50 }
  0xd3   : > { %799 = vst [vmem:[#allocation2 + $0xd8] sm:$0x7] %v781_v63  ;;  %v270_v0 = vpop.permute.xlu0 %269 }
  0xd4   : > { %v284_v1 = vsel %vm281_vm0, %v6057_v58, %v270_v0  ;;  %v840_v4 = vld [vmem:[#allocation2 + $0xe0] sm:$0x7] }
  0xd5   : > { %301 = vst [vmem:[#allocation2 + $0x10] sm:$0x38] %v284_v1  ;;  %v6132_v6 = vpop.permute.xlu1 %271  ;;  %v4434_v7 = vpack.c.bf16 %v840_v4, %v831_v3 }
  0xd6   : > { %v285_v8 = vsel %vm281_vm0, %v270_v0, %v6132_v6 }
  0xd7   : > { %302 = vst [vmem:[#allocation2 + $0x18] sm:$0x38] %v285_v8  ;;  %v339_v9 = vpop.permute.xlu0 %338  ;;  %4436 = vmatprep.subr.msk.bf16.mxu0 %vm6128_vm11, %v4434_v7  ;;  %5569 = vmatprep.subr.msk.bf16.mxu1 %vm6128_vm11, %v4434_v7 }
  0xd8   : > { %v353_v58 = vsel %vm350_vm3, %v6052_v54, %v339_v9  ;;  %v830_v12 = vld [vmem:[#allocation2 + $0x90] sm:$0xff]  ;;  %v6157_v54 = vld [vmem:[%s6702_s1] sm:$0xff] }
  0xd9   : > { %370 = vst [vmem:[#allocation2 + $0x58] ss:$-68 sps:$4 sm:$0xc1] %v353_v58   ;;  %v6142_v10 = vpop.permute.xlu1 %340 }
  0xda   : > { %v354_v11 = vsel %vm350_vm3, %v339_v9, %v6142_v10  ;;  %v839_v13 = vld [vmem:[#allocation2 + $0xd8] sm:$0x7] }
  0xdb   : > { %371 = vst [vmem:[#allocation2 + $0x60] ss:$-68 sps:$4 sm:$0xc1] %v354_v11   ;;  %v418_v14 = vpop.permute.xlu0 %417  ;;  %v4437_v15 = vpack.c.bf16 %v839_v13, %v830_v12 }
  0xdc   : > { %v432_v16 = vsel %vm429_vm2, %v6059_v60, %v418_v14 }
  0xdd   : > { %449 = vst [vmem:[#allocation2 + $0x58] sm:$0xe] %v432_v16  ;;  %v6148_v17 = vpop.permute.xlu1 %419  ;;  %4439 = vmatpush1.bf16.msk.msra.mxu0 %vm6128_vm11, %v4437_v15  ;;  %5571 = vmatpush1.bf16.msk.msra.mxu1 %vm6128_vm11, %v4437_v15 }
  0xde   : > { %v433_v60 = vsel %vm429_vm2, %v418_v14, %v6148_v17 }
  0xdf   : > { %450 = vst [vmem:[#allocation2 + $0x60] sm:$0xe] %v433_v60  ;;  %v479_v20 = vpop.permute.xlu0 %478 }
  0xe0   : > { %v493_v21 = vsel %vm490_vm1, %v6067_v2, %v479_v20  ;;  %4362 = vmatmul.mubr.msk.f32.vlgmr.msra.gmra.mrb[0].mxu0 %vm848_vm12, %v6157_v54  ;;  %4364 = vmatmul.mubr.msk.f32.vlgmr.msra.gmra.mrb[0].mxu1 %vm848_vm12, %v6162_v19  ;;  %v6184_v2 = vld [vmem:[%s6702_s1 + $0x18] sm:$0xff]  ;;  %v814_v41 = vld [vmem:[#allocation2 + $0x10] sm:$0xff] }
  0xe1   : > { %510 = vst [vmem:[#allocation2 + $0x58] sm:$0x70] %v493_v21  ;;  %v6172_v22 = vpop.permute.xlu1 %480  ;;  %959 = vmatprep.mubr.f32.mxu0 %v5826_v52  ;;  %971 = vmatprep.mubr.f32.mxu1 %v5826_v52 }
  0xe2   : > { %v494_v24 = vsel %vm490_vm1, %v479_v20, %v6172_v22  ;;  %v815_v34 = vld [vmem:[#allocation2 + $0x18] sm:$0xff] }
  0xe3   : > { %511 = vst [vmem:[#allocation2 + $0x60] sm:$0x70] %v494_v24  ;;  %v548_v25 = vpop.permute.xlu0 %547 }
  0xe4   : > { %v562_v26 = vsel %vm559_vm4, %v6087_v18, %v548_v25  ;;  %4363 = vmatmul.mubr.msk.f32.gmra.mrb[2].mxu0 %vm848_vm12, %v6178_v23  ;;  %4365 = vmatmul.mubr.msk.f32.gmra.mrb[2].mxu1 %vm848_vm12, %v6184_v2 }
  0xe5   : > { %579 = vst [vmem:[#allocation2 + $0xa0] ss:$-68 sps:$4 sm:$0x83] %v562_v26   ;;  %v6194_v27 = vpop.permute.xlu1 %549  ;;  %1042 = vmatprep.mubr.f32.mxu1 %v5826_v52  ;;  %1131 = vmatprep.mubr.f32.mxu0 %v5826_v52 }
  0xe6   : > { %v563_v28 = vsel %vm559_vm4, %v548_v25, %v6194_v27 }
  0xe7   : > { %580 = vst [vmem:[#allocation2 + $0xa8] ss:$-68 sps:$4 sm:$0x83] %v563_v28   ;;  %v629_v29 = vpop.permute.xlu0 %628 }
  0xe8   : > { %v645_v18 = vsel %vm642_vm5, %v6109_v43, %v629_v29 }
  0xe9   : > { %663 = vst [vmem:[#allocation2 + $0xa0] sm:$0x1c] %v645_v18  ;;  %v6202_v30 = vpop.permute.xlu1 %630 }
  0xea   : > { %v646_v31 = vsel %vm642_vm5, %v629_v29, %v6202_v30 }
  0xeb   : > { %664 = vst [vmem:[#allocation2 + $0xa8] sm:$0x1c] %v646_v31  ;;  %v703_v32 = vpop.permute.xlu0 %702 }
  0xec   : > { %v719_v33 = vsel %vm716_vm7, %v6115_v46, %v703_v32  ;;  %v823_v36 = vld [vmem:[#allocation2 + $0x58] sm:$0xff] }
  0xed   : > { %737 = vst [vmem:[#allocation2 + $0xa0] sm:$0xe0] %v719_v33  ;;  %v6208_v35 = vpop.permute.xlu1 %704  ;;  %v4442_v43 = vpack.c.bf16 %v823_v36, %v814_v41 }
  0xee   : > { %v720_v37 = vsel %vm716_vm7, %v703_v32, %v6208_v35  ;;  %v824_v38 = vld [vmem:[#allocation2 + $0x60] sm:$0xff] }
  0xef   : > { %738 = vst [vmem:[#allocation2 + $0xa8] sm:$0xe0] %v720_v37  ;;  %v767_v39 = vpop.permute.xlu0 %766  ;;  %v4440_v40 = vpack.c.bf16 %v824_v38, %v815_v34 }
  0xf0   : > { %v783_v42 = vsel %vm780_vm8, %v6119_v53, %v767_v39 }
  0xf1   : > { %801 = vst [vmem:[#allocation2 + $0xe8] sm:$0x7] %v783_v42  ;;  %v6214_v44 = vpop.permute.xlu1 %768  ;;  %4441 = vmatprep.subr.bf16.mxu1 %v4440_v40 }
  0xf2   : > { %v784_v45 = vsel %vm780_vm8, %v767_v39, %v6214_v44  ;;  %4443 = vmatpush1.bf16.msra.mxu1 %v4442_v43 }
  0xf3   : > { %802 = vst [vmem:[#allocation2 + $0xf0] sm:$0x7] %v784_v45  ;;  %v274_v46 = vpop.permute.xlu0 %273 }
  0xf4   : > { %v286_v47 = vsel %vm281_vm0, %v6132_v6, %v274_v46  ;;  %v832_v63 = vld [vmem:[#allocation2 + $0xa0] sm:$0xff] }
  0xf5   : > { %303 = vst [vmem:[#allocation2 + $0x20] sm:$0x38] %v286_v47  ;;  %v6220_v48 = vpop.permute.xlu1 %275 }
  0xf6   : > { %v287_v49 = vsel %vm281_vm0, %v274_v46, %v6220_v48  ;;  %v833_v53 = vld [vmem:[#allocation2 + $0xa8] sm:$0xff] }
  0xf7   : > { %304 = vst [vmem:[#allocation2 + $0x28] sm:$0x38] %v287_v49  ;;  %v343_v50 = vpop.permute.xlu0 %342 }
  0xf8   : > { %v355_v51 = vsel %vm350_vm3, %v6142_v10, %v343_v50  ;;  %v841_v56 = vld [vmem:[#allocation2 + $0xe8] sm:$0x7] }
  0xf9   : > { %372 = vst [vmem:[#allocation2 + $0x68] ss:$-68 sps:$4 sm:$0xc1] %v355_v51   ;;  %v6226_v55 = vpop.permute.xlu1 %344  ;;  %v4447_v1 = vpack.c.bf16 %v841_v56, %v832_v63 }
  0xfa   : > { %v356_v57 = vsel %vm350_vm3, %v343_v50, %v6226_v55  ;;  %v842_v59 = vld [vmem:[#allocation2 + $0xf0] sm:$0x7] }
  0xfb   : > { %373 = vst [vmem:[#allocation2 + $0x70] ss:$-68 sps:$4 sm:$0xc1] %v356_v57   ;;  %v422_v61 = vpop.permute.xlu0 %421  ;;  %v4444_v62 = vpack.c.bf16 %v842_v59, %v833_v53 }
  0xfc   : > { %v434_v0 = vsel %vm429_vm2, %v6148_v17, %v422_v61 }
  0xfd   : > { %451 = vst [vmem:[#allocation2 + $0x68] sm:$0xe] %v434_v0  ;;  %v6232_v3 = vpop.permute.xlu1 %423  ;;  %4446 = vmatprep.subr.msk.bf16.mxu1 %vm6128_vm11, %v4444_v62 }
  0xfe   : > { %v435_v4 = vsel %vm429_vm2, %v422_v61, %v6232_v3  ;;  %4449 = vmatpush1.bf16.msk.msra.mxu1 %vm6128_vm11, %v4447_v1 }
  0xff   : > { %452 = vst [vmem:[#allocation2 + $0x70] sm:$0xe] %v435_v4  ;;  %v483_v6 = vpop.permute.xlu0 %482 }
 0x100   : > { %v495_v7 = vsel %vm490_vm1, %v6172_v22, %v483_v6  ;;  %v816_v28 = vld [vmem:[#allocation2 + $0x20] sm:$0xff] }
 0x101   : > { %512 = vst [vmem:[#allocation2 + $0x68] sm:$0x70] %v495_v7  ;;  %v6242_v8 = vpop.permute.xlu1 %484  ;;  %4368 = vmatmul.mubr.msk.f32.vlgmr.msra.gmra.mrb[4].mxu1 %vm848_vm12, %v6157_v54 }
 0x102   : > { %v496_v9 = vsel %vm490_vm1, %v483_v6, %v6242_v8  ;;  %1048 = vmatprep.mubr.f32.mxu1 %v5826_v52  ;;  %v817_v20 = vld [vmem:[#allocation2 + $0x28] sm:$0xff] }
 0x103   : > { %513 = vst [vmem:[#allocation2 + $0x70] sm:$0x70] %v496_v9  ;;  %v552_v58 = vpop.permute.xlu0 %551 }
 0x104   : > { %v564_v10 = vsel %vm559_vm4, %v6194_v27, %v552_v58 }
 0x105   : > { %581 = vst [vmem:[#allocation2 + $0xb0] ss:$-68 sps:$4 sm:$0x83] %v564_v10   ;;  %v6251_v11 = vpop.permute.xlu1 %553  ;;  %4369 = vmatmul.mubr.msk.f32.gmra.mrb[6].mxu1 %vm848_vm12, %v6178_v23 }
 0x106   : > { %v565_v12 = vsel %vm559_vm4, %v552_v58, %v6251_v11  ;;  %1054 = vmatprep.mubr.f32.mxu1 %v5826_v52 }
 0x107   : > { %582 = vst [vmem:[#allocation2 + $0xb8] ss:$-68 sps:$4 sm:$0x83] %v565_v12   ;;  %v633_v13 = vpop.permute.xlu0 %632 }
 0x108   : > { %v647_v14 = vsel %vm642_vm5, %v6202_v30, %v633_v13 }
 0x109   : > { %665 = vst [vmem:[#allocation2 + $0xb0] sm:$0x1c] %v647_v14  ;;  %v6260_v15 = vpop.permute.xlu1 %634  ;;  %4370 = vmatmul.mubr.msk.f32.gmra.mrb[8].mxu1 %vm848_vm12, %v6162_v19 }
 0x10a   : > { %v648_v16 = vsel %vm642_vm5, %v633_v13, %v6260_v15  ;;  %1060 = vmatprep.mubr.f32.mxu1 %v5826_v52 }
 0x10b   : > { %666 = vst [vmem:[#allocation2 + $0xb8] sm:$0x1c] %v648_v16  ;;  %v707_v17 = vpop.permute.xlu0 %706 }
 0x10c   : > { %v721_v60 = vsel %vm716_vm7, %v6208_v35, %v707_v17  ;;  %v825_v22 = vld [vmem:[#allocation2 + $0x68] sm:$0xff] }
 0x10d   : > { %739 = vst [vmem:[#allocation2 + $0xb0] sm:$0xe0] %v721_v60  ;;  %v6269_v21 = vpop.permute.xlu1 %708  ;;  %4371 = vmatmul.mubr.msk.f32.gmra.mrb[10].mxu1 %vm848_vm12, %v6184_v2  ;;  %v4452_v18 = vpack.c.bf16 %v825_v22, %v816_v28 }
 0x10e   : > { %v722_v24 = vsel %vm716_vm7, %v707_v17, %v6269_v21  ;;  %v826_v25 = vld [vmem:[#allocation2 + $0x70] sm:$0xff]  ;;  %1220 = vmatprep.mubr.f32.mxu1 %v5826_v52 }
 0x10f   : > { %740 = vst [vmem:[#allocation2 + $0xb8] sm:$0xe0] %v722_v24  ;;  %v771_v26 = vpop.permute.xlu0 %770  ;;  %v4450_v27 = vpack.c.bf16 %v826_v25, %v817_v20 }
 0x110   : > { %v785_v29 = vsel %vm780_vm8, %v6214_v44, %v771_v26 }
 0x111   : > { %803 = vst [vmem:[#allocation2 + $0xf8] sm:$0x7] %v785_v29  ;;  %v6278_v30 = vpop.permute.xlu1 %772  ;;  %4451 = vmatprep.subr.bf16.mxu0 %v4450_v27  ;;  %v1331_v29 = vld [vmem:[#allocation3 + $0x8] sm:$0xff] }
 0x112   : > { %v786_v31 = vsel %vm780_vm8, %v771_v26, %v6278_v30  ;;  %4453 = vmatpush1.bf16.msra.mxu0 %v4452_v18 }
 0x113   : > { %804 = vst [vmem:[#allocation2 + $0x100] sm:$0x7] %v786_v31  ;;  %v278_v32 = vpop.permute.xlu0 %277 }
 0x114   : > { %v288_v33 = vsel %vm281_vm0, %v6220_v48, %v278_v32  ;;  %v834_v45 = vld [vmem:[#allocation2 + $0xb0] sm:$0xff] }
 0x115   : > { %305 = vst [vmem:[#allocation2 + $0x30] sm:$0x38] %v288_v33  ;;  %v280_v34 = vpop.permute.xlu1 %279  ;;  %v1333_v33 = vld [vmem:[#allocation3 + $0x18] sm:$0xff] }
 0x116   : > { %v289_v35 = vsel %vm281_vm0, %v278_v32, %v280_v34  ;;  %308 = vst.msk [vmem:[#allocation2 + $0x40] sm:$0x38] %vm307_vm13, %v280_v34  ;;  %v835_v38 = vld [vmem:[#allocation2 + $0xb8] sm:$0xff]  ;;  %vm455_vm0 = vcmask 519169   ;;  %v1339_v32 = vld [vmem:[#allocation3 + $0x48] sm:$0xff] }
 0x117   : > { %306 = vst [vmem:[#allocation2 + $0x38] sm:$0x38] %v289_v35  ;;  %v347_v36 = vpop.permute.xlu0 %346 }
 0x118   : > { %v357_v37 = vsel %vm350_vm3, %v6226_v55, %v347_v36  ;;  %v843_v40 = vld [vmem:[#allocation2 + $0xf8] sm:$0x7] }
 0x119   : > { %374 = vst [vmem:[#allocation2 + $0x78] ss:$-68 sps:$4 sm:$0xc1] %v357_v37   ;;  %v349_v39 = vpop.permute.xlu1 %348  ;;  %v4457_v47 = vpack.c.bf16 %v843_v40, %v834_v45  ;;  %v1338_v40 = vld [vmem:[#allocation3 + $0x40] sm:$0xff] }
 0x11a   : > { %v358_v41 = vsel %vm350_vm3, %v347_v36, %v349_v39  ;;  %377 = vst.msk [vmem:[#allocation2 + $0x40] sm:$0xc0] %vm376_vm14, %v349_v39  ;;  %v844_v42 = vld [vmem:[#allocation2 + $0x100] sm:$0x7]  ;;  %vm516_vm3 = vcmask 522244  }
 0x11b   : > { %387 = vst.msk [vmem:[#allocation2 + $0x88] sm:$0x1] %vm386_vm15, %v349_v39  ;;  %375 = vst [vmem:[#allocation2 + $0x80] ss:$-68 sps:$4 sm:$0xc1] %v358_v41   ;;  %v426_v43 = vpop.permute.xlu0 %425  ;;  %v4454_v44 = vpack.c.bf16 %v844_v42, %v835_v38  ;;  %v4480_v38 = vpack.c.bf16 %v1339_v32, %v1331_v29  ;;  %v1330_v39 = vld [vmem:[#allocation3] sm:$0xff] }
 0x11c   : > { %v436_v46 = vsel %vm429_vm2, %v6232_v3, %v426_v43  ;;  %v1347_v42 = vld [vmem:[#allocation3 + $0x88] sm:$0xff]  ;;  %v1402_v29 = vld [vmem:[#allocation3 + $0x240] sm:$0xff] }
 0x11d   : > { %453 = vst [vmem:[#allocation2 + $0x78] sm:$0xe] %v436_v46  ;;  %v428_v48 = vpop.permute.xlu1 %427  ;;  %4456 = vmatprep.subr.msk.bf16.mxu0 %vm6128_vm11, %v4454_v44  ;;  %v1332_v46 = vld [vmem:[#allocation3 + $0x10] sm:$0xff]  ;;  %v1419_v32 = vld [vmem:[#allocation3 + $0x2c8] sm:$0xff] }
 0x11e   : > { %v437_v49 = vsel %vm429_vm2, %v426_v43, %v428_v48  ;;  %456 = vst.msk [vmem:[#allocation2 + $0x88] sm:$0xe] %vm455_vm0, %v428_v48  ;;  %4459 = vmatpush1.bf16.msk.msra.mxu0 %vm6128_vm11, %v4457_v47  ;;  %vm585_vm2 = vcmask 523271   ;;  %v1355_v43 = vld [vmem:[#allocation3 + $0xc8] sm:$0xff]  ;;  %v1340_v47 = vld [vmem:[#allocation3 + $0x50] sm:$0xff]  ;;  %v4482_v48 = vpack.c.bf16 %v1338_v40, %v1330_v39  ;;  %v1418_v39 = vld [vmem:[#allocation3 + $0x2c0] sm:$0xff] }
 0x11f   : > { %454 = vst [vmem:[#allocation2 + $0x80] sm:$0xe] %v437_v49  ;;  %v487_v50 = vpop.permute.xlu0 %486  ;;  %v1349_v49 = vld [vmem:[#allocation3 + $0x98] sm:$0xff] }
 0x120   : > { %v497_v51 = vsel %vm490_vm1, %v6242_v8, %v487_v50  ;;  %v818_v4 = vld [vmem:[#allocation2 + $0x30] sm:$0xff] }
 0x121   : > { %514 = vst [vmem:[#allocation2 + $0x78] sm:$0x70] %v497_v51  ;;  %v489_v53 = vpop.permute.xlu1 %488  ;;  %4374 = vmatmul.mubr.msk.f32.vlgmr.msra.gmra.mrb[4].mxu0 %vm848_vm12, %v6157_v54  ;;  %v820_v6 = vld [vmem:[#allocation2 + $0x40] sm:$0xff]  ;;  %v4484_v51 = vpack.c.bf16 %v1355_v43, %v1347_v42  ;;  %v1435_v42 = vld [vmem:[#allocation3 + $0x348] sm:$0xff] }
 0x122   : > { %v498_v55 = vsel %vm490_vm1, %v487_v50, %v489_v53  ;;  %517 = vst.msk [vmem:[#allocation2 + $0x88] sm:$0x70] %vm516_vm3, %v489_v53  ;;  %1137 = vmatprep.mubr.f32.mxu0 %v5826_v52  ;;  %vm669_vm1 = vcmask 520194   ;;  %v819_v8 = vld [vmem:[#allocation2 + $0x38] sm:$0xff]  ;;  %v1346_v53 = vld [vmem:[#allocation3 + $0x80] sm:$0xff] }
 0x123   : > { %515 = vst [vmem:[#allocation2 + $0x80] sm:$0x70] %v498_v55  ;;  %v556_v56 = vpop.permute.xlu0 %555  ;;  %v1357_v50 = vld [vmem:[#allocation3 + $0xd8] sm:$0xff]  ;;  %v1354_v55 = vld [vmem:[#allocation3 + $0xc0] sm:$0xff] }
 0x124   : > { %v566_v57 = vsel %vm559_vm4, %v6251_v11, %v556_v56 }
 0x125   : > { %583 = vst [vmem:[#allocation2 + $0xc0] ss:$-68 sps:$4 sm:$0x83] %v566_v57   ;;  %v558_v59 = vpop.permute.xlu1 %557  ;;  %4375 = vmatmul.mubr.msk.f32.gmra.mrb[6].mxu0 %vm848_vm12, %v6178_v23  ;;  %v1363_v57 = vld [vmem:[#allocation3 + $0x108] sm:$0xff] }
 0x126   : > { %v567_v61 = vsel %vm559_vm4, %v556_v56, %v558_v59  ;;  %586 = vst.msk [vmem:[#allocation2 + $0x88] sm:$0x80] %vm585_vm2, %v558_v59  ;;  %1143 = vmatprep.mubr.f32.mxu0 %v5826_v52  ;;  %vm743_vm4 = vcmask 523269   ;;  %v4754_v56 = vpack.c.bf16 %v1340_v47, %v1332_v46  ;;  %v1429_v47 = vld [vmem:[#allocation3 + $0x318] sm:$0xff] }
 0x127   : > { %596 = vst.msk [vmem:[#allocation2 + $0xd0] sm:$0x3] %vm595_vm9, %v558_v59  ;;  %584 = vst [vmem:[#allocation2 + $0xc8] ss:$-68 sps:$4 sm:$0x83] %v567_v61   ;;  %v637_v62 = vpop.permute.xlu0 %636  ;;  %v1371_v59 = vld [vmem:[#allocation3 + $0x148] sm:$0xff]  ;;  %v4756_v61 = vpack.c.bf16 %v1357_v50, %v1349_v49 }
 0x128   : > { %v649_v63 = vsel %vm642_vm5, %v6260_v15, %v637_v62  ;;  %v4488_v5 = vpack.c.bf16 %v1371_v59, %v1363_v57  ;;  %v1426_v49 = vld [vmem:[#allocation3 + $0x300] sm:$0xff]  ;;  %v1428_v57 = vld [vmem:[#allocation3 + $0x310] sm:$0xff] }
 0x129   : > { %667 = vst [vmem:[#allocation2 + $0xc0] sm:$0x1c] %v649_v63  ;;  %v639_v0 = vpop.permute.xlu1 %638  ;;  %4376 = vmatmul.mubr.msk.f32.gmra.mrb[8].mxu0 %vm848_vm12, %v6162_v19  ;;  %v1356_v63 = vld [vmem:[#allocation3 + $0xd0] sm:$0xff]  ;;  %v1434_v50 = vld [vmem:[#allocation3 + $0x340] sm:$0xff] }
 0x12a   : > { %v650_v1 = vsel %vm642_vm5, %v637_v62, %v639_v0  ;;  %1149 = vmatprep.mubr.f32.mxu0 %v5826_v52  ;;  %v1348_v62 = vld [vmem:[#allocation3 + $0x90] sm:$0xff] }
 0x12b   : > { %668 = vst [vmem:[#allocation2 + $0xc8] sm:$0x1c] %v650_v1  ;;  %v641_v3 = vpop.permute.xlu0 %640  ;;  %v1365_v1 = vld [vmem:[#allocation3 + $0x118] sm:$0xff]  ;;  %v1436_v59 = vld [vmem:[#allocation3 + $0x350] sm:$0xff] }
 0x12c   : > { %v651_v7 = vsel %vm642_vm5, %v639_v0, %v641_v3  ;;  %v827_v9 = vld [vmem:[#allocation2 + $0x78] sm:$0xff]  ;;  %v4486_v0 = vpack.c.bf16 %v1354_v55, %v1346_v53  ;;  %v1443_v53 = vld [vmem:[#allocation3 + $0x388] sm:$0xff]  ;;  %vm2418_vm5 = vcmask 523264  }
 0x12d   : > { %670 = vst.msk [vmem:[#allocation2 + $0xd0] sm:$0x1c] %vm669_vm1, %v651_v7  ;;  %v711_v58 = vpop.permute.xlu1 %710  ;;  %v829_v10 = vld [vmem:[#allocation2 + $0x88] sm:$0xff]  ;;  %4377 = vmatmul.mubr.msk.f32.gmra.mrb[10].mxu0 %vm848_vm12, %v6184_v2  ;;  %v4462_v13 = vpack.c.bf16 %v827_v9, %v818_v4  ;;  %v1373_v3 = vld [vmem:[#allocation3 + $0x158] sm:$0xff]  ;;  %v1362_v4 = vld [vmem:[#allocation3 + $0x100] sm:$0xff]  ;;  %v4758_v7 = vpack.c.bf16 %v1356_v63, %v1348_v62 }
 0x12e   : > { %v723_v11 = vsel %vm716_vm7, %v6269_v21, %v711_v58  ;;  %v828_v12 = vld [vmem:[#allocation2 + $0x80] sm:$0xff]  ;;  %v4470_v14 = vpack.c.bf16 %v829_v10, %v820_v6  ;;  %4424 = vmatprep.mubr.msk.f32.mxu0 %vm848_vm12, %v6157_v54  ;;  %v4760_v9 = vpack.c.bf16 %v1373_v3, %v1365_v1  ;;  %v1372_v10 = vld [vmem:[#allocation3 + $0x150] sm:$0xff]  ;;  %v1451_v55 = vld [vmem:[#allocation3 + $0x3c8] sm:$0xff] }
 0x12f   : > { %741 = vst [vmem:[#allocation2 + $0xc0] sm:$0xe0] %v723_v11  ;;  %v713_v15 = vpop.permute.xlu0 %712  ;;  %v4460_v16 = vpack.c.bf16 %v828_v12, %v819_v8  ;;  %v1370_v6 = vld [vmem:[#allocation3 + $0x140] sm:$0xff]  ;;  %v1387_v8 = vld [vmem:[#allocation3 + $0x1c8] sm:$0xff]  ;;  %v1381_v12 = vld [vmem:[#allocation3 + $0x198] sm:$0xff] }
 0x130   : > { %v724_v17 = vsel %vm716_vm7, %v711_v58, %v713_v15  ;;  %4471 = vmatprep.subr.bf16.mxu0 %v4470_v14  ;;  %v1364_v58 = vld [vmem:[#allocation3 + $0x110] sm:$0xff]  ;;  %v4490_v11 = vpack.c.bf16 %v1370_v6, %v1362_v4  ;;  %v1445_v62 = vld [vmem:[#allocation3 + $0x398] sm:$0xff]  ;;  %v1442_v1 = vld [vmem:[#allocation3 + $0x380] sm:$0xff] }
 0x131   : > { %742 = vst [vmem:[#allocation2 + $0xc8] sm:$0xe0] %v724_v17  ;;  %v715_v60 = vpop.permute.xlu1 %714  ;;  %4461 = vmatprep.subr.bf16.mxu1 %v4460_v16  ;;  %4473 = vmatpush3.bf16.msra.mxu0 %v4470_v14  ;;  %v1386_v16 = vld [vmem:[#allocation3 + $0x1c0] sm:$0xff]  ;;  %v4762_v17 = vpack.c.bf16 %v1372_v10, %v1364_v58  ;;  %v1453_v63 = vld [vmem:[#allocation3 + $0x3d8] sm:$0xff]  ;;  %v1459_v4 = vld [vmem:[#allocation3 + $0x408] sm:$0xff] }
 0x132   : > { %v725_v20 = vsel %vm716_vm7, %v713_v15, %v715_v60  ;;  %4463 = vmatpush1.bf16.msra.mxu1 %v4462_v13  ;;  %v1389_v13 = vld [vmem:[#allocation3 + $0x1d8] sm:$0xff]  ;;  %v1378_v15 = vld [vmem:[#allocation3 + $0x180] sm:$0xff]  ;;  %v1395_v60 = vld [vmem:[#allocation3 + $0x208] sm:$0xff] }
 0x133   : > { %744 = vst.msk [vmem:[#allocation2 + $0xd0] sm:$0xe0] %vm743_vm4, %v725_v20  ;;  %v775_v21 = vpop.permute.xlu0 %774  ;;  %v1403_v20 = vld [vmem:[#allocation3 + $0x248] sm:$0xff]  ;;  %v1450_v3 = vld [vmem:[#allocation3 + $0x3c0] sm:$0xff]  ;;  %v1461_v58 = vld [vmem:[#allocation3 + $0x418] sm:$0xff] }
 0x134   : > { %v787_v22 = vsel %vm780_vm8, %v6278_v30, %v775_v21  ;;  %v1341_v30 = vld [vmem:[#allocation3 + $0x58] sm:$0xff]  ;;  %v1467_v6 = vld [vmem:[#allocation3 + $0x448] sm:$0xff] }
 0x135   : > { %805 = vst [vmem:[#allocation2 + $0x108] sm:$0x7] %v787_v22  ;;  %v777_v24 = vpop.permute.xlu1 %776  ;;  %v4752_v45 = vpack.c.bf16 %v1341_v30, %v1333_v33  ;;  %v1388_v22 = vld [vmem:[#allocation3 + $0x1d0] sm:$0xff]  ;;  %v1421_v30 = vld [vmem:[#allocation3 + $0x2d8] sm:$0xff] }
 0x136   : > { %v788_v25 = vsel %vm780_vm8, %v775_v21, %v777_v24  ;;  %v836_v28 = vld [vmem:[#allocation2 + $0xc0] sm:$0xff]  ;;  %v4764_v21 = vpack.c.bf16 %v1389_v13, %v1381_v12  ;;  %v1469_v10 = vld [vmem:[#allocation3 + $0x458] sm:$0xff] }
 0x137   : > { %806 = vst [vmem:[#allocation2 + $0x110] sm:$0x7] %v788_v25  ;;  %v779_v26 = vpop.permute.xlu0 %778  ;;  %v1397_v25 = vld [vmem:[#allocation3 + $0x218] sm:$0xff]  ;;  %v1458_v12 = vld [vmem:[#allocation3 + $0x400] sm:$0xff] }
 0x138   : > { %v789_v27 = vsel %vm780_vm8, %v777_v24, %v779_v26  ;;  %v837_v18 = vld [vmem:[#allocation2 + $0xc8] sm:$0xff]  ;;  %v4494_v24 = vpack.c.bf16 %v1386_v16, %v1378_v15  ;;  %v1405_v26 = vld [vmem:[#allocation3 + $0x258] sm:$0xff]  ;;  %v1466_v13 = vld [vmem:[#allocation3 + $0x440] sm:$0xff] }
 0x139   : > { %807 = vst.msk [vmem:[#allocation2 + $0x118] sm:$0x7] %vm238_vm6, %v789_v27  ;;  %v4496_v27 = vpack.c.bf16 %v1403_v20, %v1395_v60  ;;  %v4768_v33 = vpack.c.bf16 %v1405_v26, %v1397_v25  ;;  %v1475_v15 = vld [vmem:[#allocation3 + $0x488] sm:$0xff]  ;;  %v1460_v60 = vld [vmem:[#allocation3 + $0x410] sm:$0xff]  ;;  %v1474_v25 = vld [vmem:[#allocation3 + $0x480] sm:$0xff] }
 0x13a   : > { %v838_v36 = vld [vmem:[#allocation2 + $0xd0] sm:$0xff]  ;;  %v1483_v16 = vld [vmem:[#allocation3 + $0x4c8] sm:$0xff]  ;;  %v1482_v26 = vld [vmem:[#allocation3 + $0x4c0] sm:$0xff] }
 0x13b   : > { %v1468_v20 = vld [vmem:[#allocation3 + $0x450] sm:$0xff] }
 0x13c   : > { %v845_v31 = vld [vmem:[#allocation2 + $0x108] sm:$0x7] }
 0x13d   : > { %v4467_v35 = vpack.c.bf16 %v845_v31, %v836_v28  ;;  %v1394_v28 = vld [vmem:[#allocation3 + $0x200] sm:$0xff]  ;;  %v1411_v31 = vld [vmem:[#allocation3 + $0x288] sm:$0xff] }
 0x13e   : > { %v846_v34 = vld [vmem:[#allocation2 + $0x110] sm:$0x7] }
 0x13f   : > { %v4464_v37 = vpack.c.bf16 %v846_v34, %v837_v18  ;;  %v1396_v34 = vld [vmem:[#allocation3 + $0x210] sm:$0xff] }
 0x140   : > { %v847_v41 = vld [vmem:[#allocation2 + $0x118] sm:$0x7] }
 0x141   : > { %4466 = vmatprep.subr.msk.bf16.mxu1 %vm6128_vm11, %v4464_v37  ;;  %v4474_v44 = vpack.c.bf16 %v847_v41, %v838_v36  ;;  %v1413_v36 = vld [vmem:[#allocation3 + $0x298] sm:$0xff]  ;;  %v4500_v37 = vpack.c.bf16 %v1419_v32, %v1411_v31  ;;  %v1427_v41 = vld [vmem:[#allocation3 + $0x308] sm:$0xff]  ;;  %v1476_v31 = vld [vmem:[#allocation3 + $0x490] sm:$0xff] }
 0x142   : > { %4469 = vmatpush1.bf16.msk.msra.mxu1 %vm6128_vm11, %v4467_v35  ;;  %v1404_v35 = vld [vmem:[#allocation3 + $0x250] sm:$0xff]  ;;  %v4772_v43 = vpack.c.bf16 %v1421_v30, %v1413_v36  ;;  %v1490_v36 = vld [vmem:[#allocation3 + $0x500] sm:$0xff] }
 0x143   : > { %4476 = vmatprep.subr.msk.bf16.mxu0 %vm6128_vm11, %v4474_v44  ;;  %4481 = vmatprep.subr.bf16.mxu1 %v4480_v38  ;;  %v1410_v38 = vld [vmem:[#allocation3 + $0x280] sm:$0xff]  ;;  %v4770_v40 = vpack.c.bf16 %v1404_v35, %v1396_v34  ;;  %v1484_v32 = vld [vmem:[#allocation3 + $0x4d0] sm:$0xff]  ;;  %v1493_v34 = vld [vmem:[#allocation3 + $0x518] sm:$0xff] }
 0x144   : > { %4479 = vmatpush3.bf16.msk.msra.mxu0 %vm6128_vm11, %v4474_v44  ;;  %v1412_v44 = vld [vmem:[#allocation3 + $0x290] sm:$0xff]  ;;  %v4502_v46 = vpack.c.bf16 %v1418_v39, %v1410_v38  ;;  %v1501_v35 = vld [vmem:[#allocation3 + $0x558] sm:$0xff]  ;;  %v1498_v30 = vld [vmem:[#allocation3 + $0x540] sm:$0xff] }
 0x145   : > { %4380 = vmatmul.mubr.msk.f32.vlgmr.msra.gmra.mrb[12].mxu1 %vm848_vm12, %v6157_v54  ;;  %4753 = vmatprep.subr.bf16.mxu0 %v4752_v45  ;;  %v1379_v54 = vld [vmem:[#allocation3 + $0x188] sm:$0xff]  ;;  %v1420_v45 = vld [vmem:[#allocation3 + $0x2d0] sm:$0xff] }
 0x146   : > { %4483 = vmatpush1.bf16.msra.mxu1 %v4482_v48  ;;  %1226 = vmatprep.mubr.f32.mxu1 %v5826_v52  ;;  %v4492_v14 = vpack.c.bf16 %v1387_v8, %v1379_v54  ;;  %v4504_v48 = vpack.c.bf16 %v1435_v42, %v1427_v41  ;;  %v1444_v54 = vld [vmem:[#allocation3 + $0x390] sm:$0xff]  ;;  %v1507_v38 = vld [vmem:[#allocation3 + $0x588] sm:$0xff] }
 0x147   : > { %4425 = vmatmul.mubr.msk.f32.vlgmr.msra.gmra.mrb[12].mxu0 %vm848_vm12, %v6178_v23  ;;  %4485 = vmatprep.subr.bf16.mxu1 %v4484_v51  ;;  %v4774_v51 = vpack.c.bf16 %v1420_v45, %v1412_v44  ;;  %v1452_v8 = vld [vmem:[#allocation3 + $0x3d0] sm:$0xff]  ;;  %v1515_v39 = vld [vmem:[#allocation3 + $0x5c8] sm:$0xff]  ;;  %v1509_v44 = vld [vmem:[#allocation3 + $0x598] sm:$0xff] }
 0x148   : > { %4755 = vmatpush1.bf16.msra.mxu0 %v4754_v56  ;;  %4427 = vmatprep.mubr.msk.f32.mxu0 %vm848_vm12, %v6162_v19  ;;  %v1492_v41 = vld [vmem:[#allocation3 + $0x510] sm:$0xff]  ;;  %v1517_v45 = vld [vmem:[#allocation3 + $0x5d8] sm:$0xff] }
 0x149   : > { %4757 = vmatprep.subr.bf16.mxu0 %v4756_v61  ;;  %4381 = vmatmul.mubr.msk.f32.gmra.mrb[14].mxu1 %vm848_vm12, %v6178_v23  ;;  %v1380_v23 = vld [vmem:[#allocation3 + $0x190] sm:$0xff]  ;;  %v4506_v61 = vpack.c.bf16 %v1434_v50, %v1426_v49  ;;  %v1523_v49 = vld [vmem:[#allocation3 + $0x608] sm:$0xff] }
 0x14a   : > { %4487 = vmatpush1.bf16.msra.mxu1 %v4486_v0  ;;  %1232 = vmatprep.mubr.f32.mxu1 %v5826_v52  ;;  %v4766_v18 = vpack.c.bf16 %v1388_v22, %v1380_v23  ;;  %v4508_v0 = vpack.c.bf16 %v1451_v55, %v1443_v53  ;;  %v1477_v23 = vld [vmem:[#allocation3 + $0x498] sm:$0xff]  ;;  %v1500_v42 = vld [vmem:[#allocation3 + $0x550] sm:$0xff]  ;;  %v1531_v50 = vld [vmem:[#allocation3 + $0x648] sm:$0xff] }
 0x14b   : > { %4489 = vmatprep.subr.bf16.mxu1 %v4488_v5  ;;  %4428 = vmatmul.mubr.msk.f32.gmra.mrb[14].mxu0 %vm848_vm12, %v6184_v2  ;;  %v4778_v5 = vpack.c.bf16 %v1436_v59, %v1428_v57  ;;  %v1485_v22 = vld [vmem:[#allocation3 + $0x4d8] sm:$0xff]  ;;  %v1508_v53 = vld [vmem:[#allocation3 + $0x590] sm:$0xff] }
 0x14c   : > { %4759 = vmatpush1.bf16.msra.mxu0 %v4758_v7  ;;  %v4780_v7 = vpack.c.bf16 %v1453_v63, %v1445_v62  ;;  %v1516_v55 = vld [vmem:[#allocation3 + $0x5d0] sm:$0xff]  ;;  %v1525_v57 = vld [vmem:[#allocation3 + $0x618] sm:$0xff]  ;;  %v1522_v62 = vld [vmem:[#allocation3 + $0x600] sm:$0xff] }
 0x14d   : > { %4761 = vmatprep.subr.bf16.mxu0 %v4760_v9  ;;  %4382 = vmatmul.mubr.msk.f32.gmra.mrb[16].mxu1 %vm848_vm12, %v6162_v19  ;;  %v4498_v19 = vpack.c.bf16 %v1402_v29, %v1394_v28  ;;  %v4510_v9 = vpack.c.bf16 %v1450_v3, %v1442_v1  ;;  %v1491_v28 = vld [vmem:[#allocation3 + $0x508] sm:$0xff]  ;;  %v1533_v59 = vld [vmem:[#allocation3 + $0x658] sm:$0xff]  ;;  %v1530_v63 = vld [vmem:[#allocation3 + $0x640] sm:$0xff] }
 0x14e   : > { %4491 = vmatpush1.bf16.msra.mxu1 %v4490_v11  ;;  %1238 = vmatprep.mubr.f32.mxu1 %v5826_v52  ;;  %v4512_v11 = vpack.c.bf16 %v1467_v6, %v1459_v4  ;;  %v1499_v29 = vld [vmem:[#allocation3 + $0x548] sm:$0xff]  ;;  %v1524_v4 = vld [vmem:[#allocation3 + $0x610] sm:$0xff] }
 0x14f   : > { %4493 = vmatprep.subr.bf16.mxu1 %v4492_v14  ;;  %v4782_v14 = vpack.c.bf16 %v1452_v8, %v1444_v54  ;;  %v1539_v1 = vld [vmem:[#allocation3 + $0x688] sm:$0xff]  ;;  %v1532_v6 = vld [vmem:[#allocation3 + $0x650] sm:$0xff]  ;;  %v1541_v54 = vld [vmem:[#allocation3 + $0x698] sm:$0xff] }
 0x150   : > { %4763 = vmatpush1.bf16.msra.mxu0 %v4762_v17  ;;  %v4784_v17 = vpack.c.bf16 %v1469_v10, %v1461_v58  ;;  %v1547_v3 = vld [vmem:[#allocation3 + $0x6c8] sm:$0xff]  ;;  %v1549_v8 = vld [vmem:[#allocation3 + $0x6d8] sm:$0xff]  ;;  %v1538_v58 = vld [vmem:[#allocation3 + $0x680] sm:$0xff] }
 0x151   : > { %4765 = vmatprep.subr.bf16.mxu0 %v4764_v21  ;;  %4383 = vmatmul.mubr.msk.f32.gmra.mrb[18].mxu1 %vm848_vm12, %v6184_v2  ;;  %v1437_v2 = vld [vmem:[#allocation3 + $0x358] sm:$0xff]  ;;  %v4514_v21 = vpack.c.bf16 %v1466_v13, %v1458_v12  ;;  %v1546_v10 = vld [vmem:[#allocation3 + $0x6c0] sm:$0xff]  ;;  %v1555_v12 = vld [vmem:[#allocation3 + $0x708] sm:$0xff] }
 0x152   : > { %4495 = vmatpush1.bf16.msra.mxu1 %v4494_v24  ;;  %v4776_v56 = vpack.c.bf16 %v1437_v2, %v1429_v47  ;;  %v4516_v24 = vpack.c.bf16 %v1483_v16, %v1475_v15  ;;  %v1506_v47 = vld [vmem:[#allocation3 + $0x580] sm:$0xff]  ;;  %v1563_v13 = vld [vmem:[#allocation3 + $0x748] sm:$0xff]  ;;  %v1540_v15 = vld [vmem:[#allocation3 + $0x690] sm:$0xff] }
 0x153   : > { %4497 = vmatprep.subr.bf16.mxu1 %v4496_v27  ;;  %v4786_v27 = vpack.c.bf16 %v1468_v20, %v1460_v60  ;;  %v1514_v2 = vld [vmem:[#allocation3 + $0x5c0] sm:$0xff]  ;;  %v1548_v16 = vld [vmem:[#allocation3 + $0x6d0] sm:$0xff]  ;;  %v1557_v60 = vld [vmem:[#allocation3 + $0x718] sm:$0xff] }
 0x154   : > { %4767 = vmatpush1.bf16.msra.mxu0 %v4766_v18  ;;  %v4788_v18 = vpack.c.bf16 %v1485_v22, %v1477_v23  ;;  %v1565_v20 = vld [vmem:[#allocation3 + $0x758] sm:$0xff]  ;;  %v1554_v23 = vld [vmem:[#allocation3 + $0x700] sm:$0xff] }
 0x155   : > { %4769 = vmatprep.subr.bf16.mxu0 %v4768_v33  ;;  %v4518_v33 = vpack.c.bf16 %v1482_v26, %v1474_v25  ;;  %v1562_v22 = vld [vmem:[#allocation3 + $0x740] sm:$0xff]  ;;  %v1571_v25 = vld [vmem:[#allocation3 + $0x788] sm:$0xff] }
 0x156   : > { %4499 = vmatpush1.bf16.msra.mxu1 %v4498_v19  ;;  %v4520_v19 = vpack.c.bf16 %v1499_v29, %v1491_v28  ;;  %v1579_v26 = vld [vmem:[#allocation3 + $0x7c8] sm:$0xff]  ;;  %v1556_v28 = vld [vmem:[#allocation3 + $0x710] sm:$0xff] }
 0x157   : > { %4501 = vmatprep.subr.bf16.mxu1 %v4500_v37  ;;  %v4790_v37 = vpack.c.bf16 %v1484_v32, %v1476_v31  ;;  %v1564_v29 = vld [vmem:[#allocation3 + $0x750] sm:$0xff]  ;;  %v1573_v31 = vld [vmem:[#allocation3 + $0x798] sm:$0xff] }
 0x158   : > { %4771 = vmatpush1.bf16.msra.mxu0 %v4770_v40  ;;  %v4792_v40 = vpack.c.bf16 %v1501_v35, %v1493_v34  ;;  %v1581_v32 = vld [vmem:[#allocation3 + $0x7d8] sm:$0xff]  ;;  %v1570_v34 = vld [vmem:[#allocation3 + $0x780] sm:$0xff] }
 0x159   : > { %4773 = vmatprep.subr.bf16.mxu0 %v4772_v43  ;;  %v4522_v43 = vpack.c.bf16 %v1498_v30, %v1490_v36  ;;  %v1578_v35 = vld [vmem:[#allocation3 + $0x7c0] sm:$0xff]  ;;  %v1587_v36 = vld [vmem:[#allocation3 + $0x808] sm:$0xff] }
 0x15a   : > { %4503 = vmatpush1.bf16.msra.mxu1 %v4502_v46  ;;  %v4524_v46 = vpack.c.bf16 %v1515_v39, %v1507_v38  ;;  %v1595_v30 = vld [vmem:[#allocation3 + $0x848] sm:$0xff]  ;;  %v1572_v38 = vld [vmem:[#allocation3 + $0x790] sm:$0xff] }
 0x15b   : > { %4505 = vmatprep.subr.bf16.mxu1 %v4504_v48  ;;  %v4794_v48 = vpack.c.bf16 %v1500_v42, %v1492_v41  ;;  %v1580_v39 = vld [vmem:[#allocation3 + $0x7d0] sm:$0xff]  ;;  %v1589_v41 = vld [vmem:[#allocation3 + $0x818] sm:$0xff] }
 0x15c   : > { %4775 = vmatpush1.bf16.msra.mxu0 %v4774_v51  ;;  %v4796_v51 = vpack.c.bf16 %v1517_v45, %v1509_v44  ;;  %v1597_v42 = vld [vmem:[#allocation3 + $0x858] sm:$0xff]  ;;  %v4814_v44 = vpack.c.bf16 %v1580_v39, %v1572_v38  ;;  %v1658_v38 = vld [vmem:[#allocation3 + $0xa40] sm:$0xff] }
 0x15d   : > { %4777 = vmatprep.subr.bf16.mxu0 %v4776_v56  ;;  %v4526_v56 = vpack.c.bf16 %v1514_v2, %v1506_v47  ;;  %v4816_v45 = vpack.c.bf16 %v1597_v42, %v1589_v41  ;;  %v1594_v47 = vld [vmem:[#allocation3 + $0x840] sm:$0xff]  ;;  %v1588_v2 = vld [vmem:[#allocation3 + $0x810] sm:$0xff] }
 0x15e   : > { %4507 = vmatpush1.bf16.msra.mxu1 %v4506_v61  ;;  %v4528_v61 = vpack.c.bf16 %v1531_v50, %v1523_v49  ;;  %v1603_v49 = vld [vmem:[#allocation3 + $0x888] sm:$0xff]  ;;  %v1652_v41 = vld [vmem:[#allocation3 + $0xa10] sm:$0xff] }
 0x15f   : > { %4509 = vmatprep.subr.bf16.mxu1 %v4508_v0  ;;  %v4798_v0 = vpack.c.bf16 %v1516_v55, %v1508_v53  ;;  %v1611_v50 = vld [vmem:[#allocation3 + $0x8c8] sm:$0xff]  ;;  %v1613_v53 = vld [vmem:[#allocation3 + $0x8d8] sm:$0xff]  ;;  %v1660_v42 = vld [vmem:[#allocation3 + $0xa50] sm:$0xff] }
 0x160   : > { %4779 = vmatpush1.bf16.msra.mxu0 %v4778_v5  ;;  %v4800_v5 = vpack.c.bf16 %v1533_v59, %v1525_v57  ;;  %v1602_v59 = vld [vmem:[#allocation3 + $0x880] sm:$0xff] }
 0x161   : > { %4781 = vmatprep.subr.bf16.mxu0 %v4780_v7  ;;  %v4530_v7 = vpack.c.bf16 %v1530_v63, %v1522_v62 }
 0x162   : > { %4511 = vmatpush1.bf16.msra.mxu1 %v4510_v9  ;;  %v4532_v9 = vpack.c.bf16 %v1547_v3, %v1539_v1  ;;  %v1604_v3 = vld [vmem:[#allocation3 + $0x890] sm:$0xff] }
 0x163   : > { %4513 = vmatprep.subr.bf16.mxu1 %v4512_v11  ;;  %v4802_v11 = vpack.c.bf16 %v1532_v6, %v1524_v4  ;;  %v1619_v4 = vld [vmem:[#allocation3 + $0x908] sm:$0xff] }
 0x164   : > { %4783 = vmatpush1.bf16.msra.mxu0 %v4782_v14  ;;  %v4804_v14 = vpack.c.bf16 %v1549_v8, %v1541_v54  ;;  %v1621_v54 = vld [vmem:[#allocation3 + $0x918] sm:$0xff] }
 0x165   : > { %4785 = vmatprep.subr.bf16.mxu0 %v4784_v17  ;;  %v4534_v17 = vpack.c.bf16 %v1546_v10, %v1538_v58  ;;  %v1629_v8 = vld [vmem:[#allocation3 + $0x958] sm:$0xff]  ;;  %v1618_v10 = vld [vmem:[#allocation3 + $0x900] sm:$0xff] }
 0x166   : > { %4515 = vmatpush1.bf16.msra.mxu1 %v4514_v21  ;;  %v4536_v21 = vpack.c.bf16 %v1563_v13, %v1555_v12 }
 0x167   : > { %4517 = vmatprep.subr.bf16.mxu1 %v4516_v24  ;;  %v4806_v24 = vpack.c.bf16 %v1548_v16, %v1540_v15  ;;  %v4824_v15 = vpack.c.bf16 %v1629_v8, %v1621_v54  ;;  %v1620_v16 = vld [vmem:[#allocation3 + $0x910] sm:$0xff] }
 0x168   : > { %4787 = vmatpush1.bf16.msra.mxu0 %v4786_v27  ;;  %v4808_v27 = vpack.c.bf16 %v1565_v20, %v1557_v60  ;;  %v1635_v60 = vld [vmem:[#allocation3 + $0x988] sm:$0xff]  ;;  %v1684_v8 = vld [vmem:[#allocation3 + $0xb10] sm:$0xff] }
 0x169   : > { %4789 = vmatprep.subr.bf16.mxu0 %v4788_v18  ;;  %v4538_v18 = vpack.c.bf16 %v1562_v22, %v1554_v23  ;;  %v1643_v23 = vld [vmem:[#allocation3 + $0x9c8] sm:$0xff]  ;;  %v1637_v22 = vld [vmem:[#allocation3 + $0x998] sm:$0xff] }
 0x16a   : > { %4519 = vmatpush1.bf16.msra.mxu1 %v4518_v33  ;;  %v4540_v33 = vpack.c.bf16 %v1579_v26, %v1571_v25 }
 0x16b   : > { %4521 = vmatprep.subr.bf16.mxu1 %v4520_v19  ;;  %v4810_v19 = vpack.c.bf16 %v1564_v29, %v1556_v28  ;;  %v1642_v28 = vld [vmem:[#allocation3 + $0x9c0] sm:$0xff]  ;;  %v4556_v29 = vpack.c.bf16 %v1643_v23, %v1635_v60 }
 0x16c   : > { %4791 = vmatpush1.bf16.msra.mxu0 %v4790_v37  ;;  %v4812_v37 = vpack.c.bf16 %v1581_v32, %v1573_v31  ;;  %v1636_v31 = vld [vmem:[#allocation3 + $0x990] sm:$0xff]  ;;  %v1706_v60 = vld [vmem:[#allocation3 + $0xbc0] sm:$0xff] }
 0x16d   : > { %4793 = vmatprep.subr.bf16.mxu0 %v4792_v40  ;;  %v4542_v40 = vpack.c.bf16 %v1578_v35, %v1570_v34  ;;  %v1644_v32 = vld [vmem:[#allocation3 + $0x9d0] sm:$0xff]  ;;  %v1659_v34 = vld [vmem:[#allocation3 + $0xa48] sm:$0xff]  ;;  %v1653_v35 = vld [vmem:[#allocation3 + $0xa18] sm:$0xff] }
 0x16e   : > { %4523 = vmatpush1.bf16.msra.mxu1 %v4522_v43  ;;  %v4544_v43 = vpack.c.bf16 %v1595_v30, %v1587_v36  ;;  %v4830_v30 = vpack.c.bf16 %v1644_v32, %v1636_v31  ;;  %v1714_v32 = vld [vmem:[#allocation3 + $0xc00] sm:$0xff] }
 0x16f   : > { %4525 = vmatprep.subr.bf16.mxu1 %v4524_v46  ;;  %v1586_v46 = vld [vmem:[#allocation3 + $0x800] sm:$0xff] }
 0x170   : > { %4795 = vmatpush1.bf16.msra.mxu0 %v4794_v48  ;;  %v1596_v48 = vld [vmem:[#allocation3 + $0x850] sm:$0xff] }
 0x171   : > { %4797 = vmatprep.subr.bf16.mxu0 %v4796_v51  ;;  %v1605_v51 = vld [vmem:[#allocation3 + $0x898] sm:$0xff]  ;;  %v4818_v57 = vpack.c.bf16 %v1596_v48, %v1588_v2  ;;  %v4834_v2 = vpack.c.bf16 %v1660_v42, %v1652_v41  ;;  %v1666_v48 = vld [vmem:[#allocation3 + $0xa80] sm:$0xff] }
 0x172   : > { %4527 = vmatpush1.bf16.msra.mxu1 %v4526_v56  ;;  %v4546_v56 = vpack.c.bf16 %v1594_v47, %v1586_v46  ;;  %v4820_v1 = vpack.c.bf16 %v1613_v53, %v1605_v51  ;;  %v1677_v46 = vld [vmem:[#allocation3 + $0xad8] sm:$0xff]  ;;  %v1668_v53 = vld [vmem:[#allocation3 + $0xa90] sm:$0xff]  ;;  %v1730_v42 = vld [vmem:[#allocation3 + $0xc80] sm:$0xff] }
 0x173   : > { %4529 = vmatprep.subr.bf16.mxu1 %v4528_v61  ;;  %v1610_v61 = vld [vmem:[#allocation3 + $0x8c0] sm:$0xff] }
 0x174   : > { %4799 = vmatpush1.bf16.msra.mxu0 %v4798_v0  ;;  %v4548_v0 = vpack.c.bf16 %v1611_v50, %v1603_v49  ;;  %v1674_v49 = vld [vmem:[#allocation3 + $0xac0] sm:$0xff] }
 0x175   : > { %4801 = vmatprep.subr.bf16.mxu0 %v4800_v5  ;;  %v1612_v5 = vld [vmem:[#allocation3 + $0x8d0] sm:$0xff] }
 0x176   : > { %4531 = vmatpush1.bf16.msra.mxu1 %v4530_v7  ;;  %v1627_v7 = vld [vmem:[#allocation3 + $0x948] sm:$0xff]  ;;  %v4822_v58 = vpack.c.bf16 %v1612_v5, %v1604_v3  ;;  %v1682_v5 = vld [vmem:[#allocation3 + $0xb00] sm:$0xff] }
 0x177   : > { %4533 = vmatprep.subr.bf16.mxu1 %v4532_v9  ;;  %v4550_v9 = vpack.c.bf16 %v1610_v61, %v1602_v59  ;;  %v1691_v59 = vld [vmem:[#allocation3 + $0xb48] sm:$0xff]  ;;  %v1685_v61 = vld [vmem:[#allocation3 + $0xb18] sm:$0xff] }
 0x178   : > { %4803 = vmatpush1.bf16.msra.mxu0 %v4802_v11  ;;  %v1626_v11 = vld [vmem:[#allocation3 + $0x940] sm:$0xff] }
 0x179   : > { %4805 = vmatprep.subr.bf16.mxu0 %v4804_v14  ;;  %v4552_v14 = vpack.c.bf16 %v1627_v7, %v1619_v4  ;;  %v4554_v25 = vpack.c.bf16 %v1626_v11, %v1618_v10  ;;  %v1690_v4 = vld [vmem:[#allocation3 + $0xb40] sm:$0xff]  ;;  %v1707_v10 = vld [vmem:[#allocation3 + $0xbc8] sm:$0xff]  ;;  %v1701_v11 = vld [vmem:[#allocation3 + $0xb98] sm:$0xff] }
 0x17a   : > { %4535 = vmatpush1.bf16.msra.mxu1 %v4534_v17  ;;  %v1628_v17 = vld [vmem:[#allocation3 + $0x950] sm:$0xff] }
 0x17b   : > { %4537 = vmatprep.subr.bf16.mxu1 %v4536_v21  ;;  %v4826_v26 = vpack.c.bf16 %v1628_v17, %v1620_v16  ;;  %v1698_v17 = vld [vmem:[#allocation3 + $0xb80] sm:$0xff] }
 0x17c   : > { %4807 = vmatpush1.bf16.msra.mxu0 %v4806_v24  ;;  %v1645_v24 = vld [vmem:[#allocation3 + $0x9d8] sm:$0xff] }
 0x17d   : > { %4809 = vmatprep.subr.bf16.mxu0 %v4808_v27  ;;  %v1634_v27 = vld [vmem:[#allocation3 + $0x980] sm:$0xff] }
 0x17e   : > { %4539 = vmatpush1.bf16.msra.mxu1 %v4538_v18  ;;  %v4828_v18 = vpack.c.bf16 %v1645_v24, %v1637_v22  ;;  %v4558_v36 = vpack.c.bf16 %v1642_v28, %v1634_v27  ;;  %v1700_v24 = vld [vmem:[#allocation3 + $0xb90] sm:$0xff]  ;;  %v1723_v27 = vld [vmem:[#allocation3 + $0xc48] sm:$0xff]  ;;  %v1717_v28 = vld [vmem:[#allocation3 + $0xc18] sm:$0xff] }
 0x17f   : > { %4541 = vmatprep.subr.bf16.mxu1 %v4540_v33  ;;  %v1651_v33 = vld [vmem:[#allocation3 + $0xa08] sm:$0xff] }
 0x180   : > { %4811 = vmatpush1.bf16.msra.mxu0 %v4810_v19  ;;  %v1661_v19 = vld [vmem:[#allocation3 + $0xa58] sm:$0xff]  ;;  %v4560_v39 = vpack.c.bf16 %v1659_v34, %v1651_v33  ;;  %v1722_v33 = vld [vmem:[#allocation3 + $0xc40] sm:$0xff] }
 0x181   : > { %4813 = vmatprep.subr.bf16.mxu0 %v4812_v37  ;;  %v1650_v37 = vld [vmem:[#allocation3 + $0xa00] sm:$0xff] }
 0x182   : > { %4543 = vmatpush1.bf16.msra.mxu1 %v4542_v40  ;;  %v4832_v40 = vpack.c.bf16 %v1661_v19, %v1653_v35  ;;  %v4562_v47 = vpack.c.bf16 %v1658_v38, %v1650_v37  ;;  %v1716_v19 = vld [vmem:[#allocation3 + $0xc10] sm:$0xff]  ;;  %v1739_v37 = vld [vmem:[#allocation3 + $0xcc8] sm:$0xff]  ;;  %v1733_v38 = vld [vmem:[#allocation3 + $0xc98] sm:$0xff] }
 0x183   : > { %4545 = vmatprep.subr.bf16.mxu1 %v4544_v43  ;;  %v1667_v43 = vld [vmem:[#allocation3 + $0xa88] sm:$0xff] }
 0x184   : > { %4815 = vmatpush1.bf16.msra.mxu0 %v4814_v44  ;;  %v1675_v44 = vld [vmem:[#allocation3 + $0xac8] sm:$0xff] }
 0x185   : > { %4817 = vmatprep.subr.bf16.mxu0 %v4816_v45  ;;  %v1669_v45 = vld [vmem:[#allocation3 + $0xa98] sm:$0xff]  ;;  %v4564_v50 = vpack.c.bf16 %v1675_v44, %v1667_v43  ;;  %v1738_v43 = vld [vmem:[#allocation3 + $0xcc0] sm:$0xff] }
 0x186   : > { %v4836_v51 = vpack.c.bf16 %v1677_v46, %v1669_v45  ;;  %v1732_v46 = vld [vmem:[#allocation3 + $0xc90] sm:$0xff] }
 0x1b3   : > { %v6352_v55 = vpop.f32.mrb[0].mxu0  ;;  %v6354_v62 = vpop.f32.mrb[0].mxu1 }
 0x1b4   : > { %v6356_v63 = vpop.f32.mrb[1].mxu0  ;;  %v6358_v6 = vpop.f32.mrb[1].mxu1 }
 0x1b5   : > { %2495 = vmatprep.mubr.f32.mxu1 %v6356_v63  ;;  %2940 = vmatprep.mubr.f32.mxu0 %v6356_v63 }
 0x1b6   : > { %2496 = vmatmul.mubr.f32.vlgmr.msra.gmra.mrb[20].mxu1 %v6352_v55  ;;  %2941 = vmatmul.mubr.f32.vlgmr.msra.gmra.mrb[16].mxu0 %v6352_v55 }
 0x1b7   : > { %4547 = vmatpush1.bf16.msra.mxu1 %v4546_v56  ;;  %4819 = vmatpush1.bf16.msra.mxu0 %v4818_v57  ;;  %v6364_v12 = vpop.f32.mrb[2].mxu0  ;;  %v6366_v13 = vpop.f32.mrb[2].mxu1  ;;  %v1676_v56 = vld [vmem:[#allocation3 + $0xad0] sm:$0xff]  ;;  %v1683_v57 = vld [vmem:[#allocation3 + $0xb08] sm:$0xff] }
 0x1b8   : > { %4549 = vmatprep.subr.bf16.mxu1 %v4548_v0  ;;  %4821 = vmatprep.subr.bf16.mxu0 %v4820_v1  ;;  %v6368_v20 = vpop.f32.mrb[3].mxu0  ;;  %v6370_v21 = vpop.f32.mrb[3].mxu1  ;;  %v1693_v0 = vld [vmem:[#allocation3 + $0xb58] sm:$0xff]  ;;  %v4566_v1 = vpack.c.bf16 %v1674_v49, %v1666_v48  ;;  %v4838_v3 = vpack.c.bf16 %v1676_v56, %v1668_v53  ;;  %v4568_v7 = vpack.c.bf16 %v1691_v59, %v1683_v57  ;;  %v1755_v49 = vld [vmem:[#allocation3 + $0xd48] sm:$0xff]  ;;  %v1746_v59 = vld [vmem:[#allocation3 + $0xd00] sm:$0xff] }
 0x1b9   : > { %2501 = vmatprep.mubr.f32.mxu1 %v6368_v20  ;;  %2946 = vmatprep.mubr.f32.mxu0 %v6368_v20  ;;  %v4840_v54 = vpack.c.bf16 %v1693_v0, %v1685_v61  ;;  %v4582_v56 = vpack.c.bf16 %v1738_v43, %v1730_v42  ;;  %v1754_v61 = vld [vmem:[#allocation3 + $0xd40] sm:$0xff] }
 0x1ba   : > { %2502 = vmatmul.mubr.f32.gmra.mrb[22].mxu1 %v6364_v12  ;;  %2947 = vmatmul.mubr.f32.gmra.mrb[18].mxu0 %v6364_v12  ;;  %v1794_v43 = vld [vmem:[#allocation3 + $0xe80] sm:$0xff] }
 0x1bb   : > { %4551 = vmatpush1.bf16.msra.mxu1 %v4550_v9  ;;  %4823 = vmatpush1.bf16.msra.mxu0 %v4822_v58  ;;  %v1692_v9 = vld [vmem:[#allocation3 + $0xb50] sm:$0xff]  ;;  %v1699_v58 = vld [vmem:[#allocation3 + $0xb88] sm:$0xff] }
 0x1bc   : > { %4553 = vmatprep.subr.bf16.mxu1 %v4552_v14  ;;  %4825 = vmatprep.subr.bf16.mxu0 %v4824_v15  ;;  %v1709_v14 = vld [vmem:[#allocation3 + $0xbd8] sm:$0xff]  ;;  %v4570_v15 = vpack.c.bf16 %v1690_v4, %v1682_v5  ;;  %v4842_v16 = vpack.c.bf16 %v1692_v9, %v1684_v8  ;;  %v4572_v23 = vpack.c.bf16 %v1707_v10, %v1699_v58  ;;  %v1756_v5 = vld [vmem:[#allocation3 + $0xd50] sm:$0xff]  ;;  %v1763_v4 = vld [vmem:[#allocation3 + $0xd88] sm:$0xff] }
 0x1bd   : > { %2507 = vmatprep.mubr.f32.mxu1 %v6358_v6  ;;  %2952 = vmatprep.mubr.f32.mxu0 %v6358_v6  ;;  %v4844_v22 = vpack.c.bf16 %v1709_v14, %v1701_v11  ;;  %v1765_v8 = vld [vmem:[#allocation3 + $0xd98] sm:$0xff]  ;;  %v4586_v10 = vpack.c.bf16 %v1754_v61, %v1746_v59  ;;  %v1762_v14 = vld [vmem:[#allocation3 + $0xd80] sm:$0xff] }
 0x1be   : > { %2508 = vmatmul.mubr.f32.gmra.mrb[24].mxu1 %v6354_v62  ;;  %2953 = vmatmul.mubr.f32.gmra.mrb[20].mxu0 %v6354_v62  ;;  %v1773_v9 = vld [vmem:[#allocation3 + $0xdd8] sm:$0xff]  ;;  %v1810_v61 = vld [vmem:[#allocation3 + $0xf00] sm:$0xff] }
 0x1bf   : > { %4555 = vmatpush1.bf16.msra.mxu1 %v4554_v25  ;;  %4827 = vmatpush1.bf16.msra.mxu0 %v4826_v26  ;;  %v1708_v25 = vld [vmem:[#allocation3 + $0xbd0] sm:$0xff]  ;;  %v1715_v26 = vld [vmem:[#allocation3 + $0xc08] sm:$0xff] }
 0x1c0   : > { %4557 = vmatprep.subr.bf16.mxu1 %v4556_v29  ;;  %4829 = vmatprep.subr.bf16.mxu0 %v4828_v18  ;;  %v1725_v29 = vld [vmem:[#allocation3 + $0xc58] sm:$0xff]  ;;  %v4574_v18 = vpack.c.bf16 %v1706_v60, %v1698_v17  ;;  %v4846_v31 = vpack.c.bf16 %v1708_v25, %v1700_v24  ;;  %v4576_v34 = vpack.c.bf16 %v1723_v27, %v1715_v26  ;;  %v1764_v60 = vld [vmem:[#allocation3 + $0xd90] sm:$0xff]  ;;  %v1787_v25 = vld [vmem:[#allocation3 + $0xe48] sm:$0xff] }
 0x1c1   : > { %2513 = vmatprep.mubr.f32.mxu1 %v6370_v21  ;;  %2958 = vmatprep.mubr.f32.mxu0 %v6370_v21  ;;  %v4848_v35 = vpack.c.bf16 %v1725_v29, %v1717_v28  ;;  %v4860_v17 = vpack.c.bf16 %v1773_v9, %v1765_v8  ;;  %v1781_v26 = vld [vmem:[#allocation3 + $0xe18] sm:$0xff]  ;;  %v1835_v8 = vld [vmem:[#allocation3 + $0xfc8] sm:$0xff] }
 0x1c2   : > { %2514 = vmatmul.mubr.f32.gmra.mrb[26].mxu1 %v6366_v13  ;;  %2959 = vmatmul.mubr.f32.gmra.mrb[22].mxu0 %v6366_v13  ;;  %v1789_v27 = vld [vmem:[#allocation3 + $0xe58] sm:$0xff] }
 0x1c3   : > { %4559 = vmatpush1.bf16.msra.mxu1 %v4558_v36  ;;  %4831 = vmatpush1.bf16.msra.mxu0 %v4830_v30  ;;  %v1724_v36 = vld [vmem:[#allocation3 + $0xc50] sm:$0xff]  ;;  %v1731_v30 = vld [vmem:[#allocation3 + $0xc88] sm:$0xff]  ;;  %v1829_v9 = vld [vmem:[#allocation3 + $0xf98] sm:$0xff] }
 0x1c4   : > { %4561 = vmatprep.subr.bf16.mxu1 %v4560_v39  ;;  %4833 = vmatprep.subr.bf16.mxu0 %v4832_v40  ;;  %v1741_v39 = vld [vmem:[#allocation3 + $0xcd8] sm:$0xff]  ;;  %v4578_v40 = vpack.c.bf16 %v1722_v33, %v1714_v32  ;;  %v4850_v41 = vpack.c.bf16 %v1724_v36, %v1716_v19  ;;  %v4580_v44 = vpack.c.bf16 %v1739_v37, %v1731_v30  ;;  %v1786_v32 = vld [vmem:[#allocation3 + $0xe40] sm:$0xff]  ;;  %v1788_v19 = vld [vmem:[#allocation3 + $0xe50] sm:$0xff] }
 0x1c5   : > { %v4852_v45 = vpack.c.bf16 %v1741_v39, %v1733_v38  ;;  %v1795_v36 = vld [vmem:[#allocation3 + $0xe88] sm:$0xff]  ;;  %v1797_v38 = vld [vmem:[#allocation3 + $0xe98] sm:$0xff] }
 0x1c6   : > { %v1803_v37 = vld [vmem:[#allocation3 + $0xec8] sm:$0xff]  ;;  %v1805_v39 = vld [vmem:[#allocation3 + $0xed8] sm:$0xff] }
 0x1c7   : > { %4563 = vmatpush1.bf16.msra.mxu1 %v4562_v47  ;;  %4835 = vmatpush1.bf16.msra.mxu0 %v4834_v2  ;;  %v1740_v47 = vld [vmem:[#allocation3 + $0xcd0] sm:$0xff]  ;;  %v1747_v2 = vld [vmem:[#allocation3 + $0xd08] sm:$0xff] }
 0x1c8   : > { %4565 = vmatprep.subr.bf16.mxu1 %v4564_v50  ;;  %4837 = vmatprep.subr.bf16.mxu0 %v4836_v51  ;;  %v1749_v50 = vld [vmem:[#allocation3 + $0xd18] sm:$0xff]  ;;  %v4854_v57 = vpack.c.bf16 %v1740_v47, %v1732_v46  ;;  %v4584_v0 = vpack.c.bf16 %v1755_v49, %v1747_v2  ;;  %v4868_v46 = vpack.c.bf16 %v1805_v39, %v1797_v38  ;;  %v1796_v47 = vld [vmem:[#allocation3 + $0xe90] sm:$0xff]  ;;  %v1811_v49 = vld [vmem:[#allocation3 + $0xf08] sm:$0xff] }
 0x1c9   : > { %v1757_v51 = vld [vmem:[#allocation3 + $0xd58] sm:$0xff]  ;;  %v1804_v2 = vld [vmem:[#allocation3 + $0xed0] sm:$0xff]  ;;  %v1867_v38 = vld [vmem:[#allocation3 + $0x10c8] sm:$0xff] }
 0x1ca   : > { %v4870_v59 = vpack.c.bf16 %v1804_v2, %v1796_v47  ;;  %v1861_v39 = vld [vmem:[#allocation3 + $0x1098] sm:$0xff]  ;;  %v1860_v2 = vld [vmem:[#allocation3 + $0x1090] sm:$0xff] }
 0x1cb   : > { %4567 = vmatpush1.bf16.msra.mxu1 %v4566_v1  ;;  %4839 = vmatpush1.bf16.msra.mxu0 %v4838_v3  ;;  %v4856_v1 = vpack.c.bf16 %v1757_v51, %v1749_v50  ;;  %v1748_v3 = vld [vmem:[#allocation3 + $0xd10] sm:$0xff]  ;;  %v1819_v50 = vld [vmem:[#allocation3 + $0xf48] sm:$0xff]  ;;  %v1813_v51 = vld [vmem:[#allocation3 + $0xf18] sm:$0xff] }
 0x1cc   : > { %4569 = vmatprep.subr.bf16.mxu1 %v4568_v7  ;;  %4841 = vmatprep.subr.bf16.mxu0 %v4840_v54  ;;  %v1771_v54 = vld [vmem:[#allocation3 + $0xdc8] sm:$0xff]  ;;  %v4858_v11 = vpack.c.bf16 %v1756_v5, %v1748_v3  ;;  %v1812_v5 = vld [vmem:[#allocation3 + $0xf10] sm:$0xff] }
 0x1cf   : > { %4571 = vmatpush1.bf16.msra.mxu1 %v4570_v15  ;;  %4843 = vmatpush1.bf16.msra.mxu0 %v4842_v16  ;;  %v1770_v15 = vld [vmem:[#allocation3 + $0xdc0] sm:$0xff]  ;;  %v4588_v16 = vpack.c.bf16 %v1771_v54, %v1763_v4  ;;  %v1820_v4 = vld [vmem:[#allocation3 + $0xf50] sm:$0xff]  ;;  %v1827_v54 = vld [vmem:[#allocation3 + $0xf88] sm:$0xff] }
 0x1d0   : > { %4573 = vmatprep.subr.bf16.mxu1 %v4572_v23  ;;  %4845 = vmatprep.subr.bf16.mxu0 %v4844_v22  ;;  %v1772_v23 = vld [vmem:[#allocation3 + $0xdd0] sm:$0xff]  ;;  %v1779_v22 = vld [vmem:[#allocation3 + $0xe08] sm:$0xff]  ;;  %v4590_v29 = vpack.c.bf16 %v1770_v15, %v1762_v14  ;;  %v4874_v14 = vpack.c.bf16 %v1820_v4, %v1812_v5  ;;  %v1826_v15 = vld [vmem:[#allocation3 + $0xf80] sm:$0xff] }
 0x1d1   : > { %v4592_v33 = vpack.c.bf16 %v1787_v25, %v1779_v22  ;;  %v1836_v22 = vld [vmem:[#allocation3 + $0xfd0] sm:$0xff]  ;;  %v1843_v25 = vld [vmem:[#allocation3 + $0x1008] sm:$0xff]  ;;  %v1882_v5 = vld [vmem:[#allocation3 + $0x1140] sm:$0xff] }
 0x1d3   : > { %4575 = vmatpush1.bf16.msra.mxu1 %v4574_v18  ;;  %4847 = vmatpush1.bf16.msra.mxu0 %v4846_v31  ;;  %v4862_v18 = vpack.c.bf16 %v1772_v23, %v1764_v60  ;;  %v1778_v31 = vld [vmem:[#allocation3 + $0xe00] sm:$0xff]  ;;  %v1828_v23 = vld [vmem:[#allocation3 + $0xf90] sm:$0xff] }
 0x1d4   : > { %4577 = vmatprep.subr.bf16.mxu1 %v4576_v34  ;;  %4849 = vmatprep.subr.bf16.mxu0 %v4848_v35  ;;  %v6384_v48 = vpop.f32.mrb[4].mxu1  ;;  %v4864_v34 = vpack.c.bf16 %v1789_v27, %v1781_v26  ;;  %v1780_v35 = vld [vmem:[#allocation3 + $0xe10] sm:$0xff]  ;;  %v1851_v26 = vld [vmem:[#allocation3 + $0x1048] sm:$0xff]  ;;  %v1845_v27 = vld [vmem:[#allocation3 + $0x1018] sm:$0xff] }
 0x1d5   : > { %v6386_v53 = vpop.f32.mrb[5].mxu1  ;;  %v4866_v42 = vpack.c.bf16 %v1788_v19, %v1780_v35  ;;  %v1844_v19 = vld [vmem:[#allocation3 + $0x1010] sm:$0xff] }
 0x1d6   : > { %2584 = vmatprep.mubr.f32.mxu1 %v6386_v53  ;;  %3029 = vmatprep.mubr.f32.mxu0 %v6386_v53 }
 0x1d7   : > { %4579 = vmatpush1.bf16.msra.mxu1 %v4578_v40  ;;  %4851 = vmatpush1.bf16.msra.mxu0 %v4850_v41  ;;  %v4594_v41 = vpack.c.bf16 %v1786_v32, %v1778_v31  ;;  %v4878_v31 = vpack.c.bf16 %v1836_v22, %v1828_v23  ;;  %v1842_v32 = vld [vmem:[#allocation3 + $0x1000] sm:$0xff] }
 0x1d8   : > { %4581 = vmatprep.subr.bf16.mxu1 %v4580_v44  ;;  %4853 = vmatprep.subr.bf16.mxu0 %v4852_v45  ;;  %v6390_v7 = vpop.f32.mrb[6].mxu1  ;;  %v1802_v44 = vld [vmem:[#allocation3 + $0xec0] sm:$0xff]  ;;  %v4596_v45 = vpack.c.bf16 %v1803_v37, %v1795_v36  ;;  %v1852_v36 = vld [vmem:[#allocation3 + $0x1050] sm:$0xff]  ;;  %v1859_v37 = vld [vmem:[#allocation3 + $0x1088] sm:$0xff] }
 0x1d9   : > { %v6392_v58 = vpop.f32.mrb[7].mxu1  ;;  %v1890_v22 = vld [vmem:[#allocation3 + $0x1180] sm:$0xff] }
 0x1db   : > { %4583 = vmatpush1.bf16.msra.mxu1 %v4582_v56  ;;  %4855 = vmatpush1.bf16.msra.mxu0 %v4854_v57  ;;  %v1821_v56 = vld [vmem:[#allocation3 + $0xf58] sm:$0xff]  ;;  %v4598_v57 = vpack.c.bf16 %v1802_v44, %v1794_v43  ;;  %v4882_v43 = vpack.c.bf16 %v1852_v36, %v1844_v19  ;;  %v1858_v44 = vld [vmem:[#allocation3 + $0x1080] sm:$0xff] }
 0x1dc   : > { %4585 = vmatprep.subr.bf16.mxu1 %v4584_v0  ;;  %4857 = vmatprep.subr.bf16.mxu0 %v4856_v1  ;;  %v6394_v24 = vpop.f32.mrb[8].mxu1  ;;  %v1818_v0 = vld [vmem:[#allocation3 + $0xf40] sm:$0xff]  ;;  %v4600_v1 = vpack.c.bf16 %v1819_v50, %v1811_v49  ;;  %v4872_v3 = vpack.c.bf16 %v1821_v56, %v1813_v51  ;;  %v1868_v49 = vld [vmem:[#allocation3 + $0x10d0] sm:$0xff]  ;;  %v1875_v50 = vld [vmem:[#allocation3 + $0x1108] sm:$0xff] }
 0x1dd   : > { %v6396_v28 = vpop.f32.mrb[9].mxu1  ;;  %v1883_v56 = vld [vmem:[#allocation3 + $0x1148] sm:$0xff] }
 0x1de   : > { %v4616_v4 = vpack.c.bf16 %v1883_v56, %v1875_v50 }
 0x1df   : > { %4587 = vmatpush1.bf16.msra.mxu1 %v4586_v10  ;;  %4859 = vmatpush1.bf16.msra.mxu0 %v4858_v11  ;;  %v1837_v10 = vld [vmem:[#allocation3 + $0xfd8] sm:$0xff]  ;;  %v4602_v11 = vpack.c.bf16 %v1818_v0, %v1810_v61 }
 0x1e0   : > { %4589 = vmatprep.subr.bf16.mxu1 %v4588_v16  ;;  %4861 = vmatprep.subr.bf16.mxu0 %v4860_v17  ;;  %v6398_v30 = vpop.f32.mrb[10].mxu1  ;;  %v1834_v16 = vld [vmem:[#allocation3 + $0xfc0] sm:$0xff]  ;;  %v4604_v17 = vpack.c.bf16 %v1835_v8, %v1827_v54  ;;  %v4876_v60 = vpack.c.bf16 %v1837_v10, %v1829_v9  ;;  %v1876_v8 = vld [vmem:[#allocation3 + $0x1110] sm:$0xff]  ;;  %v1891_v10 = vld [vmem:[#allocation3 + $0x1188] sm:$0xff] }
 0x1e1   : > { %v6400_v40 = vpop.f32.mrb[11].mxu1  ;;  %v1884_v9 = vld [vmem:[#allocation3 + $0x1150] sm:$0xff] }
 0x1e2   : > { %v4890_v23 = vpack.c.bf16 %v1884_v9, %v1876_v8  ;;  %v1947_v8 = vld [vmem:[#allocation3 + $0x1348] sm:$0xff]  ;;  %v1941_v9 = vld [vmem:[#allocation3 + $0x1318] sm:$0xff] }
 0x1e3   : > { %4591 = vmatpush1.bf16.msra.mxu1 %v4590_v29  ;;  %4863 = vmatpush1.bf16.msra.mxu0 %v4862_v18  ;;  %v1853_v29 = vld [vmem:[#allocation3 + $0x1058] sm:$0xff]  ;;  %v4606_v18 = vpack.c.bf16 %v1834_v16, %v1826_v15 }
 0x1e4   : > { %4593 = vmatprep.subr.bf16.mxu1 %v4592_v33  ;;  %4865 = vmatprep.subr.bf16.mxu0 %v4864_v34  ;;  %v1850_v33 = vld [vmem:[#allocation3 + $0x1040] sm:$0xff]  ;;  %v4608_v34 = vpack.c.bf16 %v1851_v26, %v1843_v25  ;;  %v4880_v35 = vpack.c.bf16 %v1853_v29, %v1845_v27  ;;  %v1893_v15 = vld [vmem:[#allocation3 + $0x1198] sm:$0xff]  ;;  %v1892_v29 = vld [vmem:[#allocation3 + $0x1190] sm:$0xff] }
 0x1e5   : > { %v1901_v16 = vld [vmem:[#allocation3 + $0x11d8] sm:$0xff]  ;;  %v1898_v25 = vld [vmem:[#allocation3 + $0x11c0] sm:$0xff] }
 0x1e6   : > { %v4892_v27 = vpack.c.bf16 %v1901_v16, %v1893_v15  ;;  %v4622_v36 = vpack.c.bf16 %v1898_v25, %v1890_v22  ;;  %v1938_v16 = vld [vmem:[#allocation3 + $0x1300] sm:$0xff]  ;;  %v1940_v25 = vld [vmem:[#allocation3 + $0x1310] sm:$0xff] }
 0x1e7   : > { %4595 = vmatpush1.bf16.msra.mxu1 %v4594_v41  ;;  %4867 = vmatpush1.bf16.msra.mxu0 %v4866_v42  ;;  %v1869_v41 = vld [vmem:[#allocation3 + $0x10d8] sm:$0xff]  ;;  %v4610_v42 = vpack.c.bf16 %v1850_v33, %v1842_v32  ;;  %v1915_v33 = vld [vmem:[#allocation3 + $0x1248] sm:$0xff] }
 0x1e8   : > { %4597 = vmatprep.subr.bf16.mxu1 %v4596_v45  ;;  %4869 = vmatprep.subr.bf16.mxu0 %v4868_v46  ;;  %v1866_v45 = vld [vmem:[#allocation3 + $0x10c0] sm:$0xff]  ;;  %v4612_v46 = vpack.c.bf16 %v1867_v38, %v1859_v37  ;;  %v4884_v47 = vpack.c.bf16 %v1869_v41, %v1861_v39 }
 0x1e9   : > { %v4614_v0 = vpack.c.bf16 %v1866_v45, %v1858_v44  ;;  %v1906_v38 = vld [vmem:[#allocation3 + $0x1200] sm:$0xff]  ;;  %v1916_v44 = vld [vmem:[#allocation3 + $0x1250] sm:$0xff]  ;;  %v1923_v45 = vld [vmem:[#allocation3 + $0x1288] sm:$0xff] }
 0x1ea   : > { %v1914_v39 = vld [vmem:[#allocation3 + $0x1240] sm:$0xff] }
 0x1eb   : > { %4599 = vmatpush1.bf16.msra.mxu1 %v4598_v57  ;;  %4871 = vmatpush1.bf16.msra.mxu0 %v4870_v59  ;;  %v1877_v57 = vld [vmem:[#allocation3 + $0x1118] sm:$0xff]  ;;  %v4626_v56 = vpack.c.bf16 %v1914_v39, %v1906_v38  ;;  %v1956_v39 = vld [vmem:[#allocation3 + $0x1390] sm:$0xff] }
 0x1ec   : > { %4601 = vmatprep.subr.bf16.mxu1 %v4600_v1  ;;  %4873 = vmatprep.subr.bf16.mxu0 %v4872_v3  ;;  %v1885_v59 = vld [vmem:[#allocation3 + $0x1158] sm:$0xff]  ;;  %v4886_v1 = vpack.c.bf16 %v1868_v49, %v1860_v2  ;;  %v1874_v3 = vld [vmem:[#allocation3 + $0x1100] sm:$0xff] }
 0x1ed   : > { %v4888_v54 = vpack.c.bf16 %v1885_v59, %v1877_v57  ;;  %v1925_v2 = vld [vmem:[#allocation3 + $0x1298] sm:$0xff]  ;;  %v1922_v59 = vld [vmem:[#allocation3 + $0x1280] sm:$0xff] }
 0x1ee   : > { %v1933_v49 = vld [vmem:[#allocation3 + $0x12d8] sm:$0xff] }
 0x1ef   : > { %4603 = vmatpush1.bf16.msra.mxu1 %v4602_v11  ;;  %4875 = vmatpush1.bf16.msra.mxu0 %v4874_v14  ;;  %v1899_v14 = vld [vmem:[#allocation3 + $0x11c8] sm:$0xff] }
 0x1f0   : > { %4605 = vmatprep.subr.bf16.mxu1 %v4604_v17  ;;  %4877 = vmatprep.subr.bf16.mxu0 %v4876_v60  ;;  %v4618_v60 = vpack.c.bf16 %v1882_v5, %v1874_v3  ;;  %v4620_v26 = vpack.c.bf16 %v1899_v14, %v1891_v10  ;;  %v4900_v3 = vpack.c.bf16 %v1933_v49, %v1925_v2  ;;  %v1924_v5 = vld [vmem:[#allocation3 + $0x1290] sm:$0xff]  ;;  %v1949_v10 = vld [vmem:[#allocation3 + $0x1358] sm:$0xff]  ;;  %v1970_v49 = vld [vmem:[#allocation3 + $0x1400] sm:$0xff] }
 0x1f1   : > { %v4904_v22 = vpack.c.bf16 %v1949_v10, %v1941_v9  ;;  %v1986_v10 = vld [vmem:[#allocation3 + $0x1480] sm:$0xff] }
 0x1f3   : > { %4607 = vmatpush1.bf16.msra.mxu1 %v4606_v18  ;;  %4879 = vmatpush1.bf16.msra.mxu0 %v4878_v31  ;;  %v1900_v18 = vld [vmem:[#allocation3 + $0x11d0] sm:$0xff]  ;;  %v1907_v31 = vld [vmem:[#allocation3 + $0x1208] sm:$0xff] }
 0x1f4   : > { %4609 = vmatprep.subr.bf16.mxu1 %v4608_v34  ;;  %4881 = vmatprep.subr.bf16.mxu0 %v4880_v35  ;;  %v6402_v51 = vpop.f32.mrb[4].mxu0  ;;  %v1909_v34 = vld [vmem:[#allocation3 + $0x1218] sm:$0xff]  ;;  %v4894_v37 = vpack.c.bf16 %v1900_v18, %v1892_v29  ;;  %v4624_v41 = vpack.c.bf16 %v1915_v33, %v1907_v31  ;;  %v1963_v29 = vld [vmem:[#allocation3 + $0x13c8] sm:$0xff] }
 0x1f5   : > { %v6404_v61 = vpop.f32.mrb[5].mxu0  ;;  %v1917_v35 = vld [vmem:[#allocation3 + $0x1258] sm:$0xff] }
 0x1f6   : > { %2585 = vmatmul.mubr.f32.vlgmr.msra.gmra.mrb[20].mxu1 %v6384_v48  ;;  %3030 = vmatmul.mubr.f32.vlgmr.msra.gmra.mrb[16].mxu0 %v6384_v48  ;;  %v1957_v18 = vld [vmem:[#allocation3 + $0x1398] sm:$0xff] }
 0x1f7   : > { %4611 = vmatpush1.bf16.msra.mxu1 %v4610_v42  ;;  %4883 = vmatpush1.bf16.msra.mxu0 %v4882_v43  ;;  %v4896_v42 = vpack.c.bf16 %v1917_v35, %v1909_v34  ;;  %v1908_v43 = vld [vmem:[#allocation3 + $0x1210] sm:$0xff]  ;;  %v1965_v31 = vld [vmem:[#allocation3 + $0x13d8] sm:$0xff]  ;;  %v1954_v35 = vld [vmem:[#allocation3 + $0x1380] sm:$0xff] }
 0x1f8   : > { %4613 = vmatprep.subr.bf16.mxu1 %v4612_v46  ;;  %4885 = vmatprep.subr.bf16.mxu0 %v4884_v47  ;;  %v6408_v11 = vpop.f32.mrb[6].mxu0  ;;  %v1931_v47 = vld [vmem:[#allocation3 + $0x12c8] sm:$0xff]  ;;  %v4898_v57 = vpack.c.bf16 %v1916_v44, %v1908_v43  ;;  %v4908_v38 = vpack.c.bf16 %v1965_v31, %v1957_v18  ;;  %v1973_v44 = vld [vmem:[#allocation3 + $0x1418] sm:$0xff]  ;;  %v2002_v31 = vld [vmem:[#allocation3 + $0x1500] sm:$0xff] }
 0x1f9   : > { %2590 = vmatprep.mubr.f32.mxu1 %v6392_v58  ;;  %3035 = vmatprep.mubr.f32.mxu0 %v6392_v58  ;;  %v6412_v17 = vpop.f32.mrb[7].mxu0  ;;  %v1979_v43 = vld [vmem:[#allocation3 + $0x1448] sm:$0xff] }
 0x1fa   : > { %2591 = vmatmul.mubr.f32.gmra.mrb[22].mxu1 %v6390_v7  ;;  %3036 = vmatmul.mubr.f32.gmra.mrb[18].mxu0 %v6390_v7 }
 0x1fb   : > { %4615 = vmatpush1.bf16.msra.mxu1 %v4614_v0  ;;  %4887 = vmatpush1.bf16.msra.mxu0 %v4886_v1  ;;  %v1930_v0 = vld [vmem:[#allocation3 + $0x12c0] sm:$0xff]  ;;  %v4628_v1 = vpack.c.bf16 %v1931_v47, %v1923_v45  ;;  %v1981_v45 = vld [vmem:[#allocation3 + $0x1458] sm:$0xff] }
 0x1fc   : > { %4617 = vmatprep.subr.bf16.mxu1 %v4616_v4  ;;  %4889 = vmatprep.subr.bf16.mxu0 %v4888_v54  ;;  %v6416_v32 = vpop.f32.mrb[8].mxu0  ;;  %v1932_v4 = vld [vmem:[#allocation3 + $0x12d0] sm:$0xff]  ;;  %v1939_v54 = vld [vmem:[#allocation3 + $0x1308] sm:$0xff]  ;;  %v4630_v14 = vpack.c.bf16 %v1930_v0, %v1922_v59  ;;  %v4912_v59 = vpack.c.bf16 %v1981_v45, %v1973_v44 }
 0x1fd   : > { %2596 = vmatprep.mubr.f32.mxu1 %v6396_v28  ;;  %3041 = vmatprep.mubr.f32.mxu0 %v6396_v28  ;;  %v6420_v19 = vpop.f32.mrb[9].mxu0  ;;  %v4902_v15 = vpack.c.bf16 %v1932_v4, %v1924_v5  ;;  %v1972_v0 = vld [vmem:[#allocation3 + $0x1410] sm:$0xff]  ;;  %v1995_v5 = vld [vmem:[#allocation3 + $0x14c8] sm:$0xff]  ;;  %v1989_v4 = vld [vmem:[#allocation3 + $0x1498] sm:$0xff] }
 0x1fe   : > { %2597 = vmatmul.mubr.f32.gmra.mrb[24].mxu1 %v6394_v24  ;;  %3042 = vmatmul.mubr.f32.gmra.mrb[20].mxu0 %v6394_v24 }
 0x1ff   : > { %4619 = vmatpush1.bf16.msra.mxu1 %v4618_v60  ;;  %4891 = vmatpush1.bf16.msra.mxu0 %v4890_v23  ;;  %v1946_v60 = vld [vmem:[#allocation3 + $0x1340] sm:$0xff]  ;;  %v4632_v23 = vpack.c.bf16 %v1947_v8, %v1939_v54  ;;  %v1997_v54 = vld [vmem:[#allocation3 + $0x14d8] sm:$0xff] }
 0x200   : > { %4621 = vmatprep.subr.bf16.mxu1 %v4620_v26  ;;  %4893 = vmatprep.subr.bf16.mxu0 %v4892_v27  ;;  %v6424_v46 = vpop.f32.mrb[10].mxu0  ;;  %v1948_v26 = vld [vmem:[#allocation3 + $0x1350] sm:$0xff]  ;;  %v1955_v27 = vld [vmem:[#allocation3 + $0x1388] sm:$0xff]  ;;  %v4634_v33 = vpack.c.bf16 %v1946_v60, %v1938_v16  ;;  %v4916_v16 = vpack.c.bf16 %v1997_v54, %v1989_v4 }
 0x201   : > { %2602 = vmatprep.mubr.f32.mxu1 %v6400_v40  ;;  %3047 = vmatprep.mubr.f32.mxu0 %v6400_v40  ;;  %v6428_v50 = vpop.f32.mrb[11].mxu0  ;;  %v4906_v34 = vpack.c.bf16 %v1948_v26, %v1940_v25  ;;  %v1988_v60 = vld [vmem:[#allocation3 + $0x1490] sm:$0xff]  ;;  %v2011_v25 = vld [vmem:[#allocation3 + $0x1548] sm:$0xff]  ;;  %v2005_v26 = vld [vmem:[#allocation3 + $0x1518] sm:$0xff] }
 0x202   : > { %2603 = vmatmul.mubr.f32.gmra.mrb[26].mxu1 %v6398_v30  ;;  %3048 = vmatmul.mubr.f32.gmra.mrb[22].mxu0 %v6398_v30  ;;  %v2043_v54 = vld [vmem:[#allocation3 + $0x1648] sm:$0xff] }
 0x203   : > { %4623 = vmatpush1.bf16.msra.mxu1 %v4622_v36  ;;  %4895 = vmatpush1.bf16.msra.mxu0 %v4894_v37  ;;  %v1962_v36 = vld [vmem:[#allocation3 + $0x13c0] sm:$0xff]  ;;  %v4636_v37 = vpack.c.bf16 %v1963_v29, %v1955_v27  ;;  %v2013_v27 = vld [vmem:[#allocation3 + $0x1558] sm:$0xff] }
 0x204   : > { %4625 = vmatprep.subr.bf16.mxu1 %v4624_v41  ;;  %4897 = vmatprep.subr.bf16.mxu0 %v4896_v42  ;;  %v1964_v41 = vld [vmem:[#allocation3 + $0x13d0] sm:$0xff]  ;;  %v1971_v42 = vld [vmem:[#allocation3 + $0x1408] sm:$0xff]  ;;  %v4638_v47 = vpack.c.bf16 %v1962_v36, %v1954_v35  ;;  %v4920_v35 = vpack.c.bf16 %v2013_v27, %v2005_v26 }
 0x205   : > { %2673 = vmatprep.mubr.f32.mxu1 %v6404_v61  ;;  %3118 = vmatprep.mubr.f32.mxu0 %v6404_v61  ;;  %v4910_v2 = vpack.c.bf16 %v1964_v41, %v1956_v39  ;;  %v2004_v36 = vld [vmem:[#allocation3 + $0x1510] sm:$0xff]  ;;  %v2027_v41 = vld [vmem:[#allocation3 + $0x15c8] sm:$0xff] }
 0x206   : > { %v2036_v27 = vld [vmem:[#allocation3 + $0x1610] sm:$0xff] }
 0x207   : > { %4627 = vmatpush1.bf16.msra.mxu1 %v4626_v56  ;;  %4899 = vmatpush1.bf16.msra.mxu0 %v4898_v57  ;;  %v1978_v56 = vld [vmem:[#allocation3 + $0x1440] sm:$0xff]  ;;  %v4640_v57 = vpack.c.bf16 %v1979_v43, %v1971_v42  ;;  %v2021_v42 = vld [vmem:[#allocation3 + $0x1598] sm:$0xff] }
 0x208   : > { %4629 = vmatprep.subr.bf16.mxu1 %v4628_v1  ;;  %4901 = vmatprep.subr.bf16.mxu0 %v4900_v3  ;;  %v1980_v1 = vld [vmem:[#allocation3 + $0x1450] sm:$0xff]  ;;  %v1987_v3 = vld [vmem:[#allocation3 + $0x1488] sm:$0xff]  ;;  %v4642_v8 = vpack.c.bf16 %v1978_v56, %v1970_v49  ;;  %v2029_v43 = vld [vmem:[#allocation3 + $0x15d8] sm:$0xff] }
 0x209   : > { %v4914_v9 = vpack.c.bf16 %v1980_v1, %v1972_v0  ;;  %v2018_v49 = vld [vmem:[#allocation3 + $0x1580] sm:$0xff]  ;;  %v4924_v0 = vpack.c.bf16 %v2029_v43, %v2021_v42  ;;  %v2020_v1 = vld [vmem:[#allocation3 + $0x1590] sm:$0xff] }
 0x20a   : > { %v2026_v56 = vld [vmem:[#allocation3 + $0x15c0] sm:$0xff] }
 0x20b   : > { %4631 = vmatpush1.bf16.msra.mxu1 %v4630_v14  ;;  %4903 = vmatpush1.bf16.msra.mxu0 %v4902_v15  ;;  %v1994_v14 = vld [vmem:[#allocation3 + $0x14c0] sm:$0xff]  ;;  %v4644_v15 = vpack.c.bf16 %v1995_v5, %v1987_v3  ;;  %v2028_v3 = vld [vmem:[#allocation3 + $0x15d0] sm:$0xff]  ;;  %v2035_v5 = vld [vmem:[#allocation3 + $0x1608] sm:$0xff] }
 0x20c   : > { %4633 = vmatprep.subr.bf16.mxu1 %v4632_v23  ;;  %4905 = vmatprep.subr.bf16.mxu0 %v4904_v22  ;;  %v1996_v23 = vld [vmem:[#allocation3 + $0x14d0] sm:$0xff]  ;;  %v2003_v22 = vld [vmem:[#allocation3 + $0x1508] sm:$0xff]  ;;  %v4646_v29 = vpack.c.bf16 %v1994_v14, %v1986_v10  ;;  %v2058_v42 = vld [vmem:[#allocation3 + $0x16c0] sm:$0xff] }
 0x20d   : > { %v4918_v18 = vpack.c.bf16 %v1996_v23, %v1988_v60  ;;  %v2034_v60 = vld [vmem:[#allocation3 + $0x1600] sm:$0xff] }
 0x20e   : > { %v2042_v23 = vld [vmem:[#allocation3 + $0x1640] sm:$0xff] }
 0x20f   : > { %4635 = vmatpush1.bf16.msra.mxu1 %v4634_v33  ;;  %4907 = vmatpush1.bf16.msra.mxu0 %v4906_v34  ;;  %v2010_v33 = vld [vmem:[#allocation3 + $0x1540] sm:$0xff]  ;;  %v4648_v34 = vpack.c.bf16 %v2011_v25, %v2003_v22  ;;  %v4656_v25 = vpack.c.bf16 %v2043_v54, %v2035_v5 }
 0x210   : > { %4637 = vmatprep.subr.bf16.mxu1 %v4636_v37  ;;  %4909 = vmatprep.subr.bf16.mxu0 %v4908_v38  ;;  %v2012_v37 = vld [vmem:[#allocation3 + $0x1550] sm:$0xff]  ;;  %v2019_v38 = vld [vmem:[#allocation3 + $0x1588] sm:$0xff] }
 0x213   : > { %4639 = vmatpush1.bf16.msra.mxu1 %v4638_v47  ;;  %4911 = vmatpush1.bf16.msra.mxu0 %v4910_v2  ;;  %v4650_v47 = vpack.c.bf16 %v2010_v33, %v2002_v31  ;;  %v4922_v2 = vpack.c.bf16 %v2012_v37, %v2004_v36  ;;  %v2059_v33 = vld [vmem:[#allocation3 + $0x16c8] sm:$0xff]  ;;  %v4658_v37 = vpack.c.bf16 %v2042_v23, %v2034_v60  ;;  %v2068_v23 = vld [vmem:[#allocation3 + $0x1710] sm:$0xff] }
 0x214   : > { %4641 = vmatprep.subr.bf16.mxu1 %v4640_v57  ;;  %4913 = vmatprep.subr.bf16.mxu0 %v4912_v59  ;;  %v4652_v59 = vpack.c.bf16 %v2027_v41, %v2019_v38  ;;  %v2050_v41 = vld [vmem:[#allocation3 + $0x1680] sm:$0xff] }
 0x215   : > { %v4662_v54 = vpack.c.bf16 %v2058_v42, %v2050_v41  ;;  %v2084_v42 = vld [vmem:[#allocation3 + $0x1790] sm:$0xff] }
 0x217   : > { %4643 = vmatpush1.bf16.msra.mxu1 %v4642_v8  ;;  %4915 = vmatpush1.bf16.msra.mxu0 %v4914_v9  ;;  %v2037_v8 = vld [vmem:[#allocation3 + $0x1618] sm:$0xff] }
 0x218   : > { %4645 = vmatprep.subr.bf16.mxu1 %v4644_v15  ;;  %4917 = vmatprep.subr.bf16.mxu0 %v4916_v16  ;;  %v6434_v39 = vpop.f32.mrb[12].mxu1  ;;  %v2045_v9 = vld [vmem:[#allocation3 + $0x1658] sm:$0xff]  ;;  %v4654_v15 = vpack.c.bf16 %v2026_v56, %v2018_v49  ;;  %v4926_v16 = vpack.c.bf16 %v2028_v3, %v2020_v1  ;;  %v2060_v49 = vld [vmem:[#allocation3 + $0x16d0] sm:$0xff]  ;;  %v2067_v56 = vld [vmem:[#allocation3 + $0x1708] sm:$0xff] }
 0x219   : > { %v6436_v44 = vpop.f32.mrb[13].mxu1  ;;  %v4928_v26 = vpack.c.bf16 %v2045_v9, %v2037_v8  ;;  %v2069_v1 = vld [vmem:[#allocation3 + $0x1718] sm:$0xff]  ;;  %v2066_v9 = vld [vmem:[#allocation3 + $0x1700] sm:$0xff] }
 0x21a   : > { %v6438_v45 = vpop.f32.mrb[12].mxu0  ;;  %v2077_v3 = vld [vmem:[#allocation3 + $0x1758] sm:$0xff] }
 0x21b   : > { %4647 = vmatpush1.bf16.msra.mxu1 %v4646_v29  ;;  %4919 = vmatpush1.bf16.msra.mxu0 %v4918_v18  ;;  %v6440_v57 = vpop.f32.mrb[13].mxu0  ;;  %v2044_v29 = vld [vmem:[#allocation3 + $0x1650] sm:$0xff]  ;;  %v2051_v18 = vld [vmem:[#allocation3 + $0x1688] sm:$0xff]  ;;  %v4936_v60 = vpack.c.bf16 %v2077_v3, %v2069_v1  ;;  %v2098_v3 = vld [vmem:[#allocation3 + $0x1800] sm:$0xff] }
 0x21c   : > { %4649 = vmatprep.subr.bf16.mxu1 %v4648_v34  ;;  %4921 = vmatprep.subr.bf16.mxu0 %v4920_v35  ;;  %v6442_v4 = vpop.f32.mrb[14].mxu1  ;;  %v2053_v34 = vld [vmem:[#allocation3 + $0x1698] sm:$0xff]  ;;  %v4930_v38 = vpack.c.bf16 %v2044_v29, %v2036_v27  ;;  %v4660_v43 = vpack.c.bf16 %v2059_v33, %v2051_v18  ;;  %v2091_v27 = vld [vmem:[#allocation3 + $0x17c8] sm:$0xff] }
 0x21d   : > { %v6444_v10 = vpop.f32.mrb[15].mxu1  ;;  %v2061_v35 = vld [vmem:[#allocation3 + $0x16d8] sm:$0xff] }
 0x21e   : > { %v6446_v14 = vpop.f32.mrb[14].mxu0  ;;  %v2085_v29 = vld [vmem:[#allocation3 + $0x1798] sm:$0xff] }
 0x21f   : > { %4651 = vmatpush1.bf16.msra.mxu1 %v4650_v47  ;;  %4923 = vmatpush1.bf16.msra.mxu0 %v4922_v2  ;;  %v6448_v22 = vpop.f32.mrb[15].mxu0  ;;  %v4932_v47 = vpack.c.bf16 %v2061_v35, %v2053_v34  ;;  %v2052_v2 = vld [vmem:[#allocation3 + $0x1690] sm:$0xff]  ;;  %v2093_v18 = vld [vmem:[#allocation3 + $0x17d8] sm:$0xff]  ;;  %v2082_v35 = vld [vmem:[#allocation3 + $0x1780] sm:$0xff] }
 0x220   : > { %4653 = vmatprep.subr.bf16.mxu1 %v4652_v59  ;;  %4925 = vmatprep.subr.bf16.mxu0 %v4924_v0  ;;  %v6450_v31 = vpop.f32.mrb[16].mxu1  ;;  %v2075_v0 = vld [vmem:[#allocation3 + $0x1748] sm:$0xff]  ;;  %v4934_v8 = vpack.c.bf16 %v2060_v49, %v2052_v2  ;;  %v4940_v41 = vpack.c.bf16 %v2093_v18, %v2085_v29  ;;  %v2101_v49 = vld [vmem:[#allocation3 + $0x1818] sm:$0xff]  ;;  %v2114_v18 = vld [vmem:[#allocation3 + $0x1880] sm:$0xff] }
 0x221   : > { %v6452_v36 = vpop.f32.mrb[17].mxu1  ;;  %v2107_v2 = vld [vmem:[#allocation3 + $0x1848] sm:$0xff] }
 0x223   : > { %4655 = vmatpush1.bf16.msra.mxu1 %v4654_v15  ;;  %4927 = vmatpush1.bf16.msra.mxu0 %v4926_v16  ;;  %v2074_v15 = vld [vmem:[#allocation3 + $0x1740] sm:$0xff]  ;;  %v4664_v16 = vpack.c.bf16 %v2075_v0, %v2067_v56  ;;  %v2109_v56 = vld [vmem:[#allocation3 + $0x1858] sm:$0xff] }
 0x224   : > { %4657 = vmatprep.subr.bf16.mxu1 %v4656_v25  ;;  %4929 = vmatprep.subr.bf16.mxu0 %v4928_v26  ;;  %v6454_v59 = vpop.f32.mrb[18].mxu1  ;;  %v2076_v25 = vld [vmem:[#allocation3 + $0x1750] sm:$0xff]  ;;  %v2083_v26 = vld [vmem:[#allocation3 + $0x1788] sm:$0xff]  ;;  %v4666_v33 = vpack.c.bf16 %v2074_v15, %v2066_v9  ;;  %v4944_v9 = vpack.c.bf16 %v2109_v56, %v2101_v49  ;;  %v2130_v56 = vld [vmem:[#allocation3 + $0x1900] sm:$0xff] }
 0x225   : > { %v6456_v5 = vpop.f32.mrb[19].mxu1  ;;  %v4938_v34 = vpack.c.bf16 %v2076_v25, %v2068_v23  ;;  %v2100_v15 = vld [vmem:[#allocation3 + $0x1810] sm:$0xff]  ;;  %v2123_v23 = vld [vmem:[#allocation3 + $0x18c8] sm:$0xff]  ;;  %v2117_v25 = vld [vmem:[#allocation3 + $0x1898] sm:$0xff] }
 0x227   : > { %4659 = vmatpush1.bf16.msra.mxu1 %v4658_v37  ;;  %4931 = vmatpush1.bf16.msra.mxu0 %v4930_v38  ;;  %v2090_v37 = vld [vmem:[#allocation3 + $0x17c0] sm:$0xff]  ;;  %v4668_v38 = vpack.c.bf16 %v2091_v27, %v2083_v26  ;;  %v2125_v26 = vld [vmem:[#allocation3 + $0x18d8] sm:$0xff] }
 0x228   : > { %4661 = vmatprep.subr.bf16.mxu1 %v4660_v43  ;;  %4933 = vmatprep.subr.bf16.mxu0 %v4932_v47  ;;  %v2092_v43 = vld [vmem:[#allocation3 + $0x17d0] sm:$0xff]  ;;  %v2099_v47 = vld [vmem:[#allocation3 + $0x1808] sm:$0xff]  ;;  %v4670_v0 = vpack.c.bf16 %v2090_v37, %v2082_v35  ;;  %v4948_v35 = vpack.c.bf16 %v2125_v26, %v2117_v25  ;;  %v2146_v26 = vld [vmem:[#allocation3 + $0x1980] sm:$0xff] }
 0x229   : > { %v4942_v1 = vpack.c.bf16 %v2092_v43, %v2084_v42  ;;  %v2116_v37 = vld [vmem:[#allocation3 + $0x1890] sm:$0xff]  ;;  %v2139_v42 = vld [vmem:[#allocation3 + $0x1948] sm:$0xff]  ;;  %v2133_v43 = vld [vmem:[#allocation3 + $0x1918] sm:$0xff] }
 0x22b   : > { %4663 = vmatpush1.bf16.msra.mxu1 %v4662_v54  ;;  %4935 = vmatpush1.bf16.msra.mxu0 %v4934_v8  ;;  %v2106_v54 = vld [vmem:[#allocation3 + $0x1840] sm:$0xff]  ;;  %v4672_v8 = vpack.c.bf16 %v2107_v2, %v2099_v47  ;;  %v2141_v47 = vld [vmem:[#allocation3 + $0x1958] sm:$0xff] }
 0x22c   : > { %4665 = vmatprep.subr.bf16.mxu1 %v4664_v16  ;;  %4937 = vmatprep.subr.bf16.mxu0 %v4936_v60  ;;  %v2108_v16 = vld [vmem:[#allocation3 + $0x1850] sm:$0xff]  ;;  %v2115_v60 = vld [vmem:[#allocation3 + $0x1888] sm:$0xff]  ;;  %v4674_v27 = vpack.c.bf16 %v2106_v54, %v2098_v3  ;;  %v4952_v3 = vpack.c.bf16 %v2141_v47, %v2133_v43  ;;  %v2162_v47 = vld [vmem:[#allocation3 + $0x1a00] sm:$0xff] }
 0x22d   : > { %v4946_v29 = vpack.c.bf16 %v2108_v16, %v2100_v15  ;;  %v2132_v54 = vld [vmem:[#allocation3 + $0x1910] sm:$0xff]  ;;  %v2155_v15 = vld [vmem:[#allocation3 + $0x19c8] sm:$0xff]  ;;  %v2149_v16 = vld [vmem:[#allocation3 + $0x1998] sm:$0xff] }
 0x22f   : > { %4667 = vmatpush1.bf16.msra.mxu1 %v4666_v33  ;;  %4939 = vmatpush1.bf16.msra.mxu0 %v4938_v34  ;;  %v2122_v33 = vld [vmem:[#allocation3 + $0x18c0] sm:$0xff]  ;;  %v4676_v34 = vpack.c.bf16 %v2123_v23, %v2115_v60  ;;  %v2157_v60 = vld [vmem:[#allocation3 + $0x19d8] sm:$0xff] }
 0x230   : > { %4669 = vmatprep.subr.bf16.mxu1 %v4668_v38  ;;  %4941 = vmatprep.subr.bf16.mxu0 %v4940_v41  ;;  %v2124_v38 = vld [vmem:[#allocation3 + $0x18d0] sm:$0xff]  ;;  %v2131_v41 = vld [vmem:[#allocation3 + $0x1908] sm:$0xff]  ;;  %v4678_v2 = vpack.c.bf16 %v2122_v33, %v2114_v18  ;;  %v4956_v18 = vpack.c.bf16 %v2157_v60, %v2149_v16  ;;  %v2178_v60 = vld [vmem:[#allocation3 + $0x1a80] sm:$0xff] }
 0x231   : > { %v4950_v49 = vpack.c.bf16 %v2124_v38, %v2116_v37  ;;  %v2148_v33 = vld [vmem:[#allocation3 + $0x1990] sm:$0xff]  ;;  %v2171_v37 = vld [vmem:[#allocation3 + $0x1a48] sm:$0xff]  ;;  %v2165_v38 = vld [vmem:[#allocation3 + $0x1a18] sm:$0xff] }
 0x233   : > { %4671 = vmatpush1.bf16.msra.mxu1 %v4670_v0  ;;  %4943 = vmatpush1.bf16.msra.mxu0 %v4942_v1  ;;  %v2138_v0 = vld [vmem:[#allocation3 + $0x1940] sm:$0xff]  ;;  %v4680_v1 = vpack.c.bf16 %v2139_v42, %v2131_v41  ;;  %v2173_v41 = vld [vmem:[#allocation3 + $0x1a58] sm:$0xff] }
 0x234   : > { %4673 = vmatprep.subr.bf16.mxu1 %v4672_v8  ;;  %4945 = vmatprep.subr.bf16.mxu0 %v4944_v9  ;;  %v2140_v8 = vld [vmem:[#allocation3 + $0x1950] sm:$0xff]  ;;  %v2147_v9 = vld [vmem:[#allocation3 + $0x1988] sm:$0xff]  ;;  %v4682_v23 = vpack.c.bf16 %v2138_v0, %v2130_v56  ;;  %v4960_v56 = vpack.c.bf16 %v2173_v41, %v2165_v38  ;;  %v2194_v41 = vld [vmem:[#allocation3 + $0x1b00] sm:$0xff] }
 0x235   : > { %v4954_v25 = vpack.c.bf16 %v2140_v8, %v2132_v54  ;;  %v2164_v0 = vld [vmem:[#allocation3 + $0x1a10] sm:$0xff]  ;;  %v2187_v54 = vld [vmem:[#allocation3 + $0x1ac8] sm:$0xff]  ;;  %v2181_v8 = vld [vmem:[#allocation3 + $0x1a98] sm:$0xff] }
 0x236   : > { %2674 = vmatmul.mubr.f32.vlgmr.msra.gmra.mrb[20].mxu1 %v6402_v51  ;;  %3119 = vmatmul.mubr.f32.vlgmr.msra.gmra.mrb[16].mxu0 %v6402_v51 }
 0x237   : > { %4675 = vmatpush1.bf16.msra.mxu1 %v4674_v27  ;;  %4947 = vmatpush1.bf16.msra.mxu0 %v4946_v29  ;;  %v2154_v27 = vld [vmem:[#allocation3 + $0x19c0] sm:$0xff]  ;;  %v4684_v29 = vpack.c.bf16 %v2155_v15, %v2147_v9  ;;  %v2189_v9 = vld [vmem:[#allocation3 + $0x1ad8] sm:$0xff] }
 0x238   : > { %4677 = vmatprep.subr.bf16.mxu1 %v4676_v34  ;;  %4949 = vmatprep.subr.bf16.mxu0 %v4948_v35  ;;  %v2156_v34 = vld [vmem:[#allocation3 + $0x19d0] sm:$0xff]  ;;  %v2163_v35 = vld [vmem:[#allocation3 + $0x1a08] sm:$0xff]  ;;  %v4686_v42 = vpack.c.bf16 %v2154_v27, %v2146_v26  ;;  %v4964_v26 = vpack.c.bf16 %v2189_v9, %v2181_v8  ;;  %v2210_v9 = vld [vmem:[#allocation3 + $0x1b80] sm:$0xff] }
 0x239   : > { %2679 = vmatprep.mubr.f32.mxu1 %v6412_v17  ;;  %3124 = vmatprep.mubr.f32.mxu0 %v6412_v17  ;;  %v4958_v43 = vpack.c.bf16 %v2156_v34, %v2148_v33  ;;  %v2180_v27 = vld [vmem:[#allocation3 + $0x1a90] sm:$0xff]  ;;  %v2203_v33 = vld [vmem:[#allocation3 + $0x1b48] sm:$0xff]  ;;  %v2197_v34 = vld [vmem:[#allocation3 + $0x1b18] sm:$0xff] }
 0x23a   : > { %2680 = vmatmul.mubr.f32.gmra.mrb[22].mxu1 %v6408_v11  ;;  %3125 = vmatmul.mubr.f32.gmra.mrb[18].mxu0 %v6408_v11 }
 0x23b   : > { %4679 = vmatpush1.bf16.msra.mxu1 %v4678_v2  ;;  %4951 = vmatpush1.bf16.msra.mxu0 %v4950_v49  ;;  %v2170_v2 = vld [vmem:[#allocation3 + $0x1a40] sm:$0xff]  ;;  %v4688_v49 = vpack.c.bf16 %v2171_v37, %v2163_v35  ;;  %v2205_v35 = vld [vmem:[#allocation3 + $0x1b58] sm:$0xff] }
 0x23c   : > { %4681 = vmatprep.subr.bf16.mxu1 %v4680_v1  ;;  %4953 = vmatprep.subr.bf16.mxu0 %v4952_v3  ;;  %v2172_v1 = vld [vmem:[#allocation3 + $0x1a50] sm:$0xff]  ;;  %v2179_v3 = vld [vmem:[#allocation3 + $0x1a88] sm:$0xff]  ;;  %v4690_v15 = vpack.c.bf16 %v2170_v2, %v2162_v47  ;;  %v4968_v47 = vpack.c.bf16 %v2205_v35, %v2197_v34  ;;  %v2226_v35 = vld [vmem:[#allocation3 + $0x1c00] sm:$0xff] }
 0x23d   : > { %2685 = vmatprep.mubr.f32.mxu1 %v6420_v19  ;;  %3130 = vmatprep.mubr.f32.mxu0 %v6420_v19  ;;  %v4962_v16 = vpack.c.bf16 %v2172_v1, %v2164_v0  ;;  %v2196_v2 = vld [vmem:[#allocation3 + $0x1b10] sm:$0xff]  ;;  %v2219_v0 = vld [vmem:[#allocation3 + $0x1bc8] sm:$0xff]  ;;  %v2213_v1 = vld [vmem:[#allocation3 + $0x1b98] sm:$0xff] }
 0x23e   : > { %2686 = vmatmul.mubr.f32.gmra.mrb[24].mxu1 %v6416_v32  ;;  %3131 = vmatmul.mubr.f32.gmra.mrb[20].mxu0 %v6416_v32 }
 0x23f   : > { %4683 = vmatpush1.bf16.msra.mxu1 %v4682_v23  ;;  %4955 = vmatpush1.bf16.msra.mxu0 %v4954_v25  ;;  %v2186_v23 = vld [vmem:[#allocation3 + $0x1ac0] sm:$0xff]  ;;  %v4692_v25 = vpack.c.bf16 %v2187_v54, %v2179_v3  ;;  %v2221_v3 = vld [vmem:[#allocation3 + $0x1bd8] sm:$0xff] }
 0x240   : > { %4685 = vmatprep.subr.bf16.mxu1 %v4684_v29  ;;  %4957 = vmatprep.subr.bf16.mxu0 %v4956_v18  ;;  %v2188_v29 = vld [vmem:[#allocation3 + $0x1ad0] sm:$0xff]  ;;  %v2195_v18 = vld [vmem:[#allocation3 + $0x1b08] sm:$0xff]  ;;  %v4694_v37 = vpack.c.bf16 %v2186_v23, %v2178_v60  ;;  %v4972_v60 = vpack.c.bf16 %v2221_v3, %v2213_v1  ;;  %v2242_v3 = vld [vmem:[#allocation3 + $0x1c80] sm:$0xff] }
 0x241   : > { %2691 = vmatprep.mubr.f32.mxu1 %v6428_v50  ;;  %3136 = vmatprep.mubr.f32.mxu0 %v6428_v50  ;;  %v4966_v38 = vpack.c.bf16 %v2188_v29, %v2180_v27  ;;  %v2212_v23 = vld [vmem:[#allocation3 + $0x1b90] sm:$0xff]  ;;  %v2235_v27 = vld [vmem:[#allocation3 + $0x1c48] sm:$0xff]  ;;  %v2229_v29 = vld [vmem:[#allocation3 + $0x1c18] sm:$0xff] }
 0x242   : > { %2692 = vmatmul.mubr.f32.gmra.mrb[26].mxu1 %v6424_v46  ;;  %3137 = vmatmul.mubr.f32.gmra.mrb[22].mxu0 %v6424_v46 }
 0x243   : > { %4687 = vmatpush1.bf16.msra.mxu1 %v4686_v42  ;;  %4959 = vmatpush1.bf16.msra.mxu0 %v4958_v43  ;;  %v2202_v42 = vld [vmem:[#allocation3 + $0x1b40] sm:$0xff]  ;;  %v4696_v43 = vpack.c.bf16 %v2203_v33, %v2195_v18  ;;  %v2237_v18 = vld [vmem:[#allocation3 + $0x1c58] sm:$0xff] }
 0x244   : > { %4689 = vmatprep.subr.bf16.mxu1 %v4688_v49  ;;  %4961 = vmatprep.subr.bf16.mxu0 %v4960_v56  ;;  %v2204_v49 = vld [vmem:[#allocation3 + $0x1b50] sm:$0xff]  ;;  %v2211_v56 = vld [vmem:[#allocation3 + $0x1b88] sm:$0xff]  ;;  %v4698_v54 = vpack.c.bf16 %v2202_v42, %v2194_v41  ;;  %v4976_v41 = vpack.c.bf16 %v2237_v18, %v2229_v29  ;;  %v2258_v18 = vld [vmem:[#allocation3 + $0x1d00] sm:$0xff] }
 0x245   : > { %2762 = vmatprep.mubr.f32.mxu1 %v6436_v44  ;;  %3207 = vmatprep.mubr.f32.mxu0 %v6436_v44  ;;  %v4970_v8 = vpack.c.bf16 %v2204_v49, %v2196_v2  ;;  %v2228_v42 = vld [vmem:[#allocation3 + $0x1c10] sm:$0xff]  ;;  %v2251_v2 = vld [vmem:[#allocation3 + $0x1cc8] sm:$0xff]  ;;  %v2245_v49 = vld [vmem:[#allocation3 + $0x1c98] sm:$0xff] }
 0x247   : > { %4691 = vmatpush1.bf16.msra.mxu1 %v4690_v15  ;;  %4963 = vmatpush1.bf16.msra.mxu0 %v4962_v16  ;;  %v2218_v15 = vld [vmem:[#allocation3 + $0x1bc0] sm:$0xff]  ;;  %v4700_v16 = vpack.c.bf16 %v2219_v0, %v2211_v56  ;;  %v2253_v56 = vld [vmem:[#allocation3 + $0x1cd8] sm:$0xff] }
 0x248   : > { %4693 = vmatprep.subr.bf16.mxu1 %v4692_v25  ;;  %4965 = vmatprep.subr.bf16.mxu0 %v4964_v26  ;;  %v2220_v25 = vld [vmem:[#allocation3 + $0x1bd0] sm:$0xff]  ;;  %v2227_v26 = vld [vmem:[#allocation3 + $0x1c08] sm:$0xff]  ;;  %v4702_v33 = vpack.c.bf16 %v2218_v15, %v2210_v9  ;;  %v4980_v9 = vpack.c.bf16 %v2253_v56, %v2245_v49  ;;  %v2274_v56 = vld [vmem:[#allocation3 + $0x1d80] sm:$0xff] }
 0x249   : > { %v4974_v34 = vpack.c.bf16 %v2220_v25, %v2212_v23  ;;  %v2244_v15 = vld [vmem:[#allocation3 + $0x1c90] sm:$0xff]  ;;  %v2267_v23 = vld [vmem:[#allocation3 + $0x1d48] sm:$0xff]  ;;  %v2261_v25 = vld [vmem:[#allocation3 + $0x1d18] sm:$0xff] }
 0x24b   : > { %4695 = vmatpush1.bf16.msra.mxu1 %v4694_v37  ;;  %4967 = vmatpush1.bf16.msra.mxu0 %v4966_v38  ;;  %v2234_v37 = vld [vmem:[#allocation3 + $0x1c40] sm:$0xff]  ;;  %v4704_v38 = vpack.c.bf16 %v2235_v27, %v2227_v26  ;;  %v2269_v26 = vld [vmem:[#allocation3 + $0x1d58] sm:$0xff] }
 0x24c   : > { %4697 = vmatprep.subr.bf16.mxu1 %v4696_v43  ;;  %4969 = vmatprep.subr.bf16.mxu0 %v4968_v47  ;;  %v2236_v43 = vld [vmem:[#allocation3 + $0x1c50] sm:$0xff]  ;;  %v2243_v47 = vld [vmem:[#allocation3 + $0x1c88] sm:$0xff]  ;;  %v4706_v0 = vpack.c.bf16 %v2234_v37, %v2226_v35  ;;  %v4984_v35 = vpack.c.bf16 %v2269_v26, %v2261_v25  ;;  %v2290_v26 = vld [vmem:[#allocation3 + $0x1e00] sm:$0xff] }
 0x24d   : > { %v4978_v1 = vpack.c.bf16 %v2236_v43, %v2228_v42  ;;  %v2260_v37 = vld [vmem:[#allocation3 + $0x1d10] sm:$0xff]  ;;  %v2283_v42 = vld [vmem:[#allocation3 + $0x1dc8] sm:$0xff]  ;;  %v2277_v43 = vld [vmem:[#allocation3 + $0x1d98] sm:$0xff] }
 0x24f   : > { %4699 = vmatpush1.bf16.msra.mxu1 %v4698_v54  ;;  %4971 = vmatpush1.bf16.msra.mxu0 %v4970_v8  ;;  %v2250_v54 = vld [vmem:[#allocation3 + $0x1cc0] sm:$0xff]  ;;  %v4708_v8 = vpack.c.bf16 %v2251_v2, %v2243_v47  ;;  %v2285_v47 = vld [vmem:[#allocation3 + $0x1dd8] sm:$0xff] }
 0x250   : > { %4701 = vmatprep.subr.bf16.mxu1 %v4700_v16  ;;  %4973 = vmatprep.subr.bf16.mxu0 %v4972_v60  ;;  %v2252_v16 = vld [vmem:[#allocation3 + $0x1cd0] sm:$0xff]  ;;  %v2259_v60 = vld [vmem:[#allocation3 + $0x1d08] sm:$0xff]  ;;  %v4710_v27 = vpack.c.bf16 %v2250_v54, %v2242_v3  ;;  %v4988_v3 = vpack.c.bf16 %v2285_v47, %v2277_v43  ;;  %v2306_v47 = vld [vmem:[#allocation3 + $0x1e80] sm:$0xff] }
 0x251   : > { %v4982_v29 = vpack.c.bf16 %v2252_v16, %v2244_v15  ;;  %v2276_v54 = vld [vmem:[#allocation3 + $0x1d90] sm:$0xff]  ;;  %v2299_v15 = vld [vmem:[#allocation3 + $0x1e48] sm:$0xff]  ;;  %v2293_v16 = vld [vmem:[#allocation3 + $0x1e18] sm:$0xff] }
 0x253   : > { %4703 = vmatpush1.bf16.msra.mxu1 %v4702_v33  ;;  %4975 = vmatpush1.bf16.msra.mxu0 %v4974_v34  ;;  %v2266_v33 = vld [vmem:[#allocation3 + $0x1d40] sm:$0xff]  ;;  %v4712_v34 = vpack.c.bf16 %v2267_v23, %v2259_v60  ;;  %v2301_v60 = vld [vmem:[#allocation3 + $0x1e58] sm:$0xff] }
 0x254   : > { %4705 = vmatprep.subr.bf16.mxu1 %v4704_v38  ;;  %4977 = vmatprep.subr.bf16.mxu0 %v4976_v41  ;;  %v2268_v38 = vld [vmem:[#allocation3 + $0x1d50] sm:$0xff]  ;;  %v2275_v41 = vld [vmem:[#allocation3 + $0x1d88] sm:$0xff]  ;;  %v4714_v2 = vpack.c.bf16 %v2266_v33, %v2258_v18  ;;  %v4992_v18 = vpack.c.bf16 %v2301_v60, %v2293_v16  ;;  %v2322_v60 = vld [vmem:[#allocation3 + $0x1f00] sm:$0xff] }
 0x255   : > { %v4986_v49 = vpack.c.bf16 %v2268_v38, %v2260_v37  ;;  %v2292_v33 = vld [vmem:[#allocation3 + $0x1e10] sm:$0xff]  ;;  %v2315_v37 = vld [vmem:[#allocation3 + $0x1ec8] sm:$0xff]  ;;  %v2309_v38 = vld [vmem:[#allocation3 + $0x1e98] sm:$0xff] }
 0x257   : > { %4707 = vmatpush1.bf16.msra.mxu1 %v4706_v0  ;;  %4979 = vmatpush1.bf16.msra.mxu0 %v4978_v1  ;;  %v2282_v0 = vld [vmem:[#allocation3 + $0x1dc0] sm:$0xff]  ;;  %v4716_v1 = vpack.c.bf16 %v2283_v42, %v2275_v41  ;;  %v2317_v41 = vld [vmem:[#allocation3 + $0x1ed8] sm:$0xff] }
 0x258   : > { %4709 = vmatprep.subr.bf16.mxu1 %v4708_v8  ;;  %4981 = vmatprep.subr.bf16.mxu0 %v4980_v9  ;;  %v2284_v8 = vld [vmem:[#allocation3 + $0x1dd0] sm:$0xff]  ;;  %v2291_v9 = vld [vmem:[#allocation3 + $0x1e08] sm:$0xff]  ;;  %v4718_v23 = vpack.c.bf16 %v2282_v0, %v2274_v56  ;;  %v4996_v56 = vpack.c.bf16 %v2317_v41, %v2309_v38  ;;  %v2338_v41 = vld [vmem:[#allocation3 + $0x1f80] sm:$0xff] }
 0x259   : > { %v4990_v25 = vpack.c.bf16 %v2284_v8, %v2276_v54  ;;  %v2308_v0 = vld [vmem:[#allocation3 + $0x1e90] sm:$0xff]  ;;  %v2331_v54 = vld [vmem:[#allocation3 + $0x1f48] sm:$0xff]  ;;  %v2325_v8 = vld [vmem:[#allocation3 + $0x1f18] sm:$0xff] }
 0x25b   : > { %4711 = vmatpush1.bf16.msra.mxu1 %v4710_v27  ;;  %4983 = vmatpush1.bf16.msra.mxu0 %v4982_v29  ;;  %v2298_v27 = vld [vmem:[#allocation3 + $0x1e40] sm:$0xff]  ;;  %v4720_v29 = vpack.c.bf16 %v2299_v15, %v2291_v9  ;;  %v2333_v9 = vld [vmem:[#allocation3 + $0x1f58] sm:$0xff] }
 0x25c   : > { %4713 = vmatprep.subr.bf16.mxu1 %v4712_v34  ;;  %4985 = vmatprep.subr.bf16.mxu0 %v4984_v35  ;;  %v2300_v34 = vld [vmem:[#allocation3 + $0x1e50] sm:$0xff]  ;;  %v2307_v35 = vld [vmem:[#allocation3 + $0x1e88] sm:$0xff]  ;;  %v4722_v42 = vpack.c.bf16 %v2298_v27, %v2290_v26  ;;  %v5000_v26 = vpack.c.bf16 %v2333_v9, %v2325_v8  ;;  %v2354_v9 = vld [vmem:[#allocation3 + $0x2000] sm:$0xff] }
 0x25d   : > { %v4994_v43 = vpack.c.bf16 %v2300_v34, %v2292_v33  ;;  %v2324_v27 = vld [vmem:[#allocation3 + $0x1f10] sm:$0xff]  ;;  %v2347_v33 = vld [vmem:[#allocation3 + $0x1fc8] sm:$0xff]  ;;  %v2341_v34 = vld [vmem:[#allocation3 + $0x1f98] sm:$0xff] }
 0x25f   : > { %4715 = vmatpush1.bf16.msra.mxu1 %v4714_v2  ;;  %4987 = vmatpush1.bf16.msra.mxu0 %v4986_v49  ;;  %v2314_v2 = vld [vmem:[#allocation3 + $0x1ec0] sm:$0xff]  ;;  %v4724_v49 = vpack.c.bf16 %v2315_v37, %v2307_v35  ;;  %v2349_v35 = vld [vmem:[#allocation3 + $0x1fd8] sm:$0xff] }
 0x260   : > { %4717 = vmatprep.subr.bf16.mxu1 %v4716_v1  ;;  %4989 = vmatprep.subr.bf16.mxu0 %v4988_v3  ;;  %v2316_v1 = vld [vmem:[#allocation3 + $0x1ed0] sm:$0xff]  ;;  %v2323_v3 = vld [vmem:[#allocation3 + $0x1f08] sm:$0xff]  ;;  %v4726_v15 = vpack.c.bf16 %v2314_v2, %v2306_v47  ;;  %v5004_v47 = vpack.c.bf16 %v2349_v35, %v2341_v34  ;;  %v2370_v35 = vld [vmem:[#allocation3 + $0x2080] sm:$0xff] }
 0x261   : > { %v4998_v16 = vpack.c.bf16 %v2316_v1, %v2308_v0  ;;  %v2340_v2 = vld [vmem:[#allocation3 + $0x1f90] sm:$0xff]  ;;  %v2363_v0 = vld [vmem:[#allocation3 + $0x2048] sm:$0xff]  ;;  %v2357_v1 = vld [vmem:[#allocation3 + $0x2018] sm:$0xff] }
 0x263   : > { %4719 = vmatpush1.bf16.msra.mxu1 %v4718_v23  ;;  %4991 = vmatpush1.bf16.msra.mxu0 %v4990_v25  ;;  %v2330_v23 = vld [vmem:[#allocation3 + $0x1f40] sm:$0xff]  ;;  %v4728_v25 = vpack.c.bf16 %v2331_v54, %v2323_v3  ;;  %v2365_v3 = vld [vmem:[#allocation3 + $0x2058] sm:$0xff] }
 0x264   : > { %4721 = vmatprep.subr.bf16.mxu1 %v4720_v29  ;;  %4993 = vmatprep.subr.bf16.mxu0 %v4992_v18  ;;  %v2332_v29 = vld [vmem:[#allocation3 + $0x1f50] sm:$0xff]  ;;  %v2339_v18 = vld [vmem:[#allocation3 + $0x1f88] sm:$0xff]  ;;  %v4730_v37 = vpack.c.bf16 %v2330_v23, %v2322_v60  ;;  %v2362_v60 = vld [vmem:[#allocation3 + $0x2040] sm:$0xff] }
 0x265   : > { %v5002_v38 = vpack.c.bf16 %v2332_v29, %v2324_v27  ;;  %v2356_v23 = vld [vmem:[#allocation3 + $0x2010] sm:$0xff]  ;;  %v2379_v27 = vld [vmem:[#allocation3 + $0x20c8] sm:$0xff]  ;;  %v2373_v29 = vld [vmem:[#allocation3 + $0x2098] sm:$0xff] }
 0x267   : > { %4723 = vmatpush1.bf16.msra.mxu1 %v4722_v42  ;;  %4995 = vmatpush1.bf16.msra.mxu0 %v4994_v43  ;;  %v2346_v42 = vld [vmem:[#allocation3 + $0x1fc0] sm:$0xff]  ;;  %v4732_v43 = vpack.c.bf16 %v2347_v33, %v2339_v18  ;;  %v2381_v18 = vld [vmem:[#allocation3 + $0x20d8] sm:$0xff]  ;;  %v4738_v33 = vpack.c.bf16 %v2362_v60, %v2354_v9  ;;  %v2396_v9 = vld [vmem:[#allocation3 + $0x2150] sm:$0xff] }
 0x268   : > { %4725 = vmatprep.subr.bf16.mxu1 %v4724_v49  ;;  %4997 = vmatprep.subr.bf16.mxu0 %v4996_v56  ;;  %v2348_v49 = vld [vmem:[#allocation3 + $0x1fd0] sm:$0xff]  ;;  %v2355_v56 = vld [vmem:[#allocation3 + $0x2008] sm:$0xff]  ;;  %v4734_v54 = vpack.c.bf16 %v2346_v42, %v2338_v41 }
 0x269   : > { %v5006_v8 = vpack.c.bf16 %v2348_v49, %v2340_v2  ;;  %v2380_v41 = vld [vmem:[#allocation3 + $0x20d0] sm:$0xff]  ;;  %v2395_v2 = vld [vmem:[#allocation3 + $0x2148] sm:$0xff]  ;;  %v2389_v49 = vld [vmem:[#allocation3 + $0x2118] sm:$0xff] }
 0x26a   : > { %v2403_v60 = vld [vmem:[#allocation3 + $0x2188] sm:$0xff] }
 0x26b   : > { %4727 = vmatpush1.bf16.msra.mxu1 %v4726_v15  ;;  %4999 = vmatpush1.bf16.msra.mxu0 %v4998_v16  ;;  %v4736_v15 = vpack.c.bf16 %v2363_v0, %v2355_v56  ;;  %v5008_v16 = vpack.c.bf16 %v2365_v3, %v2357_v1  ;;  %v2397_v56 = vld [vmem:[#allocation3 + $0x2158] sm:$0xff]  ;;  %v2386_v3 = vld [vmem:[#allocation3 + $0x2100] sm:$0xff] }
 0x26c   : > { %4729 = vmatprep.subr.bf16.mxu1 %v4728_v25  ;;  %5001 = vmatprep.subr.bf16.mxu0 %v5000_v26  ;;  %v2364_v25 = vld [vmem:[#allocation3 + $0x2050] sm:$0xff]  ;;  %v2371_v26 = vld [vmem:[#allocation3 + $0x2088] sm:$0xff] }
 0x26d   : > { %v5010_v34 = vpack.c.bf16 %v2364_v25, %v2356_v23  ;;  %v4740_v42 = vpack.c.bf16 %v2379_v27, %v2371_v26  ;;  %v2411_v23 = vld [vmem:[#allocation3 + $0x21c8] sm:$0xff]  ;;  %v2405_v25 = vld [vmem:[#allocation3 + $0x2198] sm:$0xff] }
 0x26e   : > { %v2413_v26 = vld [vmem:[#allocation3 + $0x21d8] sm:$0xff] }
 0x26f   : > { %4731 = vmatpush1.bf16.msra.mxu1 %v4730_v37  ;;  %5003 = vmatpush1.bf16.msra.mxu0 %v5002_v38  ;;  %v2378_v37 = vld [vmem:[#allocation3 + $0x20c0] sm:$0xff]  ;;  %v2372_v38 = vld [vmem:[#allocation3 + $0x2090] sm:$0xff] }
 0x270   : > { %4733 = vmatprep.subr.bf16.mxu1 %v4732_v43  ;;  %5005 = vmatprep.subr.bf16.mxu0 %v5004_v47  ;;  %v5012_v43 = vpack.c.bf16 %v2381_v18, %v2373_v29  ;;  %v2387_v47 = vld [vmem:[#allocation3 + $0x2108] sm:$0xff]  ;;  %v4742_v0 = vpack.c.bf16 %v2378_v37, %v2370_v35  ;;  %v5014_v1 = vpack.c.bf16 %v2380_v41, %v2372_v38  ;;  %v2402_v18 = vld [vmem:[#allocation3 + $0x2180] sm:$0xff]  ;;  %v2412_v35 = vld [vmem:[#allocation3 + $0x21d0] sm:$0xff] }
 0x271   : > { %v4748_v37 = vpack.c.bf16 %v2411_v23, %v2403_v60  ;;  %v5020_v38 = vpack.c.bf16 %v2413_v26, %v2405_v25  ;;  %v1335_v41 = vld [vmem:[#allocation3 + $0x28] sm:$0xff]  ;;  %v1361_v60 = vld [vmem:[#allocation3 + $0xf8] sm:$0xff]  ;;  %v1350_v26 = vld [vmem:[#allocation3 + $0xa0] sm:$0xff] }
 0x273   : > { %4735 = vmatpush1.bf16.msra.mxu1 %v4734_v54  ;;  %5007 = vmatpush1.bf16.msra.mxu0 %v5006_v8  ;;  %v2394_v54 = vld [vmem:[#allocation3 + $0x2140] sm:$0xff]  ;;  %v2388_v8 = vld [vmem:[#allocation3 + $0x2110] sm:$0xff] }
 0x274   : > { %4737 = vmatprep.subr.bf16.mxu1 %v4736_v15  ;;  %5009 = vmatprep.subr.bf16.mxu0 %v5008_v16  ;;  %v4744_v15 = vpack.c.bf16 %v2395_v2, %v2387_v47  ;;  %v5016_v16 = vpack.c.bf16 %v2397_v56, %v2389_v49  ;;  %v4746_v27 = vpack.c.bf16 %v2394_v54, %v2386_v3  ;;  %v1345_v47 = vld [vmem:[#allocation3 + $0x78] sm:$0xff]  ;;  %v1334_v56 = vld [vmem:[#allocation3 + $0x20] sm:$0xff]  ;;  %v1344_v3 = vld [vmem:[#allocation3 + $0x70] sm:$0xff] }
 0x275   : > { %v5018_v29 = vpack.c.bf16 %v2396_v9, %v2388_v8  ;;  %v1351_v9 = vld [vmem:[#allocation3 + $0xa8] sm:$0xff] }
 0x276   : > { %2763 = vmatmul.mubr.f32.vlgmr.msra.gmra.mrb[20].mxu1 %v6434_v39  ;;  %3208 = vmatmul.mubr.f32.vlgmr.msra.gmra.mrb[16].mxu0 %v6434_v39 }
 0x277   : > { %4739 = vmatpush1.bf16.msra.mxu1 %v4738_v33  ;;  %5011 = vmatpush1.bf16.msra.mxu0 %v5010_v34  ;;  %v2410_v33 = vld [vmem:[#allocation3 + $0x21c0] sm:$0xff]  ;;  %v2404_v34 = vld [vmem:[#allocation3 + $0x2190] sm:$0xff] }
 0x278   : > { %2768 = vmatprep.mubr.f32.mxu1 %v6444_v10  ;;  %3213 = vmatprep.mubr.f32.mxu0 %v6444_v10  ;;  %v4750_v2 = vpack.c.bf16 %v2410_v33, %v2402_v18  ;;  %v5022_v49 = vpack.c.bf16 %v2412_v35, %v2404_v34  ;;  %v1360_v18 = vld [vmem:[#allocation3 + $0xf0] sm:$0xff]  ;;  %v1367_v35 = vld [vmem:[#allocation3 + $0x128] sm:$0xff] }
 0x279   : > { %4741 = vmatprep.subr.bf16.mxu1 %v4740_v42  ;;  %5013 = vmatprep.subr.bf16.mxu0 %v5012_v43  ;;  %v1343_v42 = vld [vmem:[#allocation3 + $0x68] sm:$0xff]  ;;  %v1337_v43 = vld [vmem:[#allocation3 + $0x38] sm:$0xff] }
 0x27a   : > { %2769 = vmatmul.mubr.f32.gmra.mrb[22].mxu1 %v6442_v4  ;;  %3214 = vmatmul.mubr.f32.gmra.mrb[18].mxu0 %v6442_v4  ;;  %v5024_v54 = vpack.c.bf16 %v1343_v42, %v1335_v41  ;;  %v5296_v8 = vpack.c.bf16 %v1345_v47, %v1337_v43  ;;  %v1377_v41 = vld [vmem:[#allocation3 + $0x178] sm:$0xff]  ;;  %v1366_v47 = vld [vmem:[#allocation3 + $0x120] sm:$0xff] }
 0x27b   : > { %4743 = vmatpush1.bf16.msra.mxu1 %v4742_v0  ;;  %5015 = vmatpush1.bf16.msra.mxu0 %v5014_v1  ;;  %v1342_v0 = vld [vmem:[#allocation3 + $0x60] sm:$0xff]  ;;  %v1336_v1 = vld [vmem:[#allocation3 + $0x30] sm:$0xff] }
 0x27c   : > { %2774 = vmatprep.mubr.f32.mxu1 %v6452_v36  ;;  %3219 = vmatprep.mubr.f32.mxu0 %v6452_v36  ;;  %v5026_v23 = vpack.c.bf16 %v1342_v0, %v1334_v56  ;;  %v5298_v25 = vpack.c.bf16 %v1344_v3, %v1336_v1  ;;  %v1376_v56 = vld [vmem:[#allocation3 + $0x170] sm:$0xff]  ;;  %v1383_v3 = vld [vmem:[#allocation3 + $0x1a8] sm:$0xff] }
 0x27d   : > { %4745 = vmatprep.subr.bf16.mxu1 %v4744_v15  ;;  %5017 = vmatprep.subr.bf16.mxu0 %v5016_v16  ;;  %v1359_v15 = vld [vmem:[#allocation3 + $0xe8] sm:$0xff]  ;;  %v1353_v16 = vld [vmem:[#allocation3 + $0xb8] sm:$0xff] }
 0x27e   : > { %2775 = vmatmul.mubr.f32.gmra.mrb[24].mxu1 %v6450_v31  ;;  %3220 = vmatmul.mubr.f32.gmra.mrb[20].mxu0 %v6450_v31  ;;  %v5028_v33 = vpack.c.bf16 %v1359_v15, %v1351_v9  ;;  %v5300_v34 = vpack.c.bf16 %v1361_v60, %v1353_v16  ;;  %v1393_v9 = vld [vmem:[#allocation3 + $0x1f8] sm:$0xff]  ;;  %v1382_v60 = vld [vmem:[#allocation3 + $0x1a0] sm:$0xff] }
 0x27f   : > { %4747 = vmatpush1.bf16.msra.mxu1 %v4746_v27  ;;  %5019 = vmatpush1.bf16.msra.mxu0 %v5018_v29  ;;  %v1358_v27 = vld [vmem:[#allocation3 + $0xe0] sm:$0xff]  ;;  %v1352_v29 = vld [vmem:[#allocation3 + $0xb0] sm:$0xff] }
 0x280   : > { %2780 = vmatprep.mubr.f32.mxu1 %v6456_v5  ;;  %3225 = vmatprep.mubr.f32.mxu0 %v6456_v5  ;;  %v5030_v42 = vpack.c.bf16 %v1358_v27, %v1350_v26  ;;  %v5302_v43 = vpack.c.bf16 %v1360_v18, %v1352_v29  ;;  %v1384_v27 = vld [vmem:[#allocation3 + $0x1b0] sm:$0xff]  ;;  %v1399_v18 = vld [vmem:[#allocation3 + $0x228] sm:$0xff] }
 0x281   : > { %4749 = vmatprep.subr.bf16.mxu1 %v4748_v37  ;;  %5021 = vmatprep.subr.bf16.mxu0 %v5020_v38  ;;  %v1375_v37 = vld [vmem:[#allocation3 + $0x168] sm:$0xff]  ;;  %v1369_v38 = vld [vmem:[#allocation3 + $0x138] sm:$0xff]  ;;  %v1392_v29 = vld [vmem:[#allocation3 + $0x1f0] sm:$0xff] }
 0x282   : > { %2781 = vmatmul.mubr.f32.gmra.mrb[26].mxu1 %v6454_v59  ;;  %3226 = vmatmul.mubr.f32.gmra.mrb[22].mxu0 %v6454_v59  ;;  %v5032_v0 = vpack.c.bf16 %v1375_v37, %v1367_v35  ;;  %v5304_v1 = vpack.c.bf16 %v1377_v41, %v1369_v38  ;;  %v1409_v35 = vld [vmem:[#allocation3 + $0x278] sm:$0xff]  ;;  %v5310_v38 = vpack.c.bf16 %v1392_v29, %v1384_v27  ;;  %v1398_v41 = vld [vmem:[#allocation3 + $0x220] sm:$0xff]  ;;  %v1439_v27 = vld [vmem:[#allocation3 + $0x368] sm:$0xff] }
 0x283   : > { %4751 = vmatpush1.bf16.msra.mxu1 %v4750_v2  ;;  %5023 = vmatpush1.bf16.msra.mxu0 %v5022_v49  ;;  %v1374_v2 = vld [vmem:[#allocation3 + $0x160] sm:$0xff]  ;;  %v1368_v49 = vld [vmem:[#allocation3 + $0x130] sm:$0xff]  ;;  %v1433_v29 = vld [vmem:[#allocation3 + $0x338] sm:$0xff] }
 0x284   : > { %2851 = vmatprep.mubr.f32.mxu1 %v5826_v52  ;;  %3296 = vmatprep.mubr.f32.mxu0 %v5826_v52  ;;  %v5034_v15 = vpack.c.bf16 %v1374_v2, %v1366_v47  ;;  %v5306_v16 = vpack.c.bf16 %v1376_v56, %v1368_v49  ;;  %v1408_v49 = vld [vmem:[#allocation3 + $0x270] sm:$0xff]  ;;  %v1415_v56 = vld [vmem:[#allocation3 + $0x2a8] sm:$0xff] }
 0x285   : > { %5025 = vmatprep.subr.bf16.mxu1 %v5024_v54  ;;  %5297 = vmatprep.subr.bf16.mxu0 %v5296_v8  ;;  %v1391_v54 = vld [vmem:[#allocation3 + $0x1e8] sm:$0xff]  ;;  %v1385_v8 = vld [vmem:[#allocation3 + $0x1b8] sm:$0xff] }
 0x286   : > { %4389 = vmatmul.mubr.msk.f32.vlgmr.msra.gmra.mrb[20].mxu1 %vm2418_vm5, %v6440_v57  ;;  %4393 = vmatmul.mubr.msk.f32.vlgmr.msra.gmra.mrb[16].mxu0 %vm2418_vm5, %v6440_v57  ;;  %v5308_v26 = vpack.c.bf16 %v1393_v9, %v1385_v8 }
 0x287   : > { %5027 = vmatpush1.bf16.msra.mxu1 %v5026_v23  ;;  %5299 = vmatpush1.bf16.msra.mxu0 %v5298_v25  ;;  %v1390_v23 = vld [vmem:[#allocation3 + $0x1e0] sm:$0xff]  ;;  %v5036_v25 = vpack.c.bf16 %v1391_v54, %v1383_v3  ;;  %v1425_v3 = vld [vmem:[#allocation3 + $0x2f8] sm:$0xff] }
 0x288   : > { %2857 = vmatprep.mubr.f32.mxu1 %v5826_v52  ;;  %3302 = vmatprep.mubr.f32.mxu0 %v5826_v52  ;;  %v5038_v37 = vpack.c.bf16 %v1390_v23, %v1382_v60  ;;  %v1416_v60 = vld [vmem:[#allocation3 + $0x2b0] sm:$0xff] }
 0x289   : > { %5029 = vmatprep.subr.bf16.mxu1 %v5028_v33  ;;  %5301 = vmatprep.subr.bf16.mxu0 %v5300_v34  ;;  %v1407_v33 = vld [vmem:[#allocation3 + $0x268] sm:$0xff]  ;;  %v1401_v34 = vld [vmem:[#allocation3 + $0x238] sm:$0xff] }
 0x28a   : > { %4390 = vmatmul.mubr.msk.f32.gmra.mrb[22].mxu1 %vm2418_vm5, %v6438_v45  ;;  %4394 = vmatmul.mubr.msk.f32.gmra.mrb[18].mxu0 %vm2418_vm5, %v6438_v45  ;;  %v5040_v47 = vpack.c.bf16 %v1407_v33, %v1399_v18  ;;  %v5312_v2 = vpack.c.bf16 %v1409_v35, %v1401_v34  ;;  %v1441_v18 = vld [vmem:[#allocation3 + $0x378] sm:$0xff] }
 0x28b   : > { %5031 = vmatpush1.bf16.msra.mxu1 %v5030_v42  ;;  %5303 = vmatpush1.bf16.msra.mxu0 %v5302_v43  ;;  %v1406_v42 = vld [vmem:[#allocation3 + $0x260] sm:$0xff]  ;;  %v1400_v43 = vld [vmem:[#allocation3 + $0x230] sm:$0xff] }
 0x28c   : > { %2863 = vmatprep.mubr.f32.mxu1 %v5826_v52  ;;  %3308 = vmatprep.mubr.f32.mxu0 %v5826_v52  ;;  %v5042_v54 = vpack.c.bf16 %v1406_v42, %v1398_v41  ;;  %v5314_v8 = vpack.c.bf16 %v1408_v49, %v1400_v43  ;;  %v5320_v41 = vpack.c.bf16 %v1441_v18, %v1433_v29  ;;  %v1440_v42 = vld [vmem:[#allocation3 + $0x370] sm:$0xff]  ;;  %v1447_v43 = vld [vmem:[#allocation3 + $0x3a8] sm:$0xff]  ;;  %v1457_v49 = vld [vmem:[#allocation3 + $0x3f8] sm:$0xff] }
 0x28d   : > { %5033 = vmatprep.subr.bf16.mxu1 %v5032_v0  ;;  %5305 = vmatprep.subr.bf16.mxu0 %v5304_v1  ;;  %v1423_v0 = vld [vmem:[#allocation3 + $0x2e8] sm:$0xff]  ;;  %v1417_v1 = vld [vmem:[#allocation3 + $0x2b8] sm:$0xff]  ;;  %v1462_v18 = vld [vmem:[#allocation3 + $0x420] sm:$0xff] }
 0x28e   : > { %4391 = vmatmul.mubr.msk.f32.gmra.mrb[24].mxu1 %vm2418_vm5, %v6448_v22  ;;  %4395 = vmatmul.mubr.msk.f32.gmra.mrb[20].mxu0 %vm2418_vm5, %v6448_v22  ;;  %v5044_v9 = vpack.c.bf16 %v1423_v0, %v1415_v56  ;;  %v5316_v23 = vpack.c.bf16 %v1425_v3, %v1417_v1  ;;  %v1446_v3 = vld [vmem:[#allocation3 + $0x3a0] sm:$0xff] }
 0x28f   : > { %5035 = vmatpush1.bf16.msra.mxu1 %v5034_v15  ;;  %5307 = vmatpush1.bf16.msra.mxu0 %v5306_v16  ;;  %v1414_v15 = vld [vmem:[#allocation3 + $0x2a0] sm:$0xff] }
 0x290   : > { %2869 = vmatprep.mubr.f32.mxu1 %v5826_v52  ;;  %3314 = vmatprep.mubr.f32.mxu0 %v5826_v52  ;;  %v1422_v16 = vld [vmem:[#allocation3 + $0x2e0] sm:$0xff] }
 0x291   : > { %5037 = vmatprep.subr.bf16.mxu1 %v5036_v25  ;;  %5309 = vmatprep.subr.bf16.mxu0 %v5308_v26  ;;  %v1424_v25 = vld [vmem:[#allocation3 + $0x2f0] sm:$0xff]  ;;  %v1431_v26 = vld [vmem:[#allocation3 + $0x328] sm:$0xff]  ;;  %v5046_v33 = vpack.c.bf16 %v1422_v16, %v1414_v15 }
 0x292   : > { %4392 = vmatmul.mubr.msk.f32.gmra.mrb[26].mxu1 %vm2418_vm5, %v6446_v14  ;;  %4396 = vmatmul.mubr.msk.f32.gmra.mrb[22].mxu0 %vm2418_vm5, %v6446_v14  ;;  %v5318_v34 = vpack.c.bf16 %v1424_v25, %v1416_v60  ;;  %v5048_v35 = vpack.c.bf16 %v1439_v27, %v1431_v26  ;;  %v1456_v15 = vld [vmem:[#allocation3 + $0x3f0] sm:$0xff]  ;;  %v1463_v16 = vld [vmem:[#allocation3 + $0x428] sm:$0xff]  ;;  %v1473_v25 = vld [vmem:[#allocation3 + $0x478] sm:$0xff] }
 0x293   : > { %5039 = vmatpush1.bf16.msra.mxu1 %v5038_v37  ;;  %3385 = vmatprep.mubr.f32.mxu1 %v6356_v63  ;;  %v1438_v37 = vld [vmem:[#allocation3 + $0x360] sm:$0xff]  ;;  %v1471_v60 = vld [vmem:[#allocation3 + $0x468] sm:$0xff] }
 0x294   : > { %5311 = vmatpush1.bf16.msra.mxu0 %v5310_v38  ;;  %3830 = vmatprep.mubr.f32.mxu0 %v6356_v63  ;;  %v1430_v63 = vld [vmem:[#allocation3 + $0x320] sm:$0xff]  ;;  %v1432_v38 = vld [vmem:[#allocation3 + $0x330] sm:$0xff]  ;;  %v5056_v29 = vpack.c.bf16 %v1471_v60, %v1463_v16 }
 0x295   : > { %5041 = vmatprep.subr.bf16.mxu1 %v5040_v47  ;;  %5313 = vmatprep.subr.bf16.mxu0 %v5312_v2  ;;  %v1455_v47 = vld [vmem:[#allocation3 + $0x3e8] sm:$0xff]  ;;  %v1449_v2 = vld [vmem:[#allocation3 + $0x3b8] sm:$0xff]  ;;  %v5050_v56 = vpack.c.bf16 %v1438_v37, %v1430_v63  ;;  %v5322_v0 = vpack.c.bf16 %v1440_v42, %v1432_v38  ;;  %v1472_v63 = vld [vmem:[#allocation3 + $0x470] sm:$0xff] }
 0x296   : > { %v5052_v1 = vpack.c.bf16 %v1455_v47, %v1447_v43  ;;  %v1479_v37 = vld [vmem:[#allocation3 + $0x4a8] sm:$0xff]  ;;  %v1489_v42 = vld [vmem:[#allocation3 + $0x4f8] sm:$0xff] }
 0x297   : > { %5043 = vmatpush1.bf16.msra.mxu1 %v5042_v54  ;;  %v1454_v54 = vld [vmem:[#allocation3 + $0x3e0] sm:$0xff]  ;;  %v1487_v38 = vld [vmem:[#allocation3 + $0x4e8] sm:$0xff] }
 0x298   : > { %5315 = vmatpush1.bf16.msra.mxu0 %v5314_v8  ;;  %5045 = vmatprep.subr.bf16.mxu1 %v5044_v9  ;;  %v1448_v8 = vld [vmem:[#allocation3 + $0x3b0] sm:$0xff]  ;;  %v5324_v9 = vpack.c.bf16 %v1457_v49, %v1449_v2  ;;  %v5054_v26 = vpack.c.bf16 %v1454_v54, %v1446_v3  ;;  %v5060_v2 = vpack.c.bf16 %v1487_v38, %v1479_v37  ;;  %v1478_v49 = vld [vmem:[#allocation3 + $0x4a0] sm:$0xff]  ;;  %v1495_v54 = vld [vmem:[#allocation3 + $0x528] sm:$0xff] }
 0x299   : > { %5317 = vmatprep.subr.bf16.mxu0 %v5316_v23  ;;  %v1465_v23 = vld [vmem:[#allocation3 + $0x438] sm:$0xff]  ;;  %v5326_v27 = vpack.c.bf16 %v1456_v15, %v1448_v8  ;;  %v1488_v3 = vld [vmem:[#allocation3 + $0x4f0] sm:$0xff]  ;;  %v1503_v8 = vld [vmem:[#allocation3 + $0x568] sm:$0xff] }
 0x29a   : > { %v1505_v15 = vld [vmem:[#allocation3 + $0x578] sm:$0xff] }
 0x29b   : > { %5047 = vmatpush1.bf16.msra.mxu1 %v5046_v33  ;;  %v1470_v33 = vld [vmem:[#allocation3 + $0x460] sm:$0xff] }
 0x29c   : > { %5319 = vmatpush1.bf16.msra.mxu0 %v5318_v34  ;;  %5049 = vmatprep.subr.bf16.mxu1 %v5048_v35  ;;  %v1464_v34 = vld [vmem:[#allocation3 + $0x430] sm:$0xff]  ;;  %v5328_v35 = vpack.c.bf16 %v1473_v25, %v1465_v23  ;;  %v5058_v43 = vpack.c.bf16 %v1470_v33, %v1462_v18  ;;  %v5064_v23 = vpack.c.bf16 %v1503_v8, %v1495_v54  ;;  %v1494_v25 = vld [vmem:[#allocation3 + $0x520] sm:$0xff]  ;;  %v1511_v33 = vld [vmem:[#allocation3 + $0x5a8] sm:$0xff] }
 0x29d   : > { %5321 = vmatprep.subr.bf16.mxu0 %v5320_v41  ;;  %v1481_v41 = vld [vmem:[#allocation3 + $0x4b8] sm:$0xff]  ;;  %v5330_v47 = vpack.c.bf16 %v1472_v63, %v1464_v34  ;;  %v1504_v18 = vld [vmem:[#allocation3 + $0x570] sm:$0xff]  ;;  %v1519_v34 = vld [vmem:[#allocation3 + $0x5e8] sm:$0xff] }
 0x29e   : > { %v1521_v63 = vld [vmem:[#allocation3 + $0x5f8] sm:$0xff] }
 0x29f   : > { %5051 = vmatpush1.bf16.msra.mxu1 %v5050_v56  ;;  %v1486_v56 = vld [vmem:[#allocation3 + $0x4e0] sm:$0xff] }
 0x2a0   : > { %5323 = vmatpush1.bf16.msra.mxu0 %v5322_v0  ;;  %5053 = vmatprep.subr.bf16.mxu1 %v5052_v1  ;;  %v1480_v0 = vld [vmem:[#allocation3 + $0x4b0] sm:$0xff]  ;;  %v5332_v1 = vpack.c.bf16 %v1489_v42, %v1481_v41  ;;  %v5062_v16 = vpack.c.bf16 %v1486_v56, %v1478_v49  ;;  %v5068_v41 = vpack.c.bf16 %v1519_v34, %v1511_v33  ;;  %v1510_v42 = vld [vmem:[#allocation3 + $0x5a0] sm:$0xff]  ;;  %v1527_v56 = vld [vmem:[#allocation3 + $0x628] sm:$0xff] }
 0x2a1   : > { %5325 = vmatprep.subr.bf16.mxu0 %v5324_v9  ;;  %v1497_v9 = vld [vmem:[#allocation3 + $0x538] sm:$0xff]  ;;  %v5334_v60 = vpack.c.bf16 %v1488_v3, %v1480_v0  ;;  %v1520_v49 = vld [vmem:[#allocation3 + $0x5f0] sm:$0xff]  ;;  %v1535_v0 = vld [vmem:[#allocation3 + $0x668] sm:$0xff] }
 0x2a2   : > { %v1537_v3 = vld [vmem:[#allocation3 + $0x678] sm:$0xff] }
 0x2a3   : > { %5055 = vmatpush1.bf16.msra.mxu1 %v5054_v26  ;;  %v1502_v26 = vld [vmem:[#allocation3 + $0x560] sm:$0xff] }
 0x2a4   : > { %5327 = vmatpush1.bf16.msra.mxu0 %v5326_v27  ;;  %5057 = vmatprep.subr.bf16.mxu1 %v5056_v29  ;;  %v1496_v27 = vld [vmem:[#allocation3 + $0x530] sm:$0xff]  ;;  %v5336_v29 = vpack.c.bf16 %v1505_v15, %v1497_v9  ;;  %v5066_v37 = vpack.c.bf16 %v1502_v26, %v1494_v25  ;;  %v5072_v9 = vpack.c.bf16 %v1535_v0, %v1527_v56  ;;  %v1526_v15 = vld [vmem:[#allocation3 + $0x620] sm:$0xff]  ;;  %v1543_v26 = vld [vmem:[#allocation3 + $0x6a8] sm:$0xff] }
 0x2a5   : > { %5329 = vmatprep.subr.bf16.mxu0 %v5328_v35  ;;  %v1513_v35 = vld [vmem:[#allocation3 + $0x5b8] sm:$0xff]  ;;  %v5338_v38 = vpack.c.bf16 %v1504_v18, %v1496_v27  ;;  %v1536_v25 = vld [vmem:[#allocation3 + $0x670] sm:$0xff]  ;;  %v1551_v27 = vld [vmem:[#allocation3 + $0x6e8] sm:$0xff] }
 0x2a6   : > { %v1553_v18 = vld [vmem:[#allocation3 + $0x6f8] sm:$0xff] }
 0x2a7   : > { %5059 = vmatpush1.bf16.msra.mxu1 %v5058_v43  ;;  %v1518_v43 = vld [vmem:[#allocation3 + $0x5e0] sm:$0xff] }
 0x2a8   : > { %5331 = vmatpush1.bf16.msra.mxu0 %v5330_v47  ;;  %5061 = vmatprep.subr.bf16.mxu1 %v5060_v2  ;;  %v1512_v47 = vld [vmem:[#allocation3 + $0x5b0] sm:$0xff]  ;;  %v5340_v2 = vpack.c.bf16 %v1521_v63, %v1513_v35  ;;  %v5070_v54 = vpack.c.bf16 %v1518_v43, %v1510_v42  ;;  %v5076_v35 = vpack.c.bf16 %v1551_v27, %v1543_v26  ;;  %v1542_v63 = vld [vmem:[#allocation3 + $0x6a0] sm:$0xff]  ;;  %v1559_v43 = vld [vmem:[#allocation3 + $0x728] sm:$0xff] }
 0x2a9   : > { %5333 = vmatprep.subr.bf16.mxu0 %v5332_v1  ;;  %v1529_v1 = vld [vmem:[#allocation3 + $0x638] sm:$0xff]  ;;  %v5342_v8 = vpack.c.bf16 %v1520_v49, %v1512_v47  ;;  %v1552_v42 = vld [vmem:[#allocation3 + $0x6f0] sm:$0xff]  ;;  %v1567_v47 = vld [vmem:[#allocation3 + $0x768] sm:$0xff] }
 0x2aa   : > { %v1569_v49 = vld [vmem:[#allocation3 + $0x778] sm:$0xff] }
 0x2ab   : > { %5063 = vmatpush1.bf16.msra.mxu1 %v5062_v16  ;;  %v1534_v16 = vld [vmem:[#allocation3 + $0x660] sm:$0xff] }
 0x2ac   : > { %5335 = vmatpush1.bf16.msra.mxu0 %v5334_v60  ;;  %5065 = vmatprep.subr.bf16.mxu1 %v5064_v23  ;;  %v1528_v60 = vld [vmem:[#allocation3 + $0x630] sm:$0xff]  ;;  %v5344_v23 = vpack.c.bf16 %v1537_v3, %v1529_v1  ;;  %v5074_v33 = vpack.c.bf16 %v1534_v16, %v1526_v15  ;;  %v5080_v1 = vpack.c.bf16 %v1567_v47, %v1559_v43  ;;  %v1558_v3 = vld [vmem:[#allocation3 + $0x720] sm:$0xff]  ;;  %v1575_v16 = vld [vmem:[#allocation3 + $0x7a8] sm:$0xff] }
 0x2ad   : > { %5337 = vmatprep.subr.bf16.mxu0 %v5336_v29  ;;  %v1545_v29 = vld [vmem:[#allocation3 + $0x6b8] sm:$0xff]  ;;  %v5346_v34 = vpack.c.bf16 %v1536_v25, %v1528_v60  ;;  %v1568_v15 = vld [vmem:[#allocation3 + $0x770] sm:$0xff]  ;;  %v1583_v60 = vld [vmem:[#allocation3 + $0x7e8] sm:$0xff] }
 0x2ae   : > { %v1585_v25 = vld [vmem:[#allocation3 + $0x7f8] sm:$0xff] }
 0x2af   : > { %5067 = vmatpush1.bf16.msra.mxu1 %v5066_v37  ;;  %v1550_v37 = vld [vmem:[#allocation3 + $0x6e0] sm:$0xff] }
 0x2b0   : > { %5339 = vmatpush1.bf16.msra.mxu0 %v5338_v38  ;;  %5069 = vmatprep.subr.bf16.mxu1 %v5068_v41  ;;  %v1544_v38 = vld [vmem:[#allocation3 + $0x6b0] sm:$0xff]  ;;  %v5348_v41 = vpack.c.bf16 %v1553_v18, %v1545_v29  ;;  %v5078_v56 = vpack.c.bf16 %v1550_v37, %v1542_v63  ;;  %v5084_v29 = vpack.c.bf16 %v1583_v60, %v1575_v16  ;;  %v1574_v18 = vld [vmem:[#allocation3 + $0x7a0] sm:$0xff]  ;;  %v1591_v37 = vld [vmem:[#allocation3 + $0x828] sm:$0xff] }
 0x2b1   : > { %5341 = vmatprep.subr.bf16.mxu0 %v5340_v2  ;;  %v1561_v2 = vld [vmem:[#allocation3 + $0x738] sm:$0xff]  ;;  %v5350_v0 = vpack.c.bf16 %v1552_v42, %v1544_v38  ;;  %v1584_v63 = vld [vmem:[#allocation3 + $0x7f0] sm:$0xff]  ;;  %v1599_v38 = vld [vmem:[#allocation3 + $0x868] sm:$0xff] }
 0x2b2   : > { %v1601_v42 = vld [vmem:[#allocation3 + $0x878] sm:$0xff] }
 0x2b3   : > { %5071 = vmatpush1.bf16.msra.mxu1 %v5070_v54  ;;  %v1566_v54 = vld [vmem:[#allocation3 + $0x760] sm:$0xff] }
 0x2b4   : > { %5343 = vmatpush1.bf16.msra.mxu0 %v5342_v8  ;;  %5073 = vmatprep.subr.bf16.mxu1 %v5072_v9  ;;  %v1560_v8 = vld [vmem:[#allocation3 + $0x730] sm:$0xff]  ;;  %v5352_v9 = vpack.c.bf16 %v1569_v49, %v1561_v2  ;;  %v5082_v26 = vpack.c.bf16 %v1566_v54, %v1558_v3  ;;  %v5088_v2 = vpack.c.bf16 %v1599_v38, %v1591_v37  ;;  %v1607_v54 = vld [vmem:[#allocation3 + $0x8a8] sm:$0xff] }
 0x2b5   : > { %5345 = vmatprep.subr.bf16.mxu0 %v5344_v23  ;;  %v1577_v23 = vld [vmem:[#allocation3 + $0x7b8] sm:$0xff]  ;;  %v5354_v27 = vpack.c.bf16 %v1568_v15, %v1560_v8  ;;  %v1600_v3 = vld [vmem:[#allocation3 + $0x870] sm:$0xff]  ;;  %v1615_v8 = vld [vmem:[#allocation3 + $0x8e8] sm:$0xff] }
 0x2b6   : > { %v1617_v15 = vld [vmem:[#allocation3 + $0x8f8] sm:$0xff] }
 0x2b7   : > { %5075 = vmatpush1.bf16.msra.mxu1 %v5074_v33  ;;  %v1582_v33 = vld [vmem:[#allocation3 + $0x7e0] sm:$0xff] }
 0x2b8   : > { %5347 = vmatpush1.bf16.msra.mxu0 %v5346_v34  ;;  %5077 = vmatprep.subr.bf16.mxu1 %v5076_v35  ;;  %v1576_v34 = vld [vmem:[#allocation3 + $0x7b0] sm:$0xff]  ;;  %v5356_v35 = vpack.c.bf16 %v1585_v25, %v1577_v23  ;;  %v5086_v43 = vpack.c.bf16 %v1582_v33, %v1574_v18  ;;  %v5092_v23 = vpack.c.bf16 %v1615_v8, %v1607_v54  ;;  %v1606_v25 = vld [vmem:[#allocation3 + $0x8a0] sm:$0xff]  ;;  %v1623_v33 = vld [vmem:[#allocation3 + $0x928] sm:$0xff] }
 0x2b9   : > { %5349 = vmatprep.subr.bf16.mxu0 %v5348_v41  ;;  %v1593_v41 = vld [vmem:[#allocation3 + $0x838] sm:$0xff]  ;;  %v5358_v47 = vpack.c.bf16 %v1584_v63, %v1576_v34  ;;  %v1616_v18 = vld [vmem:[#allocation3 + $0x8f0] sm:$0xff]  ;;  %v1631_v34 = vld [vmem:[#allocation3 + $0x968] sm:$0xff] }
 0x2ba   : > { %v5360_v49 = vpack.c.bf16 %v1601_v42, %v1593_v41  ;;  %v1633_v63 = vld [vmem:[#allocation3 + $0x978] sm:$0xff]  ;;  %v5096_v41 = vpack.c.bf16 %v1631_v34, %v1623_v33  ;;  %v1622_v42 = vld [vmem:[#allocation3 + $0x920] sm:$0xff]  ;;  %v1656_v34 = vld [vmem:[#allocation3 + $0xa30] sm:$0xff] }
 0x2bb   : > { %5079 = vmatpush1.bf16.msra.mxu1 %v5078_v56  ;;  %v1590_v56 = vld [vmem:[#allocation3 + $0x820] sm:$0xff] }
 0x2bc   : > { %5351 = vmatpush1.bf16.msra.mxu0 %v5350_v0  ;;  %5081 = vmatprep.subr.bf16.mxu1 %v5080_v1  ;;  %v1598_v0 = vld [vmem:[#allocation3 + $0x860] sm:$0xff]  ;;  %v1592_v1 = vld [vmem:[#allocation3 + $0x830] sm:$0xff] }
 0x2bd   : > { %5353 = vmatprep.subr.bf16.mxu0 %v5352_v9  ;;  %v1609_v9 = vld [vmem:[#allocation3 + $0x8b8] sm:$0xff]  ;;  %v5090_v16 = vpack.c.bf16 %v1598_v0, %v1590_v56  ;;  %v5362_v60 = vpack.c.bf16 %v1600_v3, %v1592_v1  ;;  %v1647_v56 = vld [vmem:[#allocation3 + $0x9e8] sm:$0xff]  ;;  %v1638_v8 = vld [vmem:[#allocation3 + $0x9a0] sm:$0xff] }
 0x2be   : > { %v1649_v0 = vld [vmem:[#allocation3 + $0x9f8] sm:$0xff]  ;;  %v1662_v33 = vld [vmem:[#allocation3 + $0xa60] sm:$0xff] }
 0x2bf   : > { %5083 = vmatpush1.bf16.msra.mxu1 %v5082_v26  ;;  %v1614_v26 = vld [vmem:[#allocation3 + $0x8e0] sm:$0xff] }
 0x2c0   : > { %5355 = vmatpush1.bf16.msra.mxu0 %v5354_v27  ;;  %5085 = vmatprep.subr.bf16.mxu1 %v5084_v29  ;;  %v1608_v27 = vld [vmem:[#allocation3 + $0x8b0] sm:$0xff]  ;;  %v5364_v29 = vpack.c.bf16 %v1617_v15, %v1609_v9  ;;  %v5094_v37 = vpack.c.bf16 %v1614_v26, %v1606_v25  ;;  %v1646_v9 = vld [vmem:[#allocation3 + $0x9e0] sm:$0xff]  ;;  %v1665_v25 = vld [vmem:[#allocation3 + $0xa78] sm:$0xff] }
 0x2c1   : > { %5357 = vmatprep.subr.bf16.mxu0 %v5356_v35  ;;  %v1625_v35 = vld [vmem:[#allocation3 + $0x938] sm:$0xff]  ;;  %v5366_v38 = vpack.c.bf16 %v1616_v18, %v1608_v27  ;;  %v1640_v15 = vld [vmem:[#allocation3 + $0x9b0] sm:$0xff]  ;;  %v5102_v26 = vpack.c.bf16 %v1646_v9, %v1638_v8  ;;  %v1654_v18 = vld [vmem:[#allocation3 + $0xa20] sm:$0xff] }
 0x2c2   : > { %v1686_v8 = vld [vmem:[#allocation3 + $0xb20] sm:$0xff] }
 0x2c3   : > { %5087 = vmatpush1.bf16.msra.mxu1 %v5086_v43  ;;  %v1630_v43 = vld [vmem:[#allocation3 + $0x960] sm:$0xff] }
 0x2c4   : > { %5359 = vmatpush1.bf16.msra.mxu0 %v5358_v47  ;;  %5089 = vmatprep.subr.bf16.mxu1 %v5088_v2  ;;  %v1624_v47 = vld [vmem:[#allocation3 + $0x930] sm:$0xff]  ;;  %v5368_v2 = vpack.c.bf16 %v1633_v63, %v1625_v35  ;;  %v5098_v1 = vpack.c.bf16 %v1630_v43, %v1622_v42  ;;  %v1671_v63 = vld [vmem:[#allocation3 + $0xaa8] sm:$0xff]  ;;  %v1694_v9 = vld [vmem:[#allocation3 + $0xb60] sm:$0xff] }
 0x2c5   : > { %5361 = vmatprep.subr.bf16.mxu0 %v5360_v49  ;;  %v1639_v49 = vld [vmem:[#allocation3 + $0x9a8] sm:$0xff] }
 0x2c6   : > { %3386 = vmatmul.mubr.f32.vlgmr.msra.gmra.mrb[28].mxu1 %v6352_v55  ;;  %v5100_v54 = vpack.c.bf16 %v1647_v56, %v1639_v49  ;;  %v1680_v56 = vld [vmem:[#allocation3 + $0xaf0] sm:$0xff] }
 0x2c7   : > { %3831 = vmatmul.mubr.f32.vlgmr.msra.gmra.mrb[24].mxu0 %v6352_v55  ;;  %3391 = vmatprep.mubr.f32.mxu1 %v6368_v20  ;;  %v1632_v55 = vld [vmem:[#allocation3 + $0x970] sm:$0xff] }
 0x2c8   : > { %5091 = vmatpush1.bf16.msra.mxu1 %v5090_v16  ;;  %3836 = vmatprep.mubr.f32.mxu0 %v6368_v20  ;;  %v1641_v20 = vld [vmem:[#allocation3 + $0x9b8] sm:$0xff]  ;;  %v5370_v3 = vpack.c.bf16 %v1632_v55, %v1624_v47  ;;  %v1670_v47 = vld [vmem:[#allocation3 + $0xaa0] sm:$0xff]  ;;  %v1672_v55 = vld [vmem:[#allocation3 + $0xab0] sm:$0xff] }
 0x2c9   : > { %5363 = vmatpush1.bf16.msra.mxu0 %v5362_v60  ;;  %5093 = vmatprep.subr.bf16.mxu1 %v5092_v23  ;;  %v5372_v16 = vpack.c.bf16 %v1649_v0, %v1641_v20  ;;  %v1655_v60 = vld [vmem:[#allocation3 + $0xa28] sm:$0xff]  ;;  %v1689_v0 = vld [vmem:[#allocation3 + $0xb38] sm:$0xff] }
 0x2ca   : > { %3392 = vmatmul.mubr.f32.gmra.mrb[30].mxu1 %v6364_v12  ;;  %5365 = vmatprep.subr.bf16.mxu0 %v5364_v29  ;;  %v1663_v23 = vld [vmem:[#allocation3 + $0xa68] sm:$0xff] }
 0x2cb   : > { %3837 = vmatmul.mubr.f32.gmra.mrb[26].mxu0 %v6364_v12  ;;  %3397 = vmatprep.mubr.f32.mxu1 %v6358_v6  ;;  %v1648_v12 = vld [vmem:[#allocation3 + $0x9f0] sm:$0xff]  ;;  %v5104_v29 = vpack.c.bf16 %v1663_v23, %v1655_v60  ;;  %v1687_v20 = vld [vmem:[#allocation3 + $0xb28] sm:$0xff] }
 0x2cc   : > { %5095 = vmatpush1.bf16.msra.mxu1 %v5094_v37  ;;  %3842 = vmatprep.mubr.f32.mxu0 %v6358_v6  ;;  %v1657_v6 = vld [vmem:[#allocation3 + $0xa38] sm:$0xff]  ;;  %v5374_v27 = vpack.c.bf16 %v1648_v12, %v1640_v15  ;;  %v1679_v37 = vld [vmem:[#allocation3 + $0xae8] sm:$0xff]  ;;  %v1688_v15 = vld [vmem:[#allocation3 + $0xb30] sm:$0xff] }
 0x2cd   : > { %5367 = vmatpush1.bf16.msra.mxu0 %v5366_v38  ;;  %5097 = vmatprep.subr.bf16.mxu1 %v5096_v41  ;;  %v5376_v35 = vpack.c.bf16 %v1665_v25, %v1657_v6  ;;  %v1681_v38 = vld [vmem:[#allocation3 + $0xaf8] sm:$0xff]  ;;  %v5106_v41 = vpack.c.bf16 %v1662_v33, %v1654_v18  ;;  %v5108_v43 = vpack.c.bf16 %v1679_v37, %v1671_v63  ;;  %v1696_v12 = vld [vmem:[#allocation3 + $0xb70] sm:$0xff]  ;;  %v1703_v60 = vld [vmem:[#allocation3 + $0xba8] sm:$0xff] }
 0x2ce   : > { %3398 = vmatmul.mubr.f32.gmra.mrb[32].mxu1 %v6354_v62  ;;  %5369 = vmatprep.subr.bf16.mxu0 %v5368_v2  ;;  %v1678_v2 = vld [vmem:[#allocation3 + $0xae0] sm:$0xff]  ;;  %v1711_v23 = vld [vmem:[#allocation3 + $0xbe8] sm:$0xff]  ;;  %v1705_v6 = vld [vmem:[#allocation3 + $0xbb8] sm:$0xff] }
 0x2cf   : > { %3843 = vmatmul.mubr.f32.gmra.mrb[28].mxu0 %v6354_v62  ;;  %3403 = vmatprep.mubr.f32.mxu1 %v6370_v21  ;;  %v1664_v62 = vld [vmem:[#allocation3 + $0xa70] sm:$0xff]  ;;  %v1713_v25 = vld [vmem:[#allocation3 + $0xbf8] sm:$0xff]  ;;  %v1702_v18 = vld [vmem:[#allocation3 + $0xba0] sm:$0xff] }
 0x2d0   : > { %5099 = vmatpush1.bf16.msra.mxu1 %v5098_v1  ;;  %3848 = vmatprep.mubr.f32.mxu0 %v6370_v21  ;;  %v1673_v21 = vld [vmem:[#allocation3 + $0xab8] sm:$0xff]  ;;  %v5378_v42 = vpack.c.bf16 %v1664_v62, %v1656_v34  ;;  %v1710_v33 = vld [vmem:[#allocation3 + $0xbe0] sm:$0xff]  ;;  %v1704_v34 = vld [vmem:[#allocation3 + $0xbb0] sm:$0xff] }
 0x2d1   : > { %5371 = vmatpush1.bf16.msra.mxu0 %v5370_v3  ;;  %5101 = vmatprep.subr.bf16.mxu1 %v5100_v54  ;;  %v5380_v49 = vpack.c.bf16 %v1681_v38, %v1673_v21  ;;  %v1697_v1 = vld [vmem:[#allocation3 + $0xb78] sm:$0xff]  ;;  %v5110_v3 = vpack.c.bf16 %v1678_v2, %v1670_v47  ;;  %v1712_v62 = vld [vmem:[#allocation3 + $0xbf0] sm:$0xff]  ;;  %v1719_v63 = vld [vmem:[#allocation3 + $0xc28] sm:$0xff] }
 0x2d2   : > { %3404 = vmatmul.mubr.f32.gmra.mrb[34].mxu1 %v6366_v13  ;;  %5373 = vmatprep.subr.bf16.mxu0 %v5372_v16  ;;  %v5384_v16 = vpack.c.bf16 %v1697_v1, %v1689_v0  ;;  %v1727_v37 = vld [vmem:[#allocation3 + $0xc68] sm:$0xff]  ;;  %v1721_v21 = vld [vmem:[#allocation3 + $0xc38] sm:$0xff]  ;;  %v1718_v47 = vld [vmem:[#allocation3 + $0xc20] sm:$0xff] }
 0x2d3   : > { %3849 = vmatmul.mubr.f32.gmra.mrb[30].mxu0 %v6366_v13  ;;  %3474 = vmatprep.mubr.f32.mxu1 %v6386_v53  ;;  %v1695_v13 = vld [vmem:[#allocation3 + $0xb68] sm:$0xff]  ;;  %v1729_v38 = vld [vmem:[#allocation3 + $0xc78] sm:$0xff]  ;;  %v1726_v2 = vld [vmem:[#allocation3 + $0xc60] sm:$0xff] }
 0x2d4   : > { %5103 = vmatpush1.bf16.msra.mxu1 %v5102_v26  ;;  %3919 = vmatprep.mubr.f32.mxu0 %v6386_v53  ;;  %v5382_v53 = vpack.c.bf16 %v1680_v56, %v1672_v55  ;;  %v5112_v54 = vpack.c.bf16 %v1695_v13, %v1687_v20  ;;  %v5114_v26 = vpack.c.bf16 %v1694_v9, %v1686_v8  ;;  %v1720_v55 = vld [vmem:[#allocation3 + $0xc30] sm:$0xff]  ;;  %v1735_v20 = vld [vmem:[#allocation3 + $0xca8] sm:$0xff]  ;;  %v1737_v0 = vld [vmem:[#allocation3 + $0xcb8] sm:$0xff] }
 0x2d5   : > { %5375 = vmatpush1.bf16.msra.mxu0 %v5374_v27  ;;  %5105 = vmatprep.subr.bf16.mxu1 %v5104_v29  ;;  %v5386_v27 = vpack.c.bf16 %v1696_v12, %v1688_v15  ;;  %v5116_v29 = vpack.c.bf16 %v1711_v23, %v1703_v60  ;;  %v1728_v56 = vld [vmem:[#allocation3 + $0xc70] sm:$0xff]  ;;  %v1743_v13 = vld [vmem:[#allocation3 + $0xce8] sm:$0xff]  ;;  %v1745_v1 = vld [vmem:[#allocation3 + $0xcf8] sm:$0xff] }
 0x2d6   : > { %5377 = vmatprep.subr.bf16.mxu0 %v5376_v35  ;;  %v5388_v35 = vpack.c.bf16 %v1713_v25, %v1705_v6  ;;  %v1734_v8 = vld [vmem:[#allocation3 + $0xca0] sm:$0xff]  ;;  %v1736_v15 = vld [vmem:[#allocation3 + $0xcb0] sm:$0xff]  ;;  %v1751_v60 = vld [vmem:[#allocation3 + $0xd28] sm:$0xff] }
 0x2d7   : > { %v1742_v9 = vld [vmem:[#allocation3 + $0xce0] sm:$0xff]  ;;  %v1744_v12 = vld [vmem:[#allocation3 + $0xcf0] sm:$0xff]  ;;  %v1759_v23 = vld [vmem:[#allocation3 + $0xd68] sm:$0xff] }
 0x2d8   : > { %5107 = vmatpush1.bf16.msra.mxu1 %v5106_v41  ;;  %v5118_v41 = vpack.c.bf16 %v1710_v33, %v1702_v18  ;;  %v1753_v6 = vld [vmem:[#allocation3 + $0xd38] sm:$0xff]  ;;  %v1750_v18 = vld [vmem:[#allocation3 + $0xd20] sm:$0xff] }
 0x2d9   : > { %5379 = vmatpush1.bf16.msra.mxu0 %v5378_v42  ;;  %5109 = vmatprep.subr.bf16.mxu1 %v5108_v43  ;;  %v5390_v42 = vpack.c.bf16 %v1712_v62, %v1704_v34  ;;  %v5120_v43 = vpack.c.bf16 %v1727_v37, %v1719_v63  ;;  %v1761_v25 = vld [vmem:[#allocation3 + $0xd78] sm:$0xff]  ;;  %v1758_v33 = vld [vmem:[#allocation3 + $0xd60] sm:$0xff]  ;;  %v1752_v34 = vld [vmem:[#allocation3 + $0xd30] sm:$0xff] }
 0x2da   : > { %5381 = vmatprep.subr.bf16.mxu0 %v5380_v49  ;;  %v5392_v49 = vpack.c.bf16 %v1729_v38, %v1721_v21  ;;  %v1760_v62 = vld [vmem:[#allocation3 + $0xd70] sm:$0xff]  ;;  %v1767_v63 = vld [vmem:[#allocation3 + $0xda8] sm:$0xff]  ;;  %v1769_v21 = vld [vmem:[#allocation3 + $0xdb8] sm:$0xff] }
 0x2db   : > { %v1775_v37 = vld [vmem:[#allocation3 + $0xde8] sm:$0xff]  ;;  %v1777_v38 = vld [vmem:[#allocation3 + $0xdf8] sm:$0xff] }
 0x2dc   : > { %5111 = vmatpush1.bf16.msra.mxu1 %v5110_v3  ;;  %v5122_v3 = vpack.c.bf16 %v1726_v2, %v1718_v47  ;;  %v1766_v47 = vld [vmem:[#allocation3 + $0xda0] sm:$0xff] }
 0x2dd   : > { %5383 = vmatpush1.bf16.msra.mxu0 %v5382_v53  ;;  %5113 = vmatprep.subr.bf16.mxu1 %v5112_v54  ;;  %v5394_v53 = vpack.c.bf16 %v1728_v56, %v1720_v55  ;;  %v5124_v54 = vpack.c.bf16 %v1743_v13, %v1735_v20  ;;  %v1774_v2 = vld [vmem:[#allocation3 + $0xde0] sm:$0xff]  ;;  %v1768_v55 = vld [vmem:[#allocation3 + $0xdb0] sm:$0xff]  ;;  %v1783_v20 = vld [vmem:[#allocation3 + $0xe28] sm:$0xff] }
 0x2de   : > { %5385 = vmatprep.subr.bf16.mxu0 %v5384_v16  ;;  %v5396_v16 = vpack.c.bf16 %v1745_v1, %v1737_v0  ;;  %v1776_v56 = vld [vmem:[#allocation3 + $0xdf0] sm:$0xff]  ;;  %v1791_v13 = vld [vmem:[#allocation3 + $0xe68] sm:$0xff]  ;;  %v1785_v0 = vld [vmem:[#allocation3 + $0xe38] sm:$0xff] }
 0x2df   : > { %v1793_v1 = vld [vmem:[#allocation3 + $0xe78] sm:$0xff] }
 0x2e0   : > { %5115 = vmatpush1.bf16.msra.mxu1 %v5114_v26  ;;  %v5126_v26 = vpack.c.bf16 %v1742_v9, %v1734_v8  ;;  %v1782_v8 = vld [vmem:[#allocation3 + $0xe20] sm:$0xff] }
 0x2e1   : > { %5387 = vmatpush1.bf16.msra.mxu0 %v5386_v27  ;;  %5117 = vmatprep.subr.bf16.mxu1 %v5116_v29  ;;  %v5398_v27 = vpack.c.bf16 %v1744_v12, %v1736_v15  ;;  %v5128_v29 = vpack.c.bf16 %v1759_v23, %v1751_v60  ;;  %v1790_v9 = vld [vmem:[#allocation3 + $0xe60] sm:$0xff]  ;;  %v1784_v15 = vld [vmem:[#allocation3 + $0xe30] sm:$0xff]  ;;  %v1799_v60 = vld [vmem:[#allocation3 + $0xea8] sm:$0xff] }
 0x2e2   : > { %5389 = vmatprep.subr.bf16.mxu0 %v5388_v35  ;;  %v5400_v35 = vpack.c.bf16 %v1761_v25, %v1753_v6  ;;  %v1792_v12 = vld [vmem:[#allocation3 + $0xe70] sm:$0xff]  ;;  %v1807_v23 = vld [vmem:[#allocation3 + $0xee8] sm:$0xff]  ;;  %v1801_v6 = vld [vmem:[#allocation3 + $0xeb8] sm:$0xff] }
 0x2e3   : > { %v1809_v25 = vld [vmem:[#allocation3 + $0xef8] sm:$0xff] }
 0x2e4   : > { %5119 = vmatpush1.bf16.msra.mxu1 %v5118_v41  ;;  %v5130_v41 = vpack.c.bf16 %v1758_v33, %v1750_v18  ;;  %v1798_v18 = vld [vmem:[#allocation3 + $0xea0] sm:$0xff] }
 0x2e5   : > { %5391 = vmatpush1.bf16.msra.mxu0 %v5390_v42  ;;  %5121 = vmatprep.subr.bf16.mxu1 %v5120_v43  ;;  %v5402_v42 = vpack.c.bf16 %v1760_v62, %v1752_v34  ;;  %v5132_v43 = vpack.c.bf16 %v1775_v37, %v1767_v63  ;;  %v1806_v33 = vld [vmem:[#allocation3 + $0xee0] sm:$0xff]  ;;  %v1800_v34 = vld [vmem:[#allocation3 + $0xeb0] sm:$0xff]  ;;  %v1815_v63 = vld [vmem:[#allocation3 + $0xf28] sm:$0xff] }
 0x2e6   : > { %5393 = vmatprep.subr.bf16.mxu0 %v5392_v49  ;;  %v5404_v49 = vpack.c.bf16 %v1777_v38, %v1769_v21  ;;  %v1808_v62 = vld [vmem:[#allocation3 + $0xef0] sm:$0xff]  ;;  %v1823_v37 = vld [vmem:[#allocation3 + $0xf68] sm:$0xff]  ;;  %v1817_v21 = vld [vmem:[#allocation3 + $0xf38] sm:$0xff] }
 0x2e7   : > { %v1825_v38 = vld [vmem:[#allocation3 + $0xf78] sm:$0xff] }
 0x2e8   : > { %5123 = vmatpush1.bf16.msra.mxu1 %v5122_v3  ;;  %v5134_v3 = vpack.c.bf16 %v1774_v2, %v1766_v47  ;;  %v1814_v47 = vld [vmem:[#allocation3 + $0xf20] sm:$0xff] }
 0x2e9   : > { %5395 = vmatpush1.bf16.msra.mxu0 %v5394_v53  ;;  %5125 = vmatprep.subr.bf16.mxu1 %v5124_v54  ;;  %v5406_v53 = vpack.c.bf16 %v1776_v56, %v1768_v55  ;;  %v5136_v54 = vpack.c.bf16 %v1791_v13, %v1783_v20  ;;  %v1822_v2 = vld [vmem:[#allocation3 + $0xf60] sm:$0xff]  ;;  %v1816_v55 = vld [vmem:[#allocation3 + $0xf30] sm:$0xff]  ;;  %v1831_v20 = vld [vmem:[#allocation3 + $0xfa8] sm:$0xff] }
 0x2ea   : > { %5397 = vmatprep.subr.bf16.mxu0 %v5396_v16  ;;  %v5408_v16 = vpack.c.bf16 %v1793_v1, %v1785_v0  ;;  %v1824_v56 = vld [vmem:[#allocation3 + $0xf70] sm:$0xff]  ;;  %v1839_v13 = vld [vmem:[#allocation3 + $0xfe8] sm:$0xff]  ;;  %v1833_v0 = vld [vmem:[#allocation3 + $0xfb8] sm:$0xff] }
 0x2eb   : > { %v1841_v1 = vld [vmem:[#allocation3 + $0xff8] sm:$0xff] }
 0x2ec   : > { %5127 = vmatpush1.bf16.msra.mxu1 %v5126_v26  ;;  %v5138_v26 = vpack.c.bf16 %v1790_v9, %v1782_v8  ;;  %v1830_v8 = vld [vmem:[#allocation3 + $0xfa0] sm:$0xff] }
 0x2ed   : > { %5399 = vmatpush1.bf16.msra.mxu0 %v5398_v27  ;;  %5129 = vmatprep.subr.bf16.mxu1 %v5128_v29  ;;  %v5410_v27 = vpack.c.bf16 %v1792_v12, %v1784_v15  ;;  %v5140_v29 = vpack.c.bf16 %v1807_v23, %v1799_v60  ;;  %v1838_v9 = vld [vmem:[#allocation3 + $0xfe0] sm:$0xff]  ;;  %v1832_v15 = vld [vmem:[#allocation3 + $0xfb0] sm:$0xff]  ;;  %v1847_v60 = vld [vmem:[#allocation3 + $0x1028] sm:$0xff] }
 0x2ee   : > { %5401 = vmatprep.subr.bf16.mxu0 %v5400_v35  ;;  %v5412_v35 = vpack.c.bf16 %v1809_v25, %v1801_v6  ;;  %v1840_v12 = vld [vmem:[#allocation3 + $0xff0] sm:$0xff]  ;;  %v1855_v23 = vld [vmem:[#allocation3 + $0x1068] sm:$0xff]  ;;  %v1849_v6 = vld [vmem:[#allocation3 + $0x1038] sm:$0xff] }
 0x2ef   : > { %v1857_v25 = vld [vmem:[#allocation3 + $0x1078] sm:$0xff] }
 0x2f0   : > { %5131 = vmatpush1.bf16.msra.mxu1 %v5130_v41  ;;  %v5142_v41 = vpack.c.bf16 %v1806_v33, %v1798_v18  ;;  %v5424_v18 = vpack.c.bf16 %v1857_v25, %v1849_v6  ;;  %v1846_v33 = vld [vmem:[#allocation3 + $0x1020] sm:$0xff] }
 0x2f1   : > { %5403 = vmatpush1.bf16.msra.mxu0 %v5402_v42  ;;  %5133 = vmatprep.subr.bf16.mxu1 %v5132_v43  ;;  %v5414_v42 = vpack.c.bf16 %v1808_v62, %v1800_v34  ;;  %v5144_v43 = vpack.c.bf16 %v1823_v37, %v1815_v63  ;;  %v1854_v34 = vld [vmem:[#allocation3 + $0x1060] sm:$0xff]  ;;  %v1856_v62 = vld [vmem:[#allocation3 + $0x1070] sm:$0xff]  ;;  %v1863_v63 = vld [vmem:[#allocation3 + $0x10a8] sm:$0xff] }
 0x2f2   : > { %5405 = vmatprep.subr.bf16.mxu0 %v5404_v49  ;;  %v5416_v49 = vpack.c.bf16 %v1825_v38, %v1817_v21  ;;  %v1871_v37 = vld [vmem:[#allocation3 + $0x10e8] sm:$0xff]  ;;  %v1865_v21 = vld [vmem:[#allocation3 + $0x10b8] sm:$0xff] }
 0x2f3   : > { %v1873_v38 = vld [vmem:[#allocation3 + $0x10f8] sm:$0xff] }
 0x2f4   : > { %5135 = vmatpush1.bf16.msra.mxu1 %v5134_v3  ;;  %v5146_v3 = vpack.c.bf16 %v1822_v2, %v1814_v47  ;;  %v1862_v47 = vld [vmem:[#allocation3 + $0x10a0] sm:$0xff] }
 0x2f5   : > { %5407 = vmatpush1.bf16.msra.mxu0 %v5406_v53  ;;  %5137 = vmatprep.subr.bf16.mxu1 %v5136_v54  ;;  %v5418_v53 = vpack.c.bf16 %v1824_v56, %v1816_v55  ;;  %v5148_v54 = vpack.c.bf16 %v1839_v13, %v1831_v20  ;;  %v1870_v2 = vld [vmem:[#allocation3 + $0x10e0] sm:$0xff]  ;;  %v1864_v55 = vld [vmem:[#allocation3 + $0x10b0] sm:$0xff]  ;;  %v1879_v20 = vld [vmem:[#allocation3 + $0x1128] sm:$0xff] }
 0x2f6   : > { %5409 = vmatprep.subr.bf16.mxu0 %v5408_v16  ;;  %v5420_v16 = vpack.c.bf16 %v1841_v1, %v1833_v0  ;;  %v1872_v56 = vld [vmem:[#allocation3 + $0x10f0] sm:$0xff]  ;;  %v1887_v13 = vld [vmem:[#allocation3 + $0x1168] sm:$0xff]  ;;  %v1881_v0 = vld [vmem:[#allocation3 + $0x1138] sm:$0xff] }
 0x2f7   : > { %v1889_v1 = vld [vmem:[#allocation3 + $0x1178] sm:$0xff] }
 0x2f8   : > { %5139 = vmatpush1.bf16.msra.mxu1 %v5138_v26  ;;  %v5150_v26 = vpack.c.bf16 %v1838_v9, %v1830_v8  ;;  %v1878_v8 = vld [vmem:[#allocation3 + $0x1120] sm:$0xff] }
 0x2f9   : > { %5411 = vmatpush1.bf16.msra.mxu0 %v5410_v27  ;;  %5141 = vmatprep.subr.bf16.mxu1 %v5140_v29  ;;  %v5422_v27 = vpack.c.bf16 %v1840_v12, %v1832_v15  ;;  %v5152_v29 = vpack.c.bf16 %v1855_v23, %v1847_v60  ;;  %v1886_v9 = vld [vmem:[#allocation3 + $0x1160] sm:$0xff]  ;;  %v1880_v15 = vld [vmem:[#allocation3 + $0x1130] sm:$0xff]  ;;  %v1895_v12 = vld [vmem:[#allocation3 + $0x11a8] sm:$0xff] }
 0x2fa   : > { %5413 = vmatprep.subr.bf16.mxu0 %v5412_v35  ;;  %v1848_v35 = vld [vmem:[#allocation3 + $0x1030] sm:$0xff]  ;;  %v1903_v60 = vld [vmem:[#allocation3 + $0x11e8] sm:$0xff]  ;;  %v1905_v23 = vld [vmem:[#allocation3 + $0x11f8] sm:$0xff]  ;;  %v5162_v6 = vpack.c.bf16 %v1886_v9, %v1878_v8 }
 0x2fb   : > { %v1945_v8 = vld [vmem:[#allocation3 + $0x1338] sm:$0xff] }
 0x2fc   : > { %5143 = vmatpush1.bf16.msra.mxu1 %v5142_v41  ;;  %v5154_v41 = vpack.c.bf16 %v1854_v34, %v1846_v33  ;;  %v1911_v34 = vld [vmem:[#allocation3 + $0x1228] sm:$0xff]  ;;  %v1953_v9 = vld [vmem:[#allocation3 + $0x1378] sm:$0xff] }
 0x2fd   : > { %5415 = vmatpush1.bf16.msra.mxu0 %v5414_v42  ;;  %5145 = vmatprep.subr.bf16.mxu1 %v5144_v43  ;;  %v5426_v42 = vpack.c.bf16 %v1856_v62, %v1848_v35  ;;  %v5156_v43 = vpack.c.bf16 %v1871_v37, %v1863_v63  ;;  %v1919_v35 = vld [vmem:[#allocation3 + $0x1268] sm:$0xff]  ;;  %v1921_v62 = vld [vmem:[#allocation3 + $0x1278] sm:$0xff] }
 0x2fe   : > { %5417 = vmatprep.subr.bf16.mxu0 %v5416_v49  ;;  %v5428_v49 = vpack.c.bf16 %v1873_v38, %v1865_v21  ;;  %v5168_v21 = vpack.c.bf16 %v1919_v35, %v1911_v34  ;;  %v1910_v38 = vld [vmem:[#allocation3 + $0x1220] sm:$0xff]  ;;  %v1960_v35 = vld [vmem:[#allocation3 + $0x13b0] sm:$0xff] }
 0x2ff   : > { %v1966_v34 = vld [vmem:[#allocation3 + $0x13e0] sm:$0xff] }
 0x300   : > { %5147 = vmatpush1.bf16.msra.mxu1 %v5146_v3  ;;  %v5158_v3 = vpack.c.bf16 %v1870_v2, %v1862_v47  ;;  %v1927_v47 = vld [vmem:[#allocation3 + $0x12a8] sm:$0xff] }
 0x301   : > { %5419 = vmatpush1.bf16.msra.mxu0 %v5418_v53  ;;  %5149 = vmatprep.subr.bf16.mxu1 %v5148_v54  ;;  %v5430_v53 = vpack.c.bf16 %v1872_v56, %v1864_v55  ;;  %v5160_v54 = vpack.c.bf16 %v1887_v13, %v1879_v20  ;;  %v1935_v2 = vld [vmem:[#allocation3 + $0x12e8] sm:$0xff]  ;;  %v1937_v55 = vld [vmem:[#allocation3 + $0x12f8] sm:$0xff]  ;;  %v1926_v13 = vld [vmem:[#allocation3 + $0x12a0] sm:$0xff] }
 0x302   : > { %5421 = vmatprep.subr.bf16.mxu0 %v5420_v16  ;;  %v5432_v16 = vpack.c.bf16 %v1889_v1, %v1881_v0  ;;  %v5172_v20 = vpack.c.bf16 %v1935_v2, %v1927_v47  ;;  %v1934_v0 = vld [vmem:[#allocation3 + $0x12e0] sm:$0xff]  ;;  %v1928_v1 = vld [vmem:[#allocation3 + $0x12b0] sm:$0xff] }
 0x303   : > { %v1982_v47 = vld [vmem:[#allocation3 + $0x1460] sm:$0xff]  ;;  %v1976_v2 = vld [vmem:[#allocation3 + $0x1430] sm:$0xff] }
 0x304   : > { %5151 = vmatpush1.bf16.msra.mxu1 %v5150_v26  ;;  %v5164_v26 = vpack.c.bf16 %v1903_v60, %v1895_v12  ;;  %v1950_v12 = vld [vmem:[#allocation3 + $0x1360] sm:$0xff]  ;;  %v1944_v60 = vld [vmem:[#allocation3 + $0x1330] sm:$0xff] }
 0x305   : > { %5423 = vmatpush1.bf16.msra.mxu0 %v5422_v27  ;;  %5153 = vmatprep.subr.bf16.mxu1 %v5152_v29  ;;  %v1894_v27 = vld [vmem:[#allocation3 + $0x11a0] sm:$0xff] }
 0x306   : > { %5425 = vmatprep.subr.bf16.mxu0 %v5424_v18  ;;  %v1902_v29 = vld [vmem:[#allocation3 + $0x11e0] sm:$0xff]  ;;  %v1896_v18 = vld [vmem:[#allocation3 + $0x11b0] sm:$0xff] }
 0x307   : > { %3475 = vmatmul.mubr.f32.vlgmr.msra.gmra.mrb[28].mxu1 %v6384_v48  ;;  %v5166_v63 = vpack.c.bf16 %v1902_v29, %v1894_v27  ;;  %v1969_v27 = vld [vmem:[#allocation3 + $0x13f8] sm:$0xff] }
 0x308   : > { %3920 = vmatmul.mubr.f32.vlgmr.msra.gmra.mrb[24].mxu0 %v6384_v48  ;;  %3480 = vmatprep.mubr.f32.mxu1 %v6392_v58  ;;  %v1888_v48 = vld [vmem:[#allocation3 + $0x1170] sm:$0xff] }
 0x309   : > { %5155 = vmatpush1.bf16.msra.mxu1 %v5154_v41  ;;  %3925 = vmatprep.mubr.f32.mxu0 %v6392_v58  ;;  %v1897_v58 = vld [vmem:[#allocation3 + $0x11b8] sm:$0xff]  ;;  %v5434_v25 = vpack.c.bf16 %v1888_v48, %v1880_v15  ;;  %v1918_v41 = vld [vmem:[#allocation3 + $0x1260] sm:$0xff]  ;;  %v5174_v15 = vpack.c.bf16 %v1934_v0, %v1926_v13 }
 0x30a   : > { %5427 = vmatpush1.bf16.msra.mxu0 %v5426_v42  ;;  %5157 = vmatprep.subr.bf16.mxu1 %v5156_v43  ;;  %v5436_v33 = vpack.c.bf16 %v1905_v23, %v1897_v58  ;;  %v1912_v42 = vld [vmem:[#allocation3 + $0x1230] sm:$0xff]  ;;  %v1942_v48 = vld [vmem:[#allocation3 + $0x1320] sm:$0xff]  ;;  %v5448_v58 = vpack.c.bf16 %v1953_v9, %v1945_v8  ;;  %v2001_v13 = vld [vmem:[#allocation3 + $0x14f8] sm:$0xff] }
 0x30b   : > { %3481 = vmatmul.mubr.f32.gmra.mrb[30].mxu1 %v6390_v7  ;;  %5429 = vmatprep.subr.bf16.mxu0 %v5428_v49  ;;  %v5170_v49 = vpack.c.bf16 %v1918_v41, %v1910_v38  ;;  %v1952_v23 = vld [vmem:[#allocation3 + $0x1370] sm:$0xff]  ;;  %v5178_v29 = vpack.c.bf16 %v1950_v12, %v1942_v48  ;;  %v1985_v38 = vld [vmem:[#allocation3 + $0x1478] sm:$0xff] }
 0x30c   : > { %3926 = vmatmul.mubr.f32.gmra.mrb[26].mxu0 %v6390_v7  ;;  %3486 = vmatprep.mubr.f32.mxu1 %v6396_v28  ;;  %v1904_v7 = vld [vmem:[#allocation3 + $0x11f0] sm:$0xff]  ;;  %v2009_v48 = vld [vmem:[#allocation3 + $0x1538] sm:$0xff] }
 0x30d   : > { %5159 = vmatpush1.bf16.msra.mxu1 %v5158_v3  ;;  %3931 = vmatprep.mubr.f32.mxu0 %v6396_v28  ;;  %v1913_v28 = vld [vmem:[#allocation3 + $0x1238] sm:$0xff]  ;;  %v5438_v37 = vpack.c.bf16 %v1904_v7, %v1896_v18  ;;  %v5450_v18 = vpack.c.bf16 %v1952_v23, %v1944_v60  ;;  %v1958_v7 = vld [vmem:[#allocation3 + $0x13a0] sm:$0xff]  ;;  %v2000_v8 = vld [vmem:[#allocation3 + $0x14f0] sm:$0xff]  ;;  %v5828_v60 = vmov 0  }
 0x30e   : > { %5431 = vmatpush1.bf16.msra.mxu0 %v5430_v53  ;;  %5161 = vmatprep.subr.bf16.mxu1 %v5160_v54  ;;  %v5440_v43 = vpack.c.bf16 %v1921_v62, %v1913_v28  ;;  %v1936_v53 = vld [vmem:[#allocation3 + $0x12f0] sm:$0xff]  ;;  %v1943_v54 = vld [vmem:[#allocation3 + $0x1328] sm:$0xff]  ;;  %v5182_v41 = vpack.c.bf16 %v1966_v34, %v1958_v7  ;;  %v2017_v12 = vld [vmem:[#allocation3 + $0x1578] sm:$0xff] }
 0x30f   : > { %3487 = vmatmul.mubr.f32.gmra.mrb[32].mxu1 %v6394_v24  ;;  %5433 = vmatprep.subr.bf16.mxu0 %v5432_v16  ;;  %v1968_v62 = vld [vmem:[#allocation3 + $0x13f0] sm:$0xff]  ;;  %v2023_v34 = vld [vmem:[#allocation3 + $0x15a8] sm:$0xff] }
 0x310   : > { %3932 = vmatmul.mubr.f32.gmra.mrb[28].mxu0 %v6394_v24  ;;  %3492 = vmatprep.mubr.f32.mxu1 %v6400_v40  ;;  %v1920_v24 = vld [vmem:[#allocation3 + $0x1270] sm:$0xff] }
 0x311   : > { %5163 = vmatpush1.bf16.msra.mxu1 %v5162_v6  ;;  %3937 = vmatprep.mubr.f32.mxu0 %v6400_v40  ;;  %v1929_v40 = vld [vmem:[#allocation3 + $0x12b8] sm:$0xff]  ;;  %v5442_v56 = vpack.c.bf16 %v1920_v24, %v1912_v42  ;;  %v1959_v6 = vld [vmem:[#allocation3 + $0x13a8] sm:$0xff]  ;;  %v5454_v42 = vpack.c.bf16 %v1968_v62, %v1960_v35  ;;  %v1974_v24 = vld [vmem:[#allocation3 + $0x1420] sm:$0xff] }
 0x312   : > { %5435 = vmatpush1.bf16.msra.mxu0 %v5434_v25  ;;  %5165 = vmatprep.subr.bf16.mxu1 %v5164_v26  ;;  %v5444_v3 = vpack.c.bf16 %v1937_v55, %v1929_v40  ;;  %v1967_v25 = vld [vmem:[#allocation3 + $0x13e8] sm:$0xff]  ;;  %v1961_v26 = vld [vmem:[#allocation3 + $0x13b8] sm:$0xff]  ;;  %v1984_v55 = vld [vmem:[#allocation3 + $0x1470] sm:$0xff]  ;;  %v5186_v0 = vpack.c.bf16 %v1982_v47, %v1974_v24 }
 0x313   : > { %3493 = vmatmul.mubr.f32.gmra.mrb[34].mxu1 %v6398_v30  ;;  %5437 = vmatprep.subr.bf16.mxu0 %v5436_v33  ;;  %v5180_v33 = vpack.c.bf16 %v1967_v25, %v1959_v6  ;;  %v5452_v28 = vpack.c.bf16 %v1969_v27, %v1961_v26  ;;  %v2006_v6 = vld [vmem:[#allocation3 + $0x1520] sm:$0xff]  ;;  %v2016_v7 = vld [vmem:[#allocation3 + $0x1570] sm:$0xff]  ;;  %v2031_v35 = vld [vmem:[#allocation3 + $0x15e8] sm:$0xff] }
 0x314   : > { %3938 = vmatmul.mubr.f32.gmra.mrb[30].mxu0 %v6398_v30  ;;  %3563 = vmatprep.mubr.f32.mxu1 %v6404_v61  ;;  %v1951_v30 = vld [vmem:[#allocation3 + $0x1368] sm:$0xff]  ;;  %v2014_v27 = vld [vmem:[#allocation3 + $0x1560] sm:$0xff]  ;;  %v2033_v62 = vld [vmem:[#allocation3 + $0x15f8] sm:$0xff] }
 0x315   : > { %5167 = vmatpush1.bf16.msra.mxu1 %v5166_v63  ;;  %4008 = vmatprep.mubr.f32.mxu0 %v6404_v61  ;;  %v5446_v61 = vpack.c.bf16 %v1936_v53, %v1928_v1  ;;  %v5176_v16 = vpack.c.bf16 %v1951_v30, %v1943_v54  ;;  %v1975_v63 = vld [vmem:[#allocation3 + $0x1428] sm:$0xff]  ;;  %v1990_v1 = vld [vmem:[#allocation3 + $0x14a0] sm:$0xff]  ;;  %v1992_v30 = vld [vmem:[#allocation3 + $0x14b0] sm:$0xff] }
 0x316   : > { %5439 = vmatpush1.bf16.msra.mxu0 %v5438_v37  ;;  %5169 = vmatprep.subr.bf16.mxu1 %v5168_v21  ;;  %v1983_v37 = vld [vmem:[#allocation3 + $0x1468] sm:$0xff]  ;;  %v1977_v21 = vld [vmem:[#allocation3 + $0x1438] sm:$0xff]  ;;  %v1998_v54 = vld [vmem:[#allocation3 + $0x14e0] sm:$0xff]  ;;  %v5462_v25 = vpack.c.bf16 %v2000_v8, %v1992_v30 }
 0x317   : > { %5441 = vmatprep.subr.bf16.mxu0 %v5440_v43  ;;  %v5184_v43 = vpack.c.bf16 %v1983_v37, %v1975_v63  ;;  %v5456_v40 = vpack.c.bf16 %v1985_v38, %v1977_v21  ;;  %5733 = vset.pattern.permute.xlu1 %v5828_v60  ;;  %v5190_v23 = vpack.c.bf16 %v1998_v54, %v1990_v1  ;;  %v2022_v37 = vld [vmem:[#allocation3 + $0x15a0] sm:$0xff]  ;;  %v2032_v47 = vld [vmem:[#allocation3 + $0x15f0] sm:$0xff]  ;;  %v2055_v30 = vld [vmem:[#allocation3 + $0x16a8] sm:$0xff] }
 0x318   : > { %5734 = vset.pattern.permute.xlu0 %v5828_v60  ;;  %v5194_v63 = vpack.c.bf16 %v2014_v27, %v2006_v6  ;;  %v5196_v38 = vpack.c.bf16 %v2031_v35, %v2023_v34  ;;  %v2046_v1 = vld [vmem:[#allocation3 + $0x1660] sm:$0xff]  ;;  %v2048_v54 = vld [vmem:[#allocation3 + $0x1670] sm:$0xff]  ;;  %v2063_v8 = vld [vmem:[#allocation3 + $0x16e8] sm:$0xff] }
 0x319   : > { %5171 = vmatpush1.bf16.msra.mxu1 %v5170_v49  ;;  %v1991_v49 = vld [vmem:[#allocation3 + $0x14a8] sm:$0xff]  ;;  %v2062_v60 = vld [vmem:[#allocation3 + $0x16e0] sm:$0xff]  ;;  %v2064_v6 = vld [vmem:[#allocation3 + $0x16f0] sm:$0xff] }
 0x31a   : > { %5443 = vmatpush1.bf16.msra.mxu0 %v5442_v56  ;;  %5173 = vmatprep.subr.bf16.mxu1 %v5172_v20  ;;  %v1999_v56 = vld [vmem:[#allocation3 + $0x14e8] sm:$0xff]  ;;  %v1993_v20 = vld [vmem:[#allocation3 + $0x14b8] sm:$0xff]  ;;  %v2070_v34 = vld [vmem:[#allocation3 + $0x1720] sm:$0xff] }
 0x31b   : > { %5445 = vmatprep.subr.bf16.mxu0 %v5444_v3  ;;  %v5458_v3 = vpack.c.bf16 %v1984_v55, %v1976_v2  ;;  %v5188_v53 = vpack.c.bf16 %v1999_v56, %v1991_v49  ;;  %v5460_v9 = vpack.c.bf16 %v2001_v13, %v1993_v20  ;;  %v2039_v2 = vld [vmem:[#allocation3 + $0x1628] sm:$0xff]  ;;  %v2041_v55 = vld [vmem:[#allocation3 + $0x1638] sm:$0xff]  ;;  %v2078_v35 = vld [vmem:[#allocation3 + $0x1760] sm:$0xff] }
 0x31c   : > { %v2049_v49 = vld [vmem:[#allocation3 + $0x1678] sm:$0xff] }
 0x31d   : > { %5175 = vmatpush1.bf16.msra.mxu1 %v5174_v15  ;;  %v2007_v15 = vld [vmem:[#allocation3 + $0x1528] sm:$0xff]  ;;  %v2073_v27 = vld [vmem:[#allocation3 + $0x1738] sm:$0xff] }
 0x31e   : > { %5447 = vmatpush1.bf16.msra.mxu0 %v5446_v61  ;;  %5177 = vmatprep.subr.bf16.mxu1 %v5176_v16  ;;  %v2015_v61 = vld [vmem:[#allocation3 + $0x1568] sm:$0xff]  ;;  %v4235_v16 = vld [vmem:[%s6703_s2] sm:$0xff] }
 0x31f   : > { %5449 = vmatprep.subr.bf16.mxu0 %v5448_v58  ;;  %v4236_v58 = vld [vmem:[%s6703_s2 + $0x8] sm:$0xff]  ;;  %4241 = vperm.xlu1 %5733, %v4235_v16   ;;  %v5192_v26 = vpack.c.bf16 %v2015_v61, %v2007_v15  ;;  %v2065_v15 = vld [vmem:[#allocation3 + $0x16f8] sm:$0xff] }
 0x320   : > { %4246 = vperm.xlu0 %5734, %v4236_v58   ;;  %v2056_v58 = vld [vmem:[#allocation3 + $0x16b0] sm:$0xff] }
 0x321   : > { %5179 = vmatpush1.bf16.msra.mxu1 %v5178_v29  ;;  %v2008_v29 = vld [vmem:[#allocation3 + $0x1530] sm:$0xff] }
 0x322   : > { %5451 = vmatpush1.bf16.msra.mxu0 %v5450_v18  ;;  %5181 = vmatprep.subr.bf16.mxu1 %v5180_v33  ;;  %v4237_v18 = vld [vmem:[%s6703_s2 + $0x10] sm:$0xff]  ;;  %v5464_v33 = vpack.c.bf16 %v2017_v12, %v2009_v48  ;;  %v5466_v21 = vpack.c.bf16 %v2016_v7, %v2008_v29  ;;  %v5204_v48 = vpack.c.bf16 %v2063_v8, %v2055_v30  ;;  %v2054_v12 = vld [vmem:[#allocation3 + $0x16a0] sm:$0xff]  ;;  %v2081_v29 = vld [vmem:[#allocation3 + $0x1778] sm:$0xff] }
 0x323   : > { %5453 = vmatprep.subr.bf16.mxu0 %v5452_v28  ;;  %v2025_v28 = vld [vmem:[#allocation3 + $0x15b8] sm:$0xff]  ;;  %4251 = vperm.xlu1 %5733, %v4237_v18   ;;  %v5206_v18 = vpack.c.bf16 %v2062_v60, %v2054_v12  ;;  %v2102_v30 = vld [vmem:[#allocation3 + $0x1820] sm:$0xff] }
 0x324   : > { %v5468_v24 = vpack.c.bf16 %v2033_v62, %v2025_v28  ;;  %v2072_v28 = vld [vmem:[#allocation3 + $0x1730] sm:$0xff]  ;;  %v5480_v62 = vpack.c.bf16 %v2081_v29, %v2073_v27  ;;  %v2110_v8 = vld [vmem:[#allocation3 + $0x1860] sm:$0xff]  ;;  %v2129_v12 = vld [vmem:[#allocation3 + $0x18f8] sm:$0xff] }
 0x325   : > { %5183 = vmatpush1.bf16.msra.mxu1 %v5182_v41  ;;  %v2030_v41 = vld [vmem:[#allocation3 + $0x15e0] sm:$0xff]  ;;  %v5218_v60 = vpack.c.bf16 %v2110_v8, %v2102_v30  ;;  %v2128_v29 = vld [vmem:[#allocation3 + $0x18f0] sm:$0xff] }
 0x326   : > { %5455 = vmatpush1.bf16.msra.mxu0 %v5454_v42  ;;  %5185 = vmatprep.subr.bf16.mxu1 %v5184_v43  ;;  %v2024_v42 = vld [vmem:[#allocation3 + $0x15b0] sm:$0xff]  ;;  %v4238_v43 = vld [vmem:[%s6703_s2 + $0x18] sm:$0xff]  ;;  %v5198_v56 = vpack.c.bf16 %v2030_v41, %v2022_v37  ;;  %v2087_v37 = vld [vmem:[#allocation3 + $0x17a8] sm:$0xff] }
 0x327   : > { %5457 = vmatprep.subr.bf16.mxu0 %v5456_v40  ;;  %v2047_v40 = vld [vmem:[#allocation3 + $0x1668] sm:$0xff]  ;;  %4256 = vperm.xlu1 %5733, %v4238_v43   ;;  %v5470_v20 = vpack.c.bf16 %v2032_v47, %v2024_v42  ;;  %v2097_v41 = vld [vmem:[#allocation3 + $0x17f8] sm:$0xff]  ;;  %v5210_v42 = vpack.c.bf16 %v2078_v35, %v2070_v34  ;;  %v2086_v47 = vld [vmem:[#allocation3 + $0x17a0] sm:$0xff] }
 0x328   : > { %v5200_v13 = vpack.c.bf16 %v2047_v40, %v2039_v2  ;;  %v2094_v2 = vld [vmem:[#allocation3 + $0x17e0] sm:$0xff]  ;;  %v2088_v40 = vld [vmem:[#allocation3 + $0x17b0] sm:$0xff]  ;;  %v2145_v34 = vld [vmem:[#allocation3 + $0x1978] sm:$0xff] }
 0x329   : > { %5187 = vmatpush1.bf16.msra.mxu1 %v5186_v0  ;;  %v2038_v0 = vld [vmem:[#allocation3 + $0x1620] sm:$0xff]  ;;  %v2168_v8 = vld [vmem:[#allocation3 + $0x1a30] sm:$0xff] }
 0x32a   : > { %5459 = vmatpush1.bf16.msra.mxu0 %v5458_v3  ;;  %5189 = vmatprep.subr.bf16.mxu1 %v5188_v53  ;;  %v2040_v3 = vld [vmem:[#allocation3 + $0x1630] sm:$0xff]  ;;  %v5472_v53 = vpack.c.bf16 %v2049_v49, %v2041_v55  ;;  %v5202_v61 = vpack.c.bf16 %v2046_v1, %v2038_v0  ;;  %v2113_v0 = vld [vmem:[#allocation3 + $0x1878] sm:$0xff]  ;;  %v5214_v1 = vpack.c.bf16 %v2094_v2, %v2086_v47  ;;  %v2174_v30 = vld [vmem:[#allocation3 + $0x1a60] sm:$0xff] }
 0x32b   : > { %5461 = vmatprep.subr.bf16.mxu0 %v5460_v9  ;;  %v2057_v9 = vld [vmem:[#allocation3 + $0x16b8] sm:$0xff]  ;;  %v5474_v16 = vpack.c.bf16 %v2048_v54, %v2040_v3  ;;  %v2096_v49 = vld [vmem:[#allocation3 + $0x17f0] sm:$0xff] }
 0x32c   : > { %v5486_v3 = vpack.c.bf16 %v2096_v49, %v2088_v40  ;;  %v2150_v40 = vld [vmem:[#allocation3 + $0x19a0] sm:$0xff]  ;;  %v2152_v49 = vld [vmem:[#allocation3 + $0x19b0] sm:$0xff] }
 0x32d   : > { %5191 = vmatpush1.bf16.msra.mxu1 %v5190_v23  ;;  %v5476_v23 = vpack.c.bf16 %v2065_v15, %v2057_v9  ;;  %v2104_v9 = vld [vmem:[#allocation3 + $0x1830] sm:$0xff] }
 0x32e   : > { %5463 = vmatpush1.bf16.msra.mxu0 %v5462_v25  ;;  %5193 = vmatprep.subr.bf16.mxu1 %v5192_v26  ;;  %v2071_v25 = vld [vmem:[#allocation3 + $0x1728] sm:$0xff]  ;;  %v2112_v15 = vld [vmem:[#allocation3 + $0x1870] sm:$0xff] }
 0x32f   : > { %5465 = vmatprep.subr.bf16.mxu0 %v5464_v33  ;;  %v2079_v26 = vld [vmem:[#allocation3 + $0x1768] sm:$0xff]  ;;  %v5478_v33 = vpack.c.bf16 %v2064_v6, %v2056_v58  ;;  %v5490_v58 = vpack.c.bf16 %v2112_v15, %v2104_v9  ;;  %v2118_v6 = vld [vmem:[#allocation3 + $0x18a0] sm:$0xff] }
 0x330   : > { %v5208_v7 = vpack.c.bf16 %v2079_v26, %v2071_v25  ;;  %v2126_v25 = vld [vmem:[#allocation3 + $0x18e0] sm:$0xff]  ;;  %v2120_v26 = vld [vmem:[#allocation3 + $0x18b0] sm:$0xff]  ;;  %v2183_v15 = vld [vmem:[#allocation3 + $0x1aa8] sm:$0xff] }
 0x331   : > { %5195 = vmatpush1.bf16.msra.mxu1 %v5194_v63  ;;  %v2080_v63 = vld [vmem:[#allocation3 + $0x1770] sm:$0xff]  ;;  %v5222_v35 = vpack.c.bf16 %v2126_v25, %v2118_v6 }
 0x332   : > { %5467 = vmatpush1.bf16.msra.mxu0 %v5466_v21  ;;  %5197 = vmatprep.subr.bf16.mxu1 %v5196_v38  ;;  %v2095_v21 = vld [vmem:[#allocation3 + $0x17e8] sm:$0xff]  ;;  %v2089_v38 = vld [vmem:[#allocation3 + $0x17b8] sm:$0xff]  ;;  %v5482_v43 = vpack.c.bf16 %v2080_v63, %v2072_v28  ;;  %v5494_v28 = vpack.c.bf16 %v2128_v29, %v2120_v26  ;;  %v2134_v63 = vld [vmem:[#allocation3 + $0x1920] sm:$0xff] }
 0x333   : > { %5469 = vmatprep.subr.bf16.mxu0 %v5468_v24  ;;  %v5212_v24 = vpack.c.bf16 %v2095_v21, %v2087_v37  ;;  %v5484_v55 = vpack.c.bf16 %v2097_v41, %v2089_v38  ;;  %v2142_v37 = vld [vmem:[#allocation3 + $0x1960] sm:$0xff]  ;;  %v2136_v21 = vld [vmem:[#allocation3 + $0x1930] sm:$0xff]  ;;  %v2151_v41 = vld [vmem:[#allocation3 + $0x19a8] sm:$0xff] }
 0x334   : > { %v2184_v6 = vld [vmem:[#allocation3 + $0x1ab0] sm:$0xff] }
 0x335   : > { %5199 = vmatpush1.bf16.msra.mxu1 %v5198_v56  ;;  %v2103_v56 = vld [vmem:[#allocation3 + $0x1828] sm:$0xff]  ;;  %v2192_v26 = vld [vmem:[#allocation3 + $0x1af0] sm:$0xff] }
 0x336   : > { %5471 = vmatpush1.bf16.msra.mxu0 %v5470_v20  ;;  %5201 = vmatprep.subr.bf16.mxu1 %v5200_v13  ;;  %v2111_v20 = vld [vmem:[#allocation3 + $0x1868] sm:$0xff]  ;;  %v2105_v13 = vld [vmem:[#allocation3 + $0x1838] sm:$0xff] }
 0x337   : > { %5473 = vmatprep.subr.bf16.mxu0 %v5472_v53  ;;  %v5216_v53 = vpack.c.bf16 %v2111_v20, %v2103_v56  ;;  %v5488_v54 = vpack.c.bf16 %v2113_v0, %v2105_v13  ;;  %v2167_v20 = vld [vmem:[#allocation3 + $0x1a28] sm:$0xff]  ;;  %v2177_v0 = vld [vmem:[#allocation3 + $0x1a78] sm:$0xff] }
 0x338   : > { %v2175_v13 = vld [vmem:[#allocation3 + $0x1a68] sm:$0xff] }
 0x339   : > { %5203 = vmatpush1.bf16.msra.mxu1 %v5202_v61  ;;  %v2119_v61 = vld [vmem:[#allocation3 + $0x18a8] sm:$0xff] }
 0x33a   : > { %5475 = vmatpush1.bf16.msra.mxu0 %v5474_v16  ;;  %5205 = vmatprep.subr.bf16.mxu1 %v5204_v48  ;;  %v2127_v16 = vld [vmem:[#allocation3 + $0x18e8] sm:$0xff]  ;;  %v2121_v48 = vld [vmem:[#allocation3 + $0x18b8] sm:$0xff] }
 0x33b   : > { %5477 = vmatprep.subr.bf16.mxu0 %v5476_v23  ;;  %v5220_v23 = vpack.c.bf16 %v2127_v16, %v2119_v61  ;;  %v5492_v27 = vpack.c.bf16 %v2129_v12, %v2121_v48  ;;  %v2191_v61 = vld [vmem:[#allocation3 + $0x1ae8] sm:$0xff]  ;;  %v2193_v16 = vld [vmem:[#allocation3 + $0x1af8] sm:$0xff] }
 0x33d   : > { %5207 = vmatpush1.bf16.msra.mxu1 %v5206_v18  ;;  %v2135_v18 = vld [vmem:[#allocation3 + $0x1928] sm:$0xff] }
 0x33e   : > { %5479 = vmatpush1.bf16.msra.mxu0 %v5478_v33  ;;  %5209 = vmatprep.subr.bf16.mxu1 %v5208_v7  ;;  %v2143_v33 = vld [vmem:[#allocation3 + $0x1968] sm:$0xff]  ;;  %v2137_v7 = vld [vmem:[#allocation3 + $0x1938] sm:$0xff] }
 0x33f   : > { %5481 = vmatprep.subr.bf16.mxu0 %v5480_v62  ;;  %v5224_v62 = vpack.c.bf16 %v2143_v33, %v2135_v18  ;;  %v5496_v38 = vpack.c.bf16 %v2145_v34, %v2137_v7  ;;  %v2201_v33 = vld [vmem:[#allocation3 + $0x1b38] sm:$0xff] }
 0x340   : > { %v2209_v7 = vld [vmem:[#allocation3 + $0x1b78] sm:$0xff] }
 0x341   : > { %5211 = vmatpush1.bf16.msra.mxu1 %v5210_v42  ;;  %v2159_v42 = vld [vmem:[#allocation3 + $0x19e8] sm:$0xff] }
 0x342   : > { %5483 = vmatpush1.bf16.msra.mxu0 %v5482_v43  ;;  %5213 = vmatprep.subr.bf16.mxu1 %v5212_v24  ;;  %v2161_v43 = vld [vmem:[#allocation3 + $0x19f8] sm:$0xff]  ;;  %v5226_v24 = vpack.c.bf16 %v2142_v37, %v2134_v63  ;;  %v5228_v2 = vpack.c.bf16 %v2159_v42, %v2151_v41  ;;  %v5510_v63 = vpack.c.bf16 %v2192_v26, %v2184_v6  ;;  %v2208_v42 = vld [vmem:[#allocation3 + $0x1b70] sm:$0xff]  ;;  %v2230_v6 = vld [vmem:[#allocation3 + $0x1c20] sm:$0xff] }
 0x343   : > { %5485 = vmatprep.subr.bf16.mxu0 %v5484_v55  ;;  %v2158_v55 = vld [vmem:[#allocation3 + $0x19e0] sm:$0xff]  ;;  %v5512_v41 = vpack.c.bf16 %v2209_v7, %v2201_v33  ;;  %v2232_v26 = vld [vmem:[#allocation3 + $0x1c30] sm:$0xff]  ;;  %v2247_v33 = vld [vmem:[#allocation3 + $0x1ca8] sm:$0xff] }
 0x344   : > { %v2255_v7 = vld [vmem:[#allocation3 + $0x1ce8] sm:$0xff] }
 0x345   : > { %5215 = vmatpush1.bf16.msra.mxu1 %v5214_v1  ;;  %v5230_v1 = vpack.c.bf16 %v2158_v55, %v2150_v40  ;;  %v2225_v40 = vld [vmem:[#allocation3 + $0x1bf8] sm:$0xff] }
 0x346   : > { %5487 = vmatpush1.bf16.msra.mxu0 %v5486_v3  ;;  %5217 = vmatprep.subr.bf16.mxu1 %v5216_v53  ;;  %v5232_v53 = vpack.c.bf16 %v2175_v13, %v2167_v20 }
 0x347   : > { %5489 = vmatprep.subr.bf16.mxu0 %v5488_v54  ;;  %v2166_v54 = vld [vmem:[#allocation3 + $0x1a20] sm:$0xff] }
 0x348   : > { %3564 = vmatmul.mubr.f32.vlgmr.msra.gmra.mrb[28].mxu1 %v6402_v51  ;;  %v5234_v48 = vpack.c.bf16 %v2174_v30, %v2166_v54  ;;  %v2224_v54 = vld [vmem:[#allocation3 + $0x1bf0] sm:$0xff]  ;;  %v2231_v30 = vld [vmem:[#allocation3 + $0x1c28] sm:$0xff] }
 0x349   : > { %4009 = vmatmul.mubr.f32.vlgmr.msra.gmra.mrb[24].mxu0 %v6402_v51  ;;  %3569 = vmatprep.mubr.f32.mxu1 %v6412_v17  ;;  %v2144_v51 = vld [vmem:[#allocation3 + $0x1970] sm:$0xff] }
 0x34a   : > { %5219 = vmatpush1.bf16.msra.mxu1 %v5218_v60  ;;  %4014 = vmatprep.mubr.f32.mxu0 %v6412_v17  ;;  %v2153_v17 = vld [vmem:[#allocation3 + $0x19b8] sm:$0xff]  ;;  %v5498_v47 = vpack.c.bf16 %v2144_v51, %v2136_v21  ;;  %v5236_v60 = vpack.c.bf16 %v2191_v61, %v2183_v15  ;;  %v2198_v21 = vld [vmem:[#allocation3 + $0x1b20] sm:$0xff]  ;;  %v2200_v51 = vld [vmem:[#allocation3 + $0x1b30] sm:$0xff] }
 0x34b   : > { %5491 = vmatpush1.bf16.msra.mxu0 %v5490_v58  ;;  %5221 = vmatprep.subr.bf16.mxu1 %v5220_v23  ;;  %v5500_v56 = vpack.c.bf16 %v2161_v43, %v2153_v17  ;;  %v2182_v58 = vld [vmem:[#allocation3 + $0x1aa0] sm:$0xff]  ;;  %v2215_v17 = vld [vmem:[#allocation3 + $0x1ba8] sm:$0xff]  ;;  %v5514_v13 = vpack.c.bf16 %v2208_v42, %v2200_v51  ;;  %v2233_v15 = vld [vmem:[#allocation3 + $0x1c38] sm:$0xff] }
 0x34c   : > { %3570 = vmatmul.mubr.f32.gmra.mrb[30].mxu1 %v6408_v11  ;;  %5493 = vmatprep.subr.bf16.mxu0 %v5492_v27  ;;  %v2190_v23 = vld [vmem:[#allocation3 + $0x1ae0] sm:$0xff]  ;;  %v2199_v27 = vld [vmem:[#allocation3 + $0x1b28] sm:$0xff]  ;;  %v2241_v61 = vld [vmem:[#allocation3 + $0x1c78] sm:$0xff] }
 0x34d   : > { %4015 = vmatmul.mubr.f32.gmra.mrb[26].mxu0 %v6408_v11  ;;  %3575 = vmatprep.mubr.f32.mxu1 %v6420_v19  ;;  %v2160_v11 = vld [vmem:[#allocation3 + $0x19f0] sm:$0xff]  ;;  %v2223_v43 = vld [vmem:[#allocation3 + $0x1be8] sm:$0xff] }
 0x34e   : > { %5223 = vmatpush1.bf16.msra.mxu1 %v5222_v35  ;;  %4020 = vmatprep.mubr.f32.mxu0 %v6420_v19  ;;  %v2169_v19 = vld [vmem:[#allocation3 + $0x1a38] sm:$0xff]  ;;  %v5502_v3 = vpack.c.bf16 %v2160_v11, %v2152_v49 }
 0x34f   : > { %5495 = vmatpush1.bf16.msra.mxu0 %v5494_v28  ;;  %5225 = vmatprep.subr.bf16.mxu1 %v5224_v62  ;;  %v5504_v9 = vpack.c.bf16 %v2177_v0, %v2169_v19  ;;  %v5238_v28 = vpack.c.bf16 %v2190_v23, %v2182_v58  ;;  %v5244_v19 = vpack.c.bf16 %v2223_v43, %v2215_v17  ;;  %v2214_v0 = vld [vmem:[#allocation3 + $0x1ba0] sm:$0xff] }
 0x350   : > { %3576 = vmatmul.mubr.f32.gmra.mrb[32].mxu1 %v6416_v32  ;;  %5497 = vmatprep.subr.bf16.mxu0 %v5496_v38  ;;  %v2206_v38 = vld [vmem:[#allocation3 + $0x1b60] sm:$0xff] }
 0x351   : > { %4021 = vmatmul.mubr.f32.gmra.mrb[28].mxu0 %v6416_v32  ;;  %3581 = vmatprep.mubr.f32.mxu1 %v6428_v50  ;;  %v2176_v32 = vld [vmem:[#allocation3 + $0x1a70] sm:$0xff]  ;;  %v5242_v11 = vpack.c.bf16 %v2206_v38, %v2198_v21  ;;  %v2257_v21 = vld [vmem:[#allocation3 + $0x1cf8] sm:$0xff] }
 0x352   : > { %5227 = vmatpush1.bf16.msra.mxu1 %v5226_v24  ;;  %4026 = vmatprep.mubr.f32.mxu0 %v6428_v50  ;;  %v2185_v50 = vld [vmem:[#allocation3 + $0x1ab8] sm:$0xff]  ;;  %v5506_v12 = vpack.c.bf16 %v2176_v32, %v2168_v8  ;;  %v2239_v8 = vld [vmem:[#allocation3 + $0x1c68] sm:$0xff] }
 0x353   : > { %5499 = vmatpush1.bf16.msra.mxu0 %v5498_v47  ;;  %5229 = vmatprep.subr.bf16.mxu1 %v5228_v2  ;;  %v5508_v25 = vpack.c.bf16 %v2193_v16, %v2185_v50  ;;  %v2217_v2 = vld [vmem:[#allocation3 + $0x1bb8] sm:$0xff]  ;;  %v5248_v23 = vpack.c.bf16 %v2239_v8, %v2231_v30 }
 0x354   : > { %3582 = vmatmul.mubr.f32.gmra.mrb[34].mxu1 %v6424_v46  ;;  %5501 = vmatprep.subr.bf16.mxu0 %v5500_v56 }
 0x355   : > { %4027 = vmatmul.mubr.f32.gmra.mrb[30].mxu0 %v6424_v46  ;;  %3652 = vmatprep.mubr.f32.mxu1 %v6436_v44  ;;  %v2207_v46 = vld [vmem:[#allocation3 + $0x1b68] sm:$0xff] }
 0x356   : > { %5231 = vmatpush1.bf16.msra.mxu1 %v5230_v1  ;;  %4097 = vmatprep.mubr.f32.mxu0 %v6436_v44  ;;  %v5240_v37 = vpack.c.bf16 %v2207_v46, %v2199_v27  ;;  %v2222_v1 = vld [vmem:[#allocation3 + $0x1be0] sm:$0xff]  ;;  %v5520_v27 = vpack.c.bf16 %v2241_v61, %v2233_v15  ;;  %v2240_v46 = vld [vmem:[#allocation3 + $0x1c70] sm:$0xff] }
 0x357   : > { %5503 = vmatpush1.bf16.msra.mxu0 %v5502_v3  ;;  %5233 = vmatprep.subr.bf16.mxu1 %v5232_v53  ;;  %v2216_v3 = vld [vmem:[#allocation3 + $0x1bb0] sm:$0xff]  ;;  %v5516_v53 = vpack.c.bf16 %v2225_v40, %v2217_v2  ;;  %v5522_v43 = vpack.c.bf16 %v2240_v46, %v2232_v26  ;;  %v5252_v2 = vpack.c.bf16 %v2255_v7, %v2247_v33  ;;  %v2246_v40 = vld [vmem:[#allocation3 + $0x1ca0] sm:$0xff]  ;;  %v2287_v26 = vld [vmem:[#allocation3 + $0x1de8] sm:$0xff] }
 0x358   : > { %5505 = vmatprep.subr.bf16.mxu0 %v5504_v9  ;;  %v5518_v58 = vpack.c.bf16 %v2224_v54, %v2216_v3  ;;  %v2271_v3 = vld [vmem:[#allocation3 + $0x1d68] sm:$0xff]  ;;  %v2273_v54 = vld [vmem:[#allocation3 + $0x1d78] sm:$0xff]  ;;  %v2262_v61 = vld [vmem:[#allocation3 + $0x1d20] sm:$0xff] }
 0x359   : > { %v6574_v29 = vpop.f32.mrb[20].mxu1  ;;  %v6576_v18 = vpop.f32.mrb[16].mxu0  ;;  %v2289_v46 = vld [vmem:[#allocation3 + $0x1df8] sm:$0xff] }
 0x35a   : > { %5235 = vmatpush1.bf16.msra.mxu1 %v5234_v48  ;;  %v4211_v44 = vmax.f32 %v6574_v29, %v6576_v18  ;;  %v6580_v34 = vpop.f32.mrb[21].mxu1  ;;  %v6582_v35 = vpop.f32.mrb[17].mxu0 }
 0x35b   : > { %5507 = vmatpush1.bf16.msra.mxu0 %v5506_v12  ;;  %v4212_v62 = vmax.f32 %v6580_v34, %v6582_v35  ;;  %5237 = vmatprep.subr.bf16.mxu1 %v5236_v60  ;;  %v5246_v12 = vpack.c.bf16 %v2222_v1, %v2214_v0  ;;  %v2256_v0 = vld [vmem:[#allocation3 + $0x1cf0] sm:$0xff]  ;;  %v2263_v1 = vld [vmem:[#allocation3 + $0x1d28] sm:$0xff] }
 0x35c   : > { %5509 = vmatprep.subr.bf16.mxu0 %v5508_v25  ;;  %v2238_v25 = vld [vmem:[#allocation3 + $0x1c60] sm:$0xff]  ;;  %v5256_v15 = vpack.c.bf16 %v2271_v3, %v2263_v1 }
 0x35d   : > { %v6586_v24 = vpop.f32.mrb[22].mxu1  ;;  %v6588_v47 = vpop.f32.mrb[18].mxu0  ;;  %v5250_v42 = vpack.c.bf16 %v2238_v25, %v2230_v6  ;;  %v2272_v6 = vld [vmem:[#allocation3 + $0x1d70] sm:$0xff]  ;;  %v2279_v25 = vld [vmem:[#allocation3 + $0x1da8] sm:$0xff] }
 0x35e   : > { %5239 = vmatpush1.bf16.msra.mxu1 %v5238_v28  ;;  %v4213_v55 = vmax.f32 %v6586_v24, %v6588_v47  ;;  %v6592_v49 = vpop.f32.mrb[23].mxu1  ;;  %v6594_v56 = vpop.f32.mrb[19].mxu0 }
 0x35f   : > { %5511 = vmatpush1.bf16.msra.mxu0 %v5510_v63  ;;  %v4214_v20 = vmax.f32 %v6592_v49, %v6594_v56  ;;  %5241 = vmatprep.subr.bf16.mxu1 %v5240_v37  ;;  %v2249_v37 = vld [vmem:[#allocation3 + $0x1cb8] sm:$0xff] }
 0x360   : > { %5513 = vmatprep.subr.bf16.mxu0 %v5512_v41 }
 0x361   : > { %v6598_v9 = vpop.f32.mrb[24].mxu1  ;;  %v6600_v32 = vpop.f32.mrb[20].mxu0 }
 0x362   : > { %5243 = vmatpush1.bf16.msra.mxu1 %v5242_v11  ;;  %v4215_v50 = vmax.f32 %v6598_v9, %v6600_v32  ;;  %v6604_v16 = vpop.f32.mrb[25].mxu1  ;;  %v6606_v48 = vpop.f32.mrb[21].mxu0  ;;  %v2254_v11 = vld [vmem:[#allocation3 + $0x1ce0] sm:$0xff] }
 0x363   : > { %5515 = vmatpush1.bf16.msra.mxu0 %v5514_v13  ;;  %v4216_v60 = vmax.f32 %v6604_v16, %v6606_v48  ;;  %5245 = vmatprep.subr.bf16.mxu1 %v5244_v19  ;;  %v2248_v13 = vld [vmem:[#allocation3 + $0x1cb0] sm:$0xff]  ;;  %v5524_v19 = vpack.c.bf16 %v2257_v21, %v2249_v37  ;;  %v5254_v30 = vpack.c.bf16 %v2254_v11, %v2246_v40  ;;  %v2278_v21 = vld [vmem:[#allocation3 + $0x1da0] sm:$0xff]  ;;  %v2295_v11 = vld [vmem:[#allocation3 + $0x1e28] sm:$0xff] }
 0x364   : > { %5517 = vmatprep.subr.bf16.mxu0 %v5516_v53  ;;  %v2265_v53 = vld [vmem:[#allocation3 + $0x1d38] sm:$0xff]  ;;  %v5526_v8 = vpack.c.bf16 %v2256_v0, %v2248_v13  ;;  %v5260_v37 = vpack.c.bf16 %v2287_v26, %v2279_v25  ;;  %v2288_v40 = vld [vmem:[#allocation3 + $0x1df0] sm:$0xff]  ;;  %v2303_v13 = vld [vmem:[#allocation3 + $0x1e68] sm:$0xff] }
 0x365   : > { %v6610_v28 = vpop.f32.mrb[26].mxu1  ;;  %v6612_v63 = vpop.f32.mrb[22].mxu0  ;;  %v2305_v0 = vld [vmem:[#allocation3 + $0x1e78] sm:$0xff] }
 0x366   : > { %5247 = vmatpush1.bf16.msra.mxu1 %v5246_v12  ;;  %v4217_v38 = vmax.f32 %v6610_v28, %v6612_v63  ;;  %v6616_v51 = vpop.f32.mrb[27].mxu1  ;;  %v6618_v41 = vpop.f32.mrb[23].mxu0  ;;  %v2270_v12 = vld [vmem:[#allocation3 + $0x1d60] sm:$0xff] }
 0x367   : > { %5519 = vmatpush1.bf16.msra.mxu0 %v5518_v58  ;;  %v4218_v17 = vmax.f32 %v6616_v51, %v6618_v41  ;;  %5249 = vmatprep.subr.bf16.mxu1 %v5248_v23  ;;  %v2264_v58 = vld [vmem:[#allocation3 + $0x1d30] sm:$0xff]  ;;  %v5528_v23 = vpack.c.bf16 %v2273_v54, %v2265_v53  ;;  %v5258_v33 = vpack.c.bf16 %v2270_v12, %v2262_v61  ;;  %v2294_v54 = vld [vmem:[#allocation3 + $0x1e20] sm:$0xff]  ;;  %v2311_v12 = vld [vmem:[#allocation3 + $0x1ea8] sm:$0xff] }
 0x368   : > { %5521 = vmatprep.subr.bf16.mxu0 %v5520_v27  ;;  %v2281_v27 = vld [vmem:[#allocation3 + $0x1db8] sm:$0xff]  ;;  %v5530_v7 = vpack.c.bf16 %v2272_v6, %v2264_v58  ;;  %v5264_v53 = vpack.c.bf16 %v2303_v13, %v2295_v11  ;;  %v2304_v61 = vld [vmem:[#allocation3 + $0x1e70] sm:$0xff]  ;;  %v2319_v58 = vld [vmem:[#allocation3 + $0x1ee8] sm:$0xff] }
 0x369   : > { %v2321_v6 = vld [vmem:[#allocation3 + $0x1ef8] sm:$0xff] }
 0x36a   : > { %5251 = vmatpush1.bf16.msra.mxu1 %v5250_v42  ;;  %v2286_v42 = vld [vmem:[#allocation3 + $0x1de0] sm:$0xff] }
 0x36b   : > { %5523 = vmatpush1.bf16.msra.mxu0 %v5522_v43  ;;  %5253 = vmatprep.subr.bf16.mxu1 %v5252_v2  ;;  %v2280_v43 = vld [vmem:[#allocation3 + $0x1db0] sm:$0xff]  ;;  %v5532_v2 = vpack.c.bf16 %v2289_v46, %v2281_v27  ;;  %v5262_v1 = vpack.c.bf16 %v2286_v42, %v2278_v21  ;;  %v5268_v27 = vpack.c.bf16 %v2319_v58, %v2311_v12  ;;  %v2310_v46 = vld [vmem:[#allocation3 + $0x1ea0] sm:$0xff]  ;;  %v2327_v42 = vld [vmem:[#allocation3 + $0x1f28] sm:$0xff] }
 0x36c   : > { %5525 = vmatprep.subr.bf16.mxu0 %v5524_v19  ;;  %v2297_v19 = vld [vmem:[#allocation3 + $0x1e38] sm:$0xff]  ;;  %v5534_v3 = vpack.c.bf16 %v2288_v40, %v2280_v43  ;;  %v2320_v21 = vld [vmem:[#allocation3 + $0x1ef0] sm:$0xff]  ;;  %v2335_v43 = vld [vmem:[#allocation3 + $0x1f68] sm:$0xff] }
 0x36d   : > { %v2337_v40 = vld [vmem:[#allocation3 + $0x1f78] sm:$0xff] }
 0x36e   : > { %5255 = vmatpush1.bf16.msra.mxu1 %v5254_v30  ;;  %v2302_v30 = vld [vmem:[#allocation3 + $0x1e60] sm:$0xff] }
 0x36f   : > { %5527 = vmatpush1.bf16.msra.mxu0 %v5526_v8  ;;  %5257 = vmatprep.subr.bf16.mxu1 %v5256_v15  ;;  %v2296_v8 = vld [vmem:[#allocation3 + $0x1e30] sm:$0xff]  ;;  %v5536_v15 = vpack.c.bf16 %v2305_v0, %v2297_v19  ;;  %v5266_v25 = vpack.c.bf16 %v2302_v30, %v2294_v54  ;;  %v5272_v19 = vpack.c.bf16 %v2335_v43, %v2327_v42  ;;  %v2326_v0 = vld [vmem:[#allocation3 + $0x1f20] sm:$0xff]  ;;  %v2343_v30 = vld [vmem:[#allocation3 + $0x1fa8] sm:$0xff] }
 0x370   : > { %5529 = vmatprep.subr.bf16.mxu0 %v5528_v23  ;;  %v2313_v23 = vld [vmem:[#allocation3 + $0x1eb8] sm:$0xff]  ;;  %v5538_v26 = vpack.c.bf16 %v2304_v61, %v2296_v8  ;;  %v2336_v54 = vld [vmem:[#allocation3 + $0x1f70] sm:$0xff]  ;;  %v2351_v8 = vld [vmem:[#allocation3 + $0x1fe8] sm:$0xff] }
 0x371   : > { %v2353_v61 = vld [vmem:[#allocation3 + $0x1ff8] sm:$0xff] }
 0x372   : > { %5259 = vmatpush1.bf16.msra.mxu1 %v5258_v33  ;;  %v2318_v33 = vld [vmem:[#allocation3 + $0x1ee0] sm:$0xff] }
 0x373   : > { %5531 = vmatpush1.bf16.msra.mxu0 %v5530_v7  ;;  %5261 = vmatprep.subr.bf16.mxu1 %v5260_v37  ;;  %v2312_v7 = vld [vmem:[#allocation3 + $0x1eb0] sm:$0xff]  ;;  %v5540_v37 = vpack.c.bf16 %v2321_v6, %v2313_v23  ;;  %v5270_v11 = vpack.c.bf16 %v2318_v33, %v2310_v46  ;;  %v5276_v23 = vpack.c.bf16 %v2351_v8, %v2343_v30  ;;  %v2342_v6 = vld [vmem:[#allocation3 + $0x1fa0] sm:$0xff]  ;;  %v2359_v33 = vld [vmem:[#allocation3 + $0x2028] sm:$0xff] }
 0x374   : > { %5533 = vmatprep.subr.bf16.mxu0 %v5532_v2  ;;  %v2329_v2 = vld [vmem:[#allocation3 + $0x1f38] sm:$0xff]  ;;  %v5542_v13 = vpack.c.bf16 %v2320_v21, %v2312_v7  ;;  %v2352_v46 = vld [vmem:[#allocation3 + $0x1ff0] sm:$0xff]  ;;  %v2367_v7 = vld [vmem:[#allocation3 + $0x2068] sm:$0xff] }
 0x375   : > { %v2369_v21 = vld [vmem:[#allocation3 + $0x2078] sm:$0xff] }
 0x376   : > { %5263 = vmatpush1.bf16.msra.mxu1 %v5262_v1  ;;  %v2334_v1 = vld [vmem:[#allocation3 + $0x1f60] sm:$0xff] }
 0x377   : > { %5535 = vmatpush1.bf16.msra.mxu0 %v5534_v3  ;;  %5265 = vmatprep.subr.bf16.mxu1 %v5264_v53  ;;  %v2328_v3 = vld [vmem:[#allocation3 + $0x1f30] sm:$0xff]  ;;  %v5544_v53 = vpack.c.bf16 %v2337_v40, %v2329_v2  ;;  %v5274_v12 = vpack.c.bf16 %v2334_v1, %v2326_v0  ;;  %v5280_v2 = vpack.c.bf16 %v2367_v7, %v2359_v33  ;;  %v2375_v1 = vld [vmem:[#allocation3 + $0x20a8] sm:$0xff] }
 0x378   : > { %5537 = vmatprep.subr.bf16.mxu0 %v5536_v15  ;;  %v2345_v15 = vld [vmem:[#allocation3 + $0x1fb8] sm:$0xff]  ;;  %v5546_v58 = vpack.c.bf16 %v2336_v54, %v2328_v3  ;;  %v2368_v0 = vld [vmem:[#allocation3 + $0x2070] sm:$0xff]  ;;  %v2383_v3 = vld [vmem:[#allocation3 + $0x20e8] sm:$0xff] }
 0x379   : > { %v2385_v54 = vld [vmem:[#allocation3 + $0x20f8] sm:$0xff] }
 0x37a   : > { %5267 = vmatpush1.bf16.msra.mxu1 %v5266_v25  ;;  %v2350_v25 = vld [vmem:[#allocation3 + $0x1fe0] sm:$0xff] }
 0x37b   : > { %5539 = vmatpush1.bf16.msra.mxu0 %v5538_v26  ;;  %5269 = vmatprep.subr.bf16.mxu1 %v5268_v27  ;;  %v2344_v26 = vld [vmem:[#allocation3 + $0x1fb0] sm:$0xff]  ;;  %v5548_v27 = vpack.c.bf16 %v2353_v61, %v2345_v15  ;;  %v5278_v42 = vpack.c.bf16 %v2350_v25, %v2342_v6  ;;  %v5284_v15 = vpack.c.bf16 %v2383_v3, %v2375_v1  ;;  %v2374_v61 = vld [vmem:[#allocation3 + $0x20a0] sm:$0xff]  ;;  %v2391_v25 = vld [vmem:[#allocation3 + $0x2128] sm:$0xff] }
 0x37c   : > { %5541 = vmatprep.subr.bf16.mxu0 %v5540_v37  ;;  %v2361_v37 = vld [vmem:[#allocation3 + $0x2038] sm:$0xff]  ;;  %v5550_v43 = vpack.c.bf16 %v2352_v46, %v2344_v26  ;;  %v2384_v6 = vld [vmem:[#allocation3 + $0x20f0] sm:$0xff]  ;;  %v2399_v26 = vld [vmem:[#allocation3 + $0x2168] sm:$0xff] }
 0x37d   : > { %v5552_v40 = vpack.c.bf16 %v2369_v21, %v2361_v37  ;;  %v2401_v46 = vld [vmem:[#allocation3 + $0x2178] sm:$0xff]  ;;  %v5288_v37 = vpack.c.bf16 %v2399_v26, %v2391_v25  ;;  %v2390_v21 = vld [vmem:[#allocation3 + $0x2120] sm:$0xff] }
 0x37e   : > { %5271 = vmatpush1.bf16.msra.mxu1 %v5270_v11  ;;  %v2358_v11 = vld [vmem:[#allocation3 + $0x2020] sm:$0xff] }
 0x37f   : > { %5543 = vmatpush1.bf16.msra.mxu0 %v5542_v13  ;;  %5273 = vmatprep.subr.bf16.mxu1 %v5272_v19  ;;  %v2366_v13 = vld [vmem:[#allocation3 + $0x2060] sm:$0xff]  ;;  %v2360_v19 = vld [vmem:[#allocation3 + $0x2030] sm:$0xff] }
 0x380   : > { %5545 = vmatprep.subr.bf16.mxu0 %v5544_v53  ;;  %v2377_v53 = vld [vmem:[#allocation3 + $0x20b8] sm:$0xff]  ;;  %v5282_v30 = vpack.c.bf16 %v2366_v13, %v2358_v11  ;;  %v5554_v8 = vpack.c.bf16 %v2368_v0, %v2360_v19  ;;  %v2415_v11 = vld [vmem:[#allocation3 + $0x21e8] sm:$0xff]  ;;  %v2406_v3 = vld [vmem:[#allocation3 + $0x21a0] sm:$0xff] }
 0x381   : > { %v2417_v13 = vld [vmem:[#allocation3 + $0x21f8] sm:$0xff] }
 0x382   : > { %5275 = vmatpush1.bf16.msra.mxu1 %v5274_v12  ;;  %v2382_v12 = vld [vmem:[#allocation3 + $0x20e0] sm:$0xff] }
 0x383   : > { %5547 = vmatpush1.bf16.msra.mxu0 %v5546_v58  ;;  %5277 = vmatprep.subr.bf16.mxu1 %v5276_v23  ;;  %v2376_v58 = vld [vmem:[#allocation3 + $0x20b0] sm:$0xff]  ;;  %v5556_v23 = vpack.c.bf16 %v2385_v54, %v2377_v53  ;;  %v5286_v33 = vpack.c.bf16 %v2382_v12, %v2374_v61  ;;  %v2414_v53 = vld [vmem:[#allocation3 + $0x21e0] sm:$0xff] }
 0x384   : > { %5549 = vmatprep.subr.bf16.mxu0 %v5548_v27  ;;  %v2393_v27 = vld [vmem:[#allocation3 + $0x2138] sm:$0xff]  ;;  %v5558_v7 = vpack.c.bf16 %v2384_v6, %v2376_v58 }
 0x386   : > { %5279 = vmatpush1.bf16.msra.mxu1 %v5278_v42  ;;  %v2398_v42 = vld [vmem:[#allocation3 + $0x2160] sm:$0xff] }
 0x387   : > { %5551 = vmatpush1.bf16.msra.mxu0 %v5550_v43  ;;  %5281 = vmatprep.subr.bf16.mxu1 %v5280_v2  ;;  %v2392_v43 = vld [vmem:[#allocation3 + $0x2130] sm:$0xff]  ;;  %v5560_v2 = vpack.c.bf16 %v2401_v46, %v2393_v27  ;;  %v5290_v19 = vpack.c.bf16 %v2398_v42, %v2390_v21 }
 0x388   : > { %5553 = vmatprep.subr.bf16.mxu0 %v5552_v40  ;;  %v2407_v40 = vld [vmem:[#allocation3 + $0x21a8] sm:$0xff] }
 0x389   : > { %3653 = vmatmul.mubr.f32.vlgmr.msra.gmra.mrb[28].mxu1 %v6434_v39  ;;  %v5292_v1 = vpack.c.bf16 %v2415_v11, %v2407_v40 }
 0x38a   : > { %4098 = vmatmul.mubr.f32.vlgmr.msra.gmra.mrb[24].mxu0 %v6434_v39  ;;  %3658 = vmatprep.mubr.f32.mxu1 %v6444_v10  ;;  %v2400_v39 = vld [vmem:[#allocation3 + $0x2170] sm:$0xff] }
 0x38b   : > { %5283 = vmatpush1.bf16.msra.mxu1 %v5282_v30  ;;  %4103 = vmatprep.mubr.f32.mxu0 %v6444_v10  ;;  %v2409_v10 = vld [vmem:[#allocation3 + $0x21b8] sm:$0xff]  ;;  %v5562_v0 = vpack.c.bf16 %v2400_v39, %v2392_v43  ;;  %v2408_v30 = vld [vmem:[#allocation3 + $0x21b0] sm:$0xff] }
 0x38c   : > { %5555 = vmatpush1.bf16.msra.mxu0 %v5554_v8  ;;  %5285 = vmatprep.subr.bf16.mxu1 %v5284_v15  ;;  %v5564_v54 = vpack.c.bf16 %v2417_v13, %v2409_v10 }
 0x38d   : > { %3659 = vmatmul.mubr.f32.gmra.mrb[30].mxu1 %v6442_v4  ;;  %5557 = vmatprep.subr.bf16.mxu0 %v5556_v23 }
 0x38e   : > { %4104 = vmatmul.mubr.f32.gmra.mrb[26].mxu0 %v6442_v4  ;;  %3664 = vmatprep.mubr.f32.mxu1 %v6452_v36  ;;  %v2416_v4 = vld [vmem:[#allocation3 + $0x21f0] sm:$0xff] }
 0x38f   : > { %5287 = vmatpush1.bf16.msra.mxu1 %v5286_v33  ;;  %4109 = vmatprep.mubr.f32.mxu0 %v6452_v36  ;;  %v5294_v36 = vpack.c.bf16 %v2414_v53, %v2406_v3  ;;  %v5566_v8 = vpack.c.bf16 %v2416_v4, %v2408_v30 }
 0x390   : > { %5559 = vmatpush1.bf16.msra.mxu0 %v5558_v7  ;;  %5289 = vmatprep.subr.bf16.mxu1 %v5288_v37 }
 0x391   : > { %3665 = vmatmul.mubr.f32.gmra.mrb[32].mxu1 %v6450_v31  ;;  %5561 = vmatprep.subr.bf16.mxu0 %v5560_v2 }
 0x392   : > { %4110 = vmatmul.mubr.f32.gmra.mrb[28].mxu0 %v6450_v31  ;;  %3670 = vmatprep.mubr.f32.mxu1 %v6456_v5 }
 0x393   : > { %5291 = vmatpush1.bf16.msra.mxu1 %v5290_v19  ;;  %4115 = vmatprep.mubr.f32.mxu0 %v6456_v5 }
 0x394   : > { %5563 = vmatpush1.bf16.msra.mxu0 %v5562_v0  ;;  %5293 = vmatprep.subr.bf16.mxu1 %v5292_v1 }
 0x395   : > { %3671 = vmatmul.mubr.f32.gmra.mrb[34].mxu1 %v6454_v59  ;;  %5565 = vmatprep.subr.bf16.mxu0 %v5564_v54 }
 0x396   : > { %4116 = vmatmul.mubr.f32.gmra.mrb[30].mxu0 %v6454_v59  ;;  %3741 = vmatprep.mubr.f32.mxu1 %v5826_v52 }
 0x397   : > { %5295 = vmatpush1.bf16.msra.mxu1 %v5294_v36  ;;  %4186 = vmatprep.mubr.f32.mxu0 %v5826_v52 }
 0x398   : > { %5567 = vmatpush1.bf16.msra.mxu0 %v5566_v8 }
 0x39a   : > { %4397 = vmatmul.mubr.msk.f32.vlgmr.msra.gmra.mrb[28].mxu1 %vm2418_vm5, %v6440_v57 }
 0x39b   : > { %4401 = vmatmul.mubr.msk.f32.vlgmr.msra.gmra.mrb[24].mxu0 %vm2418_vm5, %v6440_v57  ;;  %3747 = vmatprep.mubr.f32.mxu1 %v5826_v52 }
 0x39c   : > { %4192 = vmatprep.mubr.f32.mxu0 %v5826_v52 }
 0x39e   : > { %4398 = vmatmul.mubr.msk.f32.gmra.mrb[30].mxu1 %vm2418_vm5, %v6438_v45  ;;  %v4242_v61 = vpop.permute.xlu1 %4241 }
 0x39f   : > { %4402 = vmatmul.mubr.msk.f32.gmra.mrb[26].mxu0 %vm2418_vm5, %v6438_v45  ;;  %3753 = vmatprep.mubr.f32.mxu1 %v5826_v52 }
 0x3a0   : > { %4198 = vmatprep.mubr.f32.mxu0 %v5826_v52 }
 0x3a2   : > { %4399 = vmatmul.mubr.msk.f32.gmra.mrb[32].mxu1 %vm2418_vm5, %v6448_v22  ;;  %v4252_v42 = vpop.permute.xlu1 %4251 }
 0x3a3   : > { %4403 = vmatmul.mubr.msk.f32.gmra.mrb[28].mxu0 %vm2418_vm5, %v6448_v22  ;;  %3759 = vmatprep.mubr.f32.mxu1 %v5826_v52 }
 0x3a4   : > { %4204 = vmatprep.mubr.f32.mxu0 %v5826_v52 }
 0x3a6   : > { %4400 = vmatmul.mubr.msk.f32.gmra.mrb[34].mxu1 %vm2418_vm5, %v6446_v14  ;;  %v4257_v48 = vpop.permute.xlu1 %4256 }
 0x3a7   : > { %4404 = vmatmul.mubr.msk.f32.gmra.mrb[30].mxu0 %vm2418_vm5, %v6446_v14 }
 0x46d   : > { %v3743_v45 = vpop.f32.mrb[28].mxu1 }
 0x46e   : > { %v4188_v57 = vpop.f32.mrb[24].mxu0  ;;  %v3745_v31 = vpop.f32.mrb[29].mxu1 }
 0x46f   : > { %v4219_v59 = vmax.f32 %v3743_v45, %v4188_v57  ;;  %v4190_v5 = vpop.f32.mrb[25].mxu0 }
 0x470   : > { %v4220_v15 = vmax.f32 %v3745_v31, %v4190_v5 }
 0x471   : > { %v4227_v22 = vmax.f32 %v4211_v44, %v4219_v59  ;;  %v3749_v12 = vpop.f32.mrb[30].mxu1  ;;  %v4247_v44 = vpop.permute.xlu0 %4246 }
 0x472   : > { %v4228_v52 = vmax.f32 %v4212_v62, %v4220_v15  ;;  %v4194_v58 = vpop.f32.mrb[26].mxu0  ;;  %v3751_v23 = vpop.f32.mrb[31].mxu1 }
 0x473   : > { %v4259_v14 = vadd.f32 %v4242_v61, %v4227_v22  ;;  %v4221_v6 = vmax.f32 %v3749_v12, %v4194_v58  ;;  %v4196_v25 = vpop.f32.mrb[27].mxu0 }
 0x474   : > { %v4260_v29 = vadd.f32 %v4242_v61, %v4228_v52  ;;  %v4222_v18 = vmax.f32 %v3751_v23, %v4196_v25 }
 0x475   : > { %v4267_v26 = vmax.f32 %v4259_v14, 0.0  ;;  %v4229_v34 = vmax.f32 %v4213_v55, %v4221_v6  ;;  %v3755_v35 = vpop.f32.mrb[32].mxu1 }
 0x476   : > { %v4268_v62 = vmax.f32 %v4260_v29, 0.0  ;;  %v4230_v27 = vmax.f32 %v4214_v20, %v4222_v18  ;;  %v4200_v46 = vpop.f32.mrb[28].mxu0  ;;  %v3757_v33 = vpop.f32.mrb[33].mxu1 }
 0x477   : > { %4275 = vst [vmem:[%s6670_s14] sm:$0xff] %v4267_v26  ;;  %v4261_v7 = vadd.f32 %v4247_v44, %v4229_v34  ;;  %v4223_v37 = vmax.f32 %v3755_v35, %v4200_v46  ;;  %v4202_v21 = vpop.f32.mrb[29].mxu0 }
 0x478   : > { %4276 = vst [vmem:[%s6670_s14 + $0x8] sm:$0xff] %v4268_v62  ;;  %v4262_v43 = vadd.f32 %v4247_v44, %v4230_v27  ;;  %v4224_v2 = vmax.f32 %v3757_v33, %v4202_v21 }
 0x479   : > { %v4269_v24 = vmax.f32 %v4261_v7, 0.0  ;;  %v4231_v47 = vmax.f32 %v4215_v50, %v4223_v37  ;;  %v3761_v55 = vpop.f32.mrb[34].mxu1 }
 0x47a   : > { %v4270_v49 = vmax.f32 %v4262_v43, 0.0  ;;  %v4232_v56 = vmax.f32 %v4216_v60, %v4224_v2  ;;  %v4206_v20 = vpop.f32.mrb[30].mxu0  ;;  %v3763_v39 = vpop.f32.mrb[35].mxu1 }
 0x47b   : > { %4277 = vst [vmem:[%s6670_s14 + $0x10] sm:$0xff] %v4269_v24  ;;  %v4263_v40 = vadd.f32 %v4252_v42, %v4231_v47  ;;  %v4225_v11 = vmax.f32 %v3761_v55, %v4206_v20  ;;  %v4208_v10 = vpop.f32.mrb[31].mxu0 }
 0x47c   : > { %4278 = vst [vmem:[%s6670_s14 + $0x18] sm:$0xff] %v4270_v49  ;;  %v4264_v13 = vadd.f32 %v4252_v42, %v4232_v56  ;;  %v4226_v9 = vmax.f32 %v3763_v39, %v4208_v10 }
 0x47d   : > { %v4271_v32 = vmax.f32 %v4263_v40, 0.0  ;;  %v4233_v50 = vmax.f32 %v4217_v38, %v4225_v11 }
 0x47e   : > { %v4272_v16 = vmax.f32 %v4264_v13, 0.0  ;;  %v4234_v60 = vmax.f32 %v4218_v17, %v4226_v9 }
 0x47f   : > { %4279 = vst [vmem:[%s6670_s14 + $0x20] sm:$0xff] %v4271_v32  ;;  %v4265_v19 = vadd.f32 %v4257_v48, %v4233_v50 }
 0x480   : > { %4280 = vst [vmem:[%s6670_s14 + $0x28] sm:$0xff] %v4272_v16  ;;  %v4266_v0 = vadd.f32 %v4257_v48, %v4234_v60 }
 0x481   : > { %v4273_v1 = vmax.f32 %v4265_v19, 0.0 }
 0x482   : > { %v4274_v3 = vmax.f32 %v4266_v0, 0.0 }
 0x483   : > { %4281 = vst [vmem:[%s6670_s14 + $0x30] sm:$0xff] %v4273_v1 }
 0x484   : > { %4282 = vst [vmem:[%s6670_s14 + $0x38] sm:$0xff] %v4274_v3 }
 0x485 PF: > { %s15_s15 = sadd.s32 1, %s5813_s15  }
 0x486   : > { %p12_p3 = scmp.ge.s32.totalorder %s15_s15, 4  }
 0x488   :  { %14 = sbr.rel (!%p12_p3) target bundleno = 1 (0x1), region = 71 }
 0x48f   :  { %4304 = vsyncpa [#allocation4], 1 }
 0x490   :  { %4306 = vsyncpa [#allocation4 + $0x1], 1 }

</bundles_post_ra>
